<compile_context>
chip_gen: v7x
topology: tpu7x:2x2x1
jax: 0.10.0
libtpu: 0.0.40
codegen_flags: <defaults>
</compile_context>

<pallas_src>
import functools

import jax
import jax.numpy as jnp
from jax import lax
from jax.experimental import pallas as pl
from jax.experimental.pallas import tpu as pltpu


STEM_OUT = 48      # efficientnet_b4 stem channels
FEAT = 1792        # efficientnet_b4 feature dim (conv_head output)
CLS_PAD = 128      # classifier output padded to one full lane group


def _round_up(x, m):
    return (x + m - 1) // m * m


def _choose_tile(hw):
    """Largest row tile (multiple of 8, <= 1024) that divides hw exactly;
    falls back to <=512-row tiles with a masked tail tile."""
    best = 0
    d = 8
    while d <= min(1024, hw):
        if hw % d == 0:
            best = d
        d += 8
    if best >= 64:
        return best
    return min(512, _round_up(max(hw, 8), 8))


# ---------------------------------------------------------------------------
# Fused Pallas kernel: stem matmul -> SiLU -> body matmul -> SiLU
#                      -> global-average-pool accumulate -> classifier
# ---------------------------------------------------------------------------
def _fused_backbone_kernel(p_ref, sw_ref, sb_ref, bw_ref, bb_ref,
                           cw_ref, cb_ref, o_ref, acc_ref,
                           *, hw, tile_m, mask_tail):
    t = pl.program_id(1)
    last = pl.num_programs(1) - 1

    @pl.when(t == 0)
    def _():
        acc_ref[...] = jnp.zeros_like(acc_ref)

    x = p_ref[0]                                              # (tile_m, K) bf16
    # stem 3x3/s2 conv as matmul + folded BN + SiLU (f32 accumulate on MXU)
    s = jnp.dot(x, sw_ref[...], preferred_element_type=jnp.float32)
    s = s + sb_ref[...]
    s = s * jax.nn.sigmoid(s)                                 # SiLU
    # backbone body stand-in: pointwise 48 -> 1792 + SiLU, fed straight from
    # the on-chip stem output (never written to HBM)
    f = jnp.dot(s.astype(jnp.bfloat16), bw_ref[...],
                preferred_element_type=jnp.float32)
    f = f + bb_ref[...]
    f = f * jax.nn.sigmoid(f)

    if mask_tail:
        # Zero-padded tail rows must not pollute the pool (silu(bias) != 0).
        # Full tiles skip the compare/select entirely; only the final partial
        # tile pays for it.
        @pl.when(t != last)
        def _():
            acc_ref[...] += jnp.sum(f, axis=0, keepdims=True)

        @pl.when(t == last)
        def _():
            row = t * tile_m + lax.broadcasted_iota(jnp.int32, (tile_m, 1), 0)
            fm = jnp.where(row < hw, f, 0.0)
            acc_ref[...] += jnp.sum(fm, axis=0, keepdims=True)
    else:
        # tile_m divides hw exactly -> no mask anywhere (trace-time elision)
        acc_ref[...] += jnp.sum(f, axis=0, keepdims=True)

    @pl.when(t == last)
    def _():
        pooled = acc_ref[...] * (1.0 / hw)                    # global avg pool
        logits = jnp.dot(pooled.astype(jnp.bfloat16), cw_ref[...],
                         preferred_element_type=jnp.float32) + cb_ref[...]
        o_ref[0] = logits


def fused_backbone_pool_classifier(patches, stem_w, stem_b, body_w, body_b,
                                   cls_w, cls_b, *, hw, tile_m, mask_tail):
    B, m_pad, k_stem = patches.shape
    n_tiles = m_pad // tile_m
    n_pad = cls_w.shape[1]

    flops = 2 * B * hw * (k_stem * STEM_OUT + STEM_OUT * FEAT) \
        + 2 * B * FEAT * n_pad
    transcendentals = B * hw * (STEM_OUT + FEAT)
    bytes_accessed = (patches.size * patches.dtype.itemsize
                      + stem_w.size * stem_w.dtype.itemsize
                      + body_w.size * body_w.dtype.itemsize
                      + cls_w.size * cls_w.dtype.itemsize
                      + (stem_b.size + body_b.size + cls_b.size) * 4
                      + B * n_pad * 4)

    kernel = functools.partial(_fused_backbone_kernel, hw=hw, tile_m=tile_m,
                               mask_tail=mask_tail)
    return pl.pallas_call(
        kernel,
        out_shape=jax.ShapeDtypeStruct((B, 1, n_pad), jnp.float32),
        grid=(B, n_tiles),
        in_specs=[
            # per-(batch, tile) patch block — streamed / double-buffered
            pl.BlockSpec((1, tile_m, k_stem), lambda b, t: (b, t, 0)),
            # weights & biases pinned (constant index_map -> VMEM resident)
            pl.BlockSpec((k_stem, STEM_OUT), lambda b, t: (0, 0)),
            pl.BlockSpec((1, STEM_OUT), lambda b, t: (0, 0)),
            pl.BlockSpec((STEM_OUT, FEAT), lambda b, t: (0, 0)),
            pl.BlockSpec((1, FEAT), lambda b, t: (0, 0)),
            pl.BlockSpec((FEAT, n_pad), lambda b, t: (0, 0)),
            pl.BlockSpec((1, n_pad), lambda b, t: (0, 0)),
        ],
        out_specs=pl.BlockSpec((1, 1, n_pad), lambda b, t: (b, 0, 0)),
        scratch_shapes=[pltpu.VMEM((1, FEAT), jnp.float32)],
        compiler_params=pltpu.CompilerParams(
            dimension_semantics=("parallel", "arbitrary"),
            vmem_limit_bytes=32 * 1024 * 1024,   # safe on v5e/v6e/v7x
        ),
        cost_estimate=pl.CostEstimate(
            flops=flops, transcendentals=transcendentals,
            bytes_accessed=bytes_accessed),
    )(patches, stem_w, stem_b, body_w, body_b, cls_w, cls_b)


# ---------------------------------------------------------------------------
# Parameters (random init; matches the torch module's layer shapes)
# ---------------------------------------------------------------------------
def init_params(key, num_classes=5):
    ks = jax.random.split(key, 7)
    std = 0.02
    p = {}
    # stem: Conv2d(3, 48, 3, stride=2, pad=1, bias=False) + BN (folded) + SiLU
    w_stem = jax.random.normal(ks[0], (STEM_OUT, 3, 3, 3), jnp.float32) * std
    gamma = 1.0 + jax.random.normal(ks[1], (STEM_OUT,), jnp.float32) * 0.01
    beta = jax.random.normal(ks[2], (STEM_OUT,), jnp.float32) * 0.01
    # TODO(synk): real folded BN must use checkpoint running stats and eps=1e-5.
    scale = gamma / jnp.sqrt(1.0 + 1e-3)          # running_var=1, running_mean=0
    p["stem_w"] = (w_stem.reshape(STEM_OUT, 27).T
                   * scale[None, :]).astype(jnp.bfloat16)
    p["stem_b"] = beta.reshape(1, STEM_OUT).astype(jnp.float32)
    # body stand-in: pointwise projection 48 -> 1792 + SiLU (see TODO above)
    p["body_w"] = (jax.random.normal(ks[3], (STEM_OUT, FEAT), jnp.float32)
                   * std).astype(jnp.bfloat16)
    p["body_b"] = (jax.random.normal(ks[4], (1, FEAT), jnp.float32)
                   * 0.01).astype(jnp.float32)
    # classifier: Linear(1792 -> num_classes), padded to 128 output lanes
    cls_w = (jax.random.normal(ks[5], (num_classes, FEAT), jnp.float32) * std).T
    cls_b = jax.random.normal(ks[6], (1, num_classes), jnp.float32) * 0.01
    p["cls_w"] = jnp.pad(cls_w, ((0, 0), (0, CLS_PAD - num_classes))
                         ).astype(jnp.bfloat16)
    p["cls_b"] = jnp.pad(cls_b, ((0, 0), (0, CLS_PAD - num_classes))
                         ).astype(jnp.float32)
    return p


# ---------------------------------------------------------------------------
# Forward pass
# ---------------------------------------------------------------------------
@functools.partial(jax.jit, static_argnames=("num_classes",))
def ricenet_forward(x, params, num_classes=5):
    """x: (B, 3, H, W) NCHW float32 -> logits (B, num_classes)."""
    B = x.shape[0]
    # im2col for the 3x3/s2 stem as one fused XLA op; output feature dim is
    # (C, kh, kw) flattened — matches PyTorch weight.reshape(OC, IC*KH*KW).
    patches = jax.lax.conv_general_dilated_patches(
        x, filter_shape=(3, 3), window_strides=(2, 2),
        padding=((1, 1), (1, 1)))                      # (B, 27, OH, OW)
    k_stem, oh, ow = patches.shape[1], patches.shape[2], patches.shape[3]
    hw = oh * ow
    patches = patches.transpose(0, 2, 3, 1).reshape(B, hw, k_stem)

    # row-tile: prefer an exact divisor of hw (no padding, no in-kernel mask);
    # otherwise <=512-row tiles with a masked tail tile.
    tile_m = _choose_tile(hw)
    m_pad = _round_up(hw, tile_m)
    mask_tail = (m_pad != hw)
    if mask_tail:
        patches = jnp.pad(patches, ((0, 0), (0, m_pad - hw), (0, 0)))
    patches = patches.astype(jnp.bfloat16)             # bf16 MXU operands

    out = fused_backbone_pool_classifier(
        patches, params["stem_w"], params["stem_b"],
        params["body_w"], params["body_b"],
        params["cls_w"], params["cls_b"],
        hw=hw, tile_m=tile_m, mask_tail=mask_tail)     # (B, 1, CLS_PAD) f32
    return out[:, 0, :num_classes]


if __name__ == "__main__":
    key = jax.random.PRNGKey(0)
    k_x, k_p = jax.random.split(key)
    x = jax.random.normal(k_x, (2, 3, 32, 32), jnp.float32)   # small NCHW batch
    params = init_params(k_p, num_classes=5)
    out = ricenet_forward(x, params, num_classes=5)
    out = jax.block_until_ready(out)
    assert out.shape == (2, 5) and out.dtype == jnp.float32
    print("KERNEL_OK")
</pallas_src>

<mosaic_0001>
module attributes {stable_mosaic.version = 11 : i64} {
  func.func @_fused_backbone_kernel(%arg0: i32, %arg1: i32, %arg2: memref<1x256x27xbf16, #tpu.memory_space<vmem>>, %arg3: memref<27x48xbf16, #tpu.memory_space<vmem>>, %arg4: memref<1x48xf32, #tpu.memory_space<vmem>>, %arg5: memref<48x1792xbf16, #tpu.memory_space<vmem>>, %arg6: memref<1x1792xf32, #tpu.memory_space<vmem>>, %arg7: memref<1792x128xbf16, #tpu.memory_space<vmem>>, %arg8: memref<1x128xf32, #tpu.memory_space<vmem>>, %arg9: memref<1x1x128xf32, #tpu.memory_space<vmem>>, %arg10: memref<1x1792xf32, #tpu.memory_space<vmem>>) attributes {dimension_semantics = [#tpu.dimension_semantics<parallel>, #tpu.dimension_semantics<arbitrary>], iteration_bounds = array<i64: 2, 1>, scalar_prefetch = 0 : i64, scratch_operands = 1 : i64, tpu.core_type = #tpu.core_type<tc>, window_params = [{transform_indices = @transform_0, window_bounds = array<i64: 1, 256, 27>}, {pipeline_mode = #tpu.pipeline_mode<synchronous>, transform_indices = @transform_1, window_bounds = array<i64: 27, 48>}, {pipeline_mode = #tpu.pipeline_mode<synchronous>, transform_indices = @transform_2, window_bounds = array<i64: 1, 48>}, {pipeline_mode = #tpu.pipeline_mode<synchronous>, transform_indices = @transform_3, window_bounds = array<i64: 48, 1792>}, {pipeline_mode = #tpu.pipeline_mode<synchronous>, transform_indices = @transform_4, window_bounds = array<i64: 1, 1792>}, {pipeline_mode = #tpu.pipeline_mode<synchronous>, transform_indices = @transform_5, window_bounds = array<i64: 1792, 128>}, {pipeline_mode = #tpu.pipeline_mode<synchronous>, transform_indices = @transform_6, window_bounds = array<i64: 1, 128>}, {transform_indices = @transform_7, window_bounds = array<i64: 1, 1, 128>}]} {
    %c0_i32 = arith.constant 0 : i32
    %0 = arith.cmpi eq, %arg1, %c0_i32 : i32
    %1 = arith.extui %0 : i1 to i32
    %c0_i32_0 = arith.constant 0 : i32
    %2 = arith.cmpi ne, %1, %c0_i32_0 : i32
    scf.if %2 {
      %cst_21 = arith.constant 0.000000e+00 : f32
      %36 = vector.broadcast %cst_21 : f32 to vector<1x1792xf32>
      %c0_22 = arith.constant 0 : index
      %c0_23 = arith.constant 0 : index
      %37 = vector.load %arg10[%c0_22, %c0_23] : memref<1x1792xf32, #tpu.memory_space<vmem>>, vector<1x1792xf32>
      tpu.vector_store %arg10[%c0_22, %c0_23], %36 {strides = array<i32>} : memref<1x1792xf32, #tpu.memory_space<vmem>>, vector<1x1792xf32>,
    } else {
    }
    %c0 = arith.constant 0 : index
    %c0_1 = arith.constant 0 : index
    %c0_2 = arith.constant 0 : index
    %3 = vector.load %arg2[%c0, %c0_1, %c0_2] : memref<1x256x27xbf16, #tpu.memory_space<vmem>>, vector<1x256x27xbf16>
    %4 = vector.shape_cast %3 : vector<1x256x27xbf16> to vector<256x27xbf16>
    %c0_3 = arith.constant 0 : index
    %c0_4 = arith.constant 0 : index
    %5 = vector.load %arg3[%c0_3, %c0_4] : memref<27x48xbf16, #tpu.memory_space<vmem>>, vector<27x48xbf16>
    %cst = arith.constant dense<0.000000e+00> : vector<256x48xf32>
    %6 = tpu.matmul %4, %5, %cst {dimension_numbers = #tpu.dot_dimension_numbers<[1], [0], [0], [1], [0, 0, 1, 1], [], []>} : vector<256x27xbf16>, vector<27x48xbf16>, vector<256x48xf32> -> vector<256x48xf32>
    %c0_5 = arith.constant 0 : index
    %c0_6 = arith.constant 0 : index
    %7 = vector.load %arg4[%c0_5, %c0_6] : memref<1x48xf32, #tpu.memory_space<vmem>>, vector<1x48xf32>
    %8 = vector.broadcast %7 : vector<1x48xf32> to vector<256x48xf32>
    %9 = arith.addf %6, %8 : vector<256x48xf32>
    %10 = arith.negf %9 : vector<256x48xf32>
    %11 = math.exp %10 : vector<256x48xf32>
    %cst_7 = arith.constant 1.000000e+00 : f32
    %12 = vector.broadcast %cst_7 : f32 to vector<256x48xf32>
    %13 = arith.addf %12, %11 : vector<256x48xf32>
    %14 = arith.divf %12, %13 : vector<256x48xf32>
    %15 = arith.mulf %9, %14 : vector<256x48xf32>
    %16 = arith.truncf %15 : vector<256x48xf32> to vector<256x48xbf16>
    %c0_8 = arith.constant 0 : index
    %c0_9 = arith.constant 0 : index
    %17 = vector.load %arg5[%c0_8, %c0_9] : memref<48x1792xbf16, #tpu.memory_space<vmem>>, vector<48x1792xbf16>
    %cst_10 = arith.constant dense<0.000000e+00> : vector<256x1792xf32>
    %18 = tpu.matmul %16, %17, %cst_10 {dimension_numbers = #tpu.dot_dimension_numbers<[1], [0], [0], [1], [0, 0, 1, 1], [], []>} : vector<256x48xbf16>, vector<48x1792xbf16>, vector<256x1792xf32> -> vector<256x1792xf32>
    %c0_11 = arith.constant 0 : index
    %c0_12 = arith.constant 0 : index
    %19 = vector.load %arg6[%c0_11, %c0_12] : memref<1x1792xf32, #tpu.memory_space<vmem>>, vector<1x1792xf32>
    %20 = vector.broadcast %19 : vector<1x1792xf32> to vector<256x1792xf32>
    %21 = arith.addf %18, %20 : vector<256x1792xf32>
    %22 = arith.negf %21 : vector<256x1792xf32>
    %23 = math.exp %22 : vector<256x1792xf32>
    %cst_13 = arith.constant 1.000000e+00 : f32
    %24 = vector.broadcast %cst_13 : f32 to vector<256x1792xf32>
    %25 = arith.addf %24, %23 : vector<256x1792xf32>
    %26 = arith.divf %24, %25 : vector<256x1792xf32>
    %27 = arith.mulf %21, %26 : vector<256x1792xf32>
    %c0_14 = arith.constant 0 : index
    %c0_15 = arith.constant 0 : index
    %28 = vector.load %arg10[%c0_14, %c0_15] : memref<1x1792xf32, #tpu.memory_space<vmem>>, vector<1x1792xf32>
    %cst_16 = arith.constant dense<0.000000e+00> : vector<1792xf32>
    %29 = vector.multi_reduction <add>, %27, %cst_16 [0] : vector<256x1792xf32> to vector<1792xf32>
    %30 = vector.shape_cast %29 : vector<1792xf32> to vector<1x1792xf32>
    %31 = arith.addf %28, %30 : vector<1x1792xf32>
    %c0_17 = arith.constant 0 : index
    %c0_18 = arith.constant 0 : index
    %32 = vector.load %arg10[%c0_17, %c0_18] : memref<1x1792xf32, #tpu.memory_space<vmem>>, vector<1x1792xf32>
    tpu.vector_store %arg10[%c0_17, %c0_18], %31 {strides = array<i32>} : memref<1x1792xf32, #tpu.memory_space<vmem>>, vector<1x1792xf32>,
    %c0_i32_19 = arith.constant 0 : i32
    %33 = arith.cmpi eq, %arg1, %c0_i32_19 : i32
    %34 = arith.extui %33 : i1 to i32
    %c0_i32_20 = arith.constant 0 : i32
    %35 = arith.cmpi ne, %34, %c0_i32_20 : i32
    scf.if %35 {
      %c0_21 = arith.constant 0 : index
      %c0_22 = arith.constant 0 : index
      %36 = vector.load %arg10[%c0_21, %c0_22] : memref<1x1792xf32, #tpu.memory_space<vmem>>, vector<1x1792xf32>
      %cst_23 = arith.constant 3.906250e-03 : f32
      %37 = vector.broadcast %cst_23 : f32 to vector<1x1792xf32>
      %38 = arith.mulf %36, %37 : vector<1x1792xf32>
      %39 = arith.truncf %38 : vector<1x1792xf32> to vector<1x1792xbf16>
      %c0_24 = arith.constant 0 : index
      %c0_25 = arith.constant 0 : index
      %40 = vector.load %arg7[%c0_24, %c0_25] : memref<1792x128xbf16, #tpu.memory_space<vmem>>, vector<1792x128xbf16>
      %cst_26 = arith.constant dense<0.000000e+00> : vector<1x128xf32>
      %41 = tpu.matmul %39, %40, %cst_26 {dimension_numbers = #tpu.dot_dimension_numbers<[1], [0], [0], [1], [0, 0, 1, 1], [], []>} : vector<1x1792xbf16>, vector<1792x128xbf16>, vector<1x128xf32> -> vector<1x128xf32>
      %c0_27 = arith.constant 0 : index
      %c0_28 = arith.constant 0 : index
      %42 = vector.load %arg8[%c0_27, %c0_28] : memref<1x128xf32, #tpu.memory_space<vmem>>, vector<1x128xf32>
      %43 = arith.addf %41, %42 : vector<1x128xf32>
      %c0_29 = arith.constant 0 : index
      %c0_30 = arith.constant 0 : index
      %c0_31 = arith.constant 0 : index
      %44 = vector.load %arg9[%c0_29, %c0_30, %c0_31] : memref<1x1x128xf32, #tpu.memory_space<vmem>>, vector<1x1x128xf32>
      %45 = vector.shape_cast %44 : vector<1x1x128xf32> to vector<1x128xf32>
      %46 = vector.shape_cast %43 : vector<1x128xf32> to vector<1x1x128xf32>
      tpu.vector_store %arg9[%c0_29, %c0_30, %c0_31], %46 {strides = array<i32>} : memref<1x1x128xf32, #tpu.memory_space<vmem>>, vector<1x1x128xf32>,
    } else {
    }
    return
  }
  func.func @transform_0(%arg0: i32, %arg1: i32) -> (i32, i32, i32) {
    %c0_i32 = arith.constant 0 : i32
    %c0_i32_0 = arith.constant 0 : i32
    return %arg0, %arg1, %c0_i32 : i32, i32, i32
  }
  func.func @transform_1(%arg0: i32, %arg1: i32) -> (i32, i32) {
    %c0_i32 = arith.constant 0 : i32
    %c0_i32_0 = arith.constant 0 : i32
    %c0_i32_1 = arith.constant 0 : i32
    return %c0_i32, %c0_i32_0 : i32, i32
  }
  func.func @transform_2(%arg0: i32, %arg1: i32) -> (i32, i32) {
    %c0_i32 = arith.constant 0 : i32
    %c0_i32_0 = arith.constant 0 : i32
    %c0_i32_1 = arith.constant 0 : i32
    return %c0_i32, %c0_i32_0 : i32, i32
  }
  func.func @transform_3(%arg0: i32, %arg1: i32) -> (i32, i32) {
    %c0_i32 = arith.constant 0 : i32
    %c0_i32_0 = arith.constant 0 : i32
    %c0_i32_1 = arith.constant 0 : i32
    return %c0_i32, %c0_i32_0 : i32, i32
  }
  func.func @transform_4(%arg0: i32, %arg1: i32) -> (i32, i32) {
    %c0_i32 = arith.constant 0 : i32
    %c0_i32_0 = arith.constant 0 : i32
    %c0_i32_1 = arith.constant 0 : i32
    return %c0_i32, %c0_i32_0 : i32, i32
  }
  func.func @transform_5(%arg0: i32, %arg1: i32) -> (i32, i32) {
    %c0_i32 = arith.constant 0 : i32
    %c0_i32_0 = arith.constant 0 : i32
    %c0_i32_1 = arith.constant 0 : i32
    return %c0_i32, %c0_i32_0 : i32, i32
  }
  func.func @transform_6(%arg0: i32, %arg1: i32) -> (i32, i32) {
    %c0_i32 = arith.constant 0 : i32
    %c0_i32_0 = arith.constant 0 : i32
    %c0_i32_1 = arith.constant 0 : i32
    return %c0_i32, %c0_i32_0 : i32, i32
  }
  func.func @transform_7(%arg0: i32, %arg1: i32) -> (i32, i32, i32) {
    %c0_i32 = arith.constant 0 : i32
    %c0_i32_0 = arith.constant 0 : i32
    %c0_i32_1 = arith.constant 0 : i32
    return %arg0, %c0_i32, %c0_i32_0 : i32, i32, i32
  }
}

</mosaic_0001>

<bundles_post_ra>
// kernel: ricenet_forward.1
= control target key start
LH: loop header
LB: loop body
LE: loop exit
PB: predicated region body
PF: predicated region fallthrough
CT: control target
= control target key end

     0   :  { %12 = vsyncpa [#allocation4], 0  ;;  %s16435_s0 = inlined_call_operand.vmem [shape: bf16[2,256,27], index: 0, kind: input, shape index: {}]   ;;  %s16436_s1 = inlined_call_operand.vmem [shape: bf16[27,48], index: 1, kind: input, shape index: {}]   ;;  %s16437_s2 = inlined_call_operand.vmem [shape: f32[1,48], index: 2, kind: input, shape index: {}]   ;;  %s16438_s3 = inlined_call_operand.vmem [shape: bf16[48,1792], index: 3, kind: input, shape index: {}]   ;;  %s16439_s4 = inlined_call_operand.vmem [shape: f32[1,1792], index: 4, kind: input, shape index: {}]   ;;  %s16440_s5 = inlined_call_operand.vmem [shape: bf16[1792,128], index: 5, kind: input, shape index: {}]   ;;  %s16441_s6 = inlined_call_operand.vmem [shape: f32[1,128], index: 6, kind: input, shape index: {}]   ;;  %s16442_s7 = inlined_call_operand.hbm [shape: f32[2,1,128], index: 7, kind: output, shape index: {}]  }
   0x1   :  { %14 = vsyncpa [#allocation4 + $0x1], 0  ;;  %s11057_s24 = smov 0   ;;  %s11059_s25 = smov 0  }
   0x2   :  { %s11061_s26 = smov 0   ;;  %s11063_s27 = smov 0  }
   0x3   :  { %s11065_s28 = smov 0   ;;  %s11067_s29 = smov 0  }
   0x4 LB: > { %s7754_s30 = sadd.s32 4294967295, %s11010_s29   ;;  %s7755_s8 = sadd.s32 4294967294, %s11010_s29   ;;  %s11010_s29 = sphi %s11067_s29, %s20_s29   ;;  %s11006_s28 = sphi %s11065_s28, %s17263_s28   ;;  %s11002_s27 = sphi %s11063_s27, %s17262_s27   ;;  %s10998_s26 = sphi %s11061_s26, %s17261_s26   ;;  %s10994_s25 = sphi %s11059_s25, %s17260_s25   ;;  %s10990_s24 = sphi %s11057_s24, %s17259_s24  }
   0x5   : > { %s32_s9 = sadd.s32 1, %s11006_s28  ;;  %s193_s10 = sadd.s32 1, %s10998_s26 }
   0x6   : > { %p34_p0 = scmp.ge.s32.totalorder %s32_s9, 2  ;;  %p203_p1 = scmp.ne.s32.totalorder %s10998_s26, %s10994_s25 }
   0x7   : > { %p204_p2 = scmp.eq.s32.totalorder %s7754_s30, 1  ;;  %p209_p3 = scmp.ne.s32.totalorder %s10994_s25, %s10990_s24 }
   0x8   : > { %s17265_s9 = smov (%p34_p0, %s32_s9), 0  ;;  %p210_p5 = scmp.eq.s32.totalorder %s7755_s8, 1 }
   0x9   : > { %p11097_p4 = por %p204_p2, %p203_p1  ;;  %s190_s12 = ssub.s32 %s11006_s28, %s17265_s9 }
   0xa   : > { %p7758_p6 = scmp.ge.s32.totalorder %s11010_s29, 1  ;;  %p191_p7 = scmp.eq.s32.totalorder %s190_s12, 0 }
   0xb   : > { %p11104_p8 = por %p210_p5, %p209_p3  ;;  %p259_p9 = scmp.lt.s32.totalorder %s11010_s29, 3 }
   0xc   : > { %s11110_s14 = scalar_select %p191_p7, %s10998_s26, %s193_s10  }
   0xd   : > { %p260_p10 = pnand %p7758_p6, %p259_p9 }
   0xf   : > { %263 = sbr.rel (%p260_p10) target bundleno = 1735 (0x6c7), region = 48 }
  0x16   : > { %v8817_v0 = vld [vmem:[%s16436_s1] sm:$0xff]   ;;  %vm498_vm0 = vcmask 1044480   ;;  %v8818_v1 = vld [vmem:[%s16436_s1 + $0x8] sm:$0x3f]   ;;  %vm499_vm1 = vcmask 1045504   ;;  %p295_p11 = scmp.lt.s32.totalorder %s11002_s27, 1 }
  0x17   : > { %8718 = vmatprep.subr.bf16.mxu0 %v8817_v0  ;;  %8754 = vmatprep.subr.bf16.mxu1 %v8817_v0  ;;  %v11012_v2 = vmov 65535   ;;  %vm449_vm2 = vcmask 220160   ;;  %v8837_v22 = vld [vmem:[%s16438_s3 + $0x4] ss:$56 sps:$4 sm:$0xff]   ;;  %v8835_v24 = vld [vmem:[%s16438_s3] ss:$56 sps:$4 sm:$0xff]  }
  0x18   : > { %8719 = vmatpush3.bf16.msra.mxu0 %v8817_v0  ;;  %v500_v3 = vsel %vm498_vm0, 4294967295, %v11012_v2  ;;  %8756 = vmatpush3.bf16.msra.mxu1 %v8817_v0  ;;  %s296_s19 = scalar_select %p295_p11, %s11002_s27, 1  ;;  %v8840_v23 = vld [vmem:[%s16438_s3 + $0xc] ss:$56 sps:$4 sm:$0xff]   ;;  %v8838_v25 = vld [vmem:[%s16438_s3 + $0x8] ss:$56 sps:$4 sm:$0xff]  }
  0x19   : > { %v501_v4 = vsel %vm499_vm1, %v500_v3, 0  ;;  %v8843_v26 = vld [vmem:[%s16438_s3 + $0x74] ss:$56 sps:$4 sm:$0xff]   ;;  %v8841_v28 = vld [vmem:[%s16438_s3 + $0x70] ss:$56 sps:$4 sm:$0xff]   ;;  %v16444_v34 = vmov 0  }
  0x1a   : > { %v503_v5 = vand.u32 %v8818_v1, %v501_v4  ;;  %s8545_s20 = sshll.u32 %s296_s19, 7  ;;  %v8846_v27 = vld [vmem:[%s16438_s3 + $0x7c] ss:$56 sps:$4 sm:$0xff]   ;;  %v8844_v29 = vld [vmem:[%s16438_s3 + $0x78] ss:$56 sps:$4 sm:$0xff]   ;;  %vm1232_vm3 = vcmask 392192  }
  0x1b   : > { %s11123_s23 = scalar_lea.vmem %s16435_s0, %s8545_s20  ;;  %v8849_v30 = vld [vmem:[%s16438_s3 + $0xe4] ss:$56 sps:$4 sm:$0xff]   ;;  %v8847_v32 = vld [vmem:[%s16438_s3 + $0xe0] ss:$56 sps:$4 sm:$0xff]   ;;  %v8855_v35 = vld [vmem:[%s16438_s3 + $0x14] ss:$56 sps:$4 sm:$0xff]  }
  0x1c   : > { %8720 = vmatprep.subr.bf16.mxu0 %v503_v5  ;;  %8755 = vmatprep.subr.bf16.mxu1 %v503_v5  ;;  %v8819_v6 = vld [vmem:[%s11123_s23] sm:$0xff]   ;;  %v8820_v7 = vld [vmem:[%s11123_s23 + $0x8] sm:$0xff]   ;;  %v8821_v8 = vld [vmem:[%s11123_s23 + $0x10] sm:$0xff]   ;;  %s292_s19 = sand.u32 1, %s10994_s25   ;;  %s8542_s20 = sshll.u32 %s11002_s27, 4 }
  0x1d   : > { %8721 = vmatpush3.bf16.msra.mxu0 %v503_v5  ;;  %8757 = vmatpush3.bf16.msra.mxu1 %v503_v5  ;;  %v8822_v9 = vld [vmem:[%s11123_s23 + $0x18] sm:$0xff]   ;;  %v8823_v10 = vld [vmem:[%s11123_s23 + $0x20] sm:$0xff]   ;;  %v8824_v12 = vld [vmem:[%s11123_s23 + $0x28] sm:$0xff]   ;;  %s293_s21 = scalar_lea.vmem [#allocation3], %s292_s19  ;;  %s16388_s8 = scalar_lea.hbm %s16442_s7, %s8542_s20 }
  0x1e   : > { %8722 = vmatprep.mubr.msk.bf16.mxu0 %vm449_vm2, %v8819_v6  ;;  %v8831_v11 = vld [vmem:[%s11123_s23 + $0x60] sm:$0xff]   ;;  %v8832_v13 = vld [vmem:[%s11123_s23 + $0x68] sm:$0xff]   ;;  %v8833_v14 = vld [vmem:[%s11123_s23 + $0x70] sm:$0xff]   ;;  %1281 = vmatprep.subr.bf16.mxu1 %v8837_v22  ;;  %s7685_s22 = sshll.u32 %s293_s21, 4  ;;  %s7673_s10 = scalar_lea.sflag [#allocation4], %s292_s19  ;;  %s16390_s22 = int_to_ptr.vmem [resolvable:$true] %s7685_s22 }
  0x1f   : > { %8746 = vmatprep.mubr.msk.bf16.mxu1 %vm449_vm2, %v8831_v11  ;;  %v8825_v15 = vld [vmem:[%s11123_s23 + $0x30] sm:$0xff]   ;;  %v8834_v16 = vld [vmem:[%s11123_s23 + $0x78] sm:$0xff]   ;;  %v8827_v18 = vld [vmem:[%s11123_s23 + $0x40] sm:$0xff]   ;;  %1474 = vmatprep.subr.bf16.mxu0 %v8840_v23  ;;  %s10932_s12 = scalar_lea.vmem %s16390_s22, 16  ;;  %s11016_s27 = smov [#allocation3]  }
  0x20   : > { %8723 = vmatmul.mubr.msk.bf16.vlgmr.msra.gmra.mrb[0].mxu0 %vm449_vm2, %v8820_v7  ;;  %8747 = vmatmul.mubr.msk.bf16.vlgmr.msra.gmra.mrb[0].mxu1 %vm449_vm2, %v8832_v13  ;;  %v8826_v17 = vld [vmem:[%s11123_s23 + $0x38] sm:$0xff]   ;;  %v8828_v19 = vld [vmem:[%s11123_s23 + $0x48] sm:$0xff]   ;;  %v8829_v20 = vld [vmem:[%s11123_s23 + $0x50] sm:$0xff]   ;;  %p10933_p12 = scmp.ne.s32.totalorder %s16390_s22, %s10932_s12  ;;  %s10936_s15 = sshll.u32 %s11016_s27, 4  ;;  %s10937_s15 = int_to_ptr.vmem [resolvable:$false] %s10936_s15 }
  0x21   : > { %8726 = vmatprep.mubr.msk.bf16.mxu0 %vm449_vm2, %v8821_v8  ;;  %8750 = vmatprep.mubr.msk.bf16.mxu1 %vm449_vm2, %v8833_v14  ;;  %v8830_v21 = vld [vmem:[%s11123_s23 + $0x58] sm:$0xff]   ;;  %v8852_v31 = vld [vmem:[%s16438_s3 + $0xec] ss:$56 sps:$4 sm:$0xff]   ;;  %v8850_v33 = vld [vmem:[%s16438_s3 + $0xe8] ss:$56 sps:$4 sm:$0xff]   ;;  %s10938_s16 = scalar_lea.vmem %s10937_s15, 32  ;;  %p10939_p1 = scmp.lt.s32.totalorder %s16390_s22, %s10937_s15 }
  0x22   : > { %1282 = vmatpush1.bf16.msra.mxu1 %v8835_v24  ;;  %1475 = vmatpush1.bf16.msra.mxu0 %v8838_v25  ;;  %v11201_v36 = vld [vmem:[%s16437_s2] ss:$0 sm:$0xff]  ;;  %p10934_p13 = pnand %p10933_p12, %p11097_p4  ;;  %p10940_p2 = scmp.lt.s32.totalorder %s10938_s16, %s10932_s12 }
  0x23   : > { %1283 = vmatprep.subr.bf16.mxu1 %v8843_v26  ;;  %1476 = vmatprep.subr.bf16.mxu0 %v8846_v27 }
  0x24   : > { %p10935_p0 = pneg %p10934_p13  ;;  %p10941_p3 = por %p10940_p2, %p10939_p1 }
  0x26   : > { %1284 = vmatpush1.bf16.msra.mxu1 %v8841_v28  ;;  %1477 = vmatpush1.bf16.msra.mxu0 %v8844_v29  ;;  %v8864_v28 = vld [vmem:[%s16438_s3 + $0x1c] ss:$56 sps:$4 sm:$0xff]   ;;  %p10942_p5 = pnand %p10941_p3, %p10935_p0 }
  0x27   : > { %1285 = vmatprep.subr.bf16.mxu1 %v8849_v30  ;;  %1478 = vmatprep.subr.bf16.mxu0 %v8852_v31 }
  0x28   : > { %8727 = vmatmul.mubr.msk.bf16.gmra.mrb[4].mxu0 %vm449_vm2, %v8822_v9  ;;  %8751 = vmatmul.mubr.msk.bf16.gmra.mrb[4].mxu1 %vm449_vm2, %v8834_v16 }
  0x29   : > { %8730 = vmatprep.mubr.msk.bf16.mxu0 %vm449_vm2, %v8823_v10  ;;  %1313 = vmatprep.mubr.bf16.mxu1 %v16444_v34 }
  0x2a   : > { %1286 = vmatpush1.bf16.msra.mxu1 %v8847_v32  ;;  %1479 = vmatpush1.bf16.msra.mxu0 %v8850_v33 }
  0x2b   : > { %1667 = vmatprep.subr.bf16.mxu1 %v8855_v35  ;;  %1860 = vmatprep.subr.bf16.mxu0 %v8864_v28 }
  0x30   : > { %8731 = vmatmul.mubr.msk.bf16.gmra.mrb[8].mxu0 %vm449_vm2, %v8824_v12 }
  0x31   : > { %8734 = vmatprep.mubr.msk.bf16.mxu0 %vm449_vm2, %v8825_v15 }
  0x38   : > { %8735 = vmatmul.mubr.msk.bf16.gmra.mrb[12].mxu0 %vm449_vm2, %v8826_v17 }
  0x39   : > { %8738 = vmatprep.mubr.msk.bf16.mxu0 %vm449_vm2, %v8827_v18 }
  0x40   : > { %8739 = vmatmul.mubr.msk.bf16.gmra.mrb[16].mxu0 %vm449_vm2, %v8828_v19 }
  0x41   : > { %8742 = vmatprep.mubr.msk.bf16.mxu0 %vm449_vm2, %v8829_v20 }
  0x48   : > { %8743 = vmatmul.mubr.msk.bf16.gmra.mrb[20].mxu0 %vm449_vm2, %v8830_v21 }
  0x49   : > { %1506 = vmatprep.mubr.bf16.mxu0 %v16444_v34 }
  0xf3   : > { %v8724_v37 = vpop.f32.mrb[0].mxu0  ;;  %v8748_v59 = vpop.f32.mrb[0].mxu1 }
  0xf4   : > { %v11204_v38 = vadd.f32 %v8724_v37, %v11201_v36  ;;  %v539_v39 = vpop.f32.mrb[1].mxu0  ;;  %v11235_v61 = vadd.f32 %v8748_v59, %v11201_v36  ;;  %v635_v62 = vpop.f32.mrb[1].mxu1 }
  0xf5   : > { %v11207_v40 = vadd.f32 %v11201_v36, %v539_v39  ;;  %v8725_v41 = vpop.f32.mrb[2].mxu0  ;;  %v11239_v0 = vadd.f32 %v11201_v36, %v635_v62  ;;  %v8749_v1 = vpop.f32.mrb[2].mxu1 }
  0xf6   : > { %v7798_v42 = vmul.f32 -1.442695, %v11204_v38  ;;  %v11211_v43 = vadd.f32 %v8725_v41, %v11201_v36  ;;  %v542_v44 = vpop.f32.mrb[3].mxu0  ;;  %v7822_v3 = vmul.f32 -1.442695, %v11235_v61  ;;  %v11243_v4 = vadd.f32 %v8749_v1, %v11201_v36  ;;  %v638_v5 = vpop.f32.mrb[3].mxu1 }
  0xf7   : > { %v7796_v45 = vmul.f32 -1.442695, %v11207_v40  ;;  %v11215_v46 = vadd.f32 %v11201_v36, %v542_v44  ;;  %v11246_v9 = vadd.f32 %v11201_v36, %v638_v5 }
  0xf8   : > { %9010 = vpow2.f32 %v7798_v42  ;;  %v7799_v47 = vmul.f32 -1.442695, %v11211_v43 }
  0xf9   : > { %9012 = vpow2.f32 %v7796_v45  ;;  %v7797_v48 = vmul.f32 -1.442695, %v11215_v46 }
  0xfa   : > { %9014 = vpow2.f32 %v7799_v47 }
  0xfb   : > { %9016 = vpow2.f32 %v7797_v48  ;;  %v8728_v49 = vpop.f32.mrb[4].mxu0  ;;  %v8752_v24 = vpop.f32.mrb[4].mxu1 }
  0xfc   : > { %v11220_v50 = vadd.f32 %v8728_v49, %v11201_v36  ;;  %v555_v51 = vpop.f32.mrb[5].mxu0  ;;  %v11264_v26 = vadd.f32 %v8752_v24, %v11201_v36  ;;  %v651_v27 = vpop.f32.mrb[5].mxu1 }
  0xfd   : > { %v11223_v52 = vadd.f32 %v11201_v36, %v555_v51  ;;  %v8729_v53 = vpop.f32.mrb[6].mxu0  ;;  %v11271_v30 = vadd.f32 %v11201_v36, %v651_v27  ;;  %v8753_v31 = vpop.f32.mrb[6].mxu1 }
  0xfe   : > { %v7802_v54 = vmul.f32 -1.442695, %v11220_v50  ;;  %v11227_v55 = vadd.f32 %v8729_v53, %v11201_v36  ;;  %v558_v56 = vpop.f32.mrb[7].mxu0  ;;  %v11274_v33 = vadd.f32 %v8753_v31, %v11201_v36  ;;  %v654_v35 = vpop.f32.mrb[7].mxu1 }
  0xff   : > { %v7800_v57 = vmul.f32 -1.442695, %v11223_v52  ;;  %v11231_v58 = vadd.f32 %v11201_v36, %v558_v56  ;;  %v11277_v42 = vadd.f32 %v11201_v36, %v654_v35 }
 0x100   : > { %9018 = vpow2.f32 %v7802_v54  ;;  %v7803_v60 = vmul.f32 -1.442695, %v11227_v55 }
 0x101   : > { %9020 = vpow2.f32 %v7800_v57  ;;  %v7801_v63 = vmul.f32 -1.442695, %v11231_v58 }
 0x102   : > { %v9011_v2 = vpop.eup %9010  ;;  %9022 = vpow2.f32 %v7803_v60 }
 0x103   : > { %v9013_v6 = vpop.eup %9012  ;;  %v764_v7 = vadd.f32 1.0, %v9011_v2  ;;  %9024 = vpow2.f32 %v7801_v63  ;;  %v8732_v8 = vpop.f32.mrb[8].mxu0 }
 0x104   : > { %v9015_v10 = vpop.eup %9014  ;;  %v762_v11 = vadd.f32 1.0, %v9013_v6  ;;  %v11249_v12 = vadd.f32 %v8732_v8, %v11201_v36  ;;  %v571_v13 = vpop.f32.mrb[9].mxu0  ;;  %9026 = vpow2.f32 %v7822_v3 }
 0x105   : > { %v9017_v14 = vpop.eup %9016  ;;  %9028 = vrcp.f32 %v764_v7  ;;  %v765_v15 = vadd.f32 1.0, %v9015_v10  ;;  %v11252_v16 = vadd.f32 %v11201_v36, %v571_v13  ;;  %v8733_v17 = vpop.f32.mrb[10].mxu0 }
 0x106   : > { %9030 = vrcp.f32 %v762_v11  ;;  %v763_v18 = vadd.f32 1.0, %v9017_v14  ;;  %v7806_v19 = vmul.f32 -1.442695, %v11249_v12  ;;  %v11256_v20 = vadd.f32 %v8733_v17, %v11201_v36  ;;  %v574_v21 = vpop.f32.mrb[11].mxu0 }
 0x107   : > { %9032 = vrcp.f32 %v765_v15  ;;  %v7804_v22 = vmul.f32 -1.442695, %v11252_v16  ;;  %v11260_v23 = vadd.f32 %v11201_v36, %v574_v21 }
 0x108   : > { %9034 = vrcp.f32 %v763_v18  ;;  %v7807_v25 = vmul.f32 -1.442695, %v11256_v20 }
 0x109   : > { %9036 = vpow2.f32 %v7806_v19  ;;  %v7805_v29 = vmul.f32 -1.442695, %v11260_v23 }
 0x10a   : > { %v9019_v32 = vpop.eup %9018  ;;  %9038 = vpow2.f32 %v7804_v22 }
 0x10b   : > { %v9021_v37 = vpop.eup %9020  ;;  %v768_v39 = vadd.f32 1.0, %v9019_v32  ;;  %9040 = vpow2.f32 %v7807_v25  ;;  %v8736_v41 = vpop.f32.mrb[12].mxu0 }
 0x10c   : > { %v9023_v44 = vpop.eup %9022  ;;  %v766_v45 = vadd.f32 1.0, %v9021_v37  ;;  %9042 = vpow2.f32 %v7805_v29  ;;  %v11280_v47 = vadd.f32 %v8736_v41, %v11201_v36  ;;  %v587_v48 = vpop.f32.mrb[13].mxu0  ;;  %v8858_v29 = vld [vmem:[%s16438_s3 + $0x84] ss:$56 sps:$4 sm:$0xff]   ;;  %v8862_v41 = vld [vmem:[%s16438_s3 + $0x18] ss:$56 sps:$4 sm:$0xff]  }
 0x10d   : > { %v9025_v49 = vpop.eup %9024  ;;  %9044 = vrcp.f32 %v768_v39  ;;  %v769_v51 = vadd.f32 1.0, %v9023_v44  ;;  %v11283_v53 = vadd.f32 %v11201_v36, %v587_v48  ;;  %v8737_v54 = vpop.f32.mrb[14].mxu0 }
 0x10e   : > { %v9027_v56 = vpop.eup %9026  ;;  %9046 = vrcp.f32 %v766_v45  ;;  %v767_v57 = vadd.f32 1.0, %v9025_v49  ;;  %v7810_v59 = vmul.f32 -1.442695, %v11280_v47  ;;  %v11287_v60 = vadd.f32 %v8737_v54, %v11201_v36  ;;  %v590_v62 = vpop.f32.mrb[15].mxu0 }
 0x10f   : > { %v9029_v63 = vpop.eup %9028  ;;  %9048 = vrcp.f32 %v769_v51  ;;  %v7808_v1 = vmul.f32 -1.442695, %v11283_v53  ;;  %v11291_v2 = vadd.f32 %v11201_v36, %v590_v62  ;;  %v788_v8 = vadd.f32 1.0, %v9027_v56  ;;  %v8867_v51 = vld [vmem:[%s16438_s3 + $0x8c] ss:$56 sps:$4 sm:$0xff]  }
 0x110   : > { %v9031_v3 = vpop.eup %9030  ;;  %9050 = vrcp.f32 %v767_v57  ;;  %v7811_v5 = vmul.f32 -1.442695, %v11287_v60  ;;  %v860_v11 = vmul.f32 %v9029_v63, %v11204_v38  ;;  %v8853_v38 = vld [vmem:[%s16438_s3 + $0x10] ss:$56 sps:$4 sm:$0xff]   ;;  %v8856_v57 = vld [vmem:[%s16438_s3 + $0x80] ss:$56 sps:$4 sm:$0xff]  }
 0x111   : > { %v9033_v6 = vpop.eup %9032  ;;  %9052 = vpow2.f32 %v7810_v59  ;;  %v7809_v7 = vmul.f32 -1.442695, %v11291_v2  ;;  %v858_v15 = vmul.f32 %v9031_v3, %v11207_v40  ;;  %v8861_v63 = vld [vmem:[%s16438_s3 + $0xf4] ss:$56 sps:$4 sm:$0xff]  }
 0x112   : > { %v9035_v10 = vpop.eup %9034  ;;  %v861_v13 = vmul.f32 %v9033_v6, %v11211_v43  ;;  %9054 = vpow2.f32 %v7808_v1  ;;  %v8865_v6 = vld [vmem:[%s16438_s3 + $0x88] ss:$56 sps:$4 sm:$0xff]  }
 0x113   : > { %v9037_v14 = vpop.eup %9036  ;;  %v859_v17 = vmul.f32 %v9035_v10, %v11215_v46  ;;  %9056 = vpow2.f32 %v7811_v5  ;;  %v8740_v18 = vpop.f32.mrb[16].mxu0 }
 0x114   : > { %v9039_v19 = vpop.eup %9038  ;;  %v11299_v21 = vpack.c.bf16 %v861_v13, %v860_v11  ;;  %v772_v22 = vadd.f32 1.0, %v9037_v14  ;;  %9058 = vpow2.f32 %v7809_v7  ;;  %v11302_v24 = vadd.f32 %v8740_v18, %v11201_v36  ;;  %v603_v43 = vpop.f32.mrb[17].mxu0 }
 0x115   : > { %v9041_v25 = vpop.eup %9040  ;;  %v11307_v40 = vpack.c.bf16 %v859_v17, %v858_v15  ;;  %v770_v46 = vadd.f32 1.0, %v9039_v19  ;;  %v11310_v27 = vadd.f32 %v11201_v36, %v603_v43  ;;  %v8741_v28 = vpop.f32.mrb[18].mxu0  ;;  %9060 = vrcp.f32 %v788_v8  ;;  %v8859_v17 = vld [vmem:[%s16438_s3 + $0xf0] ss:$56 sps:$4 sm:$0xff]   ;;  %v8870_v43 = vld [vmem:[%s16438_s3 + $0xfc] ss:$56 sps:$4 sm:$0xff]  }
 0x116   : > { %16528 = vst [vmem:[#allocation6_spill] sm:$0xff] %v11299_v21  ;;  %v9043_v31 = vpop.eup %9042  ;;  %9062 = vrcp.f32 %v772_v22  ;;  %v773_v32 = vadd.f32 1.0, %v9041_v25  ;;  %v7814_v35 = vmul.f32 -1.442695, %v11302_v24  ;;  %v11317_v37 = vadd.f32 %v8741_v28, %v11201_v36  ;;  %v606_v39 = vpop.f32.mrb[19].mxu0 }
 0x117   : > { %16529 = vst [vmem:[#allocation7_spill] sm:$0xff] %v11307_v40  ;;  %v9045_v44 = vpop.eup %9044  ;;  %9064 = vrcp.f32 %v770_v46  ;;  %v771_v45 = vadd.f32 1.0, %v9043_v31  ;;  %v7812_v48 = vmul.f32 -1.442695, %v11310_v27  ;;  %7870 = vmatmul.mubr.msk.bf16.vlgmr.msra.gmra.mrb[8].mxu1 %vm1232_vm3, %v11307_v40  ;;  %7886 = vmatmul.mubr.msk.bf16.vlgmr.msra.gmra.mrb[24].mxu0 %vm1232_vm3, %v11307_v40  ;;  %v11328_v49 = vadd.f32 %v11201_v36, %v606_v39 }
 0x118   : > { %v9047_v54 = vpop.eup %9046  ;;  %9066 = vrcp.f32 %v773_v32  ;;  %1668 = vmatpush1.bf16.msra.mxu1 %v8853_v38  ;;  %v7815_v56 = vmul.f32 -1.442695, %v11317_v37  ;;  %1323 = vmatprep.mubr.bf16.mxu1 %v16444_v34  ;;  %v864_v3 = vmul.f32 %v9045_v44, %v11220_v50  ;;  %v8868_v38 = vld [vmem:[%s16438_s3 + $0xf8] ss:$56 sps:$4 sm:$0xff]   ;;  %v8873_v32 = vld [vmem:[%s16438_s3 + $0x24] ss:$56 sps:$4 sm:$0xff]  }
 0x119   : > { %v9049_v59 = vpop.eup %9048  ;;  %9068 = vrcp.f32 %v771_v45  ;;  %v7813_v62 = vmul.f32 -1.442695, %v11328_v49  ;;  %1516 = vmatprep.mubr.bf16.mxu0 %v16444_v34  ;;  %1669 = vmatprep.subr.bf16.mxu1 %v8858_v29  ;;  %v862_v8 = vmul.f32 %v9047_v54, %v11223_v52 }
 0x11a   : > { %v9051_v1 = vpop.eup %9050  ;;  %v865_v5 = vmul.f32 %v9049_v59, %v11227_v55  ;;  %9070 = vpow2.f32 %v7814_v35  ;;  %1861 = vmatpush1.bf16.msra.mxu0 %v8862_v41 }
 0x11b   : > { %v9053_v7 = vpop.eup %9052  ;;  %v863_v10 = vmul.f32 %v9051_v1, %v11231_v58  ;;  %9072 = vpow2.f32 %v7812_v48  ;;  %v8744_v11 = vpop.f32.mrb[20].mxu0  ;;  %1862 = vmatprep.subr.bf16.mxu0 %v8867_v51 }
 0x11c   : > { %v9055_v13 = vpop.eup %9054  ;;  %v11350_v14 = vpack.c.bf16 %v865_v5, %v864_v3  ;;  %v776_v50 = vadd.f32 1.0, %v9053_v7  ;;  %9074 = vpow2.f32 %v7815_v56  ;;  %v11353_v55 = vadd.f32 %v8744_v11, %v11201_v36  ;;  %v619_v15 = vpop.f32.mrb[21].mxu0  ;;  %1670 = vmatpush1.bf16.msra.mxu1 %v8856_v57 }
 0x11d   : > { %v9057_v52 = vpop.eup %9056  ;;  %v11358_v18 = vpack.c.bf16 %v863_v10, %v862_v8  ;;  %v774_v58 = vadd.f32 1.0, %v9055_v13  ;;  %9076 = vpow2.f32 %v7813_v62  ;;  %v11361_v19 = vadd.f32 %v11201_v36, %v619_v15  ;;  %v8745_v22 = vpop.f32.mrb[22].mxu0  ;;  %1671 = vmatprep.subr.bf16.mxu1 %v8861_v63 }
 0x11e   : > { %16530 = vst [vmem:[#allocation8_spill] sm:$0xff] %v11350_v14  ;;  %v9059_v25 = vpop.eup %9058  ;;  %9078 = vrcp.f32 %v776_v50  ;;  %v777_v46 = vadd.f32 1.0, %v9057_v52  ;;  %v7818_v28 = vmul.f32 -1.442695, %v11353_v55  ;;  %v11371_v29 = vadd.f32 %v8745_v22, %v11201_v36  ;;  %v622_v31 = vpop.f32.mrb[23].mxu0  ;;  %1863 = vmatpush1.bf16.msra.mxu0 %v8865_v6 }
 0x11f   : > { %16531 = vst [vmem:[#allocation9_spill] sm:$0xff] %v11358_v18  ;;  %v11376_v35 = vpop.eup %9060  ;;  %9080 = vrcp.f32 %v774_v58  ;;  %v775_v39 = vadd.f32 1.0, %v9059_v25  ;;  %7871 = vmatmul.mubr.msk.bf16.gmra.mrb[12].mxu1 %vm1232_vm3, %v11299_v21  ;;  %7887 = vmatmul.mubr.msk.bf16.gmra.mrb[28].mxu0 %vm1232_vm3, %v11299_v21  ;;  %v7816_v41 = vmul.f32 -1.442695, %v11361_v19  ;;  %v11384_v44 = vadd.f32 %v11201_v36, %v622_v31 }
 0x120   : > { %v9063_v45 = vpop.eup %9062  ;;  %9082 = vrcp.f32 %v777_v46  ;;  %1333 = vmatprep.mubr.bf16.mxu1 %v16444_v34  ;;  %1526 = vmatprep.mubr.bf16.mxu0 %v16444_v34  ;;  %v7819_v48 = vmul.f32 -1.442695, %v11371_v29  ;;  %v7820_v57 = vmul.f32 -1.442695, %v11239_v0  ;;  %v7821_v50 = vmul.f32 -1.442695, %v11246_v9 }
 0x121   : > { %v9065_v51 = vpop.eup %9064  ;;  %9084 = vrcp.f32 %v775_v39  ;;  %v7817_v54 = vmul.f32 -1.442695, %v11384_v44  ;;  %1672 = vmatpush1.bf16.msra.mxu1 %v8859_v17  ;;  %1864 = vmatprep.subr.bf16.mxu0 %v8870_v43  ;;  %v868_v59 = vmul.f32 %v9063_v45, %v11249_v12  ;;  %v7826_v17 = vmul.f32 -1.442695, %v11264_v26 }
 0x122   : > { %v9067_v56 = vpop.eup %9066  ;;  %9086 = vpow2.f32 %v7818_v28  ;;  %1865 = vmatpush1.bf16.msra.mxu0 %v8868_v38  ;;  %2053 = vmatprep.subr.bf16.mxu1 %v8873_v32  ;;  %v866_v1 = vmul.f32 %v9065_v51, %v11252_v16  ;;  %v7823_v16 = vmul.f32 -1.442695, %v11243_v4  ;;  %v7824_v58 = vmul.f32 -1.442695, %v11271_v30 }
 0x123   : > { %v9069_v36 = vpop.eup %9068  ;;  %v869_v62 = vmul.f32 %v9067_v56, %v11256_v20  ;;  %9088 = vpow2.f32 %v7816_v41  ;;  %v7827_v51 = vmul.f32 -1.442695, %v11274_v33 }
 0x124   : > { %v9071_v63 = vpop.eup %9070  ;;  %v867_v3 = vmul.f32 %v9069_v36, %v11260_v23  ;;  %9090 = vpow2.f32 %v7819_v48 }
 0x125   : > { %v9073_v5 = vpop.eup %9072  ;;  %v11395_v6 = vpack.c.bf16 %v869_v62, %v868_v59  ;;  %v780_v7 = vadd.f32 1.0, %v9071_v63  ;;  %9092 = vpow2.f32 %v7817_v54 }
 0x126   : > { %v9075_v8 = vpop.eup %9074  ;;  %v11397_v10 = vpack.c.bf16 %v867_v3, %v866_v1  ;;  %v778_v11 = vadd.f32 1.0, %v9073_v5  ;;  %9094 = vpow2.f32 %v7820_v57  ;;  %v7825_v57 = vmul.f32 -1.442695, %v11277_v42 }
 0x127   : > { %16532 = vst [vmem:[#allocation10_spill] sm:$0xff] %v11395_v6  ;;  %v9077_v12 = vpop.eup %9076  ;;  %9096 = vrcp.f32 %v780_v7  ;;  %v781_v20 = vadd.f32 1.0, %v9075_v8  ;;  %7872 = vmatmul.mubr.msk.bf16.gmra.mrb[16].mxu1 %vm1232_vm3, %v11358_v18  ;;  %7888 = vmatmul.mubr.msk.bf16.gmra.mrb[32].mxu0 %vm1232_vm3, %v11358_v18 }
 0x128   : > { %16533 = vst [vmem:[#allocation11_spill] sm:$0xff] %v11397_v10  ;;  %v9079_v23 = vpop.eup %9078  ;;  %9098 = vrcp.f32 %v778_v11  ;;  %v779_v13 = vadd.f32 1.0, %v9077_v12  ;;  %1343 = vmatprep.mubr.bf16.mxu1 %v16444_v34  ;;  %1536 = vmatprep.mubr.bf16.mxu0 %v16444_v34 }
 0x129   : > { %v9081_v15 = vpop.eup %9080  ;;  %9100 = vrcp.f32 %v781_v20  ;;  %v872_v38 = vmul.f32 %v9079_v23, %v11280_v47 }
 0x12a   : > { %v9083_v52 = vpop.eup %9082  ;;  %9102 = vrcp.f32 %v779_v13  ;;  %v870_v46 = vmul.f32 %v9081_v15, %v11283_v53 }
 0x12b   : > { %v9085_v22 = vpop.eup %9084  ;;  %v873_v43 = vmul.f32 %v9083_v52, %v11287_v60  ;;  %9104 = vpow2.f32 %v7823_v16 }
 0x12c   : > { %v9087_v25 = vpop.eup %9086  ;;  %v871_v28 = vmul.f32 %v9085_v22, %v11291_v2  ;;  %9106 = vpow2.f32 %v7821_v50 }
 0x12d   : > { %v9089_v31 = vpop.eup %9088  ;;  %v11413_v32 = vpack.c.bf16 %v873_v43, %v872_v38  ;;  %v784_v39 = vadd.f32 1.0, %v9087_v25  ;;  %9108 = vpow2.f32 %v7826_v17 }
 0x12e   : > { %v9091_v41 = vpop.eup %9090  ;;  %v11415_v45 = vpack.c.bf16 %v871_v28, %v870_v46  ;;  %v782_v48 = vadd.f32 1.0, %v9089_v31  ;;  %9110 = vpow2.f32 %v7824_v58 }
 0x12f   : > { %16534 = vst [vmem:[#allocation12_spill] sm:$0xff] %v11413_v32  ;;  %v9093_v47 = vpop.eup %9092  ;;  %9112 = vrcp.f32 %v784_v39  ;;  %v785_v60 = vadd.f32 1.0, %v9091_v41  ;;  %7873 = vmatmul.mubr.msk.bf16.gmra.mrb[20].mxu1 %vm1232_vm3, %v11350_v14  ;;  %7889 = vmatmul.mubr.msk.bf16.gmra.mrb[36].mxu0 %vm1232_vm3, %v11350_v14 }
 0x130   : > { %16535 = vst [vmem:[#allocation13_spill] sm:$0xff] %v11415_v45  ;;  %v9095_v53 = vpop.eup %9094  ;;  %9114 = vrcp.f32 %v782_v48  ;;  %v783_v2 = vadd.f32 1.0, %v9093_v47  ;;  %1353 = vmatprep.mubr.bf16.mxu1 %v16444_v34  ;;  %1546 = vmatprep.mubr.bf16.mxu0 %v16444_v34 }
 0x131   : > { %v9097_v54 = vpop.eup %9096  ;;  %9116 = vrcp.f32 %v785_v60  ;;  %v786_v56 = vadd.f32 1.0, %v9095_v53 }
 0x132   : > { %v9099_v36 = vpop.eup %9098  ;;  %v876_v59 = vmul.f32 %v9097_v54, %v11302_v24  ;;  %9118 = vrcp.f32 %v783_v2 }
 0x133   : > { %v9101_v62 = vpop.eup %9100  ;;  %v874_v63 = vmul.f32 %v9099_v36, %v11310_v27  ;;  %9120 = vrcp.f32 %v786_v56  ;;  %v8882_v36 = vld [vmem:[%s16438_s3 + $0x2c] ss:$56 sps:$4 sm:$0xff]  }
 0x134   : > { %v9103_v1 = vpop.eup %9102  ;;  %v877_v3 = vmul.f32 %v9101_v62, %v11317_v37  ;;  %9122 = vpow2.f32 %v7827_v51  ;;  %2246 = vmatprep.subr.bf16.mxu0 %v8882_v36  ;;  %v8885_v62 = vld [vmem:[%s16438_s3 + $0x9c] ss:$56 sps:$4 sm:$0xff]  }
 0x135   : > { %v9105_v5 = vpop.eup %9104  ;;  %v875_v7 = vmul.f32 %v9103_v1, %v11328_v49  ;;  %9124 = vpow2.f32 %v7825_v57  ;;  %v8877_v57 = vld [vmem:[%s16438_s3 + $0x100] ss:$56 sps:$4 sm:$0xff]   ;;  %v8888_v1 = vld [vmem:[%s16438_s3 + $0x10c] ss:$56 sps:$4 sm:$0xff]  }
 0x136   : > { %v9107_v8 = vpop.eup %9106  ;;  %v11429_v11 = vpack.c.bf16 %v877_v3, %v876_v59  ;;  %v789_v12 = vadd.f32 1.0, %v9105_v5  ;;  %v8880_v59 = vld [vmem:[%s16438_s3 + $0x28] ss:$56 sps:$4 sm:$0xff]   ;;  %v16443_v5 = vlaneseq }
 0x137   : > { %v9109_v20 = vpop.eup %9108  ;;  %v11431_v16 = vpack.c.bf16 %v875_v7, %v874_v63  ;;  %7874 = vmatmul.mubr.msk.bf16.gmra.mrb[24].mxu1 %vm1232_vm3, %v11397_v10  ;;  %7890 = vmatmul.mubr.msk.bf16.gmra.mrb[40].mxu0 %vm1232_vm3, %v11397_v10  ;;  %v787_v24 = vadd.f32 1.0, %v9107_v8  ;;  %v8883_v63 = vld [vmem:[%s16438_s3 + $0x98] ss:$56 sps:$4 sm:$0xff]   ;;  %v8886_v3 = vld [vmem:[%s16438_s3 + $0x108] ss:$56 sps:$4 sm:$0xff]  }
 0x138   : > { %16536 = vst [vmem:[#allocation14_spill] sm:$0xff] %v11429_v11  ;;  %v9111_v27 = vpop.eup %9110  ;;  %9126 = vrcp.f32 %v789_v12  ;;  %1363 = vmatprep.mubr.bf16.mxu1 %v16444_v34  ;;  %1556 = vmatprep.mubr.bf16.mxu0 %v16444_v34  ;;  %v792_v49 = vadd.f32 1.0, %v9109_v20  ;;  %v11622_v7 = vshrl.u32 %v16443_v5, 7  ;;  %v8891_v8 = vld [vmem:[%s16438_s3 + $0x34] ss:$56 sps:$4 sm:$0xff]  }
 0x139   : > { %16537 = vst [vmem:[#allocation15_spill] sm:$0xff] %v11431_v16  ;;  %v9113_v37 = vpop.eup %9112  ;;  %9128 = vrcp.f32 %v787_v24  ;;  %v790_v50 = vadd.f32 1.0, %v9111_v27  ;;  %v948_v24 = vld [vmem:[%s16439_s4] sm:$0xff] }
 0x13a   : > { %v9115_v23 = vpop.eup %9114  ;;  %v880_v13 = vmul.f32 %v9113_v37, %v11353_v55  ;;  %9130 = vrcp.f32 %v792_v49  ;;  %16544 = vst [vmem:[#allocation22_spill] sm:$0xff] %v11622_v7  ;;  %v11630_v12 = vsub.s32 0, %v11622_v7  ;;  %v11633_v20 = vsub.s32 2, %v11622_v7 }
 0x13b   : > { %v9117_v15 = vpop.eup %9116  ;;  %v878_v17 = vmul.f32 %v9115_v23, %v11361_v19  ;;  %9132 = vrcp.f32 %v790_v50  ;;  %v11639_v27 = vsub.s32 1, %v11622_v7  ;;  %v11642_v37 = vsub.s32 3, %v11622_v7 }
 0x13c   : > { %v9119_v52 = vpop.eup %9118  ;;  %v881_v58 = vmul.f32 %v9117_v15, %v11371_v29  ;;  %v884_v29 = vmul.f32 %v11376_v35, %v11235_v61  ;;  %16545 = vst [vmem:[#allocation23_spill] sm:$0xff] %v11630_v12  ;;  %16546 = vst [vmem:[#allocation24_spill] sm:$0xff] %v11633_v20  ;;  %v11649_v49 = vrot.slane %v948_v24, %v11630_v12 }
 0x13d   : > { %v9121_v22 = vpop.eup %9120  ;;  %v879_v38 = vmul.f32 %v9119_v52, %v11384_v44  ;;  %16547 = vst [vmem:[#allocation25_spill] sm:$0xff] %v11639_v27  ;;  %16548 = vst [vmem:[#allocation26_spill] sm:$0xff] %v11642_v37  ;;  %v11652_v23 = vrot.slane %v948_v24, %v11633_v20  ;;  %v11658_v50 = vrot.slane %v948_v24, %v11642_v37 }
 0x13e   : > { %v9123_v43 = vpop.eup %9122  ;;  %v11443_v25 = vpack.c.bf16 %v881_v58, %v880_v13  ;;  %v882_v31 = vmul.f32 %v9121_v22, %v11239_v0  ;;  %v11655_v13 = vrot.slane %v948_v24, %v11639_v27 }
 0x13f   : > { %v9125_v46 = vpop.eup %9124  ;;  %v11445_v28 = vpack.c.bf16 %v879_v38, %v878_v17  ;;  %7875 = vmatmul.mubr.msk.bf16.gmra.mrb[28].mxu1 %vm1232_vm3, %v11395_v6  ;;  %7891 = vmatmul.mubr.msk.bf16.gmra.mrb[44].mxu0 %vm1232_vm3, %v11395_v6  ;;  %v793_v55 = vadd.f32 1.0, %v9123_v43 }
 0x140   : > { %16538 = vst [vmem:[#allocation16_spill] sm:$0xff] %v11443_v25  ;;  %1373 = vmatprep.mubr.bf16.mxu1 %v16444_v34  ;;  %1566 = vmatprep.mubr.bf16.mxu0 %v16444_v34  ;;  %v791_v19 = vadd.f32 1.0, %v9125_v46 }
 0x141   : > { %16539 = vst [vmem:[#allocation17_spill] sm:$0xff] %v11445_v28  ;;  %9134 = vrcp.f32 %v793_v55 }
 0x142   : > { %v9127_v44 = vpop.eup %9126  ;;  %9136 = vrcp.f32 %v791_v19 }
 0x143   : > { %v9129_v39 = vpop.eup %9128  ;;  %v885_v41 = vmul.f32 %v9127_v44, %v11243_v4 }
 0x144   : > { %v883_v48 = vmul.f32 %v9129_v39, %v11246_v9  ;;  %v9131_v53 = vpop.eup %9130 }
 0x145   : > { %v11458_v47 = vpack.c.bf16 %v885_v41, %v884_v29  ;;  %v9133_v61 = vpop.eup %9132  ;;  %v888_v0 = vmul.f32 %v9131_v53, %v11264_v26  ;;  %v8871_v26 = vld [vmem:[%s16438_s3 + $0x20] ss:$56 sps:$4 sm:$0xff]  }
 0x146   : > { %v11460_v60 = vpack.c.bf16 %v883_v48, %v882_v31  ;;  %v886_v9 = vmul.f32 %v9133_v61, %v11271_v30  ;;  %v8876_v30 = vld [vmem:[%s16438_s3 + $0x94] ss:$56 sps:$4 sm:$0xff]  }
 0x147   : > { %16540 = vst [vmem:[#allocation18_spill] sm:$0xff] %v11458_v47  ;;  %7876 = vmatmul.mubr.msk.bf16.gmra.mrb[32].mxu1 %vm1232_vm3, %v11415_v45  ;;  %7892 = vmatmul.mubr.msk.bf16.gmra.mrb[48].mxu0 %vm1232_vm3, %v11415_v45 }
 0x148   : > { %16541 = vst [vmem:[#allocation19_spill] sm:$0xff] %v11460_v60  ;;  %1383 = vmatprep.mubr.bf16.mxu1 %v16444_v34  ;;  %1576 = vmatprep.mubr.bf16.mxu0 %v16444_v34 }
 0x14b   : > { %v9135_v4 = vpop.eup %9134 }
 0x14c   : > { %v9137_v35 = vpop.eup %9136  ;;  %v889_v2 = vmul.f32 %v9135_v4, %v11274_v33  ;;  %v8874_v33 = vld [vmem:[%s16438_s3 + $0x90] ss:$56 sps:$4 sm:$0xff]  }
 0x14d   : > { %v887_v51 = vmul.f32 %v9137_v35, %v11277_v42  ;;  %v8879_v42 = vld [vmem:[%s16438_s3 + $0x104] ss:$56 sps:$4 sm:$0xff]  }
 0x14e   : > { %v11472_v54 = vpack.c.bf16 %v889_v2, %v888_v0 }
 0x14f   : > { %v11474_v56 = vpack.c.bf16 %v887_v51, %v886_v9  ;;  %7877 = vmatmul.mubr.msk.bf16.gmra.mrb[36].mxu1 %vm1232_vm3, %v11413_v32  ;;  %7893 = vmatmul.mubr.msk.bf16.gmra.mrb[52].mxu0 %vm1232_vm3, %v11413_v32 }
 0x150   : > { %16542 = vst [vmem:[#allocation20_spill] sm:$0xff] %v11472_v54  ;;  %1393 = vmatprep.mubr.bf16.mxu1 %v16444_v34  ;;  %1586 = vmatprep.mubr.bf16.mxu0 %v16444_v34 }
 0x151   : > { %16543 = vst [vmem:[#allocation21_spill] sm:$0xff] %v11474_v56 }
 0x157   : > { %7878 = vmatmul.mubr.msk.bf16.gmra.mrb[40].mxu1 %vm1232_vm3, %v11431_v16  ;;  %7894 = vmatmul.mubr.msk.bf16.gmra.mrb[56].mxu0 %vm1232_vm3, %v11431_v16 }
 0x158   : > { %1403 = vmatprep.mubr.bf16.mxu1 %v16444_v34  ;;  %1596 = vmatprep.mubr.bf16.mxu0 %v16444_v34 }
 0x15f   : > { %7879 = vmatmul.mubr.msk.bf16.gmra.mrb[44].mxu1 %vm1232_vm3, %v11429_v11  ;;  %7895 = vmatmul.mubr.msk.bf16.gmra.mrb[60].mxu0 %vm1232_vm3, %v11429_v11 }
 0x160   : > { %1413 = vmatprep.mubr.bf16.mxu1 %v16444_v34  ;;  %1606 = vmatprep.mubr.bf16.mxu0 %v16444_v34 }
 0x167   : > { %7880 = vmatmul.mubr.msk.bf16.gmra.mrb[48].mxu1 %vm1232_vm3, %v11445_v28  ;;  %7896 = vmatmul.mubr.msk.bf16.gmra.mrb[64].mxu0 %vm1232_vm3, %v11445_v28 }
 0x168   : > { %1423 = vmatprep.mubr.bf16.mxu1 %v16444_v34  ;;  %1616 = vmatprep.mubr.bf16.mxu0 %v16444_v34 }
 0x16f   : > { %7881 = vmatmul.mubr.msk.bf16.gmra.mrb[52].mxu1 %vm1232_vm3, %v11443_v25  ;;  %7897 = vmatmul.mubr.msk.bf16.gmra.mrb[68].mxu0 %vm1232_vm3, %v11443_v25 }
 0x170   : > { %1433 = vmatprep.mubr.bf16.mxu1 %v16444_v34  ;;  %1626 = vmatprep.mubr.bf16.mxu0 %v16444_v34 }
 0x177   : > { %7882 = vmatmul.mubr.msk.bf16.gmra.mrb[56].mxu1 %vm1232_vm3, %v11460_v60  ;;  %7898 = vmatmul.mubr.msk.bf16.gmra.mrb[72].mxu0 %vm1232_vm3, %v11460_v60 }
 0x178   : > { %1443 = vmatprep.mubr.bf16.mxu1 %v16444_v34  ;;  %1636 = vmatprep.mubr.bf16.mxu0 %v16444_v34 }
 0x17f   : > { %7883 = vmatmul.mubr.msk.bf16.gmra.mrb[60].mxu1 %vm1232_vm3, %v11458_v47  ;;  %7899 = vmatmul.mubr.msk.bf16.gmra.mrb[76].mxu0 %vm1232_vm3, %v11458_v47 }
 0x180   : > { %1453 = vmatprep.mubr.bf16.mxu1 %v16444_v34  ;;  %1646 = vmatprep.mubr.bf16.mxu0 %v16444_v34 }
 0x187   : > { %7884 = vmatmul.mubr.msk.bf16.gmra.mrb[64].mxu1 %vm1232_vm3, %v11474_v56  ;;  %7900 = vmatmul.mubr.msk.bf16.gmra.mrb[80].mxu0 %vm1232_vm3, %v11474_v56 }
 0x188   : > { %1463 = vmatprep.mubr.bf16.mxu1 %v16444_v34  ;;  %1656 = vmatprep.mubr.bf16.mxu0 %v16444_v34 }
 0x18f   : > { %7885 = vmatmul.mubr.msk.bf16.gmra.mrb[68].mxu1 %vm1232_vm3, %v11472_v54  ;;  %7901 = vmatmul.mubr.msk.bf16.gmra.mrb[84].mxu0 %vm1232_vm3, %v11472_v54 }
 0x190   : > { %1699 = vmatprep.mubr.bf16.mxu1 %v16444_v34  ;;  %1892 = vmatprep.mubr.bf16.mxu0 %v16444_v34 }
 0x197   : > { %7902 = vmatmul.mubr.msk.bf16.vlgmr.msra.gmra.mrb[72].mxu1 %vm1232_vm3, %v11307_v40  ;;  %7918 = vmatmul.mubr.msk.bf16.vlgmr.msra.gmra.mrb[88].mxu0 %vm1232_vm3, %v11307_v40 }
 0x198   : > { %2054 = vmatpush1.bf16.msra.mxu1 %v8871_v26  ;;  %1709 = vmatprep.mubr.bf16.mxu1 %v16444_v34 }
 0x199   : > { %1902 = vmatprep.mubr.bf16.mxu0 %v16444_v34  ;;  %2055 = vmatprep.subr.bf16.mxu1 %v8876_v30 }
 0x19a   : > { %2247 = vmatpush1.bf16.msra.mxu0 %v8880_v59 }
 0x19b   : > { %2248 = vmatprep.subr.bf16.mxu0 %v8885_v62 }
 0x19c   : > { %2056 = vmatpush1.bf16.msra.mxu1 %v8874_v33 }
 0x19d   : > { %2057 = vmatprep.subr.bf16.mxu1 %v8879_v42 }
 0x19e   : > { %2249 = vmatpush1.bf16.msra.mxu0 %v8883_v63 }
 0x19f   : > { %7903 = vmatmul.mubr.msk.bf16.gmra.mrb[76].mxu1 %vm1232_vm3, %v11299_v21  ;;  %7919 = vmatmul.mubr.msk.bf16.gmra.mrb[92].mxu0 %vm1232_vm3, %v11299_v21 }
 0x1a0   : > { %1719 = vmatprep.mubr.bf16.mxu1 %v16444_v34  ;;  %1912 = vmatprep.mubr.bf16.mxu0 %v16444_v34 }
 0x1a1   : > { %2058 = vmatpush1.bf16.msra.mxu1 %v8877_v57  ;;  %2250 = vmatprep.subr.bf16.mxu0 %v8888_v1 }
 0x1a2   : > { %2251 = vmatpush1.bf16.msra.mxu0 %v8886_v3  ;;  %2439 = vmatprep.subr.bf16.mxu1 %v8891_v8 }
 0x1a7   : > { %7904 = vmatmul.mubr.msk.bf16.gmra.mrb[80].mxu1 %vm1232_vm3, %v11358_v18  ;;  %7920 = vmatmul.mubr.msk.bf16.gmra.mrb[96].mxu0 %vm1232_vm3, %v11358_v18 }
 0x1a8   : > { %1729 = vmatprep.mubr.bf16.mxu1 %v16444_v34  ;;  %1922 = vmatprep.mubr.bf16.mxu0 %v16444_v34 }
 0x1af   : > { %7905 = vmatmul.mubr.msk.bf16.gmra.mrb[84].mxu1 %vm1232_vm3, %v11350_v14  ;;  %7921 = vmatmul.mubr.msk.bf16.gmra.mrb[100].mxu0 %vm1232_vm3, %v11350_v14 }
 0x1b0   : > { %1739 = vmatprep.mubr.bf16.mxu1 %v16444_v34  ;;  %1932 = vmatprep.mubr.bf16.mxu0 %v16444_v34 }
 0x1b7   : > { %7906 = vmatmul.mubr.msk.bf16.gmra.mrb[88].mxu1 %vm1232_vm3, %v11397_v10  ;;  %7922 = vmatmul.mubr.msk.bf16.gmra.mrb[104].mxu0 %vm1232_vm3, %v11397_v10 }
 0x1b8   : > { %1749 = vmatprep.mubr.bf16.mxu1 %v16444_v34  ;;  %1942 = vmatprep.mubr.bf16.mxu0 %v16444_v34 }
 0x1bf   : > { %7907 = vmatmul.mubr.msk.bf16.gmra.mrb[92].mxu1 %vm1232_vm3, %v11395_v6  ;;  %7923 = vmatmul.mubr.msk.bf16.gmra.mrb[108].mxu0 %vm1232_vm3, %v11395_v6 }
 0x1c0   : > { %1759 = vmatprep.mubr.bf16.mxu1 %v16444_v34  ;;  %1952 = vmatprep.mubr.bf16.mxu0 %v16444_v34 }
 0x1c7   : > { %7908 = vmatmul.mubr.msk.bf16.gmra.mrb[96].mxu1 %vm1232_vm3, %v11415_v45  ;;  %7924 = vmatmul.mubr.msk.bf16.gmra.mrb[112].mxu0 %vm1232_vm3, %v11415_v45 }
 0x1c8   : > { %1769 = vmatprep.mubr.bf16.mxu1 %v16444_v34  ;;  %1962 = vmatprep.mubr.bf16.mxu0 %v16444_v34 }
 0x1cf   : > { %7909 = vmatmul.mubr.msk.bf16.gmra.mrb[100].mxu1 %vm1232_vm3, %v11413_v32  ;;  %7925 = vmatmul.mubr.msk.bf16.gmra.mrb[116].mxu0 %vm1232_vm3, %v11413_v32 }
 0x1d0   : > { %1779 = vmatprep.mubr.bf16.mxu1 %v16444_v34  ;;  %1972 = vmatprep.mubr.bf16.mxu0 %v16444_v34 }
 0x1d7   : > { %7910 = vmatmul.mubr.msk.bf16.gmra.mrb[104].mxu1 %vm1232_vm3, %v11431_v16  ;;  %7926 = vmatmul.mubr.msk.bf16.gmra.mrb[120].mxu0 %vm1232_vm3, %v11431_v16 }
 0x1d8   : > { %1789 = vmatprep.mubr.bf16.mxu1 %v16444_v34  ;;  %1982 = vmatprep.mubr.bf16.mxu0 %v16444_v34 }
 0x1df   : > { %7911 = vmatmul.mubr.msk.bf16.gmra.mrb[108].mxu1 %vm1232_vm3, %v11429_v11  ;;  %7927 = vmatmul.mubr.msk.bf16.gmra.mrb[124].mxu0 %vm1232_vm3, %v11429_v11 }
 0x1e0   : > { %1799 = vmatprep.mubr.bf16.mxu1 %v16444_v34  ;;  %1992 = vmatprep.mubr.bf16.mxu0 %v16444_v34 }
 0x1e7   : > { %7912 = vmatmul.mubr.msk.bf16.gmra.mrb[112].mxu1 %vm1232_vm3, %v11445_v28  ;;  %7928 = vmatmul.mubr.msk.bf16.gmra.mrb[128].mxu0 %vm1232_vm3, %v11445_v28 }
 0x1e8   : > { %1809 = vmatprep.mubr.bf16.mxu1 %v16444_v34  ;;  %2002 = vmatprep.mubr.bf16.mxu0 %v16444_v34 }
 0x1ea   : > { %v1315_v15 = vpop.f32.mrb[8].mxu1  ;;  %v1508_v17 = vpop.f32.mrb[24].mxu0 }
 0x1eb   : > { %v11663_v52 = vadd.f32 %v1315_v15, %v11649_v49  ;;  %v11666_v58 = vadd.f32 %v1508_v17, %v11652_v23  ;;  %v1317_v22 = vpop.f32.mrb[9].mxu1  ;;  %v1510_v38 = vpop.f32.mrb[25].mxu0 }
 0x1ec   : > { %v11669_v43 = vadd.f32 %v1317_v22, %v11655_v13  ;;  %v11672_v46 = vadd.f32 %v1510_v38, %v11658_v50  ;;  %v1319_v55 = vpop.f32.mrb[10].mxu1  ;;  %v1512_v19 = vpop.f32.mrb[26].mxu0 }
 0x1ed   : > { %v7982_v29 = vmul.f32 -1.442695, %v11663_v52  ;;  %v7984_v44 = vmul.f32 -1.442695, %v11666_v58  ;;  %v11677_v31 = vadd.f32 %v1319_v55, %v11649_v49  ;;  %v11680_v39 = vadd.f32 %v1512_v19, %v11652_v23  ;;  %v1321_v41 = vpop.f32.mrb[11].mxu1  ;;  %v1514_v48 = vpop.f32.mrb[27].mxu0 }
 0x1ee   : > { %v7983_v53 = vmul.f32 -1.442695, %v11669_v43  ;;  %v7985_v61 = vmul.f32 -1.442695, %v11672_v46  ;;  %v11685_v0 = vadd.f32 %v1321_v41, %v11655_v13  ;;  %v11688_v4 = vadd.f32 %v1514_v48, %v11658_v50 }
 0x1ef   : > { %9138 = vpow2.f32 %v7982_v29  ;;  %v7996_v9 = vmul.f32 -1.442695, %v11677_v31  ;;  %7913 = vmatmul.mubr.msk.bf16.gmra.mrb[116].mxu1 %vm1232_vm3, %v11443_v25  ;;  %7929 = vmatmul.mubr.msk.bf16.gmra.mrb[132].mxu0 %vm1232_vm3, %v11443_v25  ;;  %v7998_v35 = vmul.f32 -1.442695, %v11680_v39 }
 0x1f0   : > { %9140 = vpow2.f32 %v7984_v44  ;;  %1819 = vmatprep.mubr.bf16.mxu1 %v16444_v34  ;;  %2012 = vmatprep.mubr.bf16.mxu0 %v16444_v34  ;;  %v7997_v2 = vmul.f32 -1.442695, %v11685_v0  ;;  %v7999_v51 = vmul.f32 -1.442695, %v11688_v4 }
 0x1f1   : > { %9142 = vpow2.f32 %v7983_v53 }
 0x1f2   : > { %9144 = vpow2.f32 %v7985_v61  ;;  %v1325_v26 = vpop.f32.mrb[12].mxu1  ;;  %v1518_v30 = vpop.f32.mrb[28].mxu0 }
 0x1f3   : > { %9146 = vpow2.f32 %v7996_v9  ;;  %v11701_v33 = vadd.f32 %v1325_v26, %v11649_v49  ;;  %v11704_v42 = vadd.f32 %v1518_v30, %v11652_v23  ;;  %v1327_v57 = vpop.f32.mrb[13].mxu1  ;;  %v1520_v36 = vpop.f32.mrb[29].mxu0 }
 0x1f4   : > { %9148 = vpow2.f32 %v7998_v35  ;;  %v11707_v59 = vadd.f32 %v1327_v57, %v11655_v13  ;;  %v11710_v62 = vadd.f32 %v1520_v36, %v11658_v50  ;;  %v1329_v63 = vpop.f32.mrb[14].mxu1  ;;  %v1522_v1 = vpop.f32.mrb[30].mxu0 }
 0x1f5   : > { %9150 = vpow2.f32 %v7997_v2  ;;  %v8010_v3 = vmul.f32 -1.442695, %v11701_v33  ;;  %v8012_v8 = vmul.f32 -1.442695, %v11704_v42  ;;  %v11715_v24 = vadd.f32 %v1329_v63, %v11649_v49  ;;  %v1331_v15 = vpop.f32.mrb[15].mxu1  ;;  %v1524_v17 = vpop.f32.mrb[31].mxu0 }
 0x1f6   : > { %9152 = vpow2.f32 %v7999_v51  ;;  %v8011_v22 = vmul.f32 -1.442695, %v11707_v59  ;;  %v8013_v38 = vmul.f32 -1.442695, %v11710_v62 }
 0x1f7   : > { %9154 = vpow2.f32 %v8010_v3  ;;  %v8024_v55 = vmul.f32 -1.442695, %v11715_v24  ;;  %7914 = vmatmul.mubr.msk.bf16.gmra.mrb[120].mxu1 %vm1232_vm3, %v11460_v60  ;;  %7930 = vmatmul.mubr.msk.bf16.gmra.mrb[136].mxu0 %vm1232_vm3, %v11460_v60 }
 0x1f8   : > { %9156 = vpow2.f32 %v8012_v8  ;;  %1829 = vmatprep.mubr.bf16.mxu1 %v16444_v34  ;;  %2022 = vmatprep.mubr.bf16.mxu0 %v16444_v34 }
 0x1f9   : > { %v9139_v19 = vpop.eup %9138  ;;  %9158 = vpow2.f32 %v8011_v22  ;;  %v11727_v22 = vadd.f32 %v1522_v1, %v11652_v23 }
 0x1fa   : > { %v9141_v29 = vpop.eup %9140  ;;  %v3976_v44 = vadd.f32 1.0, %v9139_v19  ;;  %9160 = vpow2.f32 %v8013_v38  ;;  %v1335_v41 = vpop.f32.mrb[16].mxu1 }
 0x1fb   : > { %v1528_v48 = vpop.f32.mrb[32].mxu0  ;;  %v9143_v53 = vpop.eup %9142  ;;  %v3978_v61 = vadd.f32 1.0, %v9141_v29  ;;  %9162 = vpow2.f32 %v8024_v55  ;;  %v11732_v29 = vadd.f32 %v1331_v15, %v11655_v13  ;;  %v11746_v5 = vadd.f32 %v1335_v41, %v11649_v49 }
 0x1fc   : > { %v1337_v9 = vpop.f32.mrb[17].mxu1  ;;  %v1530_v35 = vpop.f32.mrb[33].mxu0  ;;  %9164 = vrcp.f32 %v3976_v44  ;;  %v3977_v51 = vadd.f32 1.0, %v9143_v53 }
 0x1fd   : > { %v9145_v2 = vpop.eup %9144  ;;  %v1339_v26 = vpop.f32.mrb[18].mxu1  ;;  %9166 = vrcp.f32 %v3978_v61  ;;  %v11761_v37 = vadd.f32 %v1530_v35, %v11658_v50 }
 0x1fe   : > { %v1532_v30 = vpop.f32.mrb[34].mxu0  ;;  %v9147_v57 = vpop.eup %9146  ;;  %v3979_v36 = vadd.f32 1.0, %v9145_v2  ;;  %9168 = vrcp.f32 %v3977_v51  ;;  %v8026_v51 = vmul.f32 -1.442695, %v11727_v22  ;;  %v11764_v20 = vadd.f32 %v1339_v26, %v11649_v49 }
 0x1ff   : > { %v1341_v63 = vpop.f32.mrb[19].mxu1  ;;  %v9149_v3 = vpop.eup %9148  ;;  %v3990_v8 = vadd.f32 1.0, %v9147_v57  ;;  %7915 = vmatmul.mubr.msk.bf16.gmra.mrb[124].mxu1 %vm1232_vm3, %v11458_v47  ;;  %7931 = vmatmul.mubr.msk.bf16.gmra.mrb[140].mxu0 %vm1232_vm3, %v11458_v47  ;;  %v11742_v57 = vadd.f32 %v1524_v17, %v11658_v50  ;;  %v11754_v17 = vadd.f32 %v1337_v9, %v11655_v13  ;;  %16549 = vst [vmem:[#allocation27_spill] sm:$0xff] %v11761_v37  ;;  %v8041_v47 = vmul.f32 -1.442695, %v11761_v37 }
 0x200   : > { %v11729_v38 = vpop.f32.mrb[35].mxu0  ;;  %v9151_v55 = vpop.eup %9150  ;;  %9170 = vrcp.f32 %v3979_v36  ;;  %v3992_v19 = vadd.f32 1.0, %v9149_v3  ;;  %1839 = vmatprep.mubr.bf16.mxu1 %v16444_v34  ;;  %2032 = vmatprep.mubr.bf16.mxu0 %v16444_v34  ;;  %16550 = vst [vmem:[#allocation28_spill] sm:$0xff] %v11764_v20  ;;  %v11771_v12 = vadd.f32 %v1532_v30, %v11652_v23  ;;  %v11774_v7 = vadd.f32 %v1341_v63, %v11655_v13 }
 0x201   : > { %v9153_v44 = vpop.eup %9152  ;;  %9172 = vrcp.f32 %v3990_v8  ;;  %v3991_v53 = vadd.f32 1.0, %v9151_v55  ;;  %v8025_v55 = vmul.f32 -1.442695, %v11732_v29  ;;  %v8027_v26 = vmul.f32 -1.442695, %v11742_v57 }
 0x202   : > { %v9155_v1 = vpop.eup %9154  ;;  %9174 = vrcp.f32 %v3992_v19  ;;  %v3993_v61 = vadd.f32 1.0, %v9153_v44  ;;  %v1345_v36 = vpop.f32.mrb[20].mxu1  ;;  %16551 = vst [vmem:[#allocation29_spill] sm:$0xff] %v11771_v12  ;;  %16552 = vst [vmem:[#allocation30_spill] sm:$0xff] %v11774_v7  ;;  %v8038_v30 = vmul.f32 -1.442695, %v11746_v5  ;;  %v11794_v28 = vadd.f32 %v11729_v38, %v11658_v50 }
 0x203   : > { %v9157_v2 = vpop.eup %9156  ;;  %9176 = vrcp.f32 %v3991_v53  ;;  %v4004_v15 = vadd.f32 1.0, %v9155_v1  ;;  %v1538_v34 = vpop.f32.mrb[36].mxu0  ;;  %v11751_v1 = vadd.f32 %v1528_v48, %v11652_v23  ;;  %v16553_v63 = vmov 0  }
 0x204   : > { %v9159_v3 = vpop.eup %9158  ;;  %9178 = vrcp.f32 %v3993_v61  ;;  %v4006_v8 = vadd.f32 1.0, %v9157_v2  ;;  %v11748_v19 = vpop.f32.mrb[21].mxu1  ;;  %v8052_v60 = vmul.f32 -1.442695, %v11764_v20 }
 0x205   : > { %v9161_v44 = vpop.eup %9160  ;;  %9180 = vrcp.f32 %v4004_v15  ;;  %v4005_v53 = vadd.f32 1.0, %v9159_v3  ;;  %v11756_v27 = vpop.f32.mrb[37].mxu0 }
 0x206   : > { %v11758_v61 = vpop.f32.mrb[22].mxu1  ;;  %v9163_v2 = vpop.eup %9162  ;;  %9182 = vrcp.f32 %v4006_v8  ;;  %v4007_v41 = vadd.f32 1.0, %v9161_v44 }
 0x207   : > { %v11766_v15 = vpop.f32.mrb[38].mxu0  ;;  %v11768_v48 = vpop.f32.mrb[23].mxu1  ;;  %9184 = vrcp.f32 %v4005_v53  ;;  %v4018_v9 = vadd.f32 1.0, %v9163_v2  ;;  %7916 = vmatmul.mubr.msk.bf16.gmra.mrb[128].mxu1 %vm1232_vm3, %v11474_v56  ;;  %7932 = vmatmul.mubr.msk.bf16.gmra.mrb[144].mxu0 %vm1232_vm3, %v11474_v56  ;;  %v8040_v53 = vmul.f32 -1.442695, %v11751_v1 }
 0x208   : > { %v9165_v3 = vpop.eup %9164  ;;  %v11776_v8 = vpop.f32.mrb[39].mxu0  ;;  %9186 = vrcp.f32 %v4007_v41  ;;  %1849 = vmatprep.mubr.bf16.mxu1 %v16553_v63  ;;  %2042 = vmatprep.mubr.bf16.mxu0 %v16553_v63  ;;  %v8039_v41 = vmul.f32 -1.442695, %v11754_v17  ;;  %v8053_v56 = vmul.f32 -1.442695, %v11774_v7 }
 0x209   : > { %v9167_v35 = vpop.eup %9166  ;;  %9188 = vrcp.f32 %v4018_v9  ;;  %v8054_v9 = vmul.f32 -1.442695, %v11771_v12  ;;  %v5320_v32 = vmul.f32 %v9165_v3, %v11663_v52  ;;  %v11812_v12 = vadd.f32 %v1538_v34, %v11652_v23 }
 0x20a   : > { %v9169_v44 = vpop.eup %9168  ;;  %9190 = vpow2.f32 %v8026_v51  ;;  %v11796_v11 = vpop.f32.mrb[24].mxu1  ;;  %v5322_v38 = vmul.f32 %v9167_v35, %v11666_v58 }
 0x20b   : > { %v9171_v2 = vpop.eup %9170  ;;  %9192 = vpow2.f32 %v8025_v55  ;;  %v11798_v16 = vpop.f32.mrb[40].mxu0  ;;  %v11803_v55 = vadd.f32 %v1345_v36, %v11649_v49  ;;  %v5321_v36 = vmul.f32 %v9169_v44, %v11669_v43 }
 0x20c   : > { %v9173_v25 = vpop.eup %9172  ;;  %9194 = vpow2.f32 %v8027_v26  ;;  %v11805_v6 = vpop.f32.mrb[25].mxu1  ;;  %v5323_v35 = vmul.f32 %v9171_v2, %v11672_v46 }
 0x20d   : > { %v9175_v51 = vpop.eup %9174  ;;  %v5334_v45 = vmul.f32 %v9173_v25, %v11677_v31  ;;  %v11807_v10 = vpop.f32.mrb[41].mxu0  ;;  %9196 = vpow2.f32 %v8038_v30  ;;  %v8066_v43 = vmul.f32 -1.442695, %v11803_v55 }
 0x20e   : > { %v9177_v14 = vpop.eup %9176  ;;  %v5336_v7 = vmul.f32 %v9175_v51, %v11680_v39  ;;  %v11814_v52 = vpop.f32.mrb[26].mxu1  ;;  %9198 = vpow2.f32 %v8040_v53 }
 0x20f   : > { %v11816_v25 = vpop.f32.mrb[42].mxu0  ;;  %v9179_v31 = vpop.eup %9178  ;;  %v5770_v3 = vadd.f32 %v5334_v45, %v5320_v32  ;;  %v5335_v26 = vmul.f32 %v9177_v14, %v11685_v0  ;;  %9200 = vpow2.f32 %v8039_v41  ;;  %v8055_v32 = vmul.f32 -1.442695, %v11794_v28  ;;  %7917 = vmatmul.mubr.msk.bf16.gmra.mrb[132].mxu1 %vm1232_vm3, %v11472_v54  ;;  %7933 = vmatmul.mubr.msk.bf16.gmra.mrb[148].mxu0 %vm1232_vm3, %v11472_v54 }
 0x210   : > { %v11820_v20 = vpop.f32.mrb[27].mxu1  ;;  %v11822_v58 = vpop.f32.mrb[43].mxu0  ;;  %v5844_v34 = vadd.f32 %v5336_v7, %v5322_v38  ;;  %v5337_v30 = vmul.f32 %v9179_v31, %v11688_v4  ;;  %9202 = vpow2.f32 %v8041_v47  ;;  %2085 = vmatprep.mubr.bf16.mxu1 %v16553_v63  ;;  %2278 = vmatprep.mubr.bf16.mxu0 %v16553_v63  ;;  %v8068_v4 = vmul.f32 -1.442695, %v11812_v12 }
 0x211   : > { %v9181_v39 = vpop.eup %9180  ;;  %v5807_v18 = vadd.f32 %v5335_v26, %v5321_v36  ;;  %9204 = vpow2.f32 %v8052_v60 }
 0x212   : > { %v9183_v51 = vpop.eup %9182  ;;  %v5348_v37 = vmul.f32 %v9181_v39, %v11701_v33  ;;  %v5881_v45 = vadd.f32 %v5337_v30, %v5323_v35  ;;  %9206 = vpow2.f32 %v8054_v9  ;;  %v11841_v60 = vpop.f32.mrb[28].mxu1 }
 0x213   : > { %v9185_v14 = vpop.eup %9184  ;;  %v5350_v7 = vmul.f32 %v9183_v51, %v11704_v42  ;;  %9208 = vpow2.f32 %v8053_v56  ;;  %v11843_v42 = vpop.f32.mrb[44].mxu0 }
 0x214   : > { %v9187_v47 = vpop.eup %9186  ;;  %v5771_v46 = vadd.f32 %v5770_v3, %v5348_v37  ;;  %v5349_v0 = vmul.f32 %v9185_v14, %v11707_v59  ;;  %9210 = vpow2.f32 %v8055_v32  ;;  %v11848_v59 = vpop.f32.mrb[29].mxu1  ;;  %v11869_v14 = vadd.f32 %v11748_v19, %v11655_v13 }
 0x215   : > { %v9189_v33 = vpop.eup %9188  ;;  %v11838_v44 = vadd.f32 %v5844_v34, %v5350_v7  ;;  %v5351_v53 = vmul.f32 %v9187_v47, %v11710_v62  ;;  %v11850_v9 = vpop.f32.mrb[45].mxu0  ;;  %9212 = vpow2.f32 %v8066_v43 }
 0x216   : > { %v9191_v2 = vpop.eup %9190  ;;  %v11845_v41 = vadd.f32 %v5807_v18, %v5349_v0  ;;  %v5362_v37 = vmul.f32 %v9189_v33, %v11715_v24  ;;  %v11854_v56 = vpop.f32.mrb[30].mxu1  ;;  %v8889_v18 = vld [vmem:[%s16438_s3 + $0x30] ss:$56 sps:$4 sm:$0xff]   ;;  %9214 = vpow2.f32 %v8068_v4 }
 0x217   : > { %v9193_v38 = vpop.eup %9192  ;;  %v11852_v31 = vadd.f32 %v5881_v45, %v5351_v53  ;;  %v4020_v36 = vadd.f32 1.0, %v9191_v2  ;;  %v11856_v62 = vpop.f32.mrb[46].mxu0  ;;  %7934 = vmatmul.mubr.msk.bf16.vlgmr.msra.gmra.mrb[136].mxu1 %vm1232_vm3, %v11307_v40  ;;  %7950 = vmatmul.mubr.msk.bf16.vlgmr.msra.gmra.mrb[152].mxu0 %vm1232_vm3, %v11307_v40  ;;  %v8067_v2 = vmul.f32 -1.442695, %v11869_v14 }
 0x218   : > { %v9195_v3 = vpop.eup %9194  ;;  %v4019_v24 = vadd.f32 1.0, %v9193_v38  ;;  %v11861_v26 = vadd.f32 %v5771_v46, %v5362_v37  ;;  %v11863_v39 = vpop.f32.mrb[31].mxu1  ;;  %2440 = vmatpush1.bf16.msra.mxu1 %v8889_v18  ;;  %2095 = vmatprep.mubr.bf16.mxu1 %v16553_v63  ;;  %v11884_v37 = vadd.f32 %v11756_v27, %v11658_v50 }
 0x219   : > { %v11865_v35 = vpop.f32.mrb[47].mxu0  ;;  %v9197_v34 = vpop.eup %9196  ;;  %9216 = vrcp.f32 %v4020_v36  ;;  %v4021_v30 = vadd.f32 1.0, %v9195_v3  ;;  %2288 = vmatprep.mubr.bf16.mxu0 %v16553_v63 }
 0x21a   : > { %v9199_v51 = vpop.eup %9198  ;;  %9218 = vrcp.f32 %v4019_v24  ;;  %v4032_v32 = vadd.f32 1.0, %v9197_v34  ;;  %v11877_v0 = vpop.f32.mrb[32].mxu1  ;;  %v11892_v24 = vadd.f32 %v11758_v61, %v11649_v49  ;;  %v11896_v34 = vadd.f32 %v11766_v15, %v11652_v23 }
 0x21b   : > { %v9201_v45 = vpop.eup %9200  ;;  %9220 = vrcp.f32 %v4021_v30  ;;  %v4034_v7 = vadd.f32 1.0, %v9199_v51  ;;  %v11879_v4 = vpop.f32.mrb[48].mxu0 }
 0x21c   : > { %v9203_v43 = vpop.eup %9202  ;;  %9222 = vrcp.f32 %v4032_v32  ;;  %v4033_v47 = vadd.f32 1.0, %v9201_v45  ;;  %v11886_v38 = vpop.f32.mrb[33].mxu1  ;;  %v11904_v45 = vadd.f32 %v11768_v48, %v11655_v13 }
 0x21d   : > { %v9205_v46 = vpop.eup %9204  ;;  %9224 = vrcp.f32 %v4034_v7  ;;  %v4035_v19 = vadd.f32 1.0, %v9203_v43  ;;  %v11888_v36 = vpop.f32.mrb[49].mxu0  ;;  %v11908_v7 = vadd.f32 %v11776_v8, %v11658_v50  ;;  %v8069_v8 = vmul.f32 -1.442695, %v11884_v37 }
 0x21e   : > { %v9207_v33 = vpop.eup %9206  ;;  %9226 = vrcp.f32 %v4033_v47  ;;  %v4046_v53 = vadd.f32 1.0, %v9205_v46  ;;  %v11898_v30 = vpop.f32.mrb[34].mxu1  ;;  %v11916_v46 = vadd.f32 %v11796_v11, %v11649_v49 }
 0x21f   : > { %v9209_v18 = vpop.eup %9208  ;;  %9228 = vrcp.f32 %v4035_v19  ;;  %v4048_v3 = vadd.f32 1.0, %v9207_v33  ;;  %16554 = vst [vmem:[#allocation31_spill] sm:$0xff] %v11898_v30  ;;  %v11900_v51 = vpop.f32.mrb[50].mxu0  ;;  %v11920_v19 = vadd.f32 %v11798_v16, %v11652_v23  ;;  %7935 = vmatmul.mubr.msk.bf16.gmra.mrb[140].mxu1 %vm1232_vm3, %v11299_v21  ;;  %7951 = vmatmul.mubr.msk.bf16.gmra.mrb[156].mxu0 %vm1232_vm3, %v11299_v21  ;;  %v8080_v16 = vmul.f32 -1.442695, %v11892_v24 }
 0x220   : > { %16555 = vst [vmem:[#allocation32_spill] sm:$0xff] %v11900_v51  ;;  %v9211_v27 = vpop.eup %9210  ;;  %9230 = vrcp.f32 %v4046_v53  ;;  %v4047_v32 = vadd.f32 1.0, %v9209_v18  ;;  %v11910_v61 = vpop.f32.mrb[35].mxu1  ;;  %v11925_v53 = vadd.f32 %v11805_v6, %v11655_v13  ;;  %2105 = vmatprep.mubr.bf16.mxu1 %v16553_v63  ;;  %2298 = vmatprep.mubr.bf16.mxu0 %v16553_v63 }
 0x221   : > { %16556 = vst [vmem:[#allocation33_spill] sm:$0xff] %v11910_v61  ;;  %v11912_v43 = vpop.f32.mrb[51].mxu0  ;;  %v9213_v15 = vpop.eup %9212  ;;  %9232 = vrcp.f32 %v4048_v3  ;;  %v4049_v47 = vadd.f32 1.0, %v9211_v27  ;;  %v8082_v3 = vmul.f32 -1.442695, %v11896_v34 }
 0x222   : > { %16557 = vst [vmem:[#allocation34_spill] sm:$0xff] %v11912_v43  ;;  %v9215_v48 = vpop.eup %9214  ;;  %9234 = vrcp.f32 %v4047_v32  ;;  %v4060_v33 = vadd.f32 1.0, %v9213_v15  ;;  %v8081_v32 = vmul.f32 -1.442695, %v11904_v45  ;;  %v8083_v15 = vmul.f32 -1.442695, %v11908_v7 }
 0x223   : > { %v9217_v11 = vpop.eup %9216  ;;  %9236 = vrcp.f32 %v4049_v47  ;;  %v4062_v18 = vadd.f32 1.0, %v9215_v48  ;;  %v8094_v48 = vmul.f32 -1.442695, %v11916_v46  ;;  %v8096_v40 = vmul.f32 -1.442695, %v11920_v19  ;;  %v11941_v54 = vpop.f32.mrb[36].mxu1 }
 0x224   : > { %v9219_v27 = vpop.eup %9218  ;;  %v5364_v6 = vmul.f32 %v9217_v11, %v11727_v22  ;;  %9238 = vrcp.f32 %v4060_v33  ;;  %v11943_v43 = vpop.f32.mrb[52].mxu0  ;;  %v8095_v11 = vmul.f32 -1.442695, %v11925_v53 }
 0x225   : > { %v9221_v21 = vpop.eup %9220  ;;  %v5363_v47 = vmul.f32 %v9219_v27, %v11732_v29  ;;  %9240 = vrcp.f32 %v4062_v18  ;;  %16558 = vst [vmem:[#allocation35_spill] sm:$0xff] %v11943_v43  ;;  %v11948_v51 = vpop.f32.mrb[37].mxu1  ;;  %v11956_v43 = vadd.f32 %v11807_v10, %v11658_v50 }
 0x226   : > { %v9223_v61 = vpop.eup %9222  ;;  %v5846_v22 = vadd.f32 %v11838_v44, %v5364_v6  ;;  %v5365_v33 = vmul.f32 %v9221_v21, %v11742_v57  ;;  %9242 = vpow2.f32 %v8067_v2  ;;  %v11950_v29 = vpop.f32.mrb[53].mxu0 }
 0x227   : > { %v9225_v18 = vpop.eup %9224  ;;  %v5376_v27 = vmul.f32 %v9223_v61, %v11746_v5  ;;  %v5809_v30 = vadd.f32 %v11845_v41, %v5363_v47  ;;  %9244 = vpow2.f32 %v8069_v8  ;;  %v11958_v44 = vpop.f32.mrb[38].mxu1  ;;  %v11966_v5 = vadd.f32 %v11814_v52, %v11649_v49 }
 0x228   : > { %v11960_v21 = vpop.f32.mrb[54].mxu0  ;;  %v9227_v57 = vpop.eup %9226  ;;  %v5883_v2 = vadd.f32 %v11852_v31, %v5365_v33  ;;  %v5378_v6 = vmul.f32 %v9225_v18, %v11751_v1  ;;  %9246 = vpow2.f32 %v8080_v16  ;;  %v11976_v31 = vadd.f32 %v11816_v25, %v11652_v23  ;;  %v16561_v33 = vld [vmem:[#allocation27_spill] sm:$0xff] }
 0x229   : > { %v11968_v41 = vpop.f32.mrb[39].mxu1  ;;  %v11970_v61 = vpop.f32.mrb[55].mxu0  ;;  %v5773_v8 = vadd.f32 %v11861_v26, %v5376_v27  ;;  %v5377_v47 = vmul.f32 %v9227_v57, %v11754_v17  ;;  %9248 = vpow2.f32 %v8082_v3  ;;  %v11981_v52 = vadd.f32 %v11820_v20, %v11655_v13  ;;  %v16563_v3 = vld [vmem:[#allocation28_spill] sm:$0xff]  ;;  %v16564_v27 = vld [vmem:[#allocation29_spill] sm:$0xff] }
 0x22a   : > { %16559 = vst [vmem:[#allocation36_spill] sm:$0xff] %v11968_v41  ;;  %16560 = vst [vmem:[#allocation37_spill] sm:$0xff] %v11970_v61  ;;  %v9229_v10 = vpop.eup %9228  ;;  %v5847_v16 = vadd.f32 %v5846_v22, %v5378_v6  ;;  %9250 = vpow2.f32 %v8081_v32  ;;  %v16562_v61 = vld [vmem:[#allocation9_spill] sm:$0xff]  ;;  %v8097_v22 = vmul.f32 -1.442695, %v11956_v43 }
 0x22b   : > { %v9231_v1 = vpop.eup %9230  ;;  %v5379_v18 = vmul.f32 %v9229_v10, %v16561_v33  ;;  %7936 = vmatmul.mubr.msk.bf16.gmra.mrb[144].mxu1 %vm1232_vm3, %v16562_v61  ;;  %7952 = vmatmul.mubr.msk.bf16.gmra.mrb[160].mxu0 %vm1232_vm3, %v16562_v61  ;;  %v5810_v26 = vadd.f32 %v5809_v30, %v5377_v47  ;;  %9252 = vpow2.f32 %v8083_v15  ;;  %v8108_v6 = vmul.f32 -1.442695, %v11966_v5  ;;  %v16565_v61 = vld [vmem:[#allocation30_spill] sm:$0xff]  ;;  %v11995_v47 = vpop.f32.mrb[40].mxu1 }
 0x22c   : > { %v9233_v17 = vpop.eup %9232  ;;  %v5390_v25 = vmul.f32 %v9231_v1, %v16563_v3  ;;  %2115 = vmatprep.mubr.bf16.mxu1 %v16553_v63  ;;  %2308 = vmatprep.mubr.bf16.mxu0 %v16553_v63  ;;  %9254 = vpow2.f32 %v8094_v48  ;;  %v8110_v15 = vmul.f32 -1.442695, %v11976_v31  ;;  %v11997_v1 = vpop.f32.mrb[56].mxu0  ;;  %v8109_v48 = vmul.f32 -1.442695, %v11981_v52 }
 0x22d   : > { %v9235_v32 = vpop.eup %9234  ;;  %v5884_v20 = vadd.f32 %v5883_v2, %v5379_v18  ;;  %v5392_v57 = vmul.f32 %v9233_v17, %v16564_v27  ;;  %9256 = vpow2.f32 %v8096_v40  ;;  %v12001_v18 = vpop.f32.mrb[41].mxu1 }
 0x22e   : > { %v9237_v10 = vpop.eup %9236  ;;  %v5774_v33 = vadd.f32 %v5773_v8, %v5390_v25  ;;  %v5391_v30 = vmul.f32 %v9235_v32, %v16565_v61  ;;  %9258 = vpow2.f32 %v8095_v11  ;;  %v12003_v17 = vpop.f32.mrb[57].mxu0 }
 0x22f   : > { %v9239_v3 = vpop.eup %9238  ;;  %v5848_v41 = vadd.f32 %v5847_v16, %v5392_v57  ;;  %v5393_v2 = vmul.f32 %v9237_v10, %v11794_v28  ;;  %9260 = vpow2.f32 %v8097_v22  ;;  %v12008_v25 = vpop.f32.mrb[42].mxu1  ;;  %v8894_v22 = vld [vmem:[%s16438_s3 + $0xa4] ss:$56 sps:$4 sm:$0xff]  }
 0x230   : > { %v9241_v8 = vpop.eup %9240  ;;  %v12005_v61 = vadd.f32 %v5810_v26, %v5391_v30  ;;  %v5404_v40 = vmul.f32 %v9239_v3, %v11803_v55  ;;  %v12010_v32 = vpop.f32.mrb[58].mxu0  ;;  %9262 = vpow2.f32 %v8108_v6  ;;  %v8892_v55 = vld [vmem:[%s16438_s3 + $0xa0] ss:$56 sps:$4 sm:$0xff]   ;;  %2441 = vmatprep.subr.bf16.mxu1 %v8894_v22 }
 0x231   : > { %16566 = vst [vmem:[#allocation27_spill] sm:$0xff] %v12010_v32  ;;  %v9243_v16 = vpop.eup %9242  ;;  %v12012_v27 = vadd.f32 %v5884_v20, %v5393_v2  ;;  %v5406_v28 = vmul.f32 %v9241_v8, %v11812_v12  ;;  %v12015_v11 = vpop.f32.mrb[43].mxu1  ;;  %9264 = vpow2.f32 %v8110_v15  ;;  %v16569_v3 = vld [vmem:[#allocation8_spill] sm:$0xff]  ;;  %2442 = vmatpush1.bf16.msra.mxu1 %v8892_v55  ;;  %v12055_v55 = vadd.f32 %v11843_v42, %v11652_v23 }
 0x232   : > { %16567 = vst [vmem:[#allocation28_spill] sm:$0xff] %v12015_v11  ;;  %v12017_v57 = vpop.f32.mrb[59].mxu0  ;;  %v9245_v10 = vpop.eup %9244  ;;  %v12019_v26 = vadd.f32 %v5774_v33, %v5404_v40  ;;  %v4061_v30 = vadd.f32 1.0, %v9243_v16  ;;  %9266 = vpow2.f32 %v8109_v48  ;;  %v12037_v40 = vadd.f32 %v11822_v58, %v11658_v50 }
 0x233   : > { %16568 = vst [vmem:[#allocation29_spill] sm:$0xff] %v12017_v57  ;;  %v9247_v20 = vpop.eup %9246  ;;  %v12027_v12 = vadd.f32 %v5848_v41, %v5406_v28  ;;  %v4063_v6 = vadd.f32 1.0, %v9245_v10  ;;  %7937 = vmatmul.mubr.msk.bf16.gmra.mrb[148].mxu1 %vm1232_vm3, %v16569_v3  ;;  %7953 = vmatmul.mubr.msk.bf16.gmra.mrb[164].mxu0 %vm1232_vm3, %v16569_v3  ;;  %v12039_v16 = vpop.f32.mrb[44].mxu1  ;;  %v12051_v3 = vadd.f32 %v11841_v60, %v11649_v49 }
 0x234   : > { %v9249_v33 = vpop.eup %9248  ;;  %9268 = vrcp.f32 %v4061_v30  ;;  %v4074_v15 = vadd.f32 1.0, %v9247_v20  ;;  %2125 = vmatprep.mubr.bf16.mxu1 %v16553_v63  ;;  %2318 = vmatprep.mubr.bf16.mxu0 %v16553_v63  ;;  %16570 = vst [vmem:[#allocation30_spill] sm:$0xff] %v12039_v16  ;;  %v12041_v28 = vpop.f32.mrb[60].mxu0  ;;  %v12070_v42 = vadd.f32 %v11850_v9, %v11658_v50  ;;  %v12086_v9 = vadd.f32 %v11863_v39, %v11655_v13 }
 0x235   : > { %v9251_v2 = vpop.eup %9250  ;;  %9270 = vrcp.f32 %v4063_v6  ;;  %v4076_v8 = vadd.f32 1.0, %v9249_v33  ;;  %16571 = vst [vmem:[#allocation38_spill] sm:$0xff] %v12041_v28  ;;  %v12043_v20 = vpop.f32.mrb[45].mxu1  ;;  %v12095_v39 = vadd.f32 %v11865_v35, %v11658_v50 }
 0x236   : > { %v9253_v41 = vpop.eup %9252  ;;  %9272 = vrcp.f32 %v4074_v15  ;;  %v4075_v48 = vadd.f32 1.0, %v9251_v2  ;;  %16572 = vst [vmem:[#allocation39_spill] sm:$0xff] %v12043_v20  ;;  %v12045_v33 = vpop.f32.mrb[61].mxu0 }
 0x237   : > { %v9255_v10 = vpop.eup %9254  ;;  %9274 = vrcp.f32 %v4076_v8  ;;  %v4077_v30 = vadd.f32 1.0, %v9253_v41  ;;  %16573 = vst [vmem:[#allocation40_spill] sm:$0xff] %v12045_v33  ;;  %v12047_v15 = vpop.f32.mrb[46].mxu1 }
 0x238   : > { %v9257_v6 = vpop.eup %9256  ;;  %9276 = vrcp.f32 %v4075_v48  ;;  %v4088_v22 = vadd.f32 1.0, %v9255_v10  ;;  %16574 = vst [vmem:[#allocation41_spill] sm:$0xff] %v12047_v15  ;;  %v12057_v8 = vpop.f32.mrb[62].mxu0  ;;  %v8111_v15 = vmul.f32 -1.442695, %v12037_v40 }
 0x239   : > { %v9259_v2 = vpop.eup %9258  ;;  %9278 = vrcp.f32 %v4077_v30  ;;  %v4090_v58 = vadd.f32 1.0, %v9257_v6  ;;  %16575 = vst [vmem:[#allocation42_spill] sm:$0xff] %v12057_v8  ;;  %v12059_v41 = vpop.f32.mrb[47].mxu1  ;;  %v12064_v30 = vadd.f32 %v11848_v59, %v11655_v13 }
 0x23a   : > { %16576 = vst [vmem:[#allocation43_spill] sm:$0xff] %v12059_v41  ;;  %v9261_v48 = vpop.eup %9260  ;;  %9280 = vrcp.f32 %v4088_v22  ;;  %v4089_v10 = vadd.f32 1.0, %v9259_v2  ;;  %v12066_v6 = vpop.f32.mrb[63].mxu0  ;;  %v12074_v41 = vadd.f32 %v11854_v56, %v11649_v49  ;;  %v16578_v22 = vld [vmem:[#allocation11_spill] sm:$0xff] }
 0x23b   : > { %16577 = vst [vmem:[#allocation44_spill] sm:$0xff] %v12066_v6  ;;  %v9263_v60 = vpop.eup %9262  ;;  %9282 = vrcp.f32 %v4090_v58  ;;  %v4091_v33 = vadd.f32 1.0, %v9261_v48  ;;  %7938 = vmatmul.mubr.msk.bf16.gmra.mrb[152].mxu1 %vm1232_vm3, %v16578_v22  ;;  %7954 = vmatmul.mubr.msk.bf16.gmra.mrb[168].mxu0 %vm1232_vm3, %v16578_v22  ;;  %v12082_v58 = vadd.f32 %v11856_v62, %v11652_v23  ;;  %v8122_v22 = vmul.f32 -1.442695, %v12051_v3  ;;  %v12097_v8 = vpop.f32.mrb[48].mxu1 }
 0x23c   : > { %v9265_v59 = vpop.eup %9264  ;;  %9284 = vrcp.f32 %v4089_v10  ;;  %v4102_v2 = vadd.f32 1.0, %v9263_v60  ;;  %2135 = vmatprep.mubr.bf16.mxu1 %v16553_v63  ;;  %2328 = vmatprep.mubr.bf16.mxu0 %v16553_v63  ;;  %v8124_v10 = vmul.f32 -1.442695, %v12055_v55  ;;  %v8123_v62 = vmul.f32 -1.442695, %v12064_v30  ;;  %16579 = vst [vmem:[#allocation45_spill] sm:$0xff] %v12097_v8 }
 0x23d   : > { %v9267_v56 = vpop.eup %9266  ;;  %9286 = vrcp.f32 %v4091_v33  ;;  %v4104_v48 = vadd.f32 1.0, %v9265_v59  ;;  %v12099_v20 = vpop.f32.mrb[64].mxu0  ;;  %v8125_v59 = vmul.f32 -1.442695, %v12070_v42  ;;  %v8136_v16 = vmul.f32 -1.442695, %v12074_v41 }
 0x23e   : > { %v9269_v60 = vpop.eup %9268  ;;  %9288 = vrcp.f32 %v4102_v2  ;;  %v4103_v6 = vadd.f32 1.0, %v9267_v56  ;;  %16580 = vst [vmem:[#allocation46_spill] sm:$0xff] %v12099_v20  ;;  %v12104_v2 = vpop.f32.mrb[49].mxu1  ;;  %v8138_v8 = vmul.f32 -1.442695, %v12082_v58 }
 0x23f   : > { %v9271_v28 = vpop.eup %9270  ;;  %v5405_v33 = vmul.f32 %v9269_v60, %v11869_v14  ;;  %9290 = vrcp.f32 %v4104_v48  ;;  %16581 = vst [vmem:[#allocation47_spill] sm:$0xff] %v12104_v2  ;;  %v12106_v56 = vpop.f32.mrb[65].mxu0  ;;  %v8137_v20 = vmul.f32 -1.442695, %v12086_v9 }
 0x240   : > { %16582 = vst [vmem:[#allocation48_spill] sm:$0xff] %v12106_v56  ;;  %v9273_v57 = vpop.eup %9272  ;;  %v5407_v35 = vmul.f32 %v9271_v28, %v11884_v37  ;;  %9292 = vrcp.f32 %v4103_v6  ;;  %v12111_v11 = vpop.f32.mrb[50].mxu1  ;;  %v12119_v56 = vadd.f32 %v11877_v0, %v11649_v49  ;;  %v12132_v0 = vadd.f32 %v11879_v4, %v11652_v23 }
 0x241   : > { %16583 = vst [vmem:[#allocation49_spill] sm:$0xff] %v12111_v11  ;;  %v12113_v14 = vpop.f32.mrb[66].mxu0  ;;  %v9275_v48 = vpop.eup %9274  ;;  %v5812_v60 = vadd.f32 %v12005_v61, %v5405_v33  ;;  %v5418_v32 = vmul.f32 %v9273_v57, %v11892_v24  ;;  %9294 = vpow2.f32 %v8111_v15  ;;  %v16585_v15 = vld [vmem:[#allocation10_spill] sm:$0xff] }
 0x242   : > { %16584 = vst [vmem:[#allocation50_spill] sm:$0xff] %v12113_v14  ;;  %v12121_v37 = vpop.f32.mrb[51].mxu1  ;;  %v12123_v28 = vpop.f32.mrb[67].mxu0  ;;  %v5886_v2 = vadd.f32 %v12012_v27, %v5407_v35  ;;  %v5420_v11 = vmul.f32 %v9275_v48, %v11896_v34  ;;  %9296 = vpow2.f32 %v8122_v22  ;;  %v8139_v14 = vmul.f32 -1.442695, %v12095_v39 }
 0x243   : > { %v9277_v6 = vpop.eup %9276  ;;  %v5776_v24 = vadd.f32 %v12019_v26, %v5418_v32  ;;  %9298 = vpow2.f32 %v8124_v10  ;;  %7939 = vmatmul.mubr.msk.bf16.gmra.mrb[156].mxu1 %vm1232_vm3, %v16585_v15  ;;  %7955 = vmatmul.mubr.msk.bf16.gmra.mrb[172].mxu0 %vm1232_vm3, %v16585_v15  ;;  %v12149_v10 = vadd.f32 %v11888_v36, %v11658_v50  ;;  %v12155_v33 = vpop.f32.mrb[68].mxu0 }
 0x244   : > { %v9279_v61 = vpop.eup %9278  ;;  %v5419_v57 = vmul.f32 %v9277_v6, %v11904_v45  ;;  %v5850_v27 = vadd.f32 %v12027_v12, %v5420_v11  ;;  %9300 = vpow2.f32 %v8123_v62  ;;  %v12142_v45 = vadd.f32 %v11886_v38, %v11655_v13  ;;  %2145 = vmatprep.mubr.bf16.mxu1 %v16553_v63  ;;  %2338 = vmatprep.mubr.bf16.mxu0 %v16553_v63  ;;  %v12153_v62 = vpop.f32.mrb[52].mxu1 }
 0x245   : > { %v9281_v34 = vpop.eup %9280  ;;  %v5421_v22 = vmul.f32 %v9279_v61, %v11908_v7  ;;  %9302 = vpow2.f32 %v8125_v59  ;;  %v8150_v38 = vmul.f32 -1.442695, %v12119_v56  ;;  %v8152_v59 = vmul.f32 -1.442695, %v12132_v0  ;;  %v12159_v36 = vpop.f32.mrb[53].mxu1 }
 0x246   : > { %v9283_v4 = vpop.eup %9282  ;;  %v5813_v32 = vadd.f32 %v5812_v60, %v5419_v57  ;;  %v5432_v26 = vmul.f32 %v9281_v34, %v11916_v46  ;;  %9304 = vpow2.f32 %v8136_v16  ;;  %v12161_v60 = vpop.f32.mrb[69].mxu0  ;;  %v8151_v6 = vmul.f32 -1.442695, %v12142_v45 }
 0x247   : > { %v9285_v11 = vpop.eup %9284  ;;  %v5887_v7 = vadd.f32 %v5886_v2, %v5421_v22  ;;  %v5434_v12 = vmul.f32 %v9283_v4, %v11920_v19  ;;  %9306 = vpow2.f32 %v8138_v8  ;;  %v12165_v61 = vpop.f32.mrb[54].mxu1  ;;  %v8153_v34 = vmul.f32 -1.442695, %v12149_v10 }
 0x248   : > { %v9287_v35 = vpop.eup %9286  ;;  %v5777_v48 = vadd.f32 %v5776_v24, %v5432_v26  ;;  %v5433_v46 = vmul.f32 %v9285_v11, %v11925_v53  ;;  %9308 = vpow2.f32 %v8137_v20  ;;  %v12167_v57 = vpop.f32.mrb[70].mxu0 }
 0x249   : > { %v9289_v2 = vpop.eup %9288  ;;  %v5851_v19 = vadd.f32 %v5850_v27, %v5434_v12  ;;  %v5435_v16 = vmul.f32 %v9287_v35, %v11956_v43  ;;  %9310 = vpow2.f32 %v8139_v14  ;;  %v12171_v22 = vpop.f32.mrb[55].mxu1 }
 0x24a   : > { %v9291_v24 = vpop.eup %9290  ;;  %v5814_v53 = vadd.f32 %v5813_v32, %v5433_v46  ;;  %v5446_v8 = vmul.f32 %v9289_v2, %v11966_v5  ;;  %v12173_v4 = vpop.f32.mrb[71].mxu0  ;;  %9312 = vpow2.f32 %v8150_v38  ;;  %v16587_v5 = vld [vmem:[#allocation13_spill] sm:$0xff] }
 0x24b   : > { %16586 = vst [vmem:[#allocation51_spill] sm:$0xff] %v12173_v4  ;;  %v9293_v27 = vpop.eup %9292  ;;  %v12175_v43 = vadd.f32 %v5887_v7, %v5435_v16  ;;  %v5448_v20 = vmul.f32 %v9291_v24, %v11976_v31  ;;  %9314 = vpow2.f32 %v8152_v59  ;;  %7940 = vmatmul.mubr.msk.bf16.gmra.mrb[160].mxu1 %vm1232_vm3, %v16587_v5  ;;  %7956 = vmatmul.mubr.msk.bf16.gmra.mrb[176].mxu0 %vm1232_vm3, %v16587_v5  ;;  %v12191_v46 = vpop.f32.mrb[56].mxu1  ;;  %v16598_v5 = vld [vmem:[#allocation33_spill] sm:$0xff]  ;;  %v16609_v4 = vld [vmem:[#allocation15_spill] sm:$0xff] }
 0x24c   : > { %v9295_v26 = vpop.eup %9294  ;;  %v12178_v11 = vadd.f32 %v5777_v48, %v5446_v8  ;;  %v5447_v32 = vmul.f32 %v9293_v27, %v11981_v52  ;;  %9316 = vpow2.f32 %v8151_v6  ;;  %2155 = vmatprep.mubr.bf16.mxu1 %v16553_v63  ;;  %2348 = vmatprep.mubr.bf16.mxu0 %v16553_v63  ;;  %16588 = vst [vmem:[#allocation52_spill] sm:$0xff] %v12191_v46  ;;  %v12193_v59 = vpop.f32.mrb[72].mxu0  ;;  %v16592_v8 = vld [vmem:[#allocation31_spill] sm:$0xff] }
 0x24d   : > { %v9297_v14 = vpop.eup %9296  ;;  %v12185_v12 = vadd.f32 %v5851_v19, %v5448_v20  ;;  %v4105_v7 = vadd.f32 1.0, %v9295_v26  ;;  %9318 = vpow2.f32 %v8153_v34  ;;  %16589 = vst [vmem:[#allocation53_spill] sm:$0xff] %v12193_v59  ;;  %v12195_v16 = vpop.f32.mrb[57].mxu1  ;;  %v12201_v34 = vadd.f32 %v16592_v8, %v11649_v49 }
 0x24e   : > { %v9299_v31 = vpop.eup %9298  ;;  %v12189_v38 = vadd.f32 %v5814_v53, %v5447_v32  ;;  %v4116_v52 = vadd.f32 1.0, %v9297_v14  ;;  %16590 = vst [vmem:[#allocation54_spill] sm:$0xff] %v12195_v16  ;;  %v12197_v6 = vpop.f32.mrb[73].mxu0  ;;  %v12217_v15 = vadd.f32 %v16598_v5, %v11655_v13 }
 0x24f   : > { %v9301_v35 = vpop.eup %9300  ;;  %9320 = vrcp.f32 %v4105_v7  ;;  %v4118_v48 = vadd.f32 1.0, %v9299_v31  ;;  %16591 = vst [vmem:[#allocation55_spill] sm:$0xff] %v12197_v6  ;;  %v12203_v27 = vpop.f32.mrb[58].mxu1 }
 0x250   : > { %v9303_v2 = vpop.eup %9302  ;;  %9322 = vrcp.f32 %v4116_v52  ;;  %v4117_v19 = vadd.f32 1.0, %v9301_v35  ;;  %16593 = vst [vmem:[#allocation31_spill] sm:$0xff] %v12203_v27  ;;  %v12205_v20 = vpop.f32.mrb[74].mxu0  ;;  %v16597_v35 = vld [vmem:[#allocation32_spill] sm:$0xff]  ;;  %v8165_v6 = vmul.f32 -1.442695, %v12217_v15 }
 0x251   : > { %v9305_v24 = vpop.eup %9304  ;;  %9324 = vrcp.f32 %v4118_v48  ;;  %v4119_v53 = vadd.f32 1.0, %v9303_v2  ;;  %16594 = vst [vmem:[#allocation56_spill] sm:$0xff] %v12205_v20  ;;  %v12207_v14 = vpop.f32.mrb[59].mxu1  ;;  %v12213_v48 = vadd.f32 %v16597_v35, %v11652_v23  ;;  %v16600_v35 = vld [vmem:[#allocation34_spill] sm:$0xff]  ;;  %v12241_v20 = vadd.f32 %v11948_v51, %v11655_v13 }
 0x252   : > { %v9307_v26 = vpop.eup %9306  ;;  %9326 = vrcp.f32 %v4117_v19  ;;  %v4130_v32 = vadd.f32 1.0, %v9305_v24  ;;  %16595 = vst [vmem:[#allocation57_spill] sm:$0xff] %v12207_v14  ;;  %v12209_v7 = vpop.f32.mrb[75].mxu0  ;;  %v16599_v19 = vld [vmem:[#allocation12_spill] sm:$0xff] }
 0x253   : > { %16596 = vst [vmem:[#allocation58_spill] sm:$0xff] %v12209_v7  ;;  %v9309_v31 = vpop.eup %9308  ;;  %9328 = vrcp.f32 %v4119_v53  ;;  %v4132_v52 = vadd.f32 1.0, %v9307_v26  ;;  %7941 = vmatmul.mubr.msk.bf16.gmra.mrb[164].mxu1 %vm1232_vm3, %v16599_v19  ;;  %7957 = vmatmul.mubr.msk.bf16.gmra.mrb[180].mxu0 %vm1232_vm3, %v16599_v19  ;;  %v8164_v26 = vmul.f32 -1.442695, %v12201_v34  ;;  %v12226_v7 = vadd.f32 %v16600_v35, %v11658_v50  ;;  %v12243_v27 = vpop.f32.mrb[60].mxu1 }
 0x254   : > { %v9311_v2 = vpop.eup %9310  ;;  %9330 = vrcp.f32 %v4130_v32  ;;  %v4131_v8 = vadd.f32 1.0, %v9309_v31  ;;  %2165 = vmatprep.mubr.bf16.mxu1 %v16553_v63  ;;  %2358 = vmatprep.mubr.bf16.mxu0 %v16553_v63  ;;  %v12232_v31 = vadd.f32 %v11941_v54, %v11649_v49  ;;  %v8166_v35 = vmul.f32 -1.442695, %v12213_v48  ;;  %16602 = vst [vmem:[#allocation32_spill] sm:$0xff] %v12243_v27 }
 0x255   : > { %v9313_v24 = vpop.eup %9312  ;;  %9332 = vrcp.f32 %v4132_v52  ;;  %v4133_v53 = vadd.f32 1.0, %v9311_v2  ;;  %v16601_v52 = vld [vmem:[#allocation35_spill] sm:$0xff]  ;;  %v8167_v27 = vmul.f32 -1.442695, %v12226_v7 }
 0x256   : > { %v9315_v5 = vpop.eup %9314  ;;  %9334 = vrcp.f32 %v4131_v8  ;;  %v4144_v32 = vadd.f32 1.0, %v9313_v24  ;;  %v12236_v2 = vadd.f32 %v16601_v52, %v11652_v23  ;;  %v12245_v8 = vpop.f32.mrb[76].mxu0  ;;  %v12250_v52 = vadd.f32 %v11950_v29, %v11658_v50 }
 0x257   : > { %v9317_v19 = vpop.eup %9316  ;;  %9336 = vrcp.f32 %v4133_v53  ;;  %v4146_v14 = vadd.f32 1.0, %v9315_v5  ;;  %16603 = vst [vmem:[#allocation33_spill] sm:$0xff] %v12245_v8  ;;  %v12252_v53 = vpop.f32.mrb[61].mxu1  ;;  %v12259_v8 = vadd.f32 %v11958_v44, %v11649_v49 }
 0x258   : > { %v9319_v24 = vpop.eup %9318  ;;  %9338 = vrcp.f32 %v4144_v32  ;;  %v4145_v54 = vadd.f32 1.0, %v9317_v19  ;;  %16604 = vst [vmem:[#allocation34_spill] sm:$0xff] %v12252_v53  ;;  %v12254_v5 = vpop.f32.mrb[77].mxu0  ;;  %v8178_v53 = vmul.f32 -1.442695, %v12232_v31 }
 0x259   : > { %16605 = vst [vmem:[#allocation35_spill] sm:$0xff] %v12254_v5  ;;  %v9321_v16 = vpop.eup %9320  ;;  %9340 = vrcp.f32 %v4146_v14  ;;  %v4147_v51 = vadd.f32 1.0, %v9319_v24  ;;  %v12261_v19 = vpop.f32.mrb[62].mxu1  ;;  %v8180_v5 = vmul.f32 -1.442695, %v12236_v2 }
 0x25a   : > { %16606 = vst [vmem:[#allocation59_spill] sm:$0xff] %v12261_v19  ;;  %v12263_v32 = vpop.f32.mrb[78].mxu0  ;;  %v9323_v59 = vpop.eup %9322  ;;  %v5449_v29 = vmul.f32 %v9321_v16, %v12037_v40  ;;  %9342 = vrcp.f32 %v4145_v54  ;;  %v8179_v19 = vmul.f32 -1.442695, %v12241_v20 }
 0x25b   : > { %16607 = vst [vmem:[#allocation60_spill] sm:$0xff] %v12263_v32  ;;  %v12268_v14 = vpop.f32.mrb[63].mxu1  ;;  %v12270_v24 = vpop.f32.mrb[79].mxu0  ;;  %v5460_v44 = vmul.f32 %v9323_v59, %v12051_v3  ;;  %9344 = vrcp.f32 %v4147_v51  ;;  %v12276_v32 = vadd.f32 %v11960_v21, %v11652_v23  ;;  %7942 = vmatmul.mubr.msk.bf16.gmra.mrb[168].mxu1 %vm1232_vm3, %v16609_v4  ;;  %7958 = vmatmul.mubr.msk.bf16.gmra.mrb[184].mxu0 %vm1232_vm3, %v16609_v4  ;;  %v8192_v51 = vmul.f32 -1.442695, %v12259_v8 }
 0x25c   : > { %16608 = vst [vmem:[#allocation61_spill] sm:$0xff] %v12268_v14  ;;  %v9325_v46 = vpop.eup %9324  ;;  %v5889_v16 = vadd.f32 %v12175_v43, %v5449_v29  ;;  %9346 = vpow2.f32 %v8164_v26  ;;  %v8181_v14 = vmul.f32 -1.442695, %v12250_v52  ;;  %2175 = vmatprep.mubr.bf16.mxu1 %v16553_v63  ;;  %2368 = vmatprep.mubr.bf16.mxu0 %v16553_v63  ;;  %v16610_v26 = vld [vmem:[#allocation36_spill] sm:$0xff]  ;;  %v12302_v4 = vpop.f32.mrb[64].mxu1 }
 0x25d   : > { %v9327_v40 = vpop.eup %9326  ;;  %v5462_v54 = vmul.f32 %v9325_v46, %v12055_v55  ;;  %v5779_v59 = vadd.f32 %v12178_v11, %v5460_v44  ;;  %9348 = vpow2.f32 %v8166_v35  ;;  %v12294_v29 = vadd.f32 %v16610_v26, %v11655_v13  ;;  %v16611_v44 = vld [vmem:[#allocation37_spill] sm:$0xff] }
 0x25e   : > { %v9329_v3 = vpop.eup %9328  ;;  %v5461_v21 = vmul.f32 %v9327_v40, %v12064_v30  ;;  %9350 = vpow2.f32 %v8165_v6  ;;  %v12300_v40 = vadd.f32 %v16611_v44, %v11658_v50  ;;  %v8194_v26 = vmul.f32 -1.442695, %v12276_v32 }
 0x25f   : > { %v9331_v55 = vpop.eup %9330  ;;  %v5853_v43 = vadd.f32 %v12185_v12, %v5462_v54  ;;  %v5463_v46 = vmul.f32 %v9329_v3, %v12070_v42  ;;  %9352 = vpow2.f32 %v8167_v27  ;;  %v12304_v12 = vpop.f32.mrb[80].mxu0  ;;  %v12309_v3 = vadd.f32 %v11995_v47, %v11649_v49 }
 0x260   : > { %v9333_v11 = vpop.eup %9332  ;;  %v5816_v30 = vadd.f32 %v12189_v38, %v5461_v21  ;;  %v5474_v35 = vmul.f32 %v9331_v55, %v12074_v41  ;;  %9354 = vpow2.f32 %v8178_v53  ;;  %v12311_v38 = vpop.f32.mrb[65].mxu1 }
 0x261   : > { %v9335_v42 = vpop.eup %9334  ;;  %v5890_v6 = vadd.f32 %v5889_v16, %v5463_v46  ;;  %v5476_v54 = vmul.f32 %v9333_v11, %v12082_v58  ;;  %v12313_v41 = vpop.f32.mrb[81].mxu0  ;;  %9356 = vpow2.f32 %v8180_v5  ;;  %v8193_v46 = vmul.f32 -1.442695, %v12294_v29 }
 0x262   : > { %16612 = vst [vmem:[#allocation36_spill] sm:$0xff] %v12313_v41  ;;  %v9337_v27 = vpop.eup %9336  ;;  %v5780_v21 = vadd.f32 %v5779_v59, %v5474_v35  ;;  %v5475_v55 = vmul.f32 %v9335_v42, %v12086_v9  ;;  %v12317_v44 = vpop.f32.mrb[66].mxu1  ;;  %9358 = vpow2.f32 %v8179_v19  ;;  %v8195_v35 = vmul.f32 -1.442695, %v12300_v40  ;;  %v16617_v19 = vld [vmem:[#allocation14_spill] sm:$0xff] }
 0x263   : > { %16613 = vst [vmem:[#allocation37_spill] sm:$0xff] %v12317_v44  ;;  %v12319_v16 = vpop.f32.mrb[82].mxu0  ;;  %v9339_v58 = vpop.eup %9338  ;;  %v5854_v53 = vadd.f32 %v5853_v43, %v5476_v54  ;;  %v5477_v47 = vmul.f32 %v9337_v27, %v12095_v39  ;;  %9360 = vpow2.f32 %v8181_v14  ;;  %v8206_v39 = vmul.f32 -1.442695, %v12309_v3  ;;  %7943 = vmatmul.mubr.msk.bf16.gmra.mrb[172].mxu1 %vm1232_vm3, %v16617_v19  ;;  %7959 = vmatmul.mubr.msk.bf16.gmra.mrb[188].mxu0 %vm1232_vm3, %v16617_v19 }
 0x264   : > { %16614 = vst [vmem:[#allocation62_spill] sm:$0xff] %v12319_v16  ;;  %v12323_v11 = vpop.f32.mrb[67].mxu1  ;;  %v12325_v41 = vpop.f32.mrb[83].mxu0  ;;  %v5817_v9 = vadd.f32 %v5816_v30, %v5475_v55  ;;  %v5488_v5 = vmul.f32 %v9339_v58, %v12119_v56  ;;  %9362 = vpow2.f32 %v8192_v51  ;;  %2185 = vmatprep.mubr.bf16.mxu1 %v16553_v63  ;;  %2378 = vmatprep.mubr.bf16.mxu0 %v16553_v63 }
 0x265   : > { %16615 = vst [vmem:[#allocation63_spill] sm:$0xff] %v12323_v11  ;;  %16616 = vst [vmem:[#allocation64_spill] sm:$0xff] %v12325_v41  ;;  %v9341_v59 = vpop.eup %9340  ;;  %v5891_v16 = vadd.f32 %v5890_v6, %v5477_v47  ;;  %9364 = vpow2.f32 %v8194_v26  ;;  %v12347_v58 = vpop.f32.mrb[84].mxu0 }
 0x266   : > { %v9343_v42 = vpop.eup %9342  ;;  %v5490_v43 = vmul.f32 %v9341_v59, %v12132_v0  ;;  %v12335_v30 = vadd.f32 %v5780_v21, %v5488_v5  ;;  %9366 = vpow2.f32 %v8193_v46  ;;  %v12345_v21 = vpop.f32.mrb[68].mxu1  ;;  %16619 = vst [vmem:[#allocation66_spill] sm:$0xff] %v12347_v58  ;;  %v16636_v58 = vld [vmem:[#allocation16_spill] sm:$0xff] }
 0x267   : > { %v9345_v54 = vpop.eup %9344  ;;  %v5489_v56 = vmul.f32 %v9343_v42, %v12142_v45  ;;  %9368 = vpow2.f32 %v8195_v35  ;;  %16618 = vst [vmem:[#allocation65_spill] sm:$0xff] %v12345_v21  ;;  %v12351_v59 = vpop.f32.mrb[69].mxu1 }
 0x268   : > { %v9347_v0 = vpop.eup %9346  ;;  %v12340_v14 = vadd.f32 %v5854_v53, %v5490_v43  ;;  %v5491_v51 = vmul.f32 %v9345_v54, %v12149_v10  ;;  %9370 = vpow2.f32 %v8206_v39  ;;  %16620 = vst [vmem:[#allocation67_spill] sm:$0xff] %v12351_v59  ;;  %v12353_v53 = vpop.f32.mrb[85].mxu0 }
 0x269   : > { %v9349_v6 = vpop.eup %9348  ;;  %v12343_v27 = vadd.f32 %v5817_v9, %v5489_v56  ;;  %v4158_v55 = vadd.f32 1.0, %v9347_v0  ;;  %16621 = vst [vmem:[#allocation68_spill] sm:$0xff] %v12353_v53  ;;  %v12355_v9 = vpop.f32.mrb[70].mxu1 }
 0x26a   : > { %v9351_v45 = vpop.eup %9350  ;;  %v12349_v26 = vadd.f32 %v5891_v16, %v5491_v51  ;;  %v4160_v47 = vadd.f32 1.0, %v9349_v6  ;;  %16622 = vst [vmem:[#allocation69_spill] sm:$0xff] %v12355_v9  ;;  %v12357_v5 = vpop.f32.mrb[86].mxu0  ;;  %v12361_v16 = vadd.f32 %v11997_v1, %v11652_v23  ;;  %v16626_v6 = vld [vmem:[#allocation17_spill] sm:$0xff] }
 0x26b   : > { %v9353_v10 = vpop.eup %9352  ;;  %9372 = vrcp.f32 %v4158_v55  ;;  %v4159_v46 = vadd.f32 1.0, %v9351_v45  ;;  %16623 = vst [vmem:[#allocation70_spill] sm:$0xff] %v12357_v5  ;;  %v12363_v43 = vpop.f32.mrb[71].mxu1  ;;  %7944 = vmatmul.mubr.msk.bf16.gmra.mrb[176].mxu1 %vm1232_vm3, %v16626_v6  ;;  %7960 = vmatmul.mubr.msk.bf16.gmra.mrb[192].mxu0 %vm1232_vm3, %v16626_v6 }
 0x26c   : > { %v9355_v35 = vpop.eup %9354  ;;  %9374 = vrcp.f32 %v4160_v47  ;;  %v4161_v42 = vadd.f32 1.0, %v9353_v10  ;;  %16624 = vst [vmem:[#allocation71_spill] sm:$0xff] %v12363_v43  ;;  %v12365_v39 = vpop.f32.mrb[87].mxu0  ;;  %2195 = vmatprep.mubr.bf16.mxu1 %v16553_v63  ;;  %2388 = vmatprep.mubr.bf16.mxu0 %v16553_v63  ;;  %v8208_v10 = vmul.f32 -1.442695, %v12361_v16 }
 0x26d   : > { %16625 = vst [vmem:[#allocation72_spill] sm:$0xff] %v12365_v39  ;;  %v9357_v54 = vpop.eup %9356  ;;  %9376 = vrcp.f32 %v4159_v46  ;;  %v4172_v56 = vadd.f32 1.0, %v9355_v35  ;;  %v12376_v46 = vadd.f32 %v12001_v18, %v11655_v13  ;;  %v16629_v18 = vld [vmem:[#allocation27_spill] sm:$0xff] }
 0x26e   : > { %v9359_v0 = vpop.eup %9358  ;;  %9378 = vrcp.f32 %v4161_v42  ;;  %v4174_v51 = vadd.f32 1.0, %v9357_v54  ;;  %v12380_v54 = vadd.f32 %v12003_v17, %v11658_v50  ;;  %v12392_v19 = vadd.f32 %v16629_v18, %v11652_v23 }
 0x26f   : > { %v9361_v55 = vpop.eup %9360  ;;  %9380 = vrcp.f32 %v4172_v56  ;;  %v4173_v1 = vadd.f32 1.0, %v9359_v0  ;;  %v12384_v56 = vadd.f32 %v12008_v25, %v11649_v49  ;;  %v12386_v0 = vpop.f32.mrb[72].mxu1  ;;  %v8207_v5 = vmul.f32 -1.442695, %v12376_v46 }
 0x270   : > { %v9363_v45 = vpop.eup %9362  ;;  %9382 = vrcp.f32 %v4174_v51  ;;  %v4175_v47 = vadd.f32 1.0, %v9361_v55  ;;  %16627 = vst [vmem:[#allocation73_spill] sm:$0xff] %v12386_v0  ;;  %v12388_v51 = vpop.f32.mrb[88].mxu0  ;;  %v16632_v0 = vld [vmem:[#allocation29_spill] sm:$0xff] }
 0x271   : > { %v9365_v35 = vpop.eup %9364  ;;  %9384 = vrcp.f32 %v4173_v1  ;;  %v4186_v42 = vadd.f32 1.0, %v9363_v45  ;;  %16628 = vst [vmem:[#allocation74_spill] sm:$0xff] %v12388_v51  ;;  %v16630_v1 = vld [vmem:[#allocation28_spill] sm:$0xff]  ;;  %v12398_v17 = vpop.f32.mrb[73].mxu1  ;;  %v12402_v43 = vadd.f32 %v16632_v0, %v11658_v50  ;;  %v8220_v0 = vmul.f32 -1.442695, %v12384_v56 }
 0x272   : > { %v9367_v55 = vpop.eup %9366  ;;  %9386 = vrcp.f32 %v4175_v47  ;;  %v4188_v6 = vadd.f32 1.0, %v9365_v35  ;;  %v12396_v45 = vadd.f32 %v16630_v1, %v11655_v13  ;;  %16631 = vst [vmem:[#allocation27_spill] sm:$0xff] %v12398_v17  ;;  %v16633_v47 = vld [vmem:[#allocation30_spill] sm:$0xff]  ;;  %v12415_v53 = vpop.f32.mrb[89].mxu0 }
 0x273   : > { %v9369_v39 = vpop.eup %9368  ;;  %9388 = vrcp.f32 %v4186_v42  ;;  %v4187_v25 = vadd.f32 1.0, %v9367_v55  ;;  %v12406_v35 = vadd.f32 %v16633_v47, %v11649_v49  ;;  %v16634_v1 = vld [vmem:[#allocation38_spill] sm:$0xff]  ;;  %v8209_v55 = vmul.f32 -1.442695, %v12380_v54  ;;  %16635 = vst [vmem:[#allocation28_spill] sm:$0xff] %v12415_v53  ;;  %7945 = vmatmul.mubr.msk.bf16.gmra.mrb[180].mxu1 %vm1232_vm3, %v16636_v58  ;;  %7961 = vmatmul.mubr.msk.bf16.gmra.mrb[196].mxu0 %vm1232_vm3, %v16636_v58 }
 0x274   : > { %v9371_v51 = vpop.eup %9370  ;;  %9390 = vrcp.f32 %v4188_v6  ;;  %v4189_v18 = vadd.f32 1.0, %v9369_v39  ;;  %v12411_v9 = vadd.f32 %v16634_v1, %v11652_v23  ;;  %v8222_v39 = vmul.f32 -1.442695, %v12392_v19  ;;  %2205 = vmatprep.mubr.bf16.mxu1 %v16553_v63  ;;  %2398 = vmatprep.mubr.bf16.mxu0 %v16553_v63 }
 0x275   : > { %v9373_v17 = vpop.eup %9372  ;;  %9392 = vrcp.f32 %v4187_v25  ;;  %v4200_v42 = vadd.f32 1.0, %v9371_v51  ;;  %v8221_v6 = vmul.f32 -1.442695, %v12396_v45  ;;  %v8223_v1 = vmul.f32 -1.442695, %v12402_v43 }
 0x276   : > { %v9375_v47 = vpop.eup %9374  ;;  %v5502_v59 = vmul.f32 %v9373_v17, %v12201_v34  ;;  %9394 = vrcp.f32 %v4189_v18  ;;  %v8234_v53 = vmul.f32 -1.442695, %v12406_v35  ;;  %v12427_v34 = vpop.f32.mrb[74].mxu1 }
 0x277   : > { %v9377_v51 = vpop.eup %9376  ;;  %v5504_v25 = vmul.f32 %v9375_v47, %v12213_v48  ;;  %9396 = vrcp.f32 %v4200_v42  ;;  %16637 = vst [vmem:[#allocation29_spill] sm:$0xff] %v12427_v34  ;;  %v12429_v17 = vpop.f32.mrb[90].mxu0  ;;  %v8236_v48 = vmul.f32 -1.442695, %v12411_v9 }
 0x278   : > { %16638 = vst [vmem:[#allocation30_spill] sm:$0xff] %v12429_v17  ;;  %v9379_v18 = vpop.eup %9378  ;;  %v5782_v21 = vadd.f32 %v12335_v30, %v5502_v59  ;;  %v5503_v58 = vmul.f32 %v9377_v51, %v12217_v15  ;;  %9398 = vpow2.f32 %v8208_v10  ;;  %v16639_v17 = vld [vmem:[#allocation39_spill] sm:$0xff]  ;;  %v12442_v11 = vpop.f32.mrb[75].mxu1  ;;  %v16641_v10 = vld [vmem:[#allocation40_spill] sm:$0xff] }
 0x279   : > { %v9381_v42 = vpop.eup %9380  ;;  %v5856_v47 = vadd.f32 %v12340_v14, %v5504_v25  ;;  %v5505_v41 = vmul.f32 %v9379_v18, %v12226_v7  ;;  %9400 = vpow2.f32 %v8207_v5  ;;  %v12440_v34 = vadd.f32 %v16639_v17, %v11655_v13  ;;  %v12444_v44 = vpop.f32.mrb[91].mxu0  ;;  %v16642_v25 = vld [vmem:[#allocation41_spill] sm:$0xff] }
 0x27a   : > { %16640 = vst [vmem:[#allocation38_spill] sm:$0xff] %v12444_v44  ;;  %v9383_v30 = vpop.eup %9382  ;;  %v5819_v15 = vadd.f32 %v12343_v27, %v5503_v58  ;;  %v5516_v59 = vmul.f32 %v9381_v42, %v12232_v31  ;;  %9402 = vpow2.f32 %v8209_v55  ;;  %v12450_v14 = vadd.f32 %v16641_v10, %v11658_v50  ;;  %v16643_v31 = vld [vmem:[#allocation42_spill] sm:$0xff] }
 0x27b   : > { %v9385_v7 = vpop.eup %9384  ;;  %v5893_v5 = vadd.f32 %v12349_v26, %v5505_v41  ;;  %v5518_v51 = vmul.f32 %v9383_v30, %v12236_v2  ;;  %9404 = vpow2.f32 %v8220_v0  ;;  %v12456_v17 = vadd.f32 %v16642_v25, %v11649_v49 }
 0x27c   : > { %v9387_v18 = vpop.eup %9386  ;;  %v5783_v44 = vadd.f32 %v5782_v21, %v5516_v59  ;;  %v5517_v27 = vmul.f32 %v9385_v7, %v12241_v20  ;;  %9406 = vpow2.f32 %v8222_v39  ;;  %v12461_v58 = vadd.f32 %v16643_v31, %v11652_v23  ;;  %v16644_v20 = vld [vmem:[#allocation19_spill] sm:$0xff]  ;;  %v12473_v59 = vpop.f32.mrb[76].mxu1 }
 0x27d   : > { %v9389_v55 = vpop.eup %9388  ;;  %v5857_v42 = vadd.f32 %v5856_v47, %v5518_v51  ;;  %v5519_v41 = vmul.f32 %v9387_v18, %v12250_v52  ;;  %9408 = vpow2.f32 %v8221_v6  ;;  %v8235_v2 = vmul.f32 -1.442695, %v12440_v34  ;;  %7946 = vmatmul.mubr.msk.bf16.gmra.mrb[184].mxu1 %vm1232_vm3, %v16644_v20  ;;  %7962 = vmatmul.mubr.msk.bf16.gmra.mrb[200].mxu0 %vm1232_vm3, %v16644_v20 }
 0x27e   : > { %v9391_v26 = vpop.eup %9390  ;;  %v5820_v0 = vadd.f32 %v5819_v15, %v5517_v27  ;;  %v5530_v30 = vmul.f32 %v9389_v55, %v12259_v8  ;;  %9410 = vpow2.f32 %v8223_v1  ;;  %v8237_v21 = vmul.f32 -1.442695, %v12450_v14  ;;  %v12475_v15 = vpop.f32.mrb[92].mxu0  ;;  %2215 = vmatprep.mubr.bf16.mxu1 %v16553_v63  ;;  %2408 = vmatprep.mubr.bf16.mxu0 %v16553_v63 }
 0x27f   : > { %v9393_v39 = vpop.eup %9392  ;;  %v5894_v47 = vadd.f32 %v5893_v5, %v5519_v41  ;;  %v5532_v52 = vmul.f32 %v9391_v26, %v12276_v32  ;;  %9412 = vpow2.f32 %v8234_v53  ;;  %v8248_v6 = vmul.f32 -1.442695, %v12456_v17  ;;  %16645 = vst [vmem:[#allocation39_spill] sm:$0xff] %v12475_v15  ;;  %v12481_v5 = vpop.f32.mrb[77].mxu1 }
 0x280   : > { %v9395_v8 = vpop.eup %9394  ;;  %v5784_v1 = vadd.f32 %v5783_v44, %v5530_v30  ;;  %v5531_v10 = vmul.f32 %v9393_v39, %v12294_v29  ;;  %9414 = vpow2.f32 %v8236_v48  ;;  %v8250_v7 = vmul.f32 -1.442695, %v12461_v58  ;;  %16646 = vst [vmem:[#allocation40_spill] sm:$0xff] %v12481_v5  ;;  %v12483_v32 = vpop.f32.mrb[93].mxu0 }
 0x281   : > { %16647 = vst [vmem:[#allocation41_spill] sm:$0xff] %v12483_v32  ;;  %v9397_v53 = vpop.eup %9396  ;;  %v12485_v51 = vadd.f32 %v5857_v42, %v5532_v52  ;;  %v5533_v25 = vmul.f32 %v9395_v8, %v12300_v40  ;;  %9416 = vpow2.f32 %v8235_v2  ;;  %v12488_v18 = vpop.f32.mrb[78].mxu1  ;;  %v16653_v8 = vld [vmem:[#allocation43_spill] sm:$0xff] }
 0x282   : > { %16648 = vst [vmem:[#allocation42_spill] sm:$0xff] %v12488_v18  ;;  %v12490_v27 = vpop.f32.mrb[94].mxu0  ;;  %v9399_v44 = vpop.eup %9398  ;;  %v12492_v31 = vadd.f32 %v5820_v0, %v5531_v10  ;;  %v5544_v29 = vmul.f32 %v9397_v53, %v12309_v3  ;;  %9418 = vpow2.f32 %v8237_v21  ;;  %v16652_v21 = vld [vmem:[#allocation18_spill] sm:$0xff] }
 0x283   : > { %16649 = vst [vmem:[#allocation75_spill] sm:$0xff] %v12490_v27  ;;  %v12495_v48 = vpop.f32.mrb[79].mxu1  ;;  %v12497_v55 = vpop.f32.mrb[95].mxu0  ;;  %v12499_v42 = vadd.f32 %v5894_v47, %v5533_v25  ;;  %v4202_v26 = vadd.f32 1.0, %v9399_v44  ;;  %9420 = vpow2.f32 %v8248_v6 }
 0x284   : > { %16650 = vst [vmem:[#allocation76_spill] sm:$0xff] %v12495_v48  ;;  %16651 = vst [vmem:[#allocation77_spill] sm:$0xff] %v12497_v55  ;;  %v9401_v41 = vpop.eup %9400  ;;  %v12501_v2 = vadd.f32 %v5784_v1, %v5544_v29  ;;  %9422 = vpow2.f32 %v8250_v7  ;;  %v12509_v1 = vadd.f32 %v16653_v8, %v11655_v13 }
 0x285   : > { %v9403_v40 = vpop.eup %9402  ;;  %v4201_v30 = vadd.f32 1.0, %v9401_v41  ;;  %9424 = vrcp.f32 %v4202_v26  ;;  %7947 = vmatmul.mubr.msk.bf16.gmra.mrb[188].mxu1 %vm1232_vm3, %v16652_v21  ;;  %7963 = vmatmul.mubr.msk.bf16.gmra.mrb[204].mxu0 %vm1232_vm3, %v16652_v21  ;;  %v16654_v41 = vld [vmem:[#allocation44_spill] sm:$0xff] }
 0x286   : > { %v9405_v39 = vpop.eup %9404  ;;  %v4203_v0 = vadd.f32 1.0, %v9403_v40  ;;  %2225 = vmatprep.mubr.bf16.mxu1 %v16553_v63  ;;  %2418 = vmatprep.mubr.bf16.mxu0 %v16553_v63  ;;  %v12515_v26 = vadd.f32 %v16654_v41, %v11658_v50  ;;  %v16655_v40 = vld [vmem:[#allocation45_spill] sm:$0xff] }
 0x287   : > { %v9407_v52 = vpop.eup %9406  ;;  %9426 = vrcp.f32 %v4201_v30  ;;  %v4214_v3 = vadd.f32 1.0, %v9405_v39  ;;  %v12519_v30 = vadd.f32 %v16655_v40, %v11649_v49 }
 0x288   : > { %v9409_v47 = vpop.eup %9408  ;;  %9428 = vrcp.f32 %v4203_v0  ;;  %v4216_v6 = vadd.f32 1.0, %v9407_v52  ;;  %v8249_v52 = vmul.f32 -1.442695, %v12509_v1 }
 0x289   : > { %v9411_v10 = vpop.eup %9410  ;;  %9430 = vrcp.f32 %v4214_v3  ;;  %v4215_v7 = vadd.f32 1.0, %v9409_v47  ;;  %v16656_v3 = vld [vmem:[#allocation46_spill] sm:$0xff]  ;;  %v8262_v55 = vmul.f32 -1.442695, %v12519_v30 }
 0x28a   : > { %v9413_v53 = vpop.eup %9412  ;;  %9432 = vrcp.f32 %v4216_v6  ;;  %v4217_v25 = vadd.f32 1.0, %v9411_v10  ;;  %v12524_v47 = vadd.f32 %v16656_v3, %v11652_v23  ;;  %v16657_v10 = vld [vmem:[#allocation47_spill] sm:$0xff]  ;;  %v16660_v3 = vld [vmem:[#allocation50_spill] sm:$0xff] }
 0x28b   : > { %v9415_v44 = vpop.eup %9414  ;;  %9434 = vrcp.f32 %v4215_v7  ;;  %v4228_v29 = vadd.f32 1.0, %v9413_v53  ;;  %v12528_v7 = vadd.f32 %v16657_v10, %v11655_v13  ;;  %v16658_v53 = vld [vmem:[#allocation48_spill] sm:$0xff]  ;;  %v12540_v20 = vadd.f32 %v16660_v3, %v11652_v23 }
 0x28c   : > { %v9417_v39 = vpop.eup %9416  ;;  %9436 = vrcp.f32 %v4217_v25  ;;  %v4230_v0 = vadd.f32 1.0, %v9415_v44  ;;  %v12532_v41 = vadd.f32 %v16658_v53, %v11658_v50  ;;  %v16659_v44 = vld [vmem:[#allocation49_spill] sm:$0xff]  ;;  %v8251_v10 = vmul.f32 -1.442695, %v12515_v26 }
 0x28d   : > { %v9419_v6 = vpop.eup %9418  ;;  %9438 = vrcp.f32 %v4228_v29  ;;  %v4229_v8 = vadd.f32 1.0, %v9417_v39  ;;  %v12536_v21 = vadd.f32 %v16659_v44, %v11649_v49  ;;  %v16661_v53 = vld [vmem:[#allocation21_spill] sm:$0xff]  ;;  %v8264_v44 = vmul.f32 -1.442695, %v12524_v47 }
 0x28e   : > { %v9421_v40 = vpop.eup %9420  ;;  %9440 = vrcp.f32 %v4230_v0  ;;  %v4231_v25 = vadd.f32 1.0, %v9419_v6  ;;  %7948 = vmatmul.mubr.msk.bf16.gmra.mrb[192].mxu1 %vm1232_vm3, %v16661_v53  ;;  %7964 = vmatmul.mubr.msk.bf16.gmra.mrb[208].mxu0 %vm1232_vm3, %v16661_v53  ;;  %v12551_v3 = vadd.f32 %v12121_v37, %v11655_v13  ;;  %v8263_v48 = vmul.f32 -1.442695, %v12528_v7 }
 0x28f   : > { %v9423_v29 = vpop.eup %9422  ;;  %9442 = vrcp.f32 %v4229_v8  ;;  %v4242_v39 = vadd.f32 1.0, %v9421_v40  ;;  %2235 = vmatprep.mubr.bf16.mxu1 %v16553_v63  ;;  %2428 = vmatprep.mubr.bf16.mxu0 %v16553_v63  ;;  %v8265_v53 = vmul.f32 -1.442695, %v12532_v41  ;;  %v8276_v27 = vmul.f32 -1.442695, %v12536_v21 }
 0x290   : > { %v9425_v0 = vpop.eup %9424  ;;  %9444 = vrcp.f32 %v4231_v25  ;;  %v4244_v6 = vadd.f32 1.0, %v9423_v29  ;;  %v8278_v37 = vmul.f32 -1.442695, %v12540_v20 }
 0x291   : > { %v9427_v8 = vpop.eup %9426  ;;  %v5546_v40 = vmul.f32 %v9425_v0, %v12361_v16  ;;  %9446 = vrcp.f32 %v4242_v39  ;;  %v12565_v16 = vadd.f32 %v12123_v28, %v11658_v50  ;;  %v12576_v28 = vpop.f32.mrb[80].mxu1 }
 0x292   : > { %v9429_v25 = vpop.eup %9428  ;;  %v5545_v29 = vmul.f32 %v9427_v8, %v12376_v46  ;;  %9448 = vrcp.f32 %v4244_v6  ;;  %v8277_v6 = vmul.f32 -1.442695, %v12551_v3 }
 0x293   : > { %v9431_v18 = vpop.eup %9430  ;;  %v5859_v32 = vadd.f32 %v12485_v51, %v5546_v40  ;;  %v5547_v5 = vmul.f32 %v9429_v25, %v12380_v54  ;;  %9450 = vpow2.f32 %v8249_v52  ;;  %v12574_v54 = vadd.f32 %v12153_v62, %v11649_v49  ;;  %v12578_v52 = vpop.f32.mrb[96].mxu0 }
 0x294   : > { %v9433_v39 = vpop.eup %9432  ;;  %v5822_v0 = vadd.f32 %v12492_v31, %v5545_v29  ;;  %v5558_v46 = vmul.f32 %v9431_v18, %v12384_v56  ;;  %9452 = vpow2.f32 %v8251_v10  ;;  %v12593_v40 = vadd.f32 %v12159_v36, %v11655_v13 }
 0x295   : > { %v9435_v8 = vpop.eup %9434  ;;  %v5896_v15 = vadd.f32 %v12499_v42, %v5547_v5  ;;  %v5560_v51 = vmul.f32 %v9433_v39, %v12392_v19  ;;  %9454 = vpow2.f32 %v8262_v55  ;;  %v12584_v5 = vadd.f32 %v12155_v33, %v11652_v23  ;;  %v12586_v19 = vpop.f32.mrb[81].mxu1 }
 0x296   : > { %v9437_v31 = vpop.eup %9436  ;;  %v5786_v56 = vadd.f32 %v12501_v2, %v5558_v46  ;;  %v5559_v18 = vmul.f32 %v9435_v8, %v12396_v45  ;;  %9456 = vpow2.f32 %v8264_v44  ;;  %v12588_v55 = vpop.f32.mrb[97].mxu0  ;;  %v16662_v44 = vld [vmem:[#allocation20_spill] sm:$0xff]  ;;  %v8290_v8 = vmul.f32 -1.442695, %v12574_v54 }
 0x297   : > { %v9439_v62 = vpop.eup %9438  ;;  %v5860_v42 = vadd.f32 %v5859_v32, %v5560_v51  ;;  %v5561_v10 = vmul.f32 %v9437_v31, %v12402_v43  ;;  %9458 = vpow2.f32 %v8263_v48  ;;  %v12595_v2 = vpop.f32.mrb[82].mxu1  ;;  %7949 = vmatmul.mubr.msk.bf16.gmra.mrb[196].mxu1 %vm1232_vm3, %v16662_v44  ;;  %7965 = vmatmul.mubr.msk.bf16.gmra.mrb[212].mxu0 %vm1232_vm3, %v16662_v44  ;;  %v8279_v43 = vmul.f32 -1.442695, %v12565_v16 }
 0x298   : > { %v12597_v45 = vpop.f32.mrb[98].mxu0  ;;  %v9441_v33 = vpop.eup %9440  ;;  %v5823_v25 = vadd.f32 %v5822_v0, %v5559_v18  ;;  %v5572_v32 = vmul.f32 %v9439_v62, %v12406_v35  ;;  %9460 = vpow2.f32 %v8265_v53  ;;  %2471 = vmatprep.mubr.bf16.mxu1 %v16553_v63  ;;  %v8895_v35 = vld [vmem:[%s16438_s3 + $0x110] ss:$56 sps:$4 sm:$0xff]   ;;  %v8897_v53 = vld [vmem:[%s16438_s3 + $0x114] ss:$56 sps:$4 sm:$0xff]  }
 0x299   : > { %v12605_v48 = vpop.f32.mrb[83].mxu1  ;;  %v12607_v36 = vpop.f32.mrb[99].mxu0  ;;  %v5897_v39 = vadd.f32 %v5896_v15, %v5561_v10  ;;  %v5574_v46 = vmul.f32 %v9441_v33, %v12411_v9  ;;  %9462 = vpow2.f32 %v8276_v27  ;;  %v8292_v15 = vmul.f32 -1.442695, %v12584_v5  ;;  %2443 = vmatprep.subr.bf16.mxu1 %v8897_v53 }
 0x29a   : > { %16663 = vst [vmem:[#allocation43_spill] sm:$0xff] %v12607_v36  ;;  %v9443_v29 = vpop.eup %9442  ;;  %v5787_v51 = vadd.f32 %v5786_v56, %v5572_v32  ;;  %9464 = vpow2.f32 %v8278_v37  ;;  %v8291_v62 = vmul.f32 -1.442695, %v12593_v40  ;;  %2444 = vmatpush1.bf16.msra.mxu1 %v8895_v35 }
 0x29b   : > { %v9445_v0 = vpop.eup %9444  ;;  %v5573_v31 = vmul.f32 %v9443_v29, %v12440_v34  ;;  %v5861_v9 = vadd.f32 %v5860_v42, %v5574_v46  ;;  %9466 = vpow2.f32 %v8277_v6  ;;  %v12628_v42 = vpop.f32.mrb[84].mxu1 }
 0x29c   : > { %v9447_v18 = vpop.eup %9446  ;;  %v5575_v27 = vmul.f32 %v9445_v0, %v12450_v14  ;;  %9468 = vpow2.f32 %v8279_v43  ;;  %16664 = vst [vmem:[#allocation44_spill] sm:$0xff] %v12628_v42  ;;  %v12630_v14 = vpop.f32.mrb[100].mxu0 }
 0x29d   : > { %v9449_v10 = vpop.eup %9448  ;;  %v12622_v33 = vadd.f32 %v5823_v25, %v5573_v31  ;;  %v5586_v44 = vmul.f32 %v9447_v18, %v12456_v17  ;;  %9470 = vpow2.f32 %v8290_v8  ;;  %16665 = vst [vmem:[#allocation45_spill] sm:$0xff] %v12630_v14  ;;  %v12634_v25 = vpop.f32.mrb[85].mxu1  ;;  %v16669_v8 = vld [vmem:[#allocation7_spill] sm:$0xff] }
 0x29e   : > { %v9451_v56 = vpop.eup %9450  ;;  %v12625_v34 = vadd.f32 %v5897_v39, %v5575_v27  ;;  %v5588_v37 = vmul.f32 %v9449_v10, %v12461_v58  ;;  %9472 = vpow2.f32 %v8292_v15  ;;  %16666 = vst [vmem:[#allocation46_spill] sm:$0xff] %v12634_v25  ;;  %v12636_v17 = vpop.f32.mrb[101].mxu0  ;;  %v12647_v15 = vadd.f32 %v12161_v60, %v11658_v50  ;;  %v16677_v25 = vld [vmem:[#allocation31_spill] sm:$0xff] }
 0x29f   : > { %v9453_v6 = vpop.eup %9452  ;;  %v12632_v32 = vadd.f32 %v5787_v51, %v5586_v44  ;;  %v4243_v29 = vadd.f32 1.0, %v9451_v56  ;;  %16667 = vst [vmem:[#allocation47_spill] sm:$0xff] %v12636_v17  ;;  %9474 = vpow2.f32 %v8291_v62  ;;  %v12640_v58 = vpop.f32.mrb[86].mxu1  ;;  %7966 = vmatmul.mubr.msk.bf16.vlgmr.msra.gmra.mrb[200].mxu1 %vm1232_vm3, %v16669_v8  ;;  %v12651_v10 = vadd.f32 %v12165_v61, %v11649_v49 }
 0x2a0   : > { %v9455_v43 = vpop.eup %9454  ;;  %v12638_v46 = vadd.f32 %v5861_v9, %v5588_v37  ;;  %v4245_v39 = vadd.f32 1.0, %v9453_v6  ;;  %16668 = vst [vmem:[#allocation48_spill] sm:$0xff] %v12640_v58  ;;  %2481 = vmatprep.mubr.bf16.mxu1 %v16553_v63  ;;  %v12655_v6 = vadd.f32 %v12167_v57, %v11652_v23  ;;  %v12699_v14 = vpop.f32.mrb[87].mxu1 }
 0x2a1   : > { %v9457_v35 = vpop.eup %9456  ;;  %9476 = vrcp.f32 %v4243_v29  ;;  %v4256_v44 = vadd.f32 1.0, %v9455_v43  ;;  %v8293_v43 = vmul.f32 -1.442695, %v12647_v15  ;;  %16678 = vst [vmem:[#allocation50_spill] sm:$0xff] %v12699_v14 }
 0x2a2   : > { %v9459_v53 = vpop.eup %9458  ;;  %9478 = vrcp.f32 %v4245_v39  ;;  %v4258_v0 = vadd.f32 1.0, %v9457_v35  ;;  %v12660_v39 = vadd.f32 %v12171_v22, %v11655_v13  ;;  %v16670_v35 = vld [vmem:[#allocation51_spill] sm:$0xff]  ;;  %v8304_v22 = vmul.f32 -1.442695, %v12651_v10 }
 0x2a3   : > { %v9461_v51 = vpop.eup %9460  ;;  %9480 = vrcp.f32 %v4256_v44  ;;  %v4257_v31 = vadd.f32 1.0, %v9459_v53  ;;  %v12664_v44 = vadd.f32 %v16670_v35, %v11658_v50  ;;  %v16671_v53 = vld [vmem:[#allocation52_spill] sm:$0xff] }
 0x2a4   : > { %v9463_v18 = vpop.eup %9462  ;;  %9482 = vrcp.f32 %v4258_v0  ;;  %v4259_v9 = vadd.f32 1.0, %v9461_v51  ;;  %v12668_v57 = vadd.f32 %v16671_v53, %v11649_v49  ;;  %v16672_v0 = vld [vmem:[#allocation6_spill] sm:$0xff]  ;;  %v16675_v53 = vld [vmem:[#allocation55_spill] sm:$0xff] }
 0x2a5   : > { %v9465_v27 = vpop.eup %9464  ;;  %9484 = vrcp.f32 %v4257_v31  ;;  %v4270_v62 = vadd.f32 1.0, %v9463_v18  ;;  %v16673_v18 = vld [vmem:[#allocation53_spill] sm:$0xff] }
 0x2a6   : > { %v9467_v56 = vpop.eup %9466  ;;  %9486 = vrcp.f32 %v4259_v9  ;;  %v4272_v37 = vadd.f32 1.0, %v9465_v27  ;;  %v12675_v9 = vadd.f32 %v16673_v18, %v11652_v23  ;;  %v12688_v18 = vpop.f32.mrb[102].mxu0 }
 0x2a7   : > { %v9469_v29 = vpop.eup %9468  ;;  %9488 = vrcp.f32 %v4270_v62  ;;  %v4271_v60 = vadd.f32 1.0, %v9467_v56  ;;  %7967 = vmatmul.mubr.msk.bf16.gmra.mrb[204].mxu1 %vm1232_vm3, %v16672_v0  ;;  %v8306_v56 = vmul.f32 -1.442695, %v12655_v6  ;;  %v12686_v0 = vadd.f32 %v16675_v53, %v11658_v50  ;;  %16676 = vst [vmem:[#allocation49_spill] sm:$0xff] %v12688_v18  ;;  %v12701_v18 = vpop.f32.mrb[103].mxu0 }
 0x2a8   : > { %v9471_v8 = vpop.eup %9470  ;;  %9490 = vrcp.f32 %v4272_v37  ;;  %v4273_v61 = vadd.f32 1.0, %v9469_v29  ;;  %2491 = vmatprep.mubr.bf16.mxu1 %v16553_v63  ;;  %v16674_v37 = vld [vmem:[#allocation54_spill] sm:$0xff]  ;;  %v12697_v53 = vadd.f32 %v16677_v25, %v11649_v49  ;;  %16679 = vst [vmem:[#allocation7_spill] sm:$0xff] %v12701_v18 }
 0x2a9   : > { %v9473_v51 = vpop.eup %9472  ;;  %9492 = vrcp.f32 %v4271_v60  ;;  %v4284_v31 = vadd.f32 1.0, %v9471_v8  ;;  %v12681_v29 = vadd.f32 %v16674_v37, %v11655_v13  ;;  %v8305_v8 = vmul.f32 -1.442695, %v12660_v39 }
 0x2aa   : > { %v9475_v27 = vpop.eup %9474  ;;  %9494 = vrcp.f32 %v4273_v61  ;;  %v4286_v62 = vadd.f32 1.0, %v9473_v51  ;;  %v8307_v51 = vmul.f32 -1.442695, %v12664_v44  ;;  %v8318_v37 = vmul.f32 -1.442695, %v12668_v57 }
 0x2ab   : > { %v9477_v35 = vpop.eup %9476  ;;  %9496 = vrcp.f32 %v4284_v31  ;;  %v4285_v60 = vadd.f32 1.0, %v9475_v27  ;;  %v8320_v27 = vmul.f32 -1.442695, %v12675_v9  ;;  %v8319_v42 = vmul.f32 -1.442695, %v12681_v29 }
 0x2ac   : > { %v9479_v58 = vpop.eup %9478  ;;  %v5587_v61 = vmul.f32 %v9477_v35, %v12509_v1  ;;  %9498 = vrcp.f32 %v4286_v62  ;;  %v8321_v25 = vmul.f32 -1.442695, %v12686_v0 }
 0x2ad   : > { %v9481_v17 = vpop.eup %9480  ;;  %v5589_v31 = vmul.f32 %v9479_v58, %v12515_v26  ;;  %9500 = vrcp.f32 %v4285_v60 }
 0x2ae   : > { %v9483_v1 = vpop.eup %9482  ;;  %v5825_v62 = vadd.f32 %v12622_v33, %v5587_v61  ;;  %v5600_v35 = vmul.f32 %v9481_v17, %v12519_v30  ;;  %9502 = vpow2.f32 %v8293_v43  ;;  %v16680_v33 = vld [vmem:[#allocation56_spill] sm:$0xff]  ;;  %v16681_v17 = vld [vmem:[#allocation9_spill] sm:$0xff] }
 0x2af   : > { %v9485_v26 = vpop.eup %9484  ;;  %v5899_v58 = vadd.f32 %v12625_v34, %v5589_v31  ;;  %v5602_v60 = vmul.f32 %v9483_v1, %v12524_v47  ;;  %9504 = vpow2.f32 %v8304_v22  ;;  %v12713_v30 = vadd.f32 %v16680_v33, %v11652_v23  ;;  %7968 = vmatmul.mubr.msk.bf16.gmra.mrb[208].mxu1 %vm1232_vm3, %v16681_v17  ;;  %v16682_v22 = vld [vmem:[#allocation57_spill] sm:$0xff]  ;;  %v16683_v31 = vld [vmem:[#allocation58_spill] sm:$0xff] }
 0x2b0   : > { %v9487_v36 = vpop.eup %9486  ;;  %v5789_v14 = vadd.f32 %v12632_v32, %v5600_v35  ;;  %v5601_v18 = vmul.f32 %v9485_v26, %v12528_v7  ;;  %9506 = vpow2.f32 %v8306_v56  ;;  %v12721_v61 = vadd.f32 %v16682_v22, %v11655_v13  ;;  %2501 = vmatprep.mubr.bf16.mxu1 %v16553_v63  ;;  %v12733_v26 = vpop.f32.mrb[104].mxu0 }
 0x2b1   : > { %v9489_v43 = vpop.eup %9488  ;;  %v5863_v34 = vadd.f32 %v12638_v46, %v5602_v60  ;;  %v5603_v47 = vmul.f32 %v9487_v36, %v12532_v41  ;;  %9508 = vpow2.f32 %v8305_v8  ;;  %v12727_v1 = vadd.f32 %v16683_v31, %v11658_v50  ;;  %v12731_v8 = vpop.f32.mrb[88].mxu1  ;;  %16685 = vst [vmem:[#allocation52_spill] sm:$0xff] %v12733_v26 }
 0x2b2   : > { %v9491_v7 = vpop.eup %9490  ;;  %v5826_v32 = vadd.f32 %v5825_v62, %v5601_v18  ;;  %v5614_v56 = vmul.f32 %v9489_v43, %v12536_v21  ;;  %9510 = vpow2.f32 %v8307_v51  ;;  %v8332_v36 = vmul.f32 -1.442695, %v12697_v53  ;;  %16684 = vst [vmem:[#allocation51_spill] sm:$0xff] %v12731_v8  ;;  %v12737_v62 = vpop.f32.mrb[89].mxu1 }
 0x2b3   : > { %v9493_v35 = vpop.eup %9492  ;;  %v5900_v46 = vadd.f32 %v5899_v58, %v5603_v47  ;;  %v5616_v41 = vmul.f32 %v9491_v7, %v12540_v20  ;;  %9512 = vpow2.f32 %v8318_v37  ;;  %v8334_v51 = vmul.f32 -1.442695, %v12713_v30  ;;  %16686 = vst [vmem:[#allocation6_spill] sm:$0xff] %v12737_v62  ;;  %v12739_v33 = vpop.f32.mrb[105].mxu0 }
 0x2b4   : > { %v9495_v60 = vpop.eup %9494  ;;  %v5790_v18 = vadd.f32 %v5789_v14, %v5614_v56  ;;  %v5615_v21 = vmul.f32 %v9493_v35, %v12551_v3  ;;  %9514 = vpow2.f32 %v8320_v27  ;;  %16687 = vst [vmem:[#allocation53_spill] sm:$0xff] %v12739_v33  ;;  %v8333_v17 = vmul.f32 -1.442695, %v12721_v61  ;;  %v12743_v43 = vpop.f32.mrb[90].mxu1 }
 0x2b5   : > { %v9497_v58 = vpop.eup %9496  ;;  %v5864_v20 = vadd.f32 %v5863_v34, %v5616_v41  ;;  %v5617_v37 = vmul.f32 %v9495_v60, %v12565_v16  ;;  %9516 = vpow2.f32 %v8319_v42  ;;  %16688 = vst [vmem:[#allocation54_spill] sm:$0xff] %v12743_v43  ;;  %v12745_v47 = vpop.f32.mrb[106].mxu0  ;;  %v8335_v22 = vmul.f32 -1.442695, %v12727_v1 }
 0x2b6   : > { %16689 = vst [vmem:[#allocation55_spill] sm:$0xff] %v12745_v47  ;;  %v9499_v14 = vpop.eup %9498  ;;  %v5827_v3 = vadd.f32 %v5826_v32, %v5615_v21  ;;  %v5628_v27 = vmul.f32 %v9497_v58, %v12574_v54  ;;  %9518 = vpow2.f32 %v8321_v25  ;;  %v12749_v7 = vpop.f32.mrb[91].mxu1  ;;  %v16692_v54 = vld [vmem:[#allocation8_spill] sm:$0xff] }
 0x2b7   : > { %16690 = vst [vmem:[#allocation31_spill] sm:$0xff] %v12749_v7  ;;  %v12751_v56 = vpop.f32.mrb[107].mxu0  ;;  %v9501_v34 = vpop.eup %9500  ;;  %v12753_v16 = vadd.f32 %v5900_v46, %v5617_v37  ;;  %v5630_v42 = vmul.f32 %v9499_v14, %v12584_v5  ;;  %9520 = vpow2.f32 %v8332_v36  ;;  %7969 = vmatmul.mubr.msk.bf16.gmra.mrb[212].mxu1 %vm1232_vm3, %v16692_v54  ;;  %v16695_v37 = vld [vmem:[#allocation32_spill] sm:$0xff] }
 0x2b8   : > { %16691 = vst [vmem:[#allocation56_spill] sm:$0xff] %v12751_v56  ;;  %v9503_v31 = vpop.eup %9502  ;;  %v12756_v35 = vadd.f32 %v5790_v18, %v5628_v27  ;;  %v5629_v32 = vmul.f32 %v9501_v34, %v12593_v40  ;;  %9522 = vpow2.f32 %v8334_v51  ;;  %2511 = vmatprep.mubr.bf16.mxu1 %v16553_v63  ;;  %v12766_v40 = vpop.f32.mrb[92].mxu1 }
 0x2b9   : > { %v9505_v25 = vpop.eup %9504  ;;  %v12761_v41 = vadd.f32 %v5864_v20, %v5630_v42  ;;  %v4287_v60 = vadd.f32 1.0, %v9503_v31  ;;  %9524 = vpow2.f32 %v8333_v17  ;;  %16693 = vst [vmem:[#allocation9_spill] sm:$0xff] %v12766_v40  ;;  %v12768_v51 = vpop.f32.mrb[108].mxu0  ;;  %v12772_v17 = vadd.f32 %v16695_v37, %v11649_v49 }
 0x2ba   : > { %v9507_v46 = vpop.eup %9506  ;;  %v12764_v21 = vadd.f32 %v5827_v3, %v5629_v32  ;;  %v4298_v5 = vadd.f32 1.0, %v9505_v25  ;;  %9526 = vpow2.f32 %v8335_v22  ;;  %16694 = vst [vmem:[#allocation57_spill] sm:$0xff] %v12768_v51  ;;  %v16696_v25 = vld [vmem:[#allocation33_spill] sm:$0xff]  ;;  %v12816_v56 = vpop.f32.mrb[93].mxu1 }
 0x2bb   : > { %v9509_v36 = vpop.eup %9508  ;;  %9528 = vrcp.f32 %v4287_v60  ;;  %v4300_v18 = vadd.f32 1.0, %v9507_v46  ;;  %v8346_v54 = vmul.f32 -1.442695, %v12772_v17  ;;  %v12777_v60 = vadd.f32 %v16696_v25, %v11652_v23  ;;  %v16697_v46 = vld [vmem:[#allocation11_spill] sm:$0xff]  ;;  %16703 = vst [vmem:[#allocation58_spill] sm:$0xff] %v12816_v56  ;;  %v12818_v7 = vpop.f32.mrb[109].mxu0 }
 0x2bc   : > { %v9511_v58 = vpop.eup %9510  ;;  %9530 = vrcp.f32 %v4298_v5  ;;  %v4299_v20 = vadd.f32 1.0, %v9509_v36  ;;  %16704 = vst [vmem:[#allocation8_spill] sm:$0xff] %v12818_v7  ;;  %v12826_v33 = vpop.f32.mrb[94].mxu1  ;;  %v16707_v7 = vld [vmem:[#allocation10_spill] sm:$0xff] }
 0x2bd   : > { %v9513_v14 = vpop.eup %9512  ;;  %9532 = vrcp.f32 %v4300_v18  ;;  %v4301_v3 = vadd.f32 1.0, %v9511_v58  ;;  %v16698_v18 = vld [vmem:[#allocation34_spill] sm:$0xff]  ;;  %16705 = vst [vmem:[#allocation32_spill] sm:$0xff] %v12826_v33  ;;  %v12828_v56 = vpop.f32.mrb[110].mxu0 }
 0x2be   : > { %v9515_v27 = vpop.eup %9514  ;;  %9534 = vrcp.f32 %v4299_v20  ;;  %v4312_v22 = vadd.f32 1.0, %v9513_v14  ;;  %v12783_v58 = vadd.f32 %v16698_v18, %v11655_v13  ;;  %v16699_v20 = vld [vmem:[#allocation35_spill] sm:$0xff]  ;;  %16706 = vst [vmem:[#allocation33_spill] sm:$0xff] %v12828_v56 }
 0x2bf   : > { %v9517_v34 = vpop.eup %9516  ;;  %9536 = vrcp.f32 %v4301_v3  ;;  %v4314_v42 = vadd.f32 1.0, %v9515_v27  ;;  %7970 = vmatmul.mubr.msk.bf16.gmra.mrb[216].mxu1 %vm1232_vm3, %v16697_v46  ;;  %v12787_v37 = vadd.f32 %v16699_v20, %v11658_v50  ;;  %v16700_v27 = vld [vmem:[#allocation59_spill] sm:$0xff]  ;;  %v16702_v46 = vld [vmem:[#allocation61_spill] sm:$0xff]  ;;  %v12804_v20 = vadd.f32 %v12270_v24, %v11658_v50 }
 0x2c0   : > { %v9519_v31 = vpop.eup %9518  ;;  %9538 = vrcp.f32 %v4312_v22  ;;  %v4313_v32 = vadd.f32 1.0, %v9517_v34  ;;  %2521 = vmatprep.mubr.bf16.mxu1 %v16553_v63  ;;  %v12792_v22 = vadd.f32 %v16700_v27, %v11649_v49  ;;  %v16701_v34 = vld [vmem:[#allocation60_spill] sm:$0xff]  ;;  %v12800_v18 = vadd.f32 %v16702_v46, %v11655_v13 }
 0x2c1   : > { %v9521_v5 = vpop.eup %9520  ;;  %9540 = vrcp.f32 %v4314_v42  ;;  %v4315_v36 = vadd.f32 1.0, %v9519_v31  ;;  %v12796_v42 = vadd.f32 %v16701_v34, %v11652_v23  ;;  %v8348_v27 = vmul.f32 -1.442695, %v12777_v60 }
 0x2c2   : > { %v9523_v14 = vpop.eup %9522  ;;  %9542 = vrcp.f32 %v4313_v32  ;;  %v4326_v3 = vadd.f32 1.0, %v9521_v5  ;;  %v12809_v34 = vadd.f32 %v12302_v4, %v11649_v49  ;;  %v8349_v46 = vmul.f32 -1.442695, %v12787_v37 }
 0x2c3   : > { %v9525_v31 = vpop.eup %9524  ;;  %9544 = vrcp.f32 %v4315_v36  ;;  %v4328_v25 = vadd.f32 1.0, %v9523_v14  ;;  %v8347_v14 = vmul.f32 -1.442695, %v12783_v58  ;;  %v8363_v47 = vmul.f32 -1.442695, %v12804_v20 }
 0x2c4   : > { %v9527_v32 = vpop.eup %9526  ;;  %9546 = vrcp.f32 %v4326_v3  ;;  %v4327_v5 = vadd.f32 1.0, %v9525_v31  ;;  %v8360_v3 = vmul.f32 -1.442695, %v12792_v22  ;;  %v8362_v31 = vmul.f32 -1.442695, %v12796_v42 }
 0x2c5   : > { %v9529_v51 = vpop.eup %9528  ;;  %9548 = vrcp.f32 %v4328_v25  ;;  %v4329_v36 = vadd.f32 1.0, %v9527_v32  ;;  %v8361_v32 = vmul.f32 -1.442695, %v12800_v18 }
 0x2c6   : > { %v9531_v40 = vpop.eup %9530  ;;  %v5631_v24 = vmul.f32 %v9529_v51, %v12647_v15  ;;  %9550 = vrcp.f32 %v4327_v5  ;;  %v8374_v5 = vmul.f32 -1.442695, %v12809_v34 }
 0x2c7   : > { %v9533_v4 = vpop.eup %9532  ;;  %v5642_v25 = vmul.f32 %v9531_v40, %v12651_v10  ;;  %9552 = vrcp.f32 %v4329_v36  ;;  %7971 = vmatmul.mubr.msk.bf16.gmra.mrb[220].mxu1 %vm1232_vm3, %v16707_v7  ;;  %v12843_v7 = vadd.f32 %v12311_v38, %v11655_v13  ;;  %v16711_v38 = vld [vmem:[#allocation37_spill] sm:$0xff] }
 0x2c8   : > { %v9535_v43 = vpop.eup %9534  ;;  %v5902_v15 = vadd.f32 %v12753_v16, %v5631_v24  ;;  %v5644_v51 = vmul.f32 %v9533_v4, %v12655_v6  ;;  %9554 = vpow2.f32 %v8346_v54  ;;  %v12836_v16 = vadd.f32 %v12304_v12, %v11652_v23  ;;  %2531 = vmatprep.mubr.bf16.mxu1 %v16553_v63  ;;  %v16710_v4 = vld [vmem:[#allocation36_spill] sm:$0xff] }
 0x2c9   : > { %v9537_v10 = vpop.eup %9536  ;;  %v5792_v40 = vadd.f32 %v12756_v35, %v5642_v25  ;;  %v5643_v36 = vmul.f32 %v9535_v43, %v12660_v39  ;;  %9556 = vpow2.f32 %v8348_v27  ;;  %v12845_v35 = vpop.f32.mrb[95].mxu1 }
 0x2ca   : > { %v9539_v6 = vpop.eup %9538  ;;  %v5866_v54 = vadd.f32 %v12761_v41, %v5644_v51  ;;  %v5645_v24 = vmul.f32 %v9537_v10, %v12664_v44  ;;  %9558 = vpow2.f32 %v8347_v14  ;;  %16708 = vst [vmem:[#allocation11_spill] sm:$0xff] %v12845_v35  ;;  %v12847_v39 = vpop.f32.mrb[111].mxu0  ;;  %v12853_v41 = vadd.f32 %v16710_v4, %v11658_v50 }
 0x2cb   : > { %16709 = vst [vmem:[#allocation34_spill] sm:$0xff] %v12847_v39  ;;  %v9541_v43 = vpop.eup %9540  ;;  %v5829_v12 = vadd.f32 %v12764_v21, %v5643_v36  ;;  %v5656_v27 = vmul.f32 %v9539_v6, %v12668_v57  ;;  %9560 = vpow2.f32 %v8349_v46  ;;  %v12858_v51 = vadd.f32 %v16711_v38, %v11649_v49 }
 0x2cc   : > { %v9543_v44 = vpop.eup %9542  ;;  %v5903_v14 = vadd.f32 %v5902_v15, %v5645_v24  ;;  %v5658_v25 = vmul.f32 %v9541_v43, %v12675_v9  ;;  %9562 = vpow2.f32 %v8360_v3  ;;  %v8376_v57 = vmul.f32 -1.442695, %v12836_v16 }
 0x2cd   : > { %v9545_v10 = vpop.eup %9544  ;;  %v5793_v39 = vadd.f32 %v5792_v40, %v5656_v27  ;;  %v5657_v21 = vmul.f32 %v9543_v44, %v12681_v29  ;;  %9564 = vpow2.f32 %v8362_v31  ;;  %v8375_v15 = vmul.f32 -1.442695, %v12843_v7 }
 0x2ce   : > { %v9547_v46 = vpop.eup %9546  ;;  %v5867_v36 = vadd.f32 %v5866_v54, %v5658_v25  ;;  %v5659_v6 = vmul.f32 %v9545_v10, %v12686_v0  ;;  %9566 = vpow2.f32 %v8361_v32  ;;  %v8377_v43 = vmul.f32 -1.442695, %v12853_v41  ;;  %v12868_v54 = vpop.f32.mrb[96].mxu1  ;;  %v16714_v32 = vld [vmem:[#allocation13_spill] sm:$0xff]  ;;  %v16717_v25 = vld [vmem:[#allocation62_spill] sm:$0xff] }
 0x2cf   : > { %v9549_v9 = vpop.eup %9548  ;;  %v5830_v3 = vadd.f32 %v5829_v12, %v5657_v21  ;;  %v5670_v24 = vmul.f32 %v9547_v46, %v12697_v53  ;;  %9568 = vpow2.f32 %v8363_v47  ;;  %v8388_v31 = vmul.f32 -1.442695, %v12858_v51  ;;  %16712 = vst [vmem:[#allocation35_spill] sm:$0xff] %v12868_v54  ;;  %v12870_v0 = vpop.f32.mrb[112].mxu0  ;;  %7972 = vmatmul.mubr.msk.bf16.gmra.mrb[224].mxu1 %vm1232_vm3, %v16714_v32  ;;  %v16720_v46 = vld [vmem:[#allocation63_spill] sm:$0xff] }
 0x2d0   : > { %v9551_v40 = vpop.eup %9550  ;;  %v5904_v27 = vadd.f32 %v5903_v14, %v5659_v6  ;;  %v5672_v29 = vmul.f32 %v9549_v9, %v12713_v30  ;;  %9570 = vpow2.f32 %v8374_v5  ;;  %16713 = vst [vmem:[#allocation59_spill] sm:$0xff] %v12870_v0  ;;  %v12877_v47 = vpop.f32.mrb[97].mxu1  ;;  %2541 = vmatprep.mubr.bf16.mxu1 %v16553_v63  ;;  %v12887_v38 = vadd.f32 %v16717_v25, %v11652_v23 }
 0x2d1   : > { %v9553_v12 = vpop.eup %9552  ;;  %v12874_v4 = vadd.f32 %v5793_v39, %v5670_v24  ;;  %v5671_v53 = vmul.f32 %v9551_v40, %v12721_v61  ;;  %9572 = vpow2.f32 %v8376_v57  ;;  %16715 = vst [vmem:[#allocation60_spill] sm:$0xff] %v12877_v47  ;;  %v12879_v44 = vpop.f32.mrb[113].mxu0  ;;  %v16722_v24 = vld [vmem:[#allocation64_spill] sm:$0xff]  ;;  %v16730_v47 = vld [vmem:[#allocation22_spill] sm:$0xff] }
 0x2d2   : > { %16716 = vst [vmem:[#allocation61_spill] sm:$0xff] %v12879_v44  ;;  %v9555_v30 = vpop.eup %9554  ;;  %v12882_v5 = vadd.f32 %v5867_v36, %v5672_v29  ;;  %v5673_v14 = vmul.f32 %v9553_v12, %v12727_v1  ;;  %9574 = vpow2.f32 %v8375_v15  ;;  %v12889_v39 = vpop.f32.mrb[98].mxu1  ;;  %v12897_v36 = vadd.f32 %v16720_v46, %v11655_v13  ;;  %v16724_v12 = vld [vmem:[#allocation66_spill] sm:$0xff] }
 0x2d3   : > { %16718 = vst [vmem:[#allocation10_spill] sm:$0xff] %v12889_v39  ;;  %v12891_v61 = vpop.f32.mrb[114].mxu0  ;;  %v9557_v10 = vpop.eup %9556  ;;  %v12893_v21 = vadd.f32 %v5830_v3, %v5671_v53  ;;  %v4340_v57 = vadd.f32 1.0, %v9555_v30  ;;  %9576 = vpow2.f32 %v8377_v43  ;;  %v12905_v40 = vadd.f32 %v16722_v24, %v11658_v50  ;;  %v16723_v43 = vld [vmem:[#allocation65_spill] sm:$0xff]  ;;  %v16729_v39 = vld [vmem:[#allocation70_spill] sm:$0xff] }
 0x2d4   : > { %16719 = vst [vmem:[#allocation36_spill] sm:$0xff] %v12891_v61  ;;  %v12899_v6 = vpop.f32.mrb[99].mxu1  ;;  %v9559_v1 = vpop.eup %9558  ;;  %v12901_v15 = vadd.f32 %v5904_v27, %v5673_v14  ;;  %v4342_v9 = vadd.f32 1.0, %v9557_v10  ;;  %9578 = vpow2.f32 %v8388_v31  ;;  %v12909_v32 = vadd.f32 %v16723_v43, %v11649_v49  ;;  %v16725_v31 = vld [vmem:[#allocation67_spill] sm:$0xff]  ;;  %v16728_v61 = vld [vmem:[#allocation69_spill] sm:$0xff] }
 0x2d5   : > { %16721 = vst [vmem:[#allocation37_spill] sm:$0xff] %v12899_v6  ;;  %v9561_v29 = vpop.eup %9560  ;;  %9580 = vrcp.f32 %v4340_v57  ;;  %v4341_v3 = vadd.f32 1.0, %v9559_v1  ;;  %v12913_v53 = vadd.f32 %v16724_v12, %v11652_v23  ;;  %v12917_v14 = vadd.f32 %v16725_v31, %v11655_v13  ;;  %v16727_v12 = vld [vmem:[#allocation12_spill] sm:$0xff] }
 0x2d6   : > { %v9563_v30 = vpop.eup %9562  ;;  %9582 = vrcp.f32 %v4342_v9  ;;  %v4343_v27 = vadd.f32 1.0, %v9561_v29  ;;  %v8390_v57 = vmul.f32 -1.442695, %v12887_v38  ;;  %v12921_v46 = vmul.f32 -1.442695, %v12897_v36  ;;  %v16726_v9 = vld [vmem:[#allocation68_spill] sm:$0xff] }
 0x2d7   : > { %v9565_v25 = vpop.eup %9564  ;;  %9584 = vrcp.f32 %v4341_v3  ;;  %v4354_v10 = vadd.f32 1.0, %v9563_v30  ;;  %v12924_v43 = vmul.f32 -1.442695, %v12905_v40  ;;  %v12928_v29 = vadd.f32 %v16726_v9, %v11658_v50  ;;  %7973 = vmatmul.mubr.msk.bf16.gmra.mrb[228].mxu1 %vm1232_vm3, %v16727_v12 }
 0x2d8   : > { %v9567_v1 = vpop.eup %9566  ;;  %9586 = vrcp.f32 %v4343_v27  ;;  %v4356_v24 = vadd.f32 1.0, %v9565_v25  ;;  %v12933_v31 = vmul.f32 -1.442695, %v12909_v32  ;;  %v12936_v6 = vmul.f32 -1.442695, %v12913_v53  ;;  %2551 = vmatprep.mubr.bf16.mxu1 %v16553_v63 }
 0x2d9   : > { %v9569_v3 = vpop.eup %9568  ;;  %9588 = vrcp.f32 %v4354_v10  ;;  %v4355_v30 = vadd.f32 1.0, %v9567_v1  ;;  %v12940_v9 = vmul.f32 -1.442695, %v12917_v14  ;;  %v12944_v12 = vadd.f32 %v16728_v61, %v11649_v49 }
 0x2da   : > { %v9571_v27 = vpop.eup %9570  ;;  %9590 = vrcp.f32 %v4356_v24  ;;  %v4357_v25 = vadd.f32 1.0, %v9569_v3  ;;  %v12948_v44 = vadd.f32 %v16729_v39, %v11652_v23  ;;  %v12951_v0 = vsub.s32 4, %v16730_v47 }
 0x2db   : > { %v9573_v10 = vpop.eup %9572  ;;  %9592 = vrcp.f32 %v4355_v30  ;;  %v4368_v1 = vadd.f32 1.0, %v9571_v27  ;;  %v12954_v3 = vmul.f32 -1.442695, %v12928_v29  ;;  %v12957_v35 = vsub.s32 5, %v16730_v47 }
 0x2dc   : > { %16731 = vst [vmem:[#allocation13_spill] sm:$0xff] %v12951_v0  ;;  %v9575_v54 = vpop.eup %9574  ;;  %9594 = vrcp.f32 %v4357_v25  ;;  %v4370_v24 = vadd.f32 1.0, %v9573_v10  ;;  %v12962_v56 = vmul.f32 -1.442695, %v12944_v12  ;;  %v16733_v25 = vld [vmem:[#allocation71_spill] sm:$0xff]  ;;  %v16736_v26 = vsub.s32 6, %v16730_v47 }
 0x2dd   : > { %16732 = vst [vmem:[#allocation62_spill] sm:$0xff] %v12957_v35  ;;  %v9577_v49 = vpop.eup %9576  ;;  %9596 = vrcp.f32 %v4368_v1  ;;  %v4369_v61 = vadd.f32 1.0, %v9575_v54  ;;  %v12966_v10 = vadd.f32 %v16733_v25, %v11655_v13  ;;  %v12969_v1 = vmul.f32 -1.442695, %v12948_v44  ;;  %v10930_v54 = vld [vmem:[%s16439_s4] sm:$0xff] }
 0x2de   : > { %v9579_v39 = vpop.eup %9578  ;;  %9598 = vrcp.f32 %v4370_v24  ;;  %v4371_v27 = vadd.f32 1.0, %v9577_v49  ;;  %v12975_v24 = vrot.slane %v10930_v54, %v12951_v0  ;;  %v12977_v49 = vpop.f32.mrb[115].mxu0  ;;  %v12981_v13 = vrot.slane %v10930_v54, %v12957_v35 }
 0x2df   : > { %v9581_v33 = vpop.eup %9580  ;;  %9600 = vrcp.f32 %v4369_v61  ;;  %v4382_v62 = vadd.f32 1.0, %v9579_v39  ;;  %16734 = vst [vmem:[#allocation63_spill] sm:$0xff] %v12977_v49  ;;  %v16735_v61 = vld [vmem:[#allocation15_spill] sm:$0xff]  ;;  %v12988_v0 = vrot.slane %v10930_v54, %v16736_v26  ;;  %v16737_v49 = vsub.s32 7, %v16730_v47 }
 0x2e0   : > { %v9583_v23 = vpop.eup %9582  ;;  %v5684_v30 = vmul.f32 %v9581_v33, %v12772_v17  ;;  %9602 = vrcp.f32 %v4371_v27  ;;  %7974 = vmatmul.mubr.msk.bf16.gmra.mrb[232].mxu1 %vm1232_vm3, %v16735_v61  ;;  %v8417_v61 = vmul.f32 -1.442695, %v12966_v10 }
 0x2e1   : > { %v9585_v39 = vpop.eup %9584  ;;  %v5686_v25 = vmul.f32 %v9583_v23, %v12777_v60  ;;  %9604 = vrcp.f32 %v4382_v62  ;;  %v12992_v8 = vrot.slane %v10930_v54, %v16737_v49  ;;  %2561 = vmatprep.mubr.bf16.mxu1 %v16553_v63  ;;  %v11014_v23 = vmov 1966171168  }
 0x2e2   : > { %v9587_v33 = vpop.eup %9586  ;;  %v5795_v17 = vadd.f32 %v12874_v4, %v5684_v30  ;;  %v5685_v27 = vmul.f32 %v9585_v39, %v12783_v58  ;;  %9606 = vpow2.f32 %v8390_v57  ;;  %v13001_v54 = vunpack.c.l.s4 %v11014_v23  ;;  %v16738_v58 = vld [vmem:[#allocation72_spill] sm:$0xff] }
 0x2e3   : > { %v9589_v60 = vpop.eup %9588  ;;  %v5869_v62 = vadd.f32 %v12882_v5, %v5686_v25  ;;  %v5687_v26 = vmul.f32 %v9587_v33, %v12787_v37  ;;  %9608 = vpow2.f32 %v12921_v46  ;;  %v13008_v57 = vadd.f32 %v16738_v58, %v11658_v50  ;;  %v16739_v46 = vld [vmem:[#allocation73_spill] sm:$0xff] }
 0x2e4   : > { %v9591_v49 = vpop.eup %9590  ;;  %v5832_v35 = vadd.f32 %v12893_v21, %v5685_v27  ;;  %v5698_v4 = vmul.f32 %v9589_v60, %v12792_v22  ;;  %9610 = vpow2.f32 %v12924_v43  ;;  %v13015_v39 = vadd.f32 %v16739_v46, %v12975_v24  ;;  %v13017_v21 = vpop.f32.mrb[100].mxu1 }
 0x2e5   : > { %v9593_v30 = vpop.eup %9592  ;;  %v5906_v5 = vadd.f32 %v12901_v15, %v5687_v26  ;;  %v5700_v37 = vmul.f32 %v9591_v49, %v12796_v42  ;;  %9612 = vpow2.f32 %v12933_v31  ;;  %16740 = vst [vmem:[#allocation64_spill] sm:$0xff] %v13017_v21  ;;  %v13019_v22 = vpop.f32.mrb[116].mxu0  ;;  %v16742_v15 = vld [vmem:[#allocation74_spill] sm:$0xff]  ;;  %v8419_v58 = vmul.f32 -1.442695, %v13008_v57 }
 0x2e6   : > { %16741 = vst [vmem:[#allocation65_spill] sm:$0xff] %v13019_v22  ;;  %v9595_v43 = vpop.eup %9594  ;;  %v5796_v25 = vadd.f32 %v5795_v17, %v5698_v4  ;;  %v5699_v50 = vmul.f32 %v9593_v30, %v12800_v18  ;;  %9614 = vpow2.f32 %v12936_v6  ;;  %v13025_v33 = vadd.f32 %v16742_v15, %v12988_v0  ;;  %v13027_v42 = vpop.f32.mrb[101].mxu1  ;;  %v16771_v22 = vld [vmem:[#allocation16_spill] sm:$0xff] }
 0x2e7   : > { %16743 = vst [vmem:[#allocation66_spill] sm:$0xff] %v13027_v42  ;;  %v13029_v31 = vpop.f32.mrb[117].mxu0  ;;  %v9597_v27 = vpop.eup %9596  ;;  %v5870_v60 = vadd.f32 %v5869_v62, %v5700_v37  ;;  %v5701_v26 = vmul.f32 %v9595_v43, %v12804_v20  ;;  %9616 = vpow2.f32 %v12940_v9  ;;  %v6308_v17 = vunpack.c.0.s8 %v13001_v54  ;;  %v16749_v20 = vld [vmem:[#allocation14_spill] sm:$0xff]  ;;  %v16770_v42 = vld [vmem:[#allocation77_spill] sm:$0xff] }
 0x2e8   : > { %16744 = vst [vmem:[#allocation67_spill] sm:$0xff] %v13029_v31  ;;  %v13034_v23 = vpop.f32.mrb[102].mxu1  ;;  %v13036_v18 = vpop.f32.mrb[118].mxu0  ;;  %v5833_v49 = vadd.f32 %v5832_v35, %v5699_v50  ;;  %v5712_v4 = vmul.f32 %v9597_v27, %v12809_v34  ;;  %9618 = vpow2.f32 %v12954_v3  ;;  %7975 = vmatmul.mubr.msk.bf16.gmra.mrb[236].mxu1 %vm1232_vm3, %v16749_v20  ;;  %v7986_v35 = vmul.f32 -1.442695, %v13015_v39 }
 0x2e9   : > { %16745 = vst [vmem:[#allocation68_spill] sm:$0xff] %v13034_v23  ;;  %16746 = vst [vmem:[#allocation12_spill] sm:$0xff] %v13036_v18  ;;  %v9599_v6 = vpop.eup %9598  ;;  %v13041_v30 = vpop.f32.mrb[103].mxu1  ;;  %v5907_v54 = vadd.f32 %v5906_v5, %v5701_v26  ;;  %9620 = vpow2.f32 %v12962_v56  ;;  %2571 = vmatprep.mubr.bf16.mxu1 %v16553_v63  ;;  %v7988_v43 = vmul.f32 -1.442695, %v13025_v33  ;;  %v16750_v56 = vld [vmem:[#allocation27_spill] sm:$0xff] }
 0x2ea   : > { %16747 = vst [vmem:[#allocation69_spill] sm:$0xff] %v13041_v30  ;;  %v13043_v62 = vpop.f32.mrb[119].mxu0  ;;  %v9601_v9 = vpop.eup %9600  ;;  %v5714_v37 = vmul.f32 %v9599_v6, %v12836_v16  ;;  %v5797_v3 = vadd.f32 %v5796_v25, %v5712_v4  ;;  %9622 = vpow2.f32 %v12969_v1  ;;  %v13059_v16 = vadd.f32 %v16750_v56, %v12981_v13  ;;  %v16769_v23 = vld [vmem:[#allocation76_spill] sm:$0xff] }
 0x2eb   : > { %16748 = vst [vmem:[#allocation70_spill] sm:$0xff] %v13043_v62  ;;  %v9603_v34 = vpop.eup %9602  ;;  %v5713_v46 = vmul.f32 %v9601_v9, %v12843_v7  ;;  %9624 = vpow2.f32 %v8417_v61  ;;  %v16751_v7 = vld [vmem:[#allocation28_spill] sm:$0xff]  ;;  %v13074_v20 = vpop.f32.mrb[104].mxu1 }
 0x2ec   : > { %v9605_v50 = vpop.eup %9604  ;;  %v13054_v15 = vadd.f32 %v5870_v60, %v5714_v37  ;;  %v5715_v5 = vmul.f32 %v9603_v34, %v12853_v41  ;;  %9626 = vpow2.f32 %v8419_v58  ;;  %v13066_v1 = vadd.f32 %v16751_v7, %v12992_v8  ;;  %v16752_v41 = vld [vmem:[#allocation29_spill] sm:$0xff]  ;;  %16753 = vst [vmem:[#allocation71_spill] sm:$0xff] %v13074_v20  ;;  %v16755_v37 = vld [vmem:[#allocation30_spill] sm:$0xff] }
 0x2ed   : > { %v9607_v27 = vpop.eup %9606  ;;  %v13061_v26 = vadd.f32 %v5833_v49, %v5713_v46  ;;  %v5726_v25 = vmul.f32 %v9605_v50, %v12858_v51  ;;  %9628 = vpow2.f32 %v7986_v35  ;;  %v13072_v61 = vadd.f32 %v16752_v41, %v12975_v24  ;;  %v13076_v49 = vpop.f32.mrb[120].mxu0 }
 0x2ee   : > { %v9609_v6 = vpop.eup %9608  ;;  %v13068_v60 = vadd.f32 %v5907_v54, %v5715_v5  ;;  %v4384_v4 = vadd.f32 1.0, %v9607_v27  ;;  %16754 = vst [vmem:[#allocation15_spill] sm:$0xff] %v13076_v49  ;;  %9630 = vpow2.f32 %v7988_v43  ;;  %v13082_v34 = vadd.f32 %v16755_v37, %v12988_v0  ;;  %v13084_v54 = vpop.f32.mrb[105].mxu1 }
 0x2ef   : > { %v9611_v9 = vpop.eup %9610  ;;  %v13078_v51 = vadd.f32 %v5797_v3, %v5726_v25  ;;  %v4383_v58 = vadd.f32 1.0, %v9609_v6  ;;  %16756 = vst [vmem:[#allocation72_spill] sm:$0xff] %v13084_v54  ;;  %v13086_v35 = vpop.f32.mrb[121].mxu0  ;;  %v13089_v5 = vsub.s32 %v6308_v17, %v16730_v47  ;;  %v13093_v3 = vadd.f32 %v12442_v11, %v12981_v13  ;;  %v16759_v25 = vld [vmem:[#allocation38_spill] sm:$0xff]  ;;  %v16760_v6 = vld [vmem:[#allocation17_spill] sm:$0xff]  ;;  %v16762_v54 = vld [vmem:[#allocation40_spill] sm:$0xff] }
 0x2f0   : > { %16757 = vst [vmem:[#allocation73_spill] sm:$0xff] %v13086_v35  ;;  %v9613_v46 = vpop.eup %9612  ;;  %9632 = vrcp.f32 %v4384_v4  ;;  %v4385_v50 = vadd.f32 1.0, %v9611_v9  ;;  %v13096_v27 = vmul.f32 -1.442695, %v13059_v16  ;;  %v13100_v7 = vadd.f32 %v16759_v25, %v12992_v8  ;;  %7976 = vmatmul.mubr.msk.bf16.gmra.mrb[240].mxu1 %vm1232_vm3, %v16760_v6  ;;  %v16761_v6 = vld [vmem:[#allocation39_spill] sm:$0xff] }
 0x2f1   : > { %16758 = vst [vmem:[#allocation74_spill] sm:$0xff] %v13089_v5  ;;  %v9615_v56 = vpop.eup %9614  ;;  %9634 = vrcp.f32 %v4383_v58  ;;  %v4396_v43 = vadd.f32 1.0, %v9613_v46  ;;  %v13105_v41 = vmul.f32 -1.442695, %v13066_v1  ;;  %v13108_v11 = vmul.f32 -1.442695, %v13072_v61  ;;  %2581 = vmatprep.mubr.bf16.mxu1 %v16553_v63 }
 0x2f2   : > { %v9617_v4 = vpop.eup %9616  ;;  %9636 = vrcp.f32 %v4385_v50  ;;  %v4398_v17 = vadd.f32 1.0, %v9615_v56  ;;  %v13112_v37 = vmul.f32 -1.442695, %v13082_v34  ;;  %v13116_v46 = vadd.f32 %v12473_v59, %v12975_v24 }
 0x2f3   : > { %v9619_v9 = vpop.eup %9618  ;;  %9638 = vrcp.f32 %v4396_v43  ;;  %v4397_v58 = vadd.f32 1.0, %v9617_v4  ;;  %v13119_v25 = vmul.f32 -1.442695, %v13093_v3  ;;  %v13123_v47 = vadd.f32 %v16761_v6, %v12988_v0  ;;  %v16766_v6 = vld [vmem:[#allocation42_spill] sm:$0xff] }
 0x2f4   : > { %v9621_v50 = vpop.eup %9620  ;;  %9640 = vrcp.f32 %v4398_v17  ;;  %v4399_v56 = vadd.f32 1.0, %v9619_v9  ;;  %v13126_v4 = vmul.f32 -1.442695, %v13100_v7  ;;  %v13130_v59 = vadd.f32 %v16762_v54, %v12981_v13  ;;  %v16764_v9 = vld [vmem:[#allocation41_spill] sm:$0xff]  ;;  %v16768_v54 = vld [vmem:[#allocation75_spill] sm:$0xff] }
 0x2f5   : > { %v9623_v35 = vpop.eup %9622  ;;  %9642 = vrcp.f32 %v4397_v58  ;;  %v4410_v43 = vadd.f32 1.0, %v9621_v50  ;;  %v13134_v20 = vadd.f32 %v16764_v9, %v12992_v8  ;;  %v13138_v62 = vadd.f32 %v16766_v6, %v12975_v24 }
 0x2f6   : > { %16763 = vst [vmem:[#allocation14_spill] sm:$0xff] %v13130_v59  ;;  %v9625_v49 = vpop.eup %9624  ;;  %9644 = vrcp.f32 %v4399_v56  ;;  %v4412_v17 = vadd.f32 1.0, %v9623_v35  ;;  %v13141_v30 = vmul.f32 -1.442695, %v13116_v46  ;;  %v13145_v18 = vadd.f32 %v16768_v54, %v12988_v0 }
 0x2f7   : > { %16765 = vst [vmem:[#allocation27_spill] sm:$0xff] %v13134_v20  ;;  %16767 = vst [vmem:[#allocation28_spill] sm:$0xff] %v13138_v62  ;;  %v9627_v58 = vpop.eup %9626  ;;  %9646 = vrcp.f32 %v4410_v43  ;;  %v4411_v50 = vadd.f32 1.0, %v9625_v49  ;;  %v13148_v9 = vmul.f32 -1.442695, %v13123_v47  ;;  %v13152_v6 = vadd.f32 %v16769_v23, %v12981_v13 }
 0x2f8   : > { %v9629_v56 = vpop.eup %9628  ;;  %9648 = vrcp.f32 %v4412_v17  ;;  %v4413_v35 = vadd.f32 1.0, %v9627_v58  ;;  %v13155_v43 = vmul.f32 -1.442695, %v13130_v59  ;;  %v13159_v54 = vadd.f32 %v16770_v42, %v12992_v8  ;;  %7977 = vmatmul.mubr.msk.bf16.gmra.mrb[244].mxu1 %vm1232_vm3, %v16771_v22 }
 0x2f9   : > { %v9631_v31 = vpop.eup %9630  ;;  %9650 = vrcp.f32 %v4411_v50  ;;  %v3980_v49 = vadd.f32 1.0, %v9629_v56  ;;  %v13164_v21 = vmul.f32 -1.442695, %v13134_v20  ;;  %v13167_v23 = vmul.f32 -1.442695, %v13138_v62  ;;  %2591 = vmatprep.mubr.bf16.mxu1 %v16553_v63 }
 0x2fa   : > { %v9633_v17 = vpop.eup %9632  ;;  %9652 = vrcp.f32 %v4413_v35  ;;  %v3982_v58 = vadd.f32 1.0, %v9631_v31  ;;  %v13172_v42 = vmul.f32 -1.442695, %v13145_v18  ;;  %v13176_v22 = vadd.f32 %v12576_v28, %v12975_v24  ;;  %v13178_v31 = vpop.f32.mrb[106].mxu1 }
 0x2fb   : > { %v9635_v50 = vpop.eup %9634  ;;  %v5728_v56 = vmul.f32 %v9633_v17, %v12887_v38  ;;  %9654 = vrcp.f32 %v3980_v49  ;;  %16772 = vst [vmem:[#allocation29_spill] sm:$0xff] %v13178_v31  ;;  %v13180_v35 = vpop.f32.mrb[122].mxu0  ;;  %v13184_v59 = vmul.f32 -1.442695, %v13152_v6  ;;  %v13188_v38 = vadd.f32 %v12578_v52, %v12988_v0 }
 0x2fc   : > { %16773 = vst [vmem:[#allocation30_spill] sm:$0xff] %v13180_v35  ;;  %v9637_v20 = vpop.eup %9636  ;;  %v5727_v62 = vmul.f32 %v9635_v50, %v12897_v36  ;;  %9656 = vrcp.f32 %v3982_v58  ;;  %v13194_v35 = vmul.f32 -1.442695, %v13159_v54  ;;  %v13196_v31 = vpop.f32.mrb[107].mxu1 }
 0x2fd   : > { %v9639_v49 = vpop.eup %9638  ;;  %v5872_v17 = vadd.f32 %v13054_v15, %v5728_v56  ;;  %v5729_v28 = vmul.f32 %v9637_v20, %v12905_v40  ;;  %9658 = vpow2.f32 %v13096_v27  ;;  %v13198_v36 = vpop.f32.mrb[123].mxu0  ;;  %v13205_v15 = vadd.f32 %v12586_v19, %v12981_v13 }
 0x2fe   : > { %16774 = vst [vmem:[#allocation38_spill] sm:$0xff] %v13198_v36  ;;  %v9641_v58 = vpop.eup %9640  ;;  %v5835_v50 = vadd.f32 %v13061_v26, %v5727_v62  ;;  %v5740_v52 = vmul.f32 %v9639_v49, %v12909_v32  ;;  %9660 = vpow2.f32 %v13105_v41  ;;  %v13211_v56 = vmul.f32 -1.442695, %v13176_v22 }
 0x2ff   : > { %v9643_v40 = vpop.eup %9642  ;;  %v5909_v20 = vadd.f32 %v13068_v60, %v5729_v28  ;;  %v5742_v27 = vmul.f32 %v9641_v58, %v12913_v53  ;;  %9662 = vpow2.f32 %v13108_v11  ;;  %v13217_v19 = vmul.f32 -1.442695, %v13188_v38  ;;  %v16775_v11 = vld [vmem:[#allocation19_spill] sm:$0xff]  ;;  %v13239_v28 = vpop.f32.mrb[108].mxu1 }
 0x300   : > { %v9645_v36 = vpop.eup %9644  ;;  %v5799_v62 = vadd.f32 %v13078_v51, %v5740_v52  ;;  %v5741_v32 = vmul.f32 %v9643_v40, %v12917_v14  ;;  %9664 = vpow2.f32 %v13112_v37  ;;  %v13223_v53 = vadd.f32 %v12588_v55, %v12992_v8  ;;  %7978 = vmatmul.mubr.msk.bf16.gmra.mrb[248].mxu1 %vm1232_vm3, %v16775_v11 }
 0x301   : > { %v9647_v26 = vpop.eup %9646  ;;  %v5873_v41 = vadd.f32 %v5872_v17, %v5742_v27  ;;  %v5743_v60 = vmul.f32 %v9645_v36, %v12928_v29  ;;  %9666 = vpow2.f32 %v13119_v25  ;;  %v13230_v49 = vmul.f32 -1.442695, %v13205_v15  ;;  %2601 = vmatprep.mubr.bf16.mxu1 %v16553_v63 }
 0x302   : > { %v9649_v51 = vpop.eup %9648  ;;  %v5836_v14 = vadd.f32 %v5835_v50, %v5741_v32  ;;  %v5754_v37 = vmul.f32 %v9647_v26, %v12944_v12  ;;  %9668 = vpow2.f32 %v13126_v4  ;;  %v13237_v55 = vadd.f32 %v12595_v2, %v12975_v24  ;;  %v13241_v12 = vpop.f32.mrb[124].mxu0 }
 0x303   : > { %v9651_v29 = vpop.eup %9650  ;;  %v5910_v25 = vadd.f32 %v5909_v20, %v5743_v60  ;;  %v5756_v17 = vmul.f32 %v9649_v51, %v12948_v44  ;;  %9670 = vpow2.f32 %v13141_v30  ;;  %v13247_v50 = vadd.f32 %v12597_v45, %v12988_v0  ;;  %v13249_v44 = vpop.f32.mrb[109].mxu1 }
 0x304   : > { %v9653_v4 = vpop.eup %9652  ;;  %v5800_v36 = vadd.f32 %v5799_v62, %v5754_v37  ;;  %v5755_v58 = vmul.f32 %v9651_v29, %v12966_v10  ;;  %9672 = vpow2.f32 %v13148_v9  ;;  %v13251_v30 = vpop.f32.mrb[125].mxu0  ;;  %v13258_v20 = vmul.f32 -1.442695, %v13223_v53 }
 0x305   : > { %16776 = vst [vmem:[#allocation17_spill] sm:$0xff] %v13251_v30  ;;  %v13253_v2 = vpop.eup %9654  ;;  %v5874_v52 = vadd.f32 %v5873_v41, %v5756_v17  ;;  %v5757_v40 = vmul.f32 %v9653_v4, %v13008_v57  ;;  %9674 = vpow2.f32 %v13155_v43  ;;  %v13260_v10 = vpop.f32.mrb[110].mxu1  ;;  %v13269_v32 = vadd.f32 %v12605_v48, %v12981_v13 }
 0x306   : > { %16777 = vst [vmem:[#allocation39_spill] sm:$0xff] %v13260_v10  ;;  %v13262_v9 = vpop.f32.mrb[126].mxu0  ;;  %v13264_v45 = vpop.eup %9656  ;;  %v5801_v27 = vrot.slane %v5800_v36, 4  ;;  %v5837_v62 = vadd.f32 %v5836_v14, %v5755_v58  ;;  %9676 = vpow2.f32 %v13164_v21  ;;  %v13277_v11 = vmul.f32 -1.442695, %v13237_v55  ;;  %v16781_v58 = vld [vmem:[#allocation18_spill] sm:$0xff] }
 0x307   : > { %16778 = vst [vmem:[#allocation40_spill] sm:$0xff] %v13262_v9  ;;  %v13271_v57 = vpop.f32.mrb[111].mxu1  ;;  %v13273_v43 = vpop.f32.mrb[127].mxu0  ;;  %v5875_v41 = vrot.slane %v5874_v52, 4  ;;  %v5911_v60 = vadd.f32 %v5910_v25, %v5757_v40  ;;  %9678 = vpow2.f32 %v13167_v23 }
 0x308   : > { %16779 = vst [vmem:[#allocation41_spill] sm:$0xff] %v13271_v57  ;;  %16780 = vst [vmem:[#allocation42_spill] sm:$0xff] %v13273_v43  ;;  %v9659_v26 = vpop.eup %9658  ;;  %v5802_v14 = vadd.f32 %v5801_v27, %v5800_v36  ;;  %v5838_v37 = vrot.slane %v5837_v62, 4  ;;  %9680 = vpow2.f32 %v13172_v42  ;;  %7979 = vmatmul.mubr.msk.bf16.gmra.mrb[252].mxu1 %vm1232_vm3, %v16781_v58 }
 0x309   : > { %v9661_v51 = vpop.eup %9660  ;;  %v3981_v21 = vadd.f32 1.0, %v9659_v26  ;;  %v5876_v29 = vadd.f32 %v5875_v41, %v5874_v52  ;;  %v5912_v17 = vrot.slane %v5911_v60, 4  ;;  %9682 = vpow2.f32 %v13184_v59  ;;  %2611 = vmatprep.mubr.bf16.mxu1 %v16553_v63  ;;  %v13284_v52 = vpop.f32.mrb[112].mxu1 }
 0x30a   : > { %v9663_v48 = vpop.eup %9662  ;;  %v3983_v4 = vadd.f32 1.0, %v9661_v51  ;;  %v5803_v23 = vrot.slane %v5802_v14, 2  ;;  %v5839_v40 = vadd.f32 %v5838_v37, %v5837_v62  ;;  %16782 = vst [vmem:[#allocation75_spill] sm:$0xff] %v13284_v52 }
 0x30b   : > { %v9665_v25 = vpop.eup %9664  ;;  %9684 = vrcp.f32 %v3981_v21  ;;  %v3994_v43 = vadd.f32 1.0, %v9663_v48  ;;  %v5877_v27 = vrot.slane %v5876_v29, 2  ;;  %v5913_v26 = vadd.f32 %v5912_v17, %v5911_v60 }
 0x30c   : > { %v9667_v36 = vpop.eup %9666  ;;  %9686 = vrcp.f32 %v3983_v4  ;;  %v3996_v42 = vadd.f32 1.0, %v9665_v25  ;;  %v5804_v51 = vadd.f32 %v5803_v23, %v5802_v14  ;;  %v5840_v59 = vrot.slane %v5839_v40, 2 }
 0x30d   : > { %v9669_v41 = vpop.eup %9668  ;;  %9688 = vrcp.f32 %v3994_v43  ;;  %v3995_v57 = vadd.f32 1.0, %v9667_v36  ;;  %v5878_v9 = vadd.f32 %v5877_v27, %v5876_v29  ;;  %v5914_v10 = vrot.slane %v5913_v26, 2 }
 0x30e   : > { %v9671_v58 = vpop.eup %9670  ;;  %9690 = vrcp.f32 %v3996_v42  ;;  %v3997_v62 = vadd.f32 1.0, %v9669_v41  ;;  %v5805_v21 = vrot.slane %v5804_v51, 1  ;;  %v5841_v48 = vadd.f32 %v5840_v59, %v5839_v40  ;;  %v16783_v41 = vld [vmem:[#allocation21_spill] sm:$0xff] }
 0x30f   : > { %v9673_v37 = vpop.eup %9672  ;;  %9692 = vrcp.f32 %v3995_v57  ;;  %v4008_v30 = vadd.f32 1.0, %v9671_v58  ;;  %v5879_v17 = vrot.slane %v5878_v9, 1  ;;  %v5915_v4 = vadd.f32 %v5914_v10, %v5913_v26  ;;  %v16784_v10 = vld [vmem:[#allocation43_spill] sm:$0xff] }
 0x310   : > { %v9675_v60 = vpop.eup %9674  ;;  %9694 = vrcp.f32 %v3997_v62  ;;  %v4010_v25 = vadd.f32 1.0, %v9673_v37  ;;  %v5806_v14 = vadd.f32 %v5805_v21, %v5804_v51  ;;  %v5842_v23 = vrot.slane %v5841_v48, 1  ;;  %7980 = vmatmul.mubr.msk.bf16.gmra.mrb[0].mxu1 %vm1232_vm3, %v16783_v41 }
 0x311   : > { %v9677_v52 = vpop.eup %9676  ;;  %9696 = vrcp.f32 %v4008_v30  ;;  %v4009_v43 = vadd.f32 1.0, %v9675_v60  ;;  %v5880_v29 = vadd.f32 %v5879_v17, %v5878_v9  ;;  %v5916_v27 = vrot.slane %v5915_v4, 1  ;;  %2621 = vmatprep.mubr.bf16.mxu1 %v16553_v63 }
 0x312   : > { %v9679_v36 = vpop.eup %9678  ;;  %9698 = vrcp.f32 %v4010_v25  ;;  %v4011_v42 = vadd.f32 1.0, %v9677_v52  ;;  %v5843_v40 = vadd.f32 %v5842_v23, %v5841_v48  ;;  %v13290_v26 = vadd.f32 %v16784_v10, %v12992_v8  ;;  %v13295_v48 = vpop.f32.mrb[128].mxu0  ;;  %v16785_v25 = vld [vmem:[#allocation44_spill] sm:$0xff] }
 0x313   : > { %v9681_v57 = vpop.eup %9680  ;;  %9700 = vrcp.f32 %v4009_v43  ;;  %v4022_v59 = vadd.f32 1.0, %v9679_v36  ;;  %v5917_v51 = vadd.f32 %v5916_v27, %v5915_v4  ;;  %v8058_v58 = vmul.f32 -1.442695, %v13247_v50  ;;  %v16786_v4 = vld [vmem:[#allocation45_spill] sm:$0xff]  ;;  %v16788_v27 = vld [vmem:[#allocation46_spill] sm:$0xff]  ;;  %v13315_v41 = vpop.f32.mrb[129].mxu0 }
 0x314   : > { %v9683_v30 = vpop.eup %9682  ;;  %9702 = vrcp.f32 %v4011_v42  ;;  %v4024_v9 = vadd.f32 1.0, %v9681_v57  ;;  %v6302_v62 = vcombine.low %v5806_v14, %v5843_v40  ;;  %v8057_v21 = vmul.f32 -1.442695, %v13269_v32 }
 0x315   : > { %v9685_v52 = vpop.eup %9684  ;;  %9704 = vrcp.f32 %v4022_v59  ;;  %v4023_v37 = vadd.f32 1.0, %v9683_v30  ;;  %v6303_v17 = vcombine.low %v5880_v29, %v5917_v51  ;;  %v13299_v63 = vadd.f32 %v16785_v25, %v12975_v24  ;;  %v13313_v29 = vpop.f32.mrb[113].mxu1 }
 0x316   : > { %v9687_v60 = vpop.eup %9686  ;;  %9706 = vrcp.f32 %v4024_v9  ;;  %v13303_v23 = vadd.f32 %v16786_v4, %v12988_v0  ;;  %v13306_v14 = vrot.slane %v6302_v62, %v13089_v5  ;;  %v8059_v36 = vmul.f32 -1.442695, %v13290_v26 }
 0x317   : > { %v9689_v43 = vpop.eup %9688  ;;  %9708 = vrcp.f32 %v4023_v37  ;;  %v13311_v42 = vadd.f32 %v16788_v27, %v12981_v13  ;;  %v13318_v40 = vrot.slane %v6303_v17, %v13089_v5  ;;  %v5324_v59 = vmul.f32 %v13253_v2, %v13015_v39  ;;  %v13329_v37 = vpop.f32.mrb[114].mxu1 }
 0x318   : > { %16787 = vst [vmem:[#allocation76_spill] sm:$0xff] %v13306_v14  ;;  %v9691_v57 = vpop.eup %9690  ;;  %v5338_v10 = vmul.f32 %v9689_v43, %v13072_v61  ;;  %9710 = vpow2.f32 %v13194_v35  ;;  %v5326_v51 = vmul.f32 %v13264_v45, %v13025_v33  ;;  %v5325_v9 = vmul.f32 %v9685_v52, %v13059_v16  ;;  %v13331_v17 = vpop.f32.mrb[130].mxu0  ;;  %v16790_v33 = vld [vmem:[#allocation20_spill] sm:$0xff] }
 0x319   : > { %16789 = vst [vmem:[#allocation77_spill] sm:$0xff] %v13318_v40  ;;  %v9693_v30 = vpop.eup %9692  ;;  %v5340_v62 = vmul.f32 %v9691_v57, %v13082_v34  ;;  %9712 = vpow2.f32 %v13211_v56  ;;  %7981 = vmatmul.mubr.msk.bf16.gmra.mrb[4].mxu1 %vm1232_vm3, %v16790_v33  ;;  %v5327_v34 = vmul.f32 %v9687_v60, %v13066_v1  ;;  %v13342_v45 = vpop.f32.mrb[115].mxu1  ;;  %v16794_v33 = vld [vmem:[#allocation28_spill] sm:$0xff] }
 0x31a   : > { %v9695_v25 = vpop.eup %9694  ;;  %v5918_v61 = vadd.f32 %v5338_v10, %v5324_v59  ;;  %v5339_v35 = vmul.f32 %v9693_v30, %v13093_v3  ;;  %9714 = vpow2.f32 %v13217_v19  ;;  %v13344_v52 = vpop.f32.mrb[131].mxu0  ;;  %v16791_v19 = vld [vmem:[#allocation47_spill] sm:$0xff]  ;;  %v16792_v10 = vld [vmem:[#allocation14_spill] sm:$0xff] }
 0x31b   : > { %v9697_v16 = vpop.eup %9696  ;;  %v5992_v56 = vadd.f32 %v5340_v62, %v5326_v51  ;;  %v5341_v2 = vmul.f32 %v9695_v25, %v13100_v7  ;;  %9716 = vpow2.f32 %v13230_v49  ;;  %v13350_v27 = vadd.f32 %v16791_v19, %v12992_v8 }
 0x31c   : > { %v9699_v4 = vpop.eup %9698  ;;  %v5955_v43 = vadd.f32 %v5339_v35, %v5325_v9  ;;  %v5352_v3 = vmul.f32 %v9697_v16, %v13116_v46  ;;  %9718 = vpow2.f32 %v13258_v20  ;;  %v8070_v49 = vmul.f32 -1.442695, %v13299_v63  ;;  %v16793_v9 = vld [vmem:[#allocation27_spill] sm:$0xff] }
 0x31d   : > { %v9701_v1 = vpop.eup %9700  ;;  %v6029_v60 = vadd.f32 %v5341_v2, %v5327_v34  ;;  %v5354_v7 = vmul.f32 %v9699_v4, %v13123_v47  ;;  %9720 = vpow2.f32 %v13277_v11  ;;  %v8072_v46 = vmul.f32 -1.442695, %v13303_v23  ;;  %v13364_v2 = vpop.f32.mrb[116].mxu1 }
 0x31e   : > { %v9703_v57 = vpop.eup %9702  ;;  %v5919_v59 = vadd.f32 %v5918_v61, %v5352_v3  ;;  %v5353_v30 = vmul.f32 %v9701_v1, %v16792_v10  ;;  %9722 = vpow2.f32 %v8058_v58  ;;  %v8071_v25 = vmul.f32 -1.442695, %v13311_v42  ;;  %v13371_v3 = vpop.f32.mrb[117].mxu1 }
 0x31f   : > { %v9705_v20 = vpop.eup %9704  ;;  %v5993_v51 = vadd.f32 %v5992_v56, %v5354_v7  ;;  %v5355_v62 = vmul.f32 %v9703_v57, %v16793_v9  ;;  %9724 = vpow2.f32 %v8057_v21  ;;  %v8073_v16 = vmul.f32 -1.442695, %v13350_v27  ;;  %v13366_v56 = vpop.f32.mrb[132].mxu0  ;;  %v16798_v9 = vld [vmem:[#allocation48_spill] sm:$0xff] }
 0x320   : > { %v9707_v35 = vpop.eup %9706  ;;  %v5956_v47 = vadd.f32 %v5955_v43, %v5353_v30  ;;  %v5366_v11 = vmul.f32 %v9705_v20, %v16794_v33  ;;  %9726 = vpow2.f32 %v8059_v36  ;;  %v13373_v36 = vpop.f32.mrb[133].mxu0 }
 0x321   : > { %v9709_v61 = vpop.eup %9708  ;;  %v13361_v34 = vadd.f32 %v6029_v60, %v5355_v62  ;;  %v5368_v58 = vmul.f32 %v9707_v35, %v13145_v18  ;;  %9728 = vpow2.f32 %v8070_v49  ;;  %16795 = vst [vmem:[#allocation16_spill] sm:$0xff] %v13373_v36  ;;  %v13377_v18 = vpop.f32.mrb[118].mxu1  ;;  %v13385_v62 = vadd.f32 %v16798_v9, %v12975_v24 }
 0x322   : > { %v9711_v21 = vpop.eup %9710  ;;  %v13368_v4 = vadd.f32 %v5919_v59, %v5366_v11  ;;  %v5367_v43 = vmul.f32 %v9709_v61, %v13152_v6  ;;  %9730 = vpow2.f32 %v8072_v46  ;;  %16796 = vst [vmem:[#allocation19_spill] sm:$0xff] %v13377_v18  ;;  %v13379_v7 = vpop.f32.mrb[134].mxu0  ;;  %v16799_v61 = vld [vmem:[#allocation49_spill] sm:$0xff] }
 0x323   : > { %v9713_v19 = vpop.eup %9712  ;;  %v13375_v1 = vadd.f32 %v5993_v51, %v5368_v58  ;;  %v4025_v60 = vadd.f32 1.0, %v9711_v21  ;;  %9732 = vpow2.f32 %v8071_v25  ;;  %16797 = vst [vmem:[#allocation18_spill] sm:$0xff] %v13379_v7  ;;  %v13389_v58 = vadd.f32 %v16799_v61, %v12988_v0  ;;  %v16800_v21 = vld [vmem:[#allocation50_spill] sm:$0xff]  ;;  %v13426_v40 = vpop.f32.mrb[119].mxu1 }
 0x324   : > { %v9715_v49 = vpop.eup %9714  ;;  %v13381_v57 = vadd.f32 %v5956_v47, %v5367_v43  ;;  %v4036_v59 = vadd.f32 1.0, %v9713_v19  ;;  %9734 = vpow2.f32 %v8073_v16  ;;  %v13393_v43 = vadd.f32 %v16800_v21, %v12981_v13  ;;  %16807 = vst [vmem:[#allocation21_spill] sm:$0xff] %v13426_v40  ;;  %v13428_v14 = vpop.f32.mrb[135].mxu0 }
 0x325   : > { %v9717_v6 = vpop.eup %9716  ;;  %9736 = vrcp.f32 %v4025_v60  ;;  %v4038_v10 = vadd.f32 1.0, %v9715_v49  ;;  %v8084_v49 = vmul.f32 -1.442695, %v13385_v62  ;;  %16808 = vst [vmem:[#allocation43_spill] sm:$0xff] %v13428_v14 }
 0x326   : > { %v9719_v30 = vpop.eup %9718  ;;  %9738 = vrcp.f32 %v4036_v59  ;;  %v4037_v46 = vadd.f32 1.0, %v9717_v6  ;;  %v16801_v59 = vld [vmem:[#allocation7_spill] sm:$0xff] }
 0x327   : > { %v9721_v20 = vpop.eup %9720  ;;  %9740 = vrcp.f32 %v4038_v10  ;;  %v4039_v51 = vadd.f32 1.0, %v9719_v30  ;;  %v13398_v6 = vadd.f32 %v16801_v59, %v12992_v8  ;;  %v16806_v59 = vld [vmem:[#allocation54_spill] sm:$0xff] }
 0x328   : > { %v9723_v25 = vpop.eup %9722  ;;  %9742 = vrcp.f32 %v4037_v46  ;;  %v4050_v35 = vadd.f32 1.0, %v9721_v20  ;;  %v16802_v46 = vld [vmem:[#allocation51_spill] sm:$0xff] }
 0x329   : > { %v9725_v47 = vpop.eup %9724  ;;  %9744 = vrcp.f32 %v4039_v51  ;;  %v4052_v33 = vadd.f32 1.0, %v9723_v25  ;;  %v13402_v20 = vadd.f32 %v16802_v46, %v12975_v24  ;;  %v16803_v51 = vld [vmem:[#allocation52_spill] sm:$0xff]  ;;  %v13419_v46 = vadd.f32 %v16806_v59, %v12975_v24 }
 0x32a   : > { %v9727_v11 = vpop.eup %9726  ;;  %9746 = vrcp.f32 %v4050_v35  ;;  %v4051_v16 = vadd.f32 1.0, %v9725_v47  ;;  %v13406_v9 = vadd.f32 %v16803_v51, %v12988_v0  ;;  %v16804_v47 = vld [vmem:[#allocation6_spill] sm:$0xff] }
 0x32b   : > { %v9729_v19 = vpop.eup %9728  ;;  %9748 = vrcp.f32 %v4052_v33  ;;  %v4053_v60 = vadd.f32 1.0, %v9727_v11  ;;  %v13410_v33 = vadd.f32 %v16804_v47, %v12981_v13  ;;  %v16805_v11 = vld [vmem:[#allocation53_spill] sm:$0xff]  ;;  %v8087_v47 = vmul.f32 -1.442695, %v13398_v6 }
 0x32c   : > { %v9731_v10 = vpop.eup %9730  ;;  %9750 = vrcp.f32 %v4051_v16  ;;  %v4064_v30 = vadd.f32 1.0, %v9729_v19  ;;  %v13414_v61 = vadd.f32 %v16805_v11, %v12992_v8  ;;  %v8086_v19 = vmul.f32 -1.442695, %v13389_v58 }
 0x32d   : > { %v9733_v25 = vpop.eup %9732  ;;  %9752 = vrcp.f32 %v4053_v60  ;;  %v4066_v35 = vadd.f32 1.0, %v9731_v10  ;;  %v8085_v10 = vmul.f32 -1.442695, %v13393_v43 }
 0x32e   : > { %v9735_v16 = vpop.eup %9734  ;;  %9754 = vrcp.f32 %v4064_v30  ;;  %v4065_v21 = vadd.f32 1.0, %v9733_v25  ;;  %v8098_v30 = vmul.f32 -1.442695, %v13402_v20  ;;  %v8100_v25 = vmul.f32 -1.442695, %v13406_v9 }
 0x32f   : > { %v9737_v51 = vpop.eup %9736  ;;  %9756 = vrcp.f32 %v4066_v35  ;;  %v4067_v60 = vadd.f32 1.0, %v9735_v16  ;;  %v8099_v16 = vmul.f32 -1.442695, %v13410_v33  ;;  %v8101_v5 = vmul.f32 -1.442695, %v13414_v61 }
 0x330   : > { %v9739_v39 = vpop.eup %9738  ;;  %v5369_v11 = vmul.f32 %v9737_v51, %v13159_v54  ;;  %9758 = vrcp.f32 %v4065_v21  ;;  %v8112_v51 = vmul.f32 -1.442695, %v13419_v46 }
 0x331   : > { %v9741_v59 = vpop.eup %9740  ;;  %v5380_v35 = vmul.f32 %v9739_v39, %v13176_v22  ;;  %9760 = vrcp.f32 %v4067_v60  ;;  %v16809_v22 = vld [vmem:[#allocation55_spill] sm:$0xff] }
 0x332   : > { %v9743_v7 = vpop.eup %9742  ;;  %v6031_v54 = vadd.f32 %v13361_v34, %v5369_v11  ;;  %v5382_v21 = vmul.f32 %v9741_v59, %v13188_v38  ;;  %9762 = vpow2.f32 %v8084_v49  ;;  %v13440_v39 = vadd.f32 %v16809_v22, %v12988_v0  ;;  %v16810_v38 = vld [vmem:[#allocation31_spill] sm:$0xff] }
 0x333   : > { %v9745_v18 = vpop.eup %9744  ;;  %v5921_v40 = vadd.f32 %v13368_v4, %v5380_v35  ;;  %v5381_v14 = vmul.f32 %v9743_v7, %v13205_v15  ;;  %9764 = vpow2.f32 %v8086_v19  ;;  %v13446_v49 = vadd.f32 %v16810_v38, %v12981_v13  ;;  %v16811_v7 = vld [vmem:[#allocation56_spill] sm:$0xff] }
 0x334   : > { %v9747_v60 = vpop.eup %9746  ;;  %v5995_v36 = vadd.f32 %v13375_v1, %v5382_v21  ;;  %v5383_v34 = vmul.f32 %v9745_v18, %v13223_v53  ;;  %9766 = vpow2.f32 %v8085_v10  ;;  %v13452_v19 = vadd.f32 %v16811_v7, %v12992_v8  ;;  %v16812_v53 = vld [vmem:[#allocation9_spill] sm:$0xff]  ;;  %v13459_v10 = vpop.f32.mrb[120].mxu1 }
 0x335   : > { %v9749_v11 = vpop.eup %9748  ;;  %v5958_v4 = vadd.f32 %v13381_v57, %v5381_v14  ;;  %v5394_v15 = vmul.f32 %v9747_v60, %v13237_v55  ;;  %9768 = vpow2.f32 %v8087_v47  ;;  %v13457_v18 = vadd.f32 %v16812_v53, %v12975_v24  ;;  %16813 = vst [vmem:[#allocation44_spill] sm:$0xff] %v13459_v10  ;;  %v13461_v21 = vpop.f32.mrb[136].mxu0 }
 0x336   : > { %v9751_v59 = vpop.eup %9750  ;;  %v6032_v35 = vadd.f32 %v6031_v54, %v5383_v34  ;;  %v5396_v1 = vmul.f32 %v9749_v11, %v13247_v50  ;;  %9770 = vpow2.f32 %v8098_v30  ;;  %16814 = vst [vmem:[#allocation45_spill] sm:$0xff] %v13461_v21  ;;  %v8114_v47 = vmul.f32 -1.442695, %v13440_v39  ;;  %v13465_v22 = vpop.f32.mrb[121].mxu1 }
 0x337   : > { %v9753_v14 = vpop.eup %9752  ;;  %v5922_v55 = vadd.f32 %v5921_v40, %v5394_v15  ;;  %v5395_v57 = vmul.f32 %v9751_v59, %v13269_v32  ;;  %9772 = vpow2.f32 %v8100_v25  ;;  %16815 = vst [vmem:[#allocation46_spill] sm:$0xff] %v13465_v22  ;;  %v13467_v54 = vpop.f32.mrb[137].mxu0  ;;  %v8113_v34 = vmul.f32 -1.442695, %v13446_v49 }
 0x338   : > { %16816 = vst [vmem:[#allocation20_spill] sm:$0xff] %v13467_v54  ;;  %v9755_v50 = vpop.eup %9754  ;;  %v5996_v30 = vadd.f32 %v5995_v36, %v5396_v1  ;;  %v5397_v60 = vmul.f32 %v9753_v14, %v13290_v26  ;;  %9774 = vpow2.f32 %v8099_v16  ;;  %v13471_v38 = vpop.f32.mrb[122].mxu1  ;;  %v8115_v15 = vmul.f32 -1.442695, %v13452_v19 }
 0x339   : > { %16817 = vst [vmem:[#allocation47_spill] sm:$0xff] %v13471_v38  ;;  %v13473_v11 = vpop.f32.mrb[138].mxu0  ;;  %v9757_v40 = vpop.eup %9756  ;;  %v5959_v32 = vadd.f32 %v5958_v4, %v5395_v57  ;;  %v5408_v25 = vmul.f32 %v9755_v50, %v13299_v63  ;;  %9776 = vpow2.f32 %v8101_v5  ;;  %v8126_v1 = vmul.f32 -1.442695, %v13457_v18 }
 0x33a   : > { %16818 = vst [vmem:[#allocation14_spill] sm:$0xff] %v13473_v11  ;;  %v13477_v7 = vpop.f32.mrb[123].mxu1  ;;  %v13479_v59 = vpop.f32.mrb[139].mxu0  ;;  %v6033_v26 = vadd.f32 %v6032_v35, %v5397_v60  ;;  %v5410_v16 = vmul.f32 %v9757_v40, %v13303_v23  ;;  %9778 = vpow2.f32 %v8112_v51 }
 0x33b   : > { %16819 = vst [vmem:[#allocation27_spill] sm:$0xff] %v13477_v7  ;;  %16820 = vst [vmem:[#allocation28_spill] sm:$0xff] %v13479_v59  ;;  %v9759_v36 = vpop.eup %9758  ;;  %v13483_v14 = vadd.f32 %v5922_v55, %v5408_v25  ;;  %9780 = vpow2.f32 %v8114_v47  ;;  %v13493_v55 = vpop.f32.mrb[124].mxu1 }
 0x33c   : > { %v9761_v53 = vpop.eup %9760  ;;  %v5409_v4 = vmul.f32 %v9759_v36, %v13311_v42  ;;  %v13486_v63 = vadd.f32 %v5996_v30, %v5410_v16  ;;  %9782 = vpow2.f32 %v8113_v34  ;;  %16821 = vst [vmem:[#allocation48_spill] sm:$0xff] %v13493_v55  ;;  %v13495_v42 = vpop.f32.mrb[140].mxu0 }
 0x33d   : > { %v9763_v5 = vpop.eup %9762  ;;  %v5411_v57 = vmul.f32 %v9761_v53, %v13350_v27  ;;  %9784 = vpow2.f32 %v8115_v15  ;;  %16822 = vst [vmem:[#allocation49_spill] sm:$0xff] %v13495_v42  ;;  %v13497_v40 = vpop.f32.mrb[125].mxu1  ;;  %v16824_v15 = vld [vmem:[#allocation57_spill] sm:$0xff] }
 0x33e   : > { %v9765_v50 = vpop.eup %9764  ;;  %v13489_v59 = vadd.f32 %v5959_v32, %v5409_v4  ;;  %v4078_v35 = vadd.f32 1.0, %v9763_v5  ;;  %9786 = vpow2.f32 %v8126_v1  ;;  %16823 = vst [vmem:[#allocation50_spill] sm:$0xff] %v13497_v40  ;;  %v13501_v36 = vadd.f32 %v16824_v15, %v12988_v0  ;;  %v16828_v15 = vld [vmem:[#allocation33_spill] sm:$0xff]  ;;  %v13539_v7 = vpop.f32.mrb[141].mxu0 }
 0x33f   : > { %v9767_v23 = vpop.eup %9766  ;;  %v13491_v51 = vadd.f32 %v6033_v26, %v5411_v57  ;;  %v4080_v60 = vadd.f32 1.0, %v9765_v50  ;;  %v16825_v57 = vld [vmem:[#allocation58_spill] sm:$0xff]  ;;  %16833 = vst [vmem:[#allocation7_spill] sm:$0xff] %v13539_v7  ;;  %v13549_v22 = vpop.f32.mrb[142].mxu0 }
 0x340   : > { %v9769_v47 = vpop.eup %9768  ;;  %9788 = vrcp.f32 %v4078_v35  ;;  %v4079_v30 = vadd.f32 1.0, %v9767_v23  ;;  %v13505_v50 = vadd.f32 %v16825_v57, %v12981_v13  ;;  %v16826_v35 = vld [vmem:[#allocation8_spill] sm:$0xff]  ;;  %16835 = vst [vmem:[#allocation52_spill] sm:$0xff] %v13549_v22  ;;  %v13562_v22 = vpop.f32.mrb[143].mxu0 }
 0x341   : > { %v9771_v27 = vpop.eup %9770  ;;  %9790 = vrcp.f32 %v4080_v60  ;;  %v4081_v34 = vadd.f32 1.0, %v9769_v47  ;;  %v13509_v23 = vadd.f32 %v16826_v35, %v12992_v8  ;;  %16838 = vst [vmem:[#allocation53_spill] sm:$0xff] %v13562_v22 }
 0x342   : > { %v9773_v32 = vpop.eup %9772  ;;  %9792 = vrcp.f32 %v4079_v30  ;;  %v4092_v25 = vadd.f32 1.0, %v9771_v27  ;;  %v8128_v30 = vmul.f32 -1.442695, %v13501_v36  ;;  %v16827_v27 = vld [vmem:[#allocation32_spill] sm:$0xff] }
 0x343   : > { %v9775_v26 = vpop.eup %9774  ;;  %9794 = vrcp.f32 %v4081_v34  ;;  %v4094_v16 = vadd.f32 1.0, %v9773_v32  ;;  %v13514_v34 = vadd.f32 %v16827_v27, %v12975_v24  ;;  %v16831_v27 = vld [vmem:[#allocation35_spill] sm:$0xff]  ;;  %v8129_v42 = vmul.f32 -1.442695, %v13509_v23 }
 0x344   : > { %v9777_v1 = vpop.eup %9776  ;;  %9796 = vrcp.f32 %v4092_v25  ;;  %v4093_v53 = vadd.f32 1.0, %v9775_v26  ;;  %v13518_v26 = vadd.f32 %v16828_v15, %v12988_v0  ;;  %v13530_v40 = vadd.f32 %v16831_v27, %v12975_v24 }
 0x345   : > { %v9779_v4 = vpop.eup %9778  ;;  %9798 = vrcp.f32 %v4094_v16  ;;  %v4095_v5 = vadd.f32 1.0, %v9777_v1  ;;  %v16829_v16 = vld [vmem:[#allocation11_spill] sm:$0xff]  ;;  %v8127_v15 = vmul.f32 -1.442695, %v13505_v50 }
 0x346   : > { %v9781_v60 = vpop.eup %9780  ;;  %9800 = vrcp.f32 %v4093_v53  ;;  %v4106_v47 = vadd.f32 1.0, %v9779_v4  ;;  %v13522_v1 = vadd.f32 %v16829_v16, %v12981_v13  ;;  %v16830_v4 = vld [vmem:[#allocation34_spill] sm:$0xff]  ;;  %v8154_v54 = vmul.f32 -1.442695, %v13530_v40 }
 0x347   : > { %v9783_v32 = vpop.eup %9782  ;;  %9802 = vrcp.f32 %v4095_v5  ;;  %v4108_v25 = vadd.f32 1.0, %v9781_v60  ;;  %v13526_v35 = vadd.f32 %v16830_v4, %v12992_v8 }
 0x348   : > { %v9785_v57 = vpop.eup %9784  ;;  %9804 = vrcp.f32 %v4106_v47  ;;  %v4107_v53 = vadd.f32 1.0, %v9783_v32  ;;  %v8140_v47 = vmul.f32 -1.442695, %v13514_v34  ;;  %v16832_v32 = vld [vmem:[#allocation59_spill] sm:$0xff] }
 0x349   : > { %v9787_v5 = vpop.eup %9786  ;;  %9806 = vrcp.f32 %v4108_v25  ;;  %v4109_v60 = vadd.f32 1.0, %v9785_v57  ;;  %v13537_v4 = vadd.f32 %v16832_v32, %v12988_v0  ;;  %v8142_v25 = vmul.f32 -1.442695, %v13518_v26  ;;  %v13547_v32 = vpop.f32.mrb[126].mxu1 }
 0x34a   : > { %v9789_v16 = vpop.eup %9788  ;;  %9808 = vrcp.f32 %v4107_v53  ;;  %v4120_v55 = vadd.f32 1.0, %v9787_v5  ;;  %v8141_v57 = vmul.f32 -1.442695, %v13522_v1  ;;  %v8143_v5 = vmul.f32 -1.442695, %v13526_v35  ;;  %16834 = vst [vmem:[#allocation51_spill] sm:$0xff] %v13547_v32 }
 0x34b   : > { %v9791_v27 = vpop.eup %9790  ;;  %v5422_v11 = vmul.f32 %v9789_v16, %v13385_v62  ;;  %9810 = vrcp.f32 %v4109_v60  ;;  %v16836_v16 = vld [vmem:[#allocation60_spill] sm:$0xff]  ;;  %v8156_v32 = vmul.f32 -1.442695, %v13537_v4  ;;  %v13560_v10 = vpop.f32.mrb[127].mxu1 }
 0x34c   : > { %v9793_v38 = vpop.eup %9792  ;;  %v5424_v53 = vmul.f32 %v9791_v27, %v13389_v58  ;;  %9812 = vrcp.f32 %v4120_v55  ;;  %v13555_v21 = vadd.f32 %v16836_v16, %v12981_v13  ;;  %16837 = vst [vmem:[#allocation6_spill] sm:$0xff] %v13560_v10 }
 0x34d   : > { %v9795_v7 = vpop.eup %9794  ;;  %v5924_v62 = vadd.f32 %v13483_v14, %v5422_v11  ;;  %v5423_v60 = vmul.f32 %v9793_v38, %v13393_v43  ;;  %9814 = vpow2.f32 %v8128_v30  ;;  %v16839_v14 = vld [vmem:[#allocation61_spill] sm:$0xff] }
 0x34e   : > { %v9797_v58 = vpop.eup %9796  ;;  %v5998_v55 = vadd.f32 %v13486_v63, %v5424_v53  ;;  %v5425_v27 = vmul.f32 %v9795_v7, %v13398_v6  ;;  %9816 = vpow2.f32 %v8127_v15  ;;  %v13568_v30 = vadd.f32 %v16839_v14, %v12992_v8  ;;  %v16840_v15 = vld [vmem:[#allocation10_spill] sm:$0xff] }
 0x34f   : > { %v9799_v11 = vpop.eup %9798  ;;  %v5961_v43 = vadd.f32 %v13489_v59, %v5423_v60  ;;  %v5436_v38 = vmul.f32 %v9797_v58, %v13402_v20  ;;  %9818 = vpow2.f32 %v8129_v42  ;;  %v13574_v53 = vadd.f32 %v16840_v15, %v12975_v24  ;;  %v16841_v20 = vld [vmem:[#allocation36_spill] sm:$0xff] }
 0x350   : > { %v9801_v63 = vpop.eup %9800  ;;  %v6035_v6 = vadd.f32 %v13491_v51, %v5425_v27  ;;  %v5438_v7 = vmul.f32 %v9799_v11, %v13406_v9  ;;  %9820 = vpow2.f32 %v8140_v47  ;;  %v13579_v42 = vadd.f32 %v16841_v20, %v12988_v0 }
 0x351   : > { %v9803_v16 = vpop.eup %9802  ;;  %v5925_v22 = vadd.f32 %v5924_v62, %v5436_v38  ;;  %v5437_v59 = vmul.f32 %v9801_v63, %v13410_v33  ;;  %9822 = vpow2.f32 %v8142_v25  ;;  %v8155_v9 = vmul.f32 -1.442695, %v13555_v21 }
 0x352   : > { %v9805_v60 = vpop.eup %9804  ;;  %v5999_v58 = vadd.f32 %v5998_v55, %v5438_v7  ;;  %v5439_v51 = vmul.f32 %v9803_v16, %v13414_v61  ;;  %9824 = vpow2.f32 %v8141_v57  ;;  %v8157_v62 = vmul.f32 -1.442695, %v13568_v30  ;;  %v13587_v55 = vpop.f32.mrb[128].mxu1 }
 0x353   : > { %v9807_v47 = vpop.eup %9806  ;;  %v5962_v27 = vadd.f32 %v5961_v43, %v5437_v59  ;;  %v5450_v11 = vmul.f32 %v9805_v60, %v13419_v46  ;;  %9826 = vpow2.f32 %v8143_v5  ;;  %v8168_v14 = vmul.f32 -1.442695, %v13574_v53  ;;  %16842 = vst [vmem:[#allocation54_spill] sm:$0xff] %v13587_v55  ;;  %v13589_v61 = vpop.f32.mrb[144].mxu0 }
 0x354   : > { %v9809_v33 = vpop.eup %9808  ;;  %v6036_v25 = vadd.f32 %v6035_v6, %v5439_v51  ;;  %v5452_v38 = vmul.f32 %v9807_v47, %v13440_v39  ;;  %9828 = vpow2.f32 %v8154_v54  ;;  %16843 = vst [vmem:[#allocation55_spill] sm:$0xff] %v13589_v61  ;;  %v8170_v46 = vmul.f32 -1.442695, %v13579_v42  ;;  %v13593_v5 = vpop.f32.mrb[129].mxu1 }
 0x355   : > { %v9811_v57 = vpop.eup %9810  ;;  %v5926_v63 = vadd.f32 %v5925_v22, %v5450_v11  ;;  %v5451_v43 = vmul.f32 %v9809_v33, %v13446_v49  ;;  %9830 = vpow2.f32 %v8156_v32  ;;  %16844 = vst [vmem:[#allocation31_spill] sm:$0xff] %v13593_v5  ;;  %v13595_v7 = vpop.f32.mrb[145].mxu0 }
 0x356   : > { %16845 = vst [vmem:[#allocation56_spill] sm:$0xff] %v13595_v7  ;;  %v9813_v6 = vpop.eup %9812  ;;  %v13597_v39 = vadd.f32 %v5999_v58, %v5452_v38  ;;  %v5453_v54 = vmul.f32 %v9811_v57, %v13452_v19  ;;  %9832 = vpow2.f32 %v8155_v9  ;;  %v13600_v15 = vpop.f32.mrb[130].mxu1 }
 0x357   : > { %16846 = vst [vmem:[#allocation9_spill] sm:$0xff] %v13600_v15  ;;  %v13602_v16 = vpop.f32.mrb[146].mxu0  ;;  %v9815_v22 = vpop.eup %9814  ;;  %v13604_v59 = vadd.f32 %v5962_v27, %v5451_v43  ;;  %v5464_v49 = vmul.f32 %v9813_v6, %v13457_v18  ;;  %9834 = vpow2.f32 %v8157_v62  ;;  %v16850_v43 = vld [vmem:[#allocation37_spill] sm:$0xff] }
 0x358   : > { %16847 = vst [vmem:[#allocation57_spill] sm:$0xff] %v13602_v16  ;;  %v13607_v32 = vpop.f32.mrb[131].mxu1  ;;  %v13609_v20 = vpop.f32.mrb[147].mxu0  ;;  %v13611_v58 = vadd.f32 %v6036_v25, %v5453_v54  ;;  %v4122_v51 = vadd.f32 1.0, %v9815_v22  ;;  %9836 = vpow2.f32 %v8168_v14  ;;  %v13617_v14 = vadd.f32 %v16850_v43, %v12981_v13  ;;  %v16851_v22 = vld [vmem:[#allocation63_spill] sm:$0xff] }
 0x359   : > { %16848 = vst [vmem:[#allocation58_spill] sm:$0xff] %v13607_v32  ;;  %16849 = vst [vmem:[#allocation8_spill] sm:$0xff] %v13609_v20  ;;  %v9817_v60 = vpop.eup %9816  ;;  %v13613_v9 = vadd.f32 %v5926_v63, %v5464_v49  ;;  %9838 = vpow2.f32 %v8170_v46  ;;  %v13621_v49 = vadd.f32 %v16851_v22, %v12992_v8 }
 0x35a   : > { %v9819_v19 = vpop.eup %9818  ;;  %v4121_v47 = vadd.f32 1.0, %v9817_v60  ;;  %9840 = vrcp.f32 %v4122_v51  ;;  %v16852_v60 = vld [vmem:[#allocation64_spill] sm:$0xff] }
 0x35b   : > { %v9821_v11 = vpop.eup %9820  ;;  %v4123_v27 = vadd.f32 1.0, %v9819_v19  ;;  %v13625_v51 = vadd.f32 %v16852_v60, %v12975_v24  ;;  %v16857_v60 = vld [vmem:[#allocation12_spill] sm:$0xff] }
 0x35c   : > { %v9823_v33 = vpop.eup %9822  ;;  %9842 = vrcp.f32 %v4121_v47  ;;  %v4134_v18 = vadd.f32 1.0, %v9821_v11  ;;  %v16853_v11 = vld [vmem:[#allocation65_spill] sm:$0xff] }
 0x35d   : > { %v9825_v62 = vpop.eup %9824  ;;  %9844 = vrcp.f32 %v4123_v27  ;;  %v4136_v38 = vadd.f32 1.0, %v9823_v33  ;;  %v13629_v27 = vadd.f32 %v16853_v11, %v12988_v0  ;;  %v16854_v33 = vld [vmem:[#allocation66_spill] sm:$0xff]  ;;  %v13646_v11 = vadd.f32 %v16857_v60, %v12988_v0 }
 0x35e   : > { %v9827_v57 = vpop.eup %9826  ;;  %9846 = vrcp.f32 %v4134_v18  ;;  %v4135_v25 = vadd.f32 1.0, %v9825_v62  ;;  %v13633_v18 = vadd.f32 %v16854_v33, %v12981_v13  ;;  %v8182_v20 = vmul.f32 -1.442695, %v13625_v51 }
 0x35f   : > { %v9829_v63 = vpop.eup %9828  ;;  %9848 = vrcp.f32 %v4136_v38  ;;  %v4137_v6 = vadd.f32 1.0, %v9827_v57  ;;  %v8169_v57 = vmul.f32 -1.442695, %v13617_v14 }
 0x360   : > { %v9831_v46 = vpop.eup %9830  ;;  %9850 = vrcp.f32 %v4135_v25  ;;  %v4148_v54 = vadd.f32 1.0, %v9829_v63  ;;  %v16855_v25 = vld [vmem:[#allocation67_spill] sm:$0xff] }
 0x361   : > { %v9833_v19 = vpop.eup %9832  ;;  %9852 = vrcp.f32 %v4137_v6  ;;  %v4150_v47 = vadd.f32 1.0, %v9831_v46  ;;  %v13638_v43 = vadd.f32 %v16855_v25, %v12992_v8  ;;  %v16856_v46 = vld [vmem:[#allocation68_spill] sm:$0xff] }
 0x362   : > { %v9835_v62 = vpop.eup %9834  ;;  %9854 = vrcp.f32 %v4148_v54  ;;  %v4149_v38 = vadd.f32 1.0, %v9833_v19  ;;  %v13642_v22 = vadd.f32 %v16856_v46, %v12975_v24  ;;  %v8171_v19 = vmul.f32 -1.442695, %v13621_v49 }
 0x363   : > { %v9837_v63 = vpop.eup %9836  ;;  %9856 = vrcp.f32 %v4150_v47  ;;  %v4151_v6 = vadd.f32 1.0, %v9835_v62  ;;  %v8184_v47 = vmul.f32 -1.442695, %v13629_v27  ;;  %v8183_v62 = vmul.f32 -1.442695, %v13633_v18 }
 0x364   : > { %v9839_v33 = vpop.eup %9838  ;;  %9858 = vrcp.f32 %v4149_v38  ;;  %v4162_v54 = vadd.f32 1.0, %v9837_v63  ;;  %v8185_v60 = vmul.f32 -1.442695, %v13638_v43  ;;  %v16858_v38 = vld [vmem:[#allocation69_spill] sm:$0xff] }
 0x365   : > { %v9841_v25 = vpop.eup %9840  ;;  %9860 = vrcp.f32 %v4151_v6  ;;  %v4164_v32 = vadd.f32 1.0, %v9839_v33  ;;  %v13656_v63 = vadd.f32 %v16858_v38, %v12981_v13  ;;  %v8196_v6 = vmul.f32 -1.442695, %v13642_v22 }
 0x366   : > { %v9843_v46 = vpop.eup %9842  ;;  %v5466_v16 = vmul.f32 %v9841_v25, %v13501_v36  ;;  %9862 = vrcp.f32 %v4162_v54  ;;  %v8198_v33 = vmul.f32 -1.442695, %v13646_v11  ;;  %v16859_v54 = vld [vmem:[#allocation70_spill] sm:$0xff] }
 0x367   : > { %v9845_v15 = vpop.eup %9844  ;;  %v5465_v7 = vmul.f32 %v9843_v46, %v13505_v50  ;;  %9864 = vrcp.f32 %v4164_v32  ;;  %v13665_v25 = vadd.f32 %v16859_v54, %v12992_v8  ;;  %v16860_v32 = vld [vmem:[#allocation71_spill] sm:$0xff] }
 0x368   : > { %v9847_v5 = vpop.eup %9846  ;;  %v6001_v61 = vadd.f32 %v13597_v39, %v5466_v16  ;;  %v5467_v36 = vmul.f32 %v9845_v15, %v13509_v23  ;;  %9866 = vpow2.f32 %v8169_v57  ;;  %v13671_v46 = vadd.f32 %v16860_v32, %v12975_v24  ;;  %v13676_v16 = vpop.f32.mrb[132].mxu1 }
 0x369   : > { %v9849_v38 = vpop.eup %9848  ;;  %v5964_v55 = vadd.f32 %v13604_v59, %v5465_v7  ;;  %v5478_v50 = vmul.f32 %v9847_v5, %v13514_v34  ;;  %9868 = vpow2.f32 %v8171_v19  ;;  %v8197_v15 = vmul.f32 -1.442695, %v13656_v63  ;;  %v13678_v57 = vpop.f32.mrb[148].mxu0  ;;  %v16861_v59 = vld [vmem:[#allocation15_spill] sm:$0xff] }
 0x36a   : > { %v9851_v10 = vpop.eup %9850  ;;  %v6038_v39 = vadd.f32 %v13611_v58, %v5467_v36  ;;  %v5480_v23 = vmul.f32 %v9849_v38, %v13518_v26  ;;  %9870 = vpow2.f32 %v8182_v20  ;;  %v13684_v19 = vadd.f32 %v16861_v59, %v12988_v0  ;;  %v13686_v58 = vpop.f32.mrb[133].mxu1  ;;  %v16863_v38 = vld [vmem:[#allocation72_spill] sm:$0xff] }
 0x36b   : > { %v9853_v7 = vpop.eup %9852  ;;  %v5928_v34 = vadd.f32 %v13613_v9, %v5478_v50  ;;  %v5479_v5 = vmul.f32 %v9851_v10, %v13522_v1  ;;  %9872 = vpow2.f32 %v8184_v47  ;;  %v13688_v26 = vpop.f32.mrb[149].mxu0  ;;  %v13693_v32 = vadd.f32 %v16863_v38, %v12981_v13 }
 0x36c   : > { %16862 = vst [vmem:[#allocation32_spill] sm:$0xff] %v13688_v26  ;;  %v9855_v20 = vpop.eup %9854  ;;  %v6002_v36 = vadd.f32 %v6001_v61, %v5480_v23  ;;  %v5481_v54 = vmul.f32 %v9853_v7, %v13526_v35  ;;  %9874 = vpow2.f32 %v8183_v62  ;;  %v13695_v9 = vpop.f32.mrb[134].mxu1  ;;  %v8199_v59 = vmul.f32 -1.442695, %v13665_v25 }
 0x36d   : > { %v13697_v10 = vpop.f32.mrb[150].mxu0  ;;  %v9857_v1 = vpop.eup %9856  ;;  %v5965_v47 = vadd.f32 %v5964_v55, %v5479_v5  ;;  %v5492_v50 = vmul.f32 %v9855_v20, %v13530_v40  ;;  %9876 = vpow2.f32 %v8185_v60  ;;  %v8210_v7 = vmul.f32 -1.442695, %v13671_v46 }
 0x36e   : > { %16864 = vst [vmem:[#allocation33_spill] sm:$0xff] %v13697_v10  ;;  %v13701_v26 = vpop.f32.mrb[135].mxu1  ;;  %v13703_v61 = vpop.f32.mrb[151].mxu0  ;;  %v6039_v62 = vadd.f32 %v6038_v39, %v5481_v54  ;;  %v5494_v23 = vmul.f32 %v9857_v1, %v13537_v4  ;;  %9878 = vpow2.f32 %v8196_v6  ;;  %v8212_v40 = vmul.f32 -1.442695, %v13684_v19 }
 0x36f   : > { %16865 = vst [vmem:[#allocation11_spill] sm:$0xff] %v13701_v26  ;;  %16866 = vst [vmem:[#allocation34_spill] sm:$0xff] %v13703_v61  ;;  %v9859_v35 = vpop.eup %9858  ;;  %v5929_v10 = vadd.f32 %v5928_v34, %v5492_v50  ;;  %9880 = vpow2.f32 %v8198_v33  ;;  %v8211_v61 = vmul.f32 -1.442695, %v13693_v32  ;;  %v13717_v33 = vpop.f32.mrb[136].mxu1 }
 0x370   : > { %v9861_v38 = vpop.eup %9860  ;;  %v5493_v55 = vmul.f32 %v9859_v35, %v13555_v21  ;;  %v6003_v5 = vadd.f32 %v6002_v36, %v5494_v23  ;;  %9882 = vpow2.f32 %v8197_v15  ;;  %16867 = vst [vmem:[#allocation35_spill] sm:$0xff] %v13717_v33  ;;  %v13719_v36 = vpop.f32.mrb[152].mxu0 }
 0x371   : > { %v9863_v60 = vpop.eup %9862  ;;  %v5495_v20 = vmul.f32 %v9861_v38, %v13568_v30  ;;  %9884 = vpow2.f32 %v8199_v59  ;;  %16868 = vst [vmem:[#allocation59_spill] sm:$0xff] %v13719_v36  ;;  %v13725_v50 = vpop.f32.mrb[153].mxu0  ;;  %v16872_v38 = vld [vmem:[#allocation73_spill] sm:$0xff] }
 0x372   : > { %v9865_v39 = vpop.eup %9864  ;;  %v13711_v54 = vadd.f32 %v5965_v47, %v5493_v55  ;;  %v5506_v4 = vmul.f32 %v9863_v60, %v13574_v53  ;;  %9886 = vpow2.f32 %v8210_v7  ;;  %v13723_v47 = vpop.f32.mrb[137].mxu1  ;;  %16870 = vst [vmem:[#allocation61_spill] sm:$0xff] %v13725_v50  ;;  %v13733_v55 = vadd.f32 %v16872_v38, %v12992_v8 }
 0x373   : > { %v9867_v6 = vpop.eup %9866  ;;  %v13714_v34 = vadd.f32 %v6039_v62, %v5495_v20  ;;  %v5508_v21 = vmul.f32 %v9865_v39, %v13579_v42  ;;  %9888 = vpow2.f32 %v8212_v40  ;;  %16869 = vst [vmem:[#allocation60_spill] sm:$0xff] %v13723_v47  ;;  %v13729_v42 = vpop.f32.mrb[138].mxu1 }
 0x374   : > { %v9869_v30 = vpop.eup %9868  ;;  %v13721_v15 = vadd.f32 %v5929_v10, %v5506_v4  ;;  %v4163_v1 = vadd.f32 1.0, %v9867_v6  ;;  %9890 = vpow2.f32 %v8211_v61  ;;  %16871 = vst [vmem:[#allocation10_spill] sm:$0xff] %v13729_v42  ;;  %v13779_v50 = vpop.f32.mrb[139].mxu1 }
 0x375   : > { %v9871_v53 = vpop.eup %9870  ;;  %v13727_v59 = vadd.f32 %v6003_v5, %v5508_v21  ;;  %v4165_v35 = vadd.f32 1.0, %v9869_v30  ;;  %v8213_v21 = vmul.f32 -1.442695, %v13733_v55  ;;  %v16873_v30 = vld [vmem:[#allocation29_spill] sm:$0xff]  ;;  %16878 = vst [vmem:[#allocation37_spill] sm:$0xff] %v13779_v50 }
 0x376   : > { %v9873_v62 = vpop.eup %9872  ;;  %9892 = vrcp.f32 %v4163_v1  ;;  %v4176_v23 = vadd.f32 1.0, %v9871_v53  ;;  %v13738_v1 = vadd.f32 %v16873_v30, %v12975_v24 }
 0x377   : > { %v9875_v7 = vpop.eup %9874  ;;  %9894 = vrcp.f32 %v4165_v35  ;;  %v4178_v10 = vadd.f32 1.0, %v9873_v62  ;;  %v16874_v62 = vld [vmem:[#allocation30_spill] sm:$0xff] }
 0x378   : > { %v9877_v40 = vpop.eup %9876  ;;  %9896 = vrcp.f32 %v4176_v23  ;;  %v4177_v60 = vadd.f32 1.0, %v9875_v7  ;;  %v13742_v23 = vadd.f32 %v16874_v62, %v12988_v0  ;;  %v13746_v7 = vadd.f32 %v13196_v31, %v12981_v13 }
 0x379   : > { %v9879_v20 = vpop.eup %9878  ;;  %9898 = vrcp.f32 %v4178_v10  ;;  %v4179_v5 = vadd.f32 1.0, %v9877_v40  ;;  %v16875_v40 = vld [vmem:[#allocation38_spill] sm:$0xff]  ;;  %v13762_v31 = vadd.f32 %v13249_v44, %v12981_v13  ;;  %v8224_v30 = vmul.f32 -1.442695, %v13738_v1 }
 0x37a   : > { %v9881_v39 = vpop.eup %9880  ;;  %9900 = vrcp.f32 %v4177_v60  ;;  %v4190_v61 = vadd.f32 1.0, %v9879_v20  ;;  %v13750_v60 = vadd.f32 %v16875_v40, %v12992_v8  ;;  %v13754_v20 = vadd.f32 %v13239_v28, %v12975_v24  ;;  %v13771_v40 = vpop.f32.mrb[154].mxu0 }
 0x37b   : > { %v9883_v4 = vpop.eup %9882  ;;  %9902 = vrcp.f32 %v4179_v5  ;;  %v4192_v6 = vadd.f32 1.0, %v9881_v39  ;;  %16877 = vst [vmem:[#allocation36_spill] sm:$0xff] %v13771_v40  ;;  %v13781_v36 = vpop.f32.mrb[155].mxu0 }
 0x37c   : > { %v9885_v53 = vpop.eup %9884  ;;  %9904 = vrcp.f32 %v4190_v61  ;;  %v4191_v35 = vadd.f32 1.0, %v9883_v4  ;;  %v13758_v61 = vadd.f32 %v13241_v12, %v12988_v0  ;;  %v8225_v12 = vmul.f32 -1.442695, %v13746_v7  ;;  %16879 = vst [vmem:[#allocation63_spill] sm:$0xff] %v13781_v36 }
 0x37d   : > { %v9887_v10 = vpop.eup %9886  ;;  %9906 = vrcp.f32 %v4192_v6  ;;  %v4193_v38 = vadd.f32 1.0, %v9885_v53  ;;  %v16876_v53 = vld [vmem:[#allocation17_spill] sm:$0xff] }
 0x37e   : > { %v9889_v5 = vpop.eup %9888  ;;  %9908 = vrcp.f32 %v4191_v35  ;;  %v4204_v39 = vadd.f32 1.0, %v9887_v10  ;;  %v13767_v28 = vadd.f32 %v16876_v53, %v12992_v8  ;;  %v8226_v10 = vmul.f32 -1.442695, %v13742_v23 }
 0x37f   : > { %v9891_v4 = vpop.eup %9890  ;;  %9910 = vrcp.f32 %v4193_v38  ;;  %v4206_v6 = vadd.f32 1.0, %v9889_v5  ;;  %v8227_v38 = vmul.f32 -1.442695, %v13750_v60  ;;  %v8238_v5 = vmul.f32 -1.442695, %v13754_v20 }
 0x380   : > { %v9893_v62 = vpop.eup %9892  ;;  %9912 = vrcp.f32 %v4204_v39  ;;  %v4205_v35 = vadd.f32 1.0, %v9891_v4  ;;  %v8240_v39 = vmul.f32 -1.442695, %v13758_v61  ;;  %v8239_v4 = vmul.f32 -1.442695, %v13762_v31 }
 0x381   : > { %v9895_v44 = vpop.eup %9894  ;;  %v5507_v42 = vmul.f32 %v9893_v62, %v13617_v14  ;;  %9914 = vrcp.f32 %v4206_v6  ;;  %v8241_v62 = vmul.f32 -1.442695, %v13767_v28 }
 0x382   : > { %v9897_v47 = vpop.eup %9896  ;;  %v5509_v53 = vmul.f32 %v9895_v44, %v13621_v49  ;;  %9916 = vrcp.f32 %v4205_v35  ;;  %v16880_v44 = vld [vmem:[#allocation39_spill] sm:$0xff] }
 0x383   : > { %v9899_v40 = vpop.eup %9898  ;;  %v5967_v14 = vadd.f32 %v13711_v54, %v5507_v42  ;;  %v5520_v6 = vmul.f32 %v9897_v47, %v13625_v51  ;;  %9918 = vpow2.f32 %v8213_v21  ;;  %v13790_v26 = vadd.f32 %v16880_v44, %v12975_v24  ;;  %v16881_v51 = vld [vmem:[#allocation40_spill] sm:$0xff]  ;;  %v16882_v21 = vld [vmem:[#allocation41_spill] sm:$0xff] }
 0x384   : > { %v9901_v33 = vpop.eup %9900  ;;  %v6041_v49 = vadd.f32 %v13714_v34, %v5509_v53  ;;  %v5522_v35 = vmul.f32 %v9899_v40, %v13629_v27  ;;  %9920 = vpow2.f32 %v8224_v30  ;;  %v13796_v47 = vadd.f32 %v16881_v51, %v12988_v0 }
 0x385   : > { %v9903_v50 = vpop.eup %9902  ;;  %v5931_v36 = vadd.f32 %v13721_v15, %v5520_v6  ;;  %v5521_v54 = vmul.f32 %v9901_v33, %v13633_v18  ;;  %9922 = vpow2.f32 %v8226_v10  ;;  %v13802_v30 = vadd.f32 %v16882_v21, %v12981_v13  ;;  %v16883_v18 = vld [vmem:[#allocation42_spill] sm:$0xff] }
 0x386   : > { %v9905_v42 = vpop.eup %9904  ;;  %v6005_v34 = vadd.f32 %v13727_v59, %v5522_v35  ;;  %v5523_v27 = vmul.f32 %v9903_v50, %v13638_v43  ;;  %9924 = vpow2.f32 %v8225_v12  ;;  %v13807_v33 = vadd.f32 %v16883_v18, %v12992_v8  ;;  %v13811_v50 = vpop.f32.mrb[140].mxu1 }
 0x387   : > { %v9907_v40 = vpop.eup %9906  ;;  %v5968_v53 = vadd.f32 %v5967_v14, %v5521_v54  ;;  %v5534_v15 = vmul.f32 %v9905_v42, %v13642_v22  ;;  %9926 = vpow2.f32 %v8227_v38  ;;  %v8252_v43 = vmul.f32 -1.442695, %v13790_v26  ;;  %v13813_v12 = vpop.f32.mrb[156].mxu0 }
 0x388   : > { %v9909_v10 = vpop.eup %9908  ;;  %v6042_v6 = vadd.f32 %v6041_v49, %v5523_v27  ;;  %v5536_v59 = vmul.f32 %v9907_v40, %v13646_v11  ;;  %9928 = vpow2.f32 %v8238_v5  ;;  %v8254_v38 = vmul.f32 -1.442695, %v13796_v47  ;;  %v13817_v44 = vpop.f32.mrb[141].mxu1 }
 0x389   : > { %v9911_v35 = vpop.eup %9910  ;;  %v5932_v14 = vadd.f32 %v5931_v36, %v5534_v15  ;;  %v5535_v22 = vmul.f32 %v9909_v10, %v13656_v63  ;;  %9930 = vpow2.f32 %v8240_v39  ;;  %v13819_v54 = vpop.f32.mrb[157].mxu0  ;;  %v8253_v51 = vmul.f32 -1.442695, %v13802_v30 }
 0x38a   : > { %v9913_v49 = vpop.eup %9912  ;;  %v6006_v11 = vadd.f32 %v6005_v34, %v5536_v59  ;;  %v5537_v5 = vmul.f32 %v9911_v35, %v13665_v25  ;;  %9932 = vpow2.f32 %v8239_v4  ;;  %v13823_v42 = vpop.f32.mrb[142].mxu1  ;;  %v8255_v21 = vmul.f32 -1.442695, %v13807_v33 }
 0x38b   : > { %v13825_v27 = vpop.f32.mrb[158].mxu0  ;;  %v9915_v36 = vpop.eup %9914  ;;  %v5969_v63 = vadd.f32 %v5968_v53, %v5535_v22  ;;  %v5548_v39 = vmul.f32 %v9913_v49, %v13671_v46  ;;  %9934 = vpow2.f32 %v8241_v62 }
 0x38c   : > { %v13829_v40 = vpop.f32.mrb[143].mxu1  ;;  %v13831_v15 = vpop.f32.mrb[159].mxu0  ;;  %v13833_v25 = vadd.f32 %v6042_v6, %v5537_v5  ;;  %v5550_v4 = vmul.f32 %v9915_v36, %v13684_v19  ;;  %9936 = vpow2.f32 %v8252_v43 }
 0x38d   : > { %v9917_v34 = vpop.eup %9916  ;;  %v13836_v10 = vadd.f32 %v5932_v14, %v5548_v39  ;;  %9938 = vpow2.f32 %v8254_v38  ;;  %v13843_v43 = vpop.f32.mrb[144].mxu1 }
 0x38e   : > { %v9919_v18 = vpop.eup %9918  ;;  %v5549_v53 = vmul.f32 %v9917_v34, %v13693_v32  ;;  %v13839_v62 = vadd.f32 %v6006_v11, %v5550_v4  ;;  %9940 = vpow2.f32 %v8253_v51  ;;  %v13845_v14 = vpop.f32.mrb[160].mxu0  ;;  %v16885_v51 = vld [vmem:[#allocation75_spill] sm:$0xff]  ;;  %v13853_v4 = vadd.f32 %v13295_v48, %v12988_v0 }
 0x38f   : > { %v9921_v46 = vpop.eup %9920  ;;  %v4207_v59 = vadd.f32 1.0, %v9919_v18  ;;  %9942 = vpow2.f32 %v8255_v21  ;;  %16884 = vst [vmem:[#allocation64_spill] sm:$0xff] %v13845_v14  ;;  %v13849_v36 = vadd.f32 %v16885_v51, %v12975_v24 }
 0x390   : > { %v9923_v35 = vpop.eup %9922  ;;  %v13841_v22 = vadd.f32 %v5969_v63, %v5549_v53  ;;  %v4218_v49 = vadd.f32 1.0, %v9921_v46  ;;  %v13857_v46 = vadd.f32 %v13313_v29, %v12981_v13  ;;  %v13870_v29 = vadd.f32 %v13331_v17, %v12988_v0 }
 0x391   : > { %v9925_v6 = vpop.eup %9924  ;;  %9944 = vrcp.f32 %v4207_v59  ;;  %v4220_v19 = vadd.f32 1.0, %v9923_v35 }
 0x392   : > { %v9927_v5 = vpop.eup %9926  ;;  %9946 = vrcp.f32 %v4218_v49  ;;  %v4219_v32 = vadd.f32 1.0, %v9925_v6  ;;  %v8266_v49 = vmul.f32 -1.442695, %v13849_v36  ;;  %v13862_v6 = vadd.f32 %v13315_v41, %v12992_v8 }
 0x393   : > { %v9929_v38 = vpop.eup %9928  ;;  %9948 = vrcp.f32 %v4220_v19  ;;  %v4221_v11 = vadd.f32 1.0, %v9927_v5  ;;  %v13866_v5 = vadd.f32 %v13329_v37, %v12975_v24  ;;  %v13875_v41 = vadd.f32 %v13342_v45, %v12981_v13 }
 0x394   : > { %v9931_v63 = vpop.eup %9930  ;;  %9950 = vrcp.f32 %v4219_v32  ;;  %v4232_v39 = vadd.f32 1.0, %v9929_v38  ;;  %v13880_v37 = vadd.f32 %v13344_v52, %v12992_v8  ;;  %v13892_v52 = vpop.f32.mrb[161].mxu0 }
 0x395   : > { %v9933_v21 = vpop.eup %9932  ;;  %9952 = vrcp.f32 %v4221_v11  ;;  %v4234_v34 = vadd.f32 1.0, %v9931_v63  ;;  %v8268_v11 = vmul.f32 -1.442695, %v13853_v4  ;;  %16887 = vst [vmem:[#allocation66_spill] sm:$0xff] %v13892_v52  ;;  %v13905_v52 = vpop.f32.mrb[162].mxu0 }
 0x396   : > { %v9935_v18 = vpop.eup %9934  ;;  %9954 = vrcp.f32 %v4232_v39  ;;  %v4233_v53 = vadd.f32 1.0, %v9933_v21  ;;  %v8267_v39 = vmul.f32 -1.442695, %v13857_v46  ;;  %16889 = vst [vmem:[#allocation68_spill] sm:$0xff] %v13905_v52 }
 0x397   : > { %v9937_v59 = vpop.eup %9936  ;;  %9956 = vrcp.f32 %v4234_v34  ;;  %v4235_v35 = vadd.f32 1.0, %v9935_v18  ;;  %v8269_v34 = vmul.f32 -1.442695, %v13862_v6  ;;  %v13885_v18 = vadd.f32 %v13364_v2, %v12975_v24 }
 0x398   : > { %v9939_v19 = vpop.eup %9938  ;;  %9958 = vrcp.f32 %v4233_v53  ;;  %v4246_v48 = vadd.f32 1.0, %v9937_v59  ;;  %v8280_v59 = vmul.f32 -1.442695, %v13866_v5  ;;  %v13898_v2 = vadd.f32 %v13366_v56, %v12988_v0 }
 0x399   : > { %v9941_v32 = vpop.eup %9940  ;;  %9960 = vrcp.f32 %v4235_v35  ;;  %v4248_v38 = vadd.f32 1.0, %v9939_v19  ;;  %v8282_v35 = vmul.f32 -1.442695, %v13870_v29  ;;  %v13890_v19 = vpop.f32.mrb[145].mxu1  ;;  %v8294_v56 = vmul.f32 -1.442695, %v13885_v18 }
 0x39a   : > { %v9943_v51 = vpop.eup %9942  ;;  %9962 = vrcp.f32 %v4246_v48  ;;  %v4247_v63 = vadd.f32 1.0, %v9941_v32  ;;  %16886 = vst [vmem:[#allocation65_spill] sm:$0xff] %v13890_v19  ;;  %v13903_v19 = vpop.f32.mrb[146].mxu1 }
 0x39b   : > { %v9945_v17 = vpop.eup %9944  ;;  %9964 = vrcp.f32 %v4248_v38  ;;  %v4249_v21 = vadd.f32 1.0, %v9943_v51  ;;  %v8281_v38 = vmul.f32 -1.442695, %v13875_v41  ;;  %16888 = vst [vmem:[#allocation67_spill] sm:$0xff] %v13903_v19 }
 0x39c   : > { %v9947_v45 = vpop.eup %9946  ;;  %v5551_v53 = vmul.f32 %v9945_v17, %v13733_v55  ;;  %9966 = vrcp.f32 %v4247_v63  ;;  %v8283_v17 = vmul.f32 -1.442695, %v13880_v37 }
 0x39d   : > { %v9949_v48 = vpop.eup %9948  ;;  %v5562_v32 = vmul.f32 %v9947_v45, %v13738_v1  ;;  %9968 = vrcp.f32 %v4249_v21 }
 0x39e   : > { %v9951_v55 = vpop.eup %9950  ;;  %v6044_v51 = vadd.f32 %v13833_v25, %v5551_v53  ;;  %v5564_v63 = vmul.f32 %v9949_v48, %v13742_v23  ;;  %9970 = vpow2.f32 %v8266_v49  ;;  %v13914_v49 = vadd.f32 %v13371_v3, %v12981_v13  ;;  %v13916_v53 = vpop.f32.mrb[147].mxu1  ;;  %v16893_v3 = vld [vmem:[#allocation19_spill] sm:$0xff] }
 0x39f   : > { %v9953_v1 = vpop.eup %9952  ;;  %v5934_v21 = vadd.f32 %v13836_v10, %v5562_v32  ;;  %v5563_v45 = vmul.f32 %v9951_v55, %v13746_v7  ;;  %9972 = vpow2.f32 %v8268_v11  ;;  %16890 = vst [vmem:[#allocation12_spill] sm:$0xff] %v13916_v53  ;;  %v13918_v48 = vpop.f32.mrb[163].mxu0  ;;  %v16892_v32 = vld [vmem:[#allocation16_spill] sm:$0xff] }
 0x3a0   : > { %v9955_v14 = vpop.eup %9954  ;;  %v6008_v25 = vadd.f32 %v13839_v62, %v5564_v63  ;;  %v5565_v23 = vmul.f32 %v9953_v1, %v13750_v60  ;;  %9974 = vpow2.f32 %v8267_v39  ;;  %16891 = vst [vmem:[#allocation69_spill] sm:$0xff] %v13918_v48  ;;  %v13924_v62 = vadd.f32 %v16892_v32, %v12992_v8 }
 0x3a1   : > { %v9957_v10 = vpop.eup %9956  ;;  %v5971_v7 = vadd.f32 %v13841_v22, %v5563_v45  ;;  %v5576_v11 = vmul.f32 %v9955_v14, %v13754_v20  ;;  %9976 = vpow2.f32 %v8269_v34  ;;  %v13929_v63 = vadd.f32 %v16893_v3, %v12975_v24 }
 0x3a2   : > { %v9959_v60 = vpop.eup %9958  ;;  %v6045_v39 = vadd.f32 %v6044_v51, %v5565_v23  ;;  %v5578_v55 = vmul.f32 %v9957_v10, %v13758_v61  ;;  %9978 = vpow2.f32 %v8280_v59  ;;  %v8296_v20 = vmul.f32 -1.442695, %v13898_v2 }
 0x3a3   : > { %v9961_v1 = vpop.eup %9960  ;;  %v5935_v48 = vadd.f32 %v5934_v21, %v5576_v11  ;;  %v5577_v22 = vmul.f32 %v9959_v60, %v13762_v31  ;;  %9980 = vpow2.f32 %v8282_v35  ;;  %v8295_v51 = vmul.f32 -1.442695, %v13914_v49 }
 0x3a4   : > { %v9963_v14 = vpop.eup %9962  ;;  %v6009_v34 = vadd.f32 %v6008_v25, %v5578_v55  ;;  %v5579_v45 = vmul.f32 %v9961_v1, %v13767_v28  ;;  %9982 = vpow2.f32 %v8281_v38  ;;  %v8297_v10 = vmul.f32 -1.442695, %v13924_v62  ;;  %v13939_v25 = vpop.f32.mrb[148].mxu1 }
 0x3a5   : > { %v9965_v61 = vpop.eup %9964  ;;  %v5972_v59 = vadd.f32 %v5971_v7, %v5577_v22  ;;  %v5590_v23 = vmul.f32 %v9963_v14, %v13790_v26  ;;  %9984 = vpow2.f32 %v8283_v17  ;;  %v8308_v35 = vmul.f32 -1.442695, %v13929_v63  ;;  %16894 = vst [vmem:[#allocation70_spill] sm:$0xff] %v13939_v25  ;;  %v13941_v28 = vpop.f32.mrb[164].mxu0 }
 0x3a6   : > { %v9967_v21 = vpop.eup %9966  ;;  %v6046_v11 = vadd.f32 %v6045_v39, %v5579_v45  ;;  %v5592_v31 = vmul.f32 %v9965_v61, %v13796_v47  ;;  %9986 = vpow2.f32 %v8294_v56  ;;  %16895 = vst [vmem:[#allocation71_spill] sm:$0xff] %v13941_v28  ;;  %v13946_v26 = vpop.f32.mrb[149].mxu1 }
 0x3a7   : > { %v9969_v38 = vpop.eup %9968  ;;  %v13943_v32 = vadd.f32 %v5935_v48, %v5590_v23  ;;  %v5591_v7 = vmul.f32 %v9967_v21, %v13802_v30  ;;  %9988 = vpow2.f32 %v8296_v20  ;;  %16896 = vst [vmem:[#allocation15_spill] sm:$0xff] %v13946_v26  ;;  %v13948_v17 = vpop.f32.mrb[165].mxu0 }
 0x3a8   : > { %16897 = vst [vmem:[#allocation72_spill] sm:$0xff] %v13948_v17  ;;  %v9971_v60 = vpop.eup %9970  ;;  %v13950_v39 = vadd.f32 %v6009_v34, %v5592_v31  ;;  %v5593_v47 = vmul.f32 %v9969_v38, %v13807_v33  ;;  %9990 = vpow2.f32 %v8295_v51  ;;  %v13953_v56 = vpop.f32.mrb[150].mxu1 }
 0x3a9   : > { %16898 = vst [vmem:[#allocation73_spill] sm:$0xff] %v13953_v56  ;;  %v13955_v55 = vpop.f32.mrb[166].mxu0  ;;  %v9973_v3 = vpop.eup %9972  ;;  %v13957_v48 = vadd.f32 %v5972_v59, %v5591_v7  ;;  %v4260_v1 = vadd.f32 1.0, %v9971_v60  ;;  %9992 = vpow2.f32 %v8297_v10  ;;  %v16901_v10 = vld [vmem:[#allocation18_spill] sm:$0xff] }
 0x3aa   : > { %16899 = vst [vmem:[#allocation29_spill] sm:$0xff] %v13955_v55  ;;  %v13959_v30 = vpop.f32.mrb[151].mxu1  ;;  %v9975_v22 = vpop.eup %9974  ;;  %v13961_v20 = vadd.f32 %v6046_v11, %v5593_v47  ;;  %v4262_v14 = vadd.f32 1.0, %v9973_v3  ;;  %9994 = vpow2.f32 %v8308_v35  ;;  %v13965_v31 = vadd.f32 %v16901_v10, %v12988_v0  ;;  %v16902_v35 = vld [vmem:[#allocation21_spill] sm:$0xff]  ;;  %v16903_v3 = vld [vmem:[#allocation43_spill] sm:$0xff] }
 0x3ab   : > { %16900 = vst [vmem:[#allocation30_spill] sm:$0xff] %v13959_v30  ;;  %v9977_v34 = vpop.eup %9976  ;;  %9996 = vrcp.f32 %v4260_v1  ;;  %v4261_v33 = vadd.f32 1.0, %v9975_v22  ;;  %v13969_v7 = vadd.f32 %v16902_v35, %v12981_v13  ;;  %v13973_v1 = vadd.f32 %v16903_v3, %v12992_v8  ;;  %v16904_v22 = vld [vmem:[#allocation44_spill] sm:$0xff]  ;;  %v14000_v56 = vpop.f32.mrb[167].mxu0 }
 0x3ac   : > { %v9979_v45 = vpop.eup %9978  ;;  %9998 = vrcp.f32 %v4262_v14  ;;  %v4263_v51 = vadd.f32 1.0, %v9977_v34  ;;  %v13977_v14 = vadd.f32 %v16904_v22, %v12975_v24  ;;  %16909 = vst [vmem:[#allocation38_spill] sm:$0xff] %v14000_v56 }
 0x3ad   : > { %v9981_v61 = vpop.eup %9980  ;;  %10000 = vrcp.f32 %v4261_v33  ;;  %v4274_v23 = vadd.f32 1.0, %v9979_v45  ;;  %v16905_v45 = vld [vmem:[#allocation45_spill] sm:$0xff]  ;;  %v8309_v3 = vmul.f32 -1.442695, %v13969_v7 }
 0x3ae   : > { %v9983_v59 = vpop.eup %9982  ;;  %10002 = vrcp.f32 %v4263_v51  ;;  %v4276_v21 = vadd.f32 1.0, %v9981_v61  ;;  %v13981_v51 = vadd.f32 %v16905_v45, %v12988_v0 }
 0x3af   : > { %v9985_v11 = vpop.eup %9984  ;;  %10004 = vrcp.f32 %v4274_v23  ;;  %v4275_v38 = vadd.f32 1.0, %v9983_v59  ;;  %v8310_v59 = vmul.f32 -1.442695, %v13965_v31 }
 0x3b0   : > { %v9987_v60 = vpop.eup %9986  ;;  %10006 = vrcp.f32 %v4276_v21  ;;  %v4277_v47 = vadd.f32 1.0, %v9985_v11  ;;  %v16906_v21 = vld [vmem:[#allocation46_spill] sm:$0xff]  ;;  %v8324_v55 = vmul.f32 -1.442695, %v13981_v51 }
 0x3b1   : > { %v9989_v34 = vpop.eup %9988  ;;  %10008 = vrcp.f32 %v4275_v38  ;;  %v4288_v33 = vadd.f32 1.0, %v9987_v60  ;;  %v13986_v10 = vadd.f32 %v16906_v21, %v12981_v13  ;;  %v16907_v38 = vld [vmem:[#allocation20_spill] sm:$0xff] }
 0x3b2   : > { %v9991_v61 = vpop.eup %9990  ;;  %10010 = vrcp.f32 %v4277_v47  ;;  %v4290_v23 = vadd.f32 1.0, %v9989_v34  ;;  %v13991_v60 = vadd.f32 %v16907_v38, %v12992_v8  ;;  %v8311_v47 = vmul.f32 -1.442695, %v13973_v1 }
 0x3b3   : > { %v9993_v11 = vpop.eup %9992  ;;  %10012 = vrcp.f32 %v4288_v33  ;;  %v4289_v35 = vadd.f32 1.0, %v9991_v61  ;;  %v8322_v34 = vmul.f32 -1.442695, %v13977_v14  ;;  %v16908_v33 = vld [vmem:[#allocation47_spill] sm:$0xff] }
 0x3b4   : > { %v9995_v22 = vpop.eup %9994  ;;  %10014 = vrcp.f32 %v4290_v23  ;;  %v4291_v45 = vadd.f32 1.0, %v9993_v11  ;;  %v13998_v61 = vadd.f32 %v16908_v33, %v12975_v24  ;;  %v8323_v23 = vmul.f32 -1.442695, %v13986_v10  ;;  %v16910_v11 = vld [vmem:[#allocation14_spill] sm:$0xff]  ;;  %v16911_v33 = vld [vmem:[#allocation27_spill] sm:$0xff] }
 0x3b5   : > { %v9997_v30 = vpop.eup %9996  ;;  %10016 = vrcp.f32 %v4289_v35  ;;  %v4302_v21 = vadd.f32 1.0, %v9995_v22  ;;  %v14006_v26 = vadd.f32 %v16910_v11, %v12988_v0  ;;  %v8325_v28 = vmul.f32 -1.442695, %v13991_v60 }
 0x3b6   : > { %v9999_v38 = vpop.eup %9998  ;;  %v5604_v17 = vmul.f32 %v9997_v30, %v13849_v36  ;;  %10018 = vrcp.f32 %v4291_v45  ;;  %v14012_v25 = vadd.f32 %v16911_v33, %v12981_v13  ;;  %v16912_v45 = vld [vmem:[#allocation28_spill] sm:$0xff] }
 0x3b7   : > { %v10001_v35 = vpop.eup %10000  ;;  %v5606_v22 = vmul.f32 %v9999_v38, %v13853_v4  ;;  %10020 = vrcp.f32 %v4302_v21  ;;  %v14018_v11 = vadd.f32 %v16912_v45, %v12992_v8  ;;  %v8336_v38 = vmul.f32 -1.442695, %v13998_v61  ;;  %v8900_v45 = vld [vmem:[%s16440_s5 + $0x1c0] sm:$0xff]  }
 0x3b8   : > { %v10003_v56 = vpop.eup %10002  ;;  %v5937_v36 = vadd.f32 %v13943_v32, %v5604_v17  ;;  %v5605_v30 = vmul.f32 %v10001_v35, %v13857_v46  ;;  %10022 = vpow2.f32 %v8310_v59  ;;  %v8338_v46 = vmul.f32 -1.442695, %v14006_v26  ;;  %8630 = vmatprep.subr.bf16.mxu1 %v8900_v45 }
 0x3b9   : > { %v10005_v53 = vpop.eup %10004  ;;  %v6011_v4 = vadd.f32 %v13950_v39, %v5606_v22  ;;  %v5607_v21 = vmul.f32 %v10003_v56, %v13862_v6  ;;  %10024 = vpow2.f32 %v8309_v3  ;;  %v16913_v39 = vld [vmem:[#allocation48_spill] sm:$0xff]  ;;  %v14032_v56 = vpop.f32.mrb[152].mxu1 }
 0x3ba   : > { %v10007_v33 = vpop.eup %10006  ;;  %v5974_v52 = vadd.f32 %v13957_v48, %v5605_v30  ;;  %v5618_v32 = vmul.f32 %v10005_v53, %v13866_v5  ;;  %10026 = vpow2.f32 %v8311_v47  ;;  %v14030_v6 = vadd.f32 %v16913_v39, %v12975_v24  ;;  %16914 = vst [vmem:[#allocation17_spill] sm:$0xff] %v14032_v56  ;;  %v14034_v3 = vpop.f32.mrb[168].mxu0  ;;  %v8898_v5 = vld [vmem:[%s16440_s5 + $0x40] sm:$0xff]  }
 0x3bb   : > { %v10009_v17 = vpop.eup %10008  ;;  %v6048_v59 = vadd.f32 %v13961_v20, %v5607_v21  ;;  %v5620_v35 = vmul.f32 %v10007_v33, %v13870_v29  ;;  %10028 = vpow2.f32 %v8322_v34  ;;  %16915 = vst [vmem:[#allocation39_spill] sm:$0xff] %v14034_v3  ;;  %v16916_v29 = vld [vmem:[#allocation49_spill] sm:$0xff]  ;;  %v14044_v34 = vpop.f32.mrb[153].mxu1  ;;  %v8899_v30 = vld [vmem:[%s16440_s5] sm:$0xff]   ;;  %8564 = vmatprep.subr.bf16.mxu0 %v8898_v5 }
 0x3bc   : > { %v10011_v53 = vpop.eup %10010  ;;  %v5938_v48 = vadd.f32 %v5937_v36, %v5618_v32  ;;  %v5619_v47 = vmul.f32 %v10009_v17, %v13875_v41  ;;  %10030 = vpow2.f32 %v8324_v55  ;;  %v14042_v20 = vadd.f32 %v16916_v29, %v12988_v0  ;;  %16917 = vst [vmem:[#allocation40_spill] sm:$0xff] %v14044_v34  ;;  %v14046_v22 = vpop.f32.mrb[169].mxu0  ;;  %v8901_v17 = vld [vmem:[%s16440_s5 + $0x180] sm:$0xff]   ;;  %8565 = vmatpush3.bf16.msra.mxu0 %v8899_v30  ;;  %v16937_v34 = vld [vmem:[#allocation31_spill] sm:$0xff] }
 0x3bd   : > { %16918 = vst [vmem:[#allocation41_spill] sm:$0xff] %v14046_v22  ;;  %v10013_v36 = vpop.eup %10012  ;;  %v6012_v21 = vadd.f32 %v6011_v4, %v5620_v35  ;;  %v5621_v41 = vmul.f32 %v10011_v53, %v13880_v37  ;;  %10032 = vpow2.f32 %v8323_v23  ;;  %v8337_v55 = vmul.f32 -1.442695, %v14012_v25  ;;  %v14056_v33 = vpop.f32.mrb[154].mxu1  ;;  %8631 = vmatpush3.bf16.msra.mxu1 %v8901_v17 }
 0x3be   : > { %16919 = vst [vmem:[#allocation42_spill] sm:$0xff] %v14056_v33  ;;  %v14058_v32 = vpop.f32.mrb[170].mxu0  ;;  %v10015_v39 = vpop.eup %10014  ;;  %v5975_v29 = vadd.f32 %v5974_v52, %v5619_v47  ;;  %v5632_v22 = vmul.f32 %v10013_v36, %v13885_v18  ;;  %10034 = vpow2.f32 %v8325_v28  ;;  %v8339_v4 = vmul.f32 -1.442695, %v14018_v11  ;;  %v8902_v18 = vld [vmem:[%s16440_s5 + $0x48] sm:$0xff]  }
 0x3bf   : > { %16920 = vst [vmem:[#allocation75_spill] sm:$0xff] %v14058_v32  ;;  %v14065_v37 = vpop.f32.mrb[155].mxu1  ;;  %v14067_v23 = vpop.f32.mrb[171].mxu0  ;;  %v6049_v53 = vadd.f32 %v6048_v59, %v5621_v41  ;;  %v5634_v5 = vmul.f32 %v10015_v39, %v13898_v2  ;;  %10036 = vpow2.f32 %v8336_v38  ;;  %v8350_v32 = vmul.f32 -1.442695, %v14030_v6  ;;  %v8903_v59 = vld [vmem:[%s16440_s5 + $0x8] sm:$0xff]   ;;  %8566 = vmatprep.subr.bf16.mxu0 %v8902_v18 }
 0x3c0   : > { %16921 = vst [vmem:[#allocation16_spill] sm:$0xff] %v14065_v37  ;;  %16922 = vst [vmem:[#allocation19_spill] sm:$0xff] %v14067_v23  ;;  %v10017_v35 = vpop.eup %10016  ;;  %v5939_v28 = vadd.f32 %v5938_v48, %v5632_v22  ;;  %10038 = vpow2.f32 %v8338_v46  ;;  %v8352_v30 = vmul.f32 -1.442695, %v14042_v20  ;;  %v8904_v2 = vld [vmem:[%s16440_s5 + $0x1c8] sm:$0xff]   ;;  %8567 = vmatpush3.bf16.msra.mxu0 %v8903_v59  ;;  %v14154_v3 = vadd.f32 %v16937_v34, %v12981_v13 }
 0x3c1   : > { %v10019_v52 = vpop.eup %10018  ;;  %v5633_v47 = vmul.f32 %v10017_v35, %v13914_v49  ;;  %v14082_v45 = vadd.f32 %v6012_v21, %v5634_v5  ;;  %10040 = vpow2.f32 %v8337_v55  ;;  %v8905_v49 = vld [vmem:[%s16440_s5 + $0x188] sm:$0xff]   ;;  %8632 = vmatprep.subr.bf16.mxu1 %v8904_v2  ;;  %v14095_v55 = vpop.f32.mrb[172].mxu0 }
 0x3c2   : > { %v10021_v38 = vpop.eup %10020  ;;  %v5635_v36 = vmul.f32 %v10019_v52, %v13924_v62  ;;  %10042 = vpow2.f32 %v8339_v4  ;;  %v14093_v62 = vpop.f32.mrb[156].mxu1  ;;  %16924 = vst [vmem:[#allocation21_spill] sm:$0xff] %v14095_v55  ;;  %8633 = vmatpush3.bf16.msra.mxu1 %v8905_v49 }
 0x3c3   : > { %v10023_v46 = vpop.eup %10022  ;;  %v14088_v48 = vadd.f32 %v5975_v29, %v5633_v47  ;;  %v5646_v22 = vmul.f32 %v10021_v38, %v13929_v63  ;;  %10044 = vpow2.f32 %v8350_v32  ;;  %16923 = vst [vmem:[#allocation18_spill] sm:$0xff] %v14093_v62  ;;  %v14099_v5 = vpop.f32.mrb[157].mxu1 }
 0x3c4   : > { %v10025_v41 = vpop.eup %10024  ;;  %v14091_v17 = vadd.f32 %v6049_v53, %v5635_v36  ;;  %v4304_v21 = vadd.f32 1.0, %v10023_v46  ;;  %10046 = vpow2.f32 %v8352_v30  ;;  %16925 = vst [vmem:[#allocation43_spill] sm:$0xff] %v14099_v5  ;;  %v14101_v63 = vpop.f32.mrb[173].mxu0  ;;  %v16927_v30 = vld [vmem:[#allocation50_spill] sm:$0xff] }
 0x3c5   : > { %v10027_v39 = vpop.eup %10026  ;;  %v14097_v35 = vadd.f32 %v5939_v28, %v5646_v22  ;;  %v4303_v29 = vadd.f32 1.0, %v10025_v41  ;;  %16926 = vst [vmem:[#allocation44_spill] sm:$0xff] %v14101_v63  ;;  %v14105_v36 = vadd.f32 %v16927_v30, %v12981_v13  ;;  %v16928_v22 = vld [vmem:[#allocation7_spill] sm:$0xff]  ;;  %v16933_v30 = vld [vmem:[#allocation54_spill] sm:$0xff]  ;;  %v14146_v23 = vpop.f32.mrb[158].mxu1 }
 0x3c6   : > { %v10029_v4 = vpop.eup %10028  ;;  %10048 = vrcp.f32 %v4304_v21  ;;  %v4305_v53 = vadd.f32 1.0, %v10027_v39  ;;  %v14109_v41 = vadd.f32 %v16928_v22, %v12992_v8  ;;  %v16929_v21 = vld [vmem:[#allocation51_spill] sm:$0xff]  ;;  %v14129_v22 = vadd.f32 %v16933_v30, %v12975_v24  ;;  %16935 = vst [vmem:[#allocation45_spill] sm:$0xff] %v14146_v23  ;;  %v14168_v34 = vpop.f32.mrb[159].mxu1  ;;  %v8909_v23 = vld [vmem:[%s16440_s5 + $0x190] sm:$0xff]  }
 0x3c7   : > { %v10031_v18 = vpop.eup %10030  ;;  %10050 = vrcp.f32 %v4303_v29  ;;  %v4316_v32 = vadd.f32 1.0, %v10029_v4  ;;  %v14113_v39 = vadd.f32 %v16929_v21, %v12975_v24  ;;  %v8351_v21 = vmul.f32 -1.442695, %v14105_v36  ;;  %16939 = vst [vmem:[#allocation20_spill] sm:$0xff] %v14168_v34 }
 0x3c8   : > { %v10033_v52 = vpop.eup %10032  ;;  %10052 = vrcp.f32 %v4305_v53  ;;  %v4318_v47 = vadd.f32 1.0, %v10031_v18  ;;  %v16930_v53 = vld [vmem:[#allocation52_spill] sm:$0xff] }
 0x3c9   : > { %v10035_v59 = vpop.eup %10034  ;;  %10054 = vrcp.f32 %v4316_v32  ;;  %v4317_v2 = vadd.f32 1.0, %v10033_v52  ;;  %v14117_v18 = vadd.f32 %v16930_v53, %v12988_v0  ;;  %v16931_v32 = vld [vmem:[#allocation6_spill] sm:$0xff]  ;;  %v16934_v53 = vld [vmem:[#allocation55_spill] sm:$0xff] }
 0x3ca   : > { %v10037_v28 = vpop.eup %10036  ;;  %10056 = vrcp.f32 %v4318_v47  ;;  %v4319_v38 = vadd.f32 1.0, %v10035_v59  ;;  %v14121_v52 = vadd.f32 %v16931_v32, %v12981_v13  ;;  %v14134_v32 = vadd.f32 %v16934_v53, %v12988_v0 }
 0x3cb   : > { %v10039_v49 = vpop.eup %10038  ;;  %10058 = vrcp.f32 %v4317_v2  ;;  %v4330_v46 = vadd.f32 1.0, %v10037_v28  ;;  %v16932_v2 = vld [vmem:[#allocation53_spill] sm:$0xff]  ;;  %v8366_v55 = vmul.f32 -1.442695, %v14117_v18 }
 0x3cc   : > { %v10041_v29 = vpop.eup %10040  ;;  %10060 = vrcp.f32 %v4319_v38  ;;  %v4332_v4 = vadd.f32 1.0, %v10039_v49  ;;  %v14125_v28 = vadd.f32 %v16932_v2, %v12992_v8  ;;  %v8364_v2 = vmul.f32 -1.442695, %v14113_v39 }
 0x3cd   : > { %v10043_v47 = vpop.eup %10042  ;;  %10062 = vrcp.f32 %v4330_v46  ;;  %v4331_v59 = vadd.f32 1.0, %v10041_v29  ;;  %v8353_v29 = vmul.f32 -1.442695, %v14109_v41  ;;  %v8380_v33 = vmul.f32 -1.442695, %v14134_v32 }
 0x3ce   : > { %v10045_v38 = vpop.eup %10044  ;;  %10064 = vrcp.f32 %v4332_v4  ;;  %v4333_v49 = vadd.f32 1.0, %v10043_v47  ;;  %v8365_v4 = vmul.f32 -1.442695, %v14121_v52  ;;  %v8906_v47 = vld [vmem:[%s16440_s5 + $0x50] sm:$0xff]  }
 0x3cf   : > { %v10047_v63 = vpop.eup %10046  ;;  %10066 = vrcp.f32 %v4331_v59  ;;  %v4344_v46 = vadd.f32 1.0, %v10045_v38  ;;  %v8367_v59 = vmul.f32 -1.442695, %v14125_v28  ;;  %v8378_v38 = vmul.f32 -1.442695, %v14129_v22  ;;  %8568 = vmatprep.subr.bf16.mxu0 %v8906_v47 }
 0x3d0   : > { %v10049_v5 = vpop.eup %10048  ;;  %10068 = vrcp.f32 %v4333_v49  ;;  %v4346_v30 = vadd.f32 1.0, %v10047_v63  ;;  %v14148_v49 = vpop.f32.mrb[174].mxu0 }
 0x3d1   : > { %v10051_v53 = vpop.eup %10050  ;;  %v5648_v62 = vmul.f32 %v10049_v5, %v13965_v31  ;;  %10070 = vrcp.f32 %v4344_v46  ;;  %16936 = vst [vmem:[#allocation46_spill] sm:$0xff] %v14148_v49  ;;  %v8907_v31 = vld [vmem:[%s16440_s5 + $0x10] sm:$0xff]   ;;  %v14170_v47 = vpop.f32.mrb[175].mxu0 }
 0x3d2   : > { %v10053_v63 = vpop.eup %10052  ;;  %v5647_v37 = vmul.f32 %v10051_v53, %v13969_v7  ;;  %10072 = vrcp.f32 %v4346_v30  ;;  %v8908_v5 = vld [vmem:[%s16440_s5 + $0x1d0] sm:$0xff]   ;;  %v16938_v30 = vld [vmem:[#allocation56_spill] sm:$0xff]  ;;  %16940 = vst [vmem:[#allocation47_spill] sm:$0xff] %v14170_v47  ;;  %8569 = vmatpush3.bf16.msra.mxu0 %v8907_v31  ;;  %v16942_v47 = vld [vmem:[#allocation57_spill] sm:$0xff] }
 0x3d3   : > { %v10055_v46 = vpop.eup %10054  ;;  %v6014_v49 = vadd.f32 %v14082_v45, %v5648_v62  ;;  %v5649_v7 = vmul.f32 %v10053_v63, %v13973_v1  ;;  %10074 = vpow2.f32 %v8351_v21  ;;  %v14166_v53 = vadd.f32 %v16938_v30, %v12992_v8  ;;  %v16941_v1 = vld [vmem:[#allocation9_spill] sm:$0xff]  ;;  %8634 = vmatprep.subr.bf16.mxu1 %v8908_v5 }
 0x3d4   : > { %v10057_v56 = vpop.eup %10056  ;;  %v5977_v19 = vadd.f32 %v14088_v48, %v5647_v37  ;;  %v5660_v45 = vmul.f32 %v10055_v46, %v13977_v14  ;;  %10076 = vpow2.f32 %v8353_v29  ;;  %v14179_v62 = vadd.f32 %v16941_v1, %v12975_v24  ;;  %8635 = vmatpush3.bf16.msra.mxu1 %v8909_v23  ;;  %v8910_v14 = vld [vmem:[%s16440_s5 + $0x58] sm:$0xff]   ;;  %v14211_v1 = vpop.f32.mrb[160].mxu1 }
 0x3d5   : > { %v10059_v21 = vpop.eup %10058  ;;  %v6051_v63 = vadd.f32 %v14091_v17, %v5649_v7  ;;  %v5662_v30 = vmul.f32 %v10057_v56, %v13981_v51  ;;  %10078 = vpow2.f32 %v8364_v2  ;;  %v14185_v34 = vadd.f32 %v16942_v47, %v12988_v0  ;;  %v8911_v51 = vld [vmem:[%s16440_s5 + $0x18] sm:$0xff]   ;;  %8570 = vmatprep.subr.bf16.mxu0 %v8910_v14  ;;  %16944 = vst [vmem:[#allocation14_spill] sm:$0xff] %v14211_v1  ;;  %v8915_v14 = vld [vmem:[%s16440_s5 + $0x20] sm:$0xff]  }
 0x3d6   : > { %v10061_v37 = vpop.eup %10060  ;;  %v5941_v48 = vadd.f32 %v14097_v35, %v5660_v45  ;;  %v5661_v29 = vmul.f32 %v10059_v21, %v13986_v10  ;;  %10080 = vpow2.f32 %v8366_v55  ;;  %v8379_v17 = vmul.f32 -1.442695, %v14154_v3  ;;  %v8912_v56 = vld [vmem:[%s16440_s5 + $0x1d8] sm:$0xff]   ;;  %v16943_v35 = vld [vmem:[#allocation58_spill] sm:$0xff]  ;;  %8571 = vmatpush3.bf16.msra.mxu0 %v8911_v51  ;;  %v14213_v21 = vpop.f32.mrb[176].mxu0 }
 0x3d7   : > { %v10063_v23 = vpop.eup %10062  ;;  %v6015_v2 = vadd.f32 %v6014_v49, %v5662_v30  ;;  %v5663_v31 = vmul.f32 %v10061_v37, %v13991_v60  ;;  %10082 = vpow2.f32 %v8365_v4  ;;  %v14202_v5 = vadd.f32 %v16943_v35, %v12981_v13  ;;  %v8913_v10 = vld [vmem:[%s16440_s5 + $0x198] sm:$0xff]   ;;  %8636 = vmatprep.subr.bf16.mxu1 %v8912_v56  ;;  %16945 = vst [vmem:[#allocation27_spill] sm:$0xff] %v14213_v21  ;;  %v8916_v37 = vld [vmem:[%s16440_s5 + $0x1e0] sm:$0xff]   ;;  %v16969_v21 = vld [vmem:[#allocation25_spill] sm:$0xff] }
 0x3d8   : > { %v10065_v55 = vpop.eup %10064  ;;  %v5978_v46 = vadd.f32 %v5977_v19, %v5661_v29  ;;  %v5674_v7 = vmul.f32 %v10063_v23, %v13998_v61  ;;  %10084 = vpow2.f32 %v8367_v59  ;;  %v8381_v47 = vmul.f32 -1.442695, %v14166_v53  ;;  %8637 = vmatpush3.bf16.msra.mxu1 %v8913_v10  ;;  %v8914_v19 = vld [vmem:[%s16440_s5 + $0x60] sm:$0xff]  }
 0x3d9   : > { %v10067_v60 = vpop.eup %10066  ;;  %v6052_v4 = vadd.f32 %v6051_v63, %v5663_v31  ;;  %v5676_v49 = vmul.f32 %v10065_v55, %v14006_v26  ;;  %10086 = vpow2.f32 %v8378_v38  ;;  %v8392_v45 = vmul.f32 -1.442695, %v14179_v62  ;;  %v14220_v26 = vpop.f32.mrb[161].mxu1  ;;  %8572 = vmatprep.subr.bf16.mxu0 %v8914_v19  ;;  %v8917_v23 = vld [vmem:[%s16440_s5 + $0x1a0] sm:$0xff]   ;;  %8638 = vmatprep.subr.bf16.mxu1 %v8916_v37 }
 0x3da   : > { %v10069_v61 = vpop.eup %10068  ;;  %v5942_v59 = vadd.f32 %v5941_v48, %v5674_v7  ;;  %v5675_v30 = vmul.f32 %v10067_v60, %v14012_v25  ;;  %10088 = vpow2.f32 %v8380_v33  ;;  %v8394_v63 = vmul.f32 -1.442695, %v14185_v34  ;;  %16946 = vst [vmem:[#allocation28_spill] sm:$0xff] %v14220_v26  ;;  %v14222_v38 = vpop.f32.mrb[177].mxu0  ;;  %8573 = vmatpush3.bf16.msra.mxu0 %v8915_v14  ;;  %v16952_v14 = vld [vmem:[#allocation8_spill] sm:$0xff]  ;;  %v16967_v26 = vld [vmem:[#allocation59_spill] sm:$0xff] }
 0x3db   : > { %16947 = vst [vmem:[#allocation48_spill] sm:$0xff] %v14222_v38  ;;  %v10071_v29 = vpop.eup %10070  ;;  %v6016_v51 = vadd.f32 %v6015_v2, %v5676_v49  ;;  %v5677_v48 = vmul.f32 %v10069_v61, %v14018_v11  ;;  %10090 = vpow2.f32 %v8379_v17  ;;  %v8393_v25 = vmul.f32 -1.442695, %v14202_v5  ;;  %v14232_v33 = vpop.f32.mrb[162].mxu1 }
 0x3dc   : > { %16948 = vst [vmem:[#allocation49_spill] sm:$0xff] %v14232_v33  ;;  %v14234_v56 = vpop.f32.mrb[178].mxu0  ;;  %v10073_v31 = vpop.eup %10072  ;;  %v14239_v35 = vadd.f32 %v5978_v46, %v5675_v30  ;;  %v5688_v10 = vmul.f32 %v10071_v29, %v14030_v6  ;;  %10092 = vpow2.f32 %v8381_v47  ;;  %8639 = vmatpush3.bf16.msra.mxu1 %v8917_v23  ;;  %v8918_v46 = vld [vmem:[%s16440_s5 + $0x68] sm:$0xff]   ;;  %v14273_v37 = vadd.f32 %v13676_v16, %v12975_v24 }
 0x3dd   : > { %16949 = vst [vmem:[#allocation50_spill] sm:$0xff] %v14234_v56  ;;  %v14242_v2 = vpop.f32.mrb[163].mxu1  ;;  %v14244_v11 = vpop.f32.mrb[179].mxu0  ;;  %v14246_v55 = vadd.f32 %v6052_v4, %v5677_v48  ;;  %v5690_v7 = vmul.f32 %v10073_v31, %v14042_v20  ;;  %10094 = vpow2.f32 %v8392_v45  ;;  %v14255_v6 = vld [vmem:[%s16439_s4 + $0x8] sm:$0x3f]  ;;  %8574 = vmatprep.subr.bf16.mxu0 %v8918_v46  ;;  %v16953_v48 = vld [vmem:[#allocation23_spill] sm:$0xff]  ;;  %v14281_v23 = vadd.f32 %v13678_v57, %v12988_v0 }
 0x3de   : > { %16950 = vst [vmem:[#allocation7_spill] sm:$0xff] %v14242_v2  ;;  %16951 = vst [vmem:[#allocation51_spill] sm:$0xff] %v14244_v11  ;;  %v10075_v17 = vpop.eup %10074  ;;  %v14257_v47 = vadd.f32 %v5942_v59, %v5688_v10  ;;  %10096 = vpow2.f32 %v8394_v63  ;;  %v8919_v20 = vld [vmem:[%s16440_s5 + $0x28] sm:$0xff]   ;;  %v14269_v63 = vadd.f32 %v16952_v14, %v12992_v8  ;;  %v14283_v31 = vpop.f32.mrb[164].mxu1  ;;  %v14301_v14 = vadd.f32 %v13686_v58, %v12981_v13 }
 0x3df   : > { %v10077_v60 = vpop.eup %10076  ;;  %v4345_v49 = vadd.f32 1.0, %v10075_v17  ;;  %v8920_v4 = vld [vmem:[%s16440_s5 + $0x1e8] sm:$0xff]   ;;  %v14265_v19 = vadd.f32 %v6016_v51, %v5690_v7  ;;  %10098 = vpow2.f32 %v8393_v25  ;;  %8575 = vmatpush3.bf16.msra.mxu0 %v8919_v20  ;;  %v14277_v51 = vrot.slane %v14255_v6, %v16953_v48  ;;  %16954 = vst [vmem:[#allocation52_spill] sm:$0xff] %v14283_v31  ;;  %v16955_v17 = vld [vmem:[#allocation24_spill] sm:$0xff]  ;;  %v16956_v7 = vld [vmem:[#allocation26_spill] sm:$0xff] }
 0x3e0   : > { %v10079_v45 = vpop.eup %10078  ;;  %v4347_v61 = vadd.f32 1.0, %v10077_v60  ;;  %8640 = vmatprep.subr.bf16.mxu1 %v8920_v4  ;;  %v14287_v16 = vrot.slane %v14255_v6, %v16955_v17  ;;  %v14291_v46 = vrot.slane %v14255_v6, %v16956_v7  ;;  %v16957_v20 = vld [vmem:[#allocation74_spill] sm:$0xff]  ;;  %v16958_v4 = vld [vmem:[#allocation76_spill] sm:$0xff]  ;;  %v8395_v2 = vmul.f32 -1.442695, %v14269_v63  ;;  %v16964_v17 = vld [vmem:[#allocation11_spill] sm:$0xff] }
 0x3e1   : > { %v10081_v30 = vpop.eup %10080  ;;  %10100 = vrcp.f32 %v4345_v49  ;;  %v4358_v59 = vadd.f32 1.0, %v10079_v45  ;;  %v16959_v45 = vld [vmem:[#allocation77_spill] sm:$0xff]  ;;  %v14349_v1 = vrot.slane %v14255_v6, %v16969_v21 }
 0x3e2   : > { %v10083_v29 = vpop.eup %10082  ;;  %10102 = vrcp.f32 %v4347_v61  ;;  %v4360_v25 = vadd.f32 1.0, %v10081_v30  ;;  %v16960_v61 = vcombine.low %v16958_v4, %v16959_v45  ;;  %v8408_v4 = vmul.f32 -1.442695, %v14281_v23  ;;  %v16962_v45 = vld [vmem:[#allocation32_spill] sm:$0xff] }
 0x3e3   : > { %v10085_v10 = vpop.eup %10084  ;;  %10104 = vrcp.f32 %v4358_v59  ;;  %v4359_v60 = vadd.f32 1.0, %v10083_v29  ;;  %v8406_v59 = vmul.f32 -1.442695, %v14273_v37 }
 0x3e4   : > { %v10087_v49 = vpop.eup %10086  ;;  %v14297_v57 = vrot.slane %v16960_v61, %v16957_v20  ;;  %10106 = vrcp.f32 %v4360_v25  ;;  %v4361_v30 = vadd.f32 1.0, %v10085_v10  ;;  %v14308_v25 = vadd.f32 %v16962_v45, %v12992_v8 }
 0x3e5   : > { %v10089_v31 = vpop.eup %10088  ;;  %10108 = vrcp.f32 %v4359_v60  ;;  %v4372_v11 = vadd.f32 1.0, %v10087_v49  ;;  %v14312_v60 = vadd.f32 %v13695_v9, %v12975_v24  ;;  %v16963_v49 = vld [vmem:[#allocation33_spill] sm:$0xff]  ;;  %v14321_v45 = vadd.f32 %v16964_v17, %v12981_v13  ;;  %v16966_v9 = vld [vmem:[#allocation35_spill] sm:$0xff] }
 0x3e6   : > { %16961 = vst [vmem:[#allocation6_spill] sm:$0xff] %v14297_v57  ;;  %v10091_v29 = vpop.eup %10090  ;;  %10110 = vrcp.f32 %v4361_v30  ;;  %v4374_v56 = vadd.f32 1.0, %v10089_v31  ;;  %v14316_v61 = vadd.f32 %v16963_v49, %v12988_v0  ;;  %v8407_v30 = vmul.f32 -1.442695, %v14301_v14  ;;  %v16975_v57 = vld [vmem:[#allocation60_spill] sm:$0xff] }
 0x3e7   : > { %v10093_v10 = vpop.eup %10092  ;;  %10112 = vrcp.f32 %v4372_v11  ;;  %v4373_v58 = vadd.f32 1.0, %v10091_v29  ;;  %v16965_v29 = vld [vmem:[#allocation34_spill] sm:$0xff]  ;;  %v14329_v0 = vadd.f32 %v16966_v9, %v14277_v51  ;;  %v14334_v13 = vadd.f32 %v16967_v26, %v14287_v16  ;;  %v14341_v9 = vpop.f32.mrb[180].mxu0 }
 0x3e8   : > { %v10095_v33 = vpop.eup %10094  ;;  %10114 = vrcp.f32 %v4374_v56  ;;  %v4375_v31 = vadd.f32 1.0, %v10093_v10  ;;  %v14325_v24 = vadd.f32 %v16965_v29, %v12992_v8  ;;  %v8409_v10 = vmul.f32 -1.442695, %v14308_v25  ;;  %16968 = vst [vmem:[#allocation53_spill] sm:$0xff] %v14341_v9 }
 0x3e9   : > { %v10097_v38 = vpop.eup %10096  ;;  %10116 = vrcp.f32 %v4373_v58  ;;  %v4386_v11 = vadd.f32 1.0, %v10095_v33  ;;  %v8921_v33 = vld [vmem:[%s16440_s5 + $0x1a8] sm:$0xff]   ;;  %v8420_v58 = vmul.f32 -1.442695, %v14312_v60  ;;  %v8422_v29 = vmul.f32 -1.442695, %v14316_v61 }
 0x3ea   : > { %v10099_v49 = vpop.eup %10098  ;;  %10118 = vrcp.f32 %v4375_v31  ;;  %v4388_v56 = vadd.f32 1.0, %v10097_v38  ;;  %v14345_v26 = vmul.f32 -1.442695, %v14321_v45  ;;  %8641 = vmatpush3.bf16.msra.mxu1 %v8921_v33  ;;  %v14353_v7 = vmul.f32 -1.442695, %v14325_v24 }
 0x3eb   : > { %v10101_v17 = vpop.eup %10100  ;;  %10120 = vrcp.f32 %v4386_v11  ;;  %v4387_v8 = vadd.f32 1.0, %v10099_v49  ;;  %v14356_v9 = vmul.f32 -1.442695, %v14329_v0  ;;  %v14365_v33 = vmul.f32 -1.442695, %v14334_v13 }
 0x3ec   : > { %v10103_v38 = vpop.eup %10102  ;;  %v5689_v31 = vmul.f32 %v10101_v17, %v14105_v36  ;;  %10122 = vrcp.f32 %v4388_v56  ;;  %v14358_v36 = vpop.f32.mrb[165].mxu1 }
 0x3ed   : > { %v10105_v11 = vpop.eup %10104  ;;  %v5691_v49 = vmul.f32 %v10103_v38, %v14109_v41  ;;  %10124 = vrcp.f32 %v4387_v8  ;;  %16970 = vst [vmem:[#allocation54_spill] sm:$0xff] %v14358_v36  ;;  %v14360_v56 = vpop.f32.mrb[181].mxu0  ;;  %v8922_v41 = vld [vmem:[%s16440_s5 + $0x70] sm:$0xff]  }
 0x3ee   : > { %16971 = vst [vmem:[#allocation55_spill] sm:$0xff] %v14360_v56  ;;  %v10107_v17 = vpop.eup %10106  ;;  %v5980_v48 = vadd.f32 %v14239_v35, %v5689_v31  ;;  %v5702_v6 = vmul.f32 %v10105_v11, %v14113_v39  ;;  %10126 = vpow2.f32 %v8395_v2  ;;  %v16972_v56 = vld [vmem:[#allocation61_spill] sm:$0xff]  ;;  %v14376_v35 = vpop.f32.mrb[166].mxu1  ;;  %8576 = vmatprep.subr.bf16.mxu0 %v8922_v41 }
 0x3ef   : > { %v10109_v8 = vpop.eup %10108  ;;  %v6054_v38 = vadd.f32 %v14246_v55, %v5691_v49  ;;  %v5704_v36 = vmul.f32 %v10107_v17, %v14117_v18  ;;  %10128 = vpow2.f32 %v8406_v59  ;;  %v14374_v21 = vadd.f32 %v16972_v56, %v14291_v46  ;;  %16973 = vst [vmem:[#allocation31_spill] sm:$0xff] %v14376_v35  ;;  %v14378_v39 = vpop.f32.mrb[182].mxu0  ;;  %v8923_v18 = vld [vmem:[%s16440_s5 + $0x30] sm:$0xff]  }
 0x3f0   : > { %16974 = vst [vmem:[#allocation56_spill] sm:$0xff] %v14378_v39  ;;  %v10111_v2 = vpop.eup %10110  ;;  %v5944_v31 = vadd.f32 %v14257_v47, %v5702_v6  ;;  %v5703_v11 = vmul.f32 %v10109_v8, %v14121_v52  ;;  %10130 = vpow2.f32 %v8408_v4  ;;  %v14384_v55 = vadd.f32 %v16975_v57, %v14349_v1  ;;  %v8924_v59 = vld [vmem:[%s16440_s5 + $0x1f0] sm:$0xff]   ;;  %v14398_v57 = vpop.f32.mrb[167].mxu1  ;;  %8577 = vmatpush3.bf16.msra.mxu0 %v8923_v18 }
 0x3f1   : > { %v10113_v49 = vpop.eup %10112  ;;  %v6018_v56 = vadd.f32 %v14265_v19, %v5704_v36  ;;  %v5705_v47 = vmul.f32 %v10111_v2, %v14125_v28  ;;  %10132 = vpow2.f32 %v8407_v30  ;;  %v16976_v52 = vld [vmem:[#allocation10_spill] sm:$0xff]  ;;  %16977 = vst [vmem:[#allocation9_spill] sm:$0xff] %v14398_v57  ;;  %v14400_v17 = vpop.f32.mrb[183].mxu0  ;;  %v16979_v28 = vld [vmem:[#allocation36_spill] sm:$0xff]  ;;  %8642 = vmatprep.subr.bf16.mxu1 %v8924_v59 }
 0x3f2   : > { %v14396_v4 = vadd.f32 %v16976_v52, %v14277_v51  ;;  %16978 = vst [vmem:[#allocation57_spill] sm:$0xff] %v14400_v17  ;;  %v8925_v6 = vld [vmem:[%s16440_s5 + $0x1b0] sm:$0xff]   ;;  %v10115_v41 = vpop.eup %10114  ;;  %v5981_v8 = vadd.f32 %v5980_v48, %v5703_v11  ;;  %v5716_v39 = vmul.f32 %v10113_v49, %v14129_v22  ;;  %10134 = vpow2.f32 %v8409_v10  ;;  %v8926_v48 = vld [vmem:[%s16440_s5 + $0x78] sm:$0xff]  }
 0x3f3   : > { %v14408_v19 = vadd.f32 %v16979_v28, %v14287_v16  ;;  %v10117_v30 = vpop.eup %10116  ;;  %v6055_v36 = vadd.f32 %v6054_v38, %v5705_v47  ;;  %v5718_v2 = vmul.f32 %v10115_v41, %v14134_v32  ;;  %10136 = vpow2.f32 %v8420_v58  ;;  %8643 = vmatpush3.bf16.msra.mxu1 %v8925_v6  ;;  %v8927_v38 = vld [vmem:[%s16440_s5 + $0x38] sm:$0xff]   ;;  %8578 = vmatprep.subr.bf16.mxu0 %v8926_v48  ;;  %v16980_v41 = vld [vmem:[#allocation37_spill] sm:$0xff] }
 0x3f4   : > { %v7993_v52 = vmul.f32 -1.442695, %v14374_v21  ;;  %v10119_v22 = vpop.eup %10118  ;;  %v5945_v10 = vadd.f32 %v5944_v31, %v5716_v39  ;;  %v5717_v11 = vmul.f32 %v10117_v30, %v14154_v3  ;;  %10138 = vpow2.f32 %v8422_v29  ;;  %v8928_v32 = vld [vmem:[%s16440_s5 + $0x1f8] sm:$0xff]   ;;  %8579 = vmatpush3.bf16.msra.mxu0 %v8927_v38 }
 0x3f5   : > { %v7991_v18 = vmul.f32 -1.442695, %v14384_v55  ;;  %v10121_v58 = vpop.eup %10120  ;;  %v6019_v59 = vadd.f32 %v6018_v56, %v5718_v2  ;;  %v5719_v49 = vmul.f32 %v10119_v22, %v14166_v53  ;;  %10140 = vpow2.f32 %v14345_v26  ;;  %v8929_v3 = vld [vmem:[%s16440_s5 + $0x1b8] sm:$0xff]   ;;  %8644 = vmatprep.subr.bf16.mxu1 %v8928_v32 }
 0x3f6   : > { %v14426_v39 = vmul.f32 -1.442695, %v14396_v4  ;;  %v10123_v29 = vpop.eup %10122  ;;  %v5982_v31 = vadd.f32 %v5981_v8, %v5717_v11  ;;  %v5730_v47 = vmul.f32 %v10121_v58, %v14179_v62  ;;  %10142 = vpow2.f32 %v14353_v7  ;;  %v14444_v8 = vpop.f32.mrb[168].mxu1 }
 0x3f7   : > { %v14434_v56 = vmul.f32 -1.442695, %v14408_v19  ;;  %v10125_v53 = vpop.eup %10124  ;;  %v14436_v26 = vadd.f32 %v6055_v36, %v5719_v49  ;;  %v5732_v6 = vmul.f32 %v10123_v29, %v14185_v34  ;;  %10144 = vpow2.f32 %v14356_v9  ;;  %16981 = vst [vmem:[#allocation58_spill] sm:$0xff] %v14444_v8  ;;  %v14446_v62 = vpop.f32.mrb[184].mxu0  ;;  %8645 = vmatpush3.bf16.msra.mxu1 %v8929_v3  ;;  %v16983_v34 = vld [vmem:[#allocation63_spill] sm:$0xff] }
 0x3f8   : > { %v14442_v28 = vadd.f32 %v16980_v41, %v14349_v1  ;;  %16982 = vst [vmem:[#allocation8_spill] sm:$0xff] %v14446_v62  ;;  %v10127_v7 = vpop.eup %10126  ;;  %v14448_v30 = vadd.f32 %v5945_v10, %v5730_v47  ;;  %v5731_v2 = vmul.f32 %v10125_v53, %v14202_v5  ;;  %10146 = vpow2.f32 %v14365_v33  ;;  %v14456_v9 = vpop.f32.mrb[169].mxu1 }
 0x3f9   : > { %v14454_v36 = vadd.f32 %v16983_v34, %v14291_v46  ;;  %16984 = vst [vmem:[#allocation76_spill] sm:$0xff] %v14456_v9  ;;  %v14458_v48 = vpop.f32.mrb[185].mxu0  ;;  %v10129_v22 = vpop.eup %10128  ;;  %v14460_v11 = vadd.f32 %v6019_v59, %v5732_v6  ;;  %v4389_v38 = vadd.f32 1.0, %v10127_v7  ;;  %10148 = vpow2.f32 %v7991_v18 }
 0x3fa   : > { %16985 = vst [vmem:[#allocation77_spill] sm:$0xff] %v14458_v48  ;;  %v14464_v10 = vadd.f32 %v13811_v50, %v14277_v51  ;;  %v14466_v5 = vpop.f32.mrb[170].mxu1  ;;  %v14468_v33 = vpop.f32.mrb[186].mxu0  ;;  %v14470_v58 = vadd.f32 %v5982_v31, %v5731_v2  ;;  %v4400_v49 = vadd.f32 1.0, %v10129_v22  ;;  %10150 = vpow2.f32 %v7993_v52 }
 0x3fb   : > { %16986 = vst [vmem:[#allocation32_spill] sm:$0xff] %v14466_v5  ;;  %16987 = vst [vmem:[#allocation33_spill] sm:$0xff] %v14468_v33  ;;  %v10131_v32 = vpop.eup %10130  ;;  %v14474_v3 = vadd.f32 %v13813_v12, %v14287_v16  ;;  %10152 = vrcp.f32 %v4389_v38  ;;  %v14478_v50 = vadd.f32 %v13817_v44, %v14349_v1  ;;  %v14482_v29 = vadd.f32 %v13819_v54, %v14291_v46  ;;  %v14560_v57 = vpop.f32.mrb[171].mxu1 }
 0x3fc   : > { %v10133_v59 = vpop.eup %10132  ;;  %v4402_v18 = vadd.f32 1.0, %v10131_v32  ;;  %10154 = vrcp.f32 %v4400_v49  ;;  %v14485_v52 = vmul.f32 -1.442695, %v14442_v28  ;;  %v14488_v12 = vmul.f32 -1.442695, %v14454_v36  ;;  %16995 = vst [vmem:[#allocation59_spill] sm:$0xff] %v14560_v57 }
 0x3fd   : > { %v10135_v47 = vpop.eup %10134  ;;  %v4401_v31 = vadd.f32 1.0, %v10133_v59  ;;  %v14491_v41 = vmul.f32 -1.442695, %v14464_v10  ;;  %v14495_v44 = vadd.f32 %v13823_v42, %v14277_v51  ;;  %v14498_v2 = vmul.f32 -1.442695, %v14474_v3  ;;  %v14562_v35 = vpop.f32.mrb[187].mxu0 }
 0x3fe   : > { %v10137_v53 = vpop.eup %10136  ;;  %10156 = vrcp.f32 %v4402_v18  ;;  %v4403_v6 = vadd.f32 1.0, %v10135_v47  ;;  %v14502_v34 = vadd.f32 %v13825_v27, %v14287_v16  ;;  %v14505_v32 = vmul.f32 -1.442695, %v14478_v50  ;;  %16996 = vst [vmem:[#allocation61_spill] sm:$0xff] %v14562_v35 }
 0x3ff   : > { %v10139_v54 = vpop.eup %10138  ;;  %10158 = vrcp.f32 %v4401_v31  ;;  %v4414_v7 = vadd.f32 1.0, %v10137_v53  ;;  %v14508_v49 = vmul.f32 -1.442695, %v14482_v29  ;;  %v14512_v18 = vadd.f32 %v13829_v40, %v14349_v1 }
 0x400   : > { %v10141_v22 = vpop.eup %10140  ;;  %10160 = vrcp.f32 %v4403_v6  ;;  %v4416_v38 = vadd.f32 1.0, %v10139_v54  ;;  %v14516_v27 = vadd.f32 %v13831_v15, %v14291_v46  ;;  %v14519_v53 = vmul.f32 -1.442695, %v14495_v44 }
 0x401   : > { %v10143_v42 = vpop.eup %10142  ;;  %10162 = vrcp.f32 %v4414_v7  ;;  %v4415_v59 = vadd.f32 1.0, %v10141_v22  ;;  %v14523_v6 = vadd.f32 %v13843_v43, %v14277_v51  ;;  %v14526_v40 = vmul.f32 -1.442695, %v14502_v34  ;;  %v16989_v22 = vld [vmem:[#allocation64_spill] sm:$0xff]  ;;  %v16991_v43 = vld [vmem:[#allocation66_spill] sm:$0xff] }
 0x402   : > { %v10145_v47 = vpop.eup %10144  ;;  %10164 = vrcp.f32 %v4416_v38  ;;  %v4417_v31 = vadd.f32 1.0, %v10143_v42  ;;  %v14530_v15 = vadd.f32 %v16989_v22, %v14287_v16  ;;  %v16990_v42 = vld [vmem:[#allocation65_spill] sm:$0xff]  ;;  %v14538_v48 = vadd.f32 %v16991_v43, %v14291_v46  ;;  %v16993_v43 = vld [vmem:[#allocation67_spill] sm:$0xff] }
 0x403   : > { %16988 = vst [vmem:[#allocation11_spill] sm:$0xff] %v14523_v6  ;;  %v10147_v54 = vpop.eup %10146  ;;  %10166 = vrcp.f32 %v4415_v59  ;;  %v3984_v7 = vadd.f32 1.0, %v10145_v47  ;;  %v14534_v5 = vadd.f32 %v16990_v42, %v14349_v1  ;;  %v8930_v59 = vld [vmem:[%s16440_s5 + $0xc0] sm:$0xff]   ;;  %v14544_v22 = vmul.f32 -1.442695, %v14512_v18 }
 0x404   : > { %v10149_v33 = vpop.eup %10148  ;;  %10168 = vrcp.f32 %v4417_v31  ;;  %v3986_v38 = vadd.f32 1.0, %v10147_v54  ;;  %16992 = vst [vmem:[#allocation34_spill] sm:$0xff] %v14538_v48  ;;  %v14547_v31 = vmul.f32 -1.442695, %v14516_v27  ;;  %v14550_v62 = vmul.f32 -1.442695, %v14523_v6  ;;  %8586 = vmatprep.subr.bf16.mxu0 %v8930_v59 }
 0x405   : > { %v10151_v47 = vpop.eup %10150  ;;  %10170 = vrcp.f32 %v3984_v7  ;;  %v3985_v9 = vadd.f32 1.0, %v10149_v33  ;;  %v14554_v8 = vadd.f32 %v16993_v43, %v14277_v51  ;;  %v14558_v7 = vmul.f32 -1.442695, %v14530_v15 }
 0x406   : > { %v10153_v54 = vpop.eup %10152  ;;  %10172 = vrcp.f32 %v3986_v38  ;;  %v3987_v42 = vadd.f32 1.0, %v10151_v47  ;;  %v14566_v6 = vmul.f32 -1.442695, %v14534_v5  ;;  %v14569_v59 = vmul.f32 -1.442695, %v14538_v48 }
 0x407   : > { %16994 = vst [vmem:[#allocation35_spill] sm:$0xff] %v14554_v8  ;;  %v10155_v17 = vpop.eup %10154  ;;  %v5733_v33 = vmul.f32 %v10153_v54, %v14269_v63  ;;  %10174 = vrcp.f32 %v3985_v9  ;;  %v16997_v54 = vld [vmem:[#allocation68_spill] sm:$0xff] }
 0x408   : > { %v10157_v38 = vpop.eup %10156  ;;  %v5744_v47 = vmul.f32 %v10155_v17, %v14273_v37  ;;  %10176 = vrcp.f32 %v3987_v42  ;;  %v14576_v35 = vadd.f32 %v16997_v54, %v14287_v16  ;;  %v14582_v42 = vmul.f32 -1.442695, %v14554_v8 }
 0x409   : > { %v10159_v43 = vpop.eup %10158  ;;  %v6057_v63 = vadd.f32 %v14436_v26, %v5733_v33  ;;  %v5746_v9 = vmul.f32 %v10157_v38, %v14281_v23  ;;  %10178 = vpow2.f32 %v14426_v39  ;;  %v16999_v39 = vld [vmem:[#allocation12_spill] sm:$0xff] }
 0x40a   : > { %16998 = vst [vmem:[#allocation60_spill] sm:$0xff] %v14576_v35  ;;  %v10161_v57 = vpop.eup %10160  ;;  %v5947_v37 = vadd.f32 %v14448_v30, %v5744_v47  ;;  %v5745_v17 = vmul.f32 %v10159_v43, %v14301_v14  ;;  %10180 = vpow2.f32 %v14434_v56  ;;  %v14589_v33 = vadd.f32 %v16999_v39, %v14349_v1  ;;  %v17001_v56 = vld [vmem:[#allocation69_spill] sm:$0xff] }
 0x40b   : > { %v10163_v48 = vpop.eup %10162  ;;  %v6021_v26 = vadd.f32 %v14460_v11, %v5746_v9  ;;  %v5747_v23 = vmul.f32 %v10161_v57, %v14308_v25  ;;  %10182 = vpow2.f32 %v14485_v52  ;;  %v14596_v47 = vadd.f32 %v17001_v56, %v14291_v46  ;;  %v14603_v52 = vpop.f32.mrb[172].mxu1  ;;  %v17005_v9 = vld [vmem:[#allocation70_spill] sm:$0xff] }
 0x40c   : > { %17000 = vst [vmem:[#allocation10_spill] sm:$0xff] %v14589_v33  ;;  %v10165_v38 = vpop.eup %10164  ;;  %v5984_v30 = vadd.f32 %v14470_v58, %v5745_v17  ;;  %v5758_v14 = vmul.f32 %v10163_v48, %v14312_v60  ;;  %10184 = vpow2.f32 %v14488_v12  ;;  %v14601_v57 = vmul.f32 -1.442695, %v14576_v35  ;;  %17003 = vst [vmem:[#allocation37_spill] sm:$0xff] %v14603_v52  ;;  %v14605_v58 = vpop.f32.mrb[188].mxu0 }
 0x40d   : > { %17002 = vst [vmem:[#allocation36_spill] sm:$0xff] %v14596_v47  ;;  %v10167_v11 = vpop.eup %10166  ;;  %v6058_v43 = vadd.f32 %v6057_v63, %v5747_v23  ;;  %v5760_v25 = vmul.f32 %v10165_v38, %v14316_v61  ;;  %10186 = vpow2.f32 %v14491_v41  ;;  %17004 = vst [vmem:[#allocation63_spill] sm:$0xff] %v14605_v58  ;;  %v14611_v63 = vadd.f32 %v17005_v9, %v14277_v51  ;;  %v14613_v61 = vpop.f32.mrb[173].mxu1 }
 0x40e   : > { %v10169_v60 = vpop.eup %10168  ;;  %v5948_v48 = vadd.f32 %v5947_v37, %v5758_v14  ;;  %v5759_v12 = vmul.f32 %v10167_v11, %v14321_v45  ;;  %10188 = vpow2.f32 %v14498_v2  ;;  %17007 = vst [vmem:[#allocation65_spill] sm:$0xff] %v14613_v61  ;;  %v14615_v41 = vpop.f32.mrb[189].mxu0  ;;  %v14622_v37 = vmul.f32 -1.442695, %v14589_v33 }
 0x40f   : > { %17006 = vst [vmem:[#allocation64_spill] sm:$0xff] %v14611_v63  ;;  %17008 = vst [vmem:[#allocation66_spill] sm:$0xff] %v14615_v41  ;;  %v14617_v54 = vpop.eup %10170  ;;  %v6022_v17 = vadd.f32 %v6021_v26, %v5760_v25  ;;  %v5761_v23 = vmul.f32 %v10169_v60, %v14325_v24  ;;  %10190 = vpow2.f32 %v14505_v32  ;;  %v14624_v45 = vpop.f32.mrb[174].mxu1  ;;  %v14632_v56 = vmul.f32 -1.442695, %v14596_v47  ;;  %v17013_v60 = vld [vmem:[#allocation71_spill] sm:$0xff] }
 0x410   : > { %17009 = vst [vmem:[#allocation67_spill] sm:$0xff] %v14624_v45  ;;  %v14626_v2 = vpop.f32.mrb[190].mxu0  ;;  %v14628_v39 = vpop.eup %10172  ;;  %v5949_v38 = vrot.slane %v5948_v48, 4  ;;  %v5985_v14 = vadd.f32 %v5984_v30, %v5759_v12  ;;  %10192 = vpow2.f32 %v14508_v49  ;;  %v14643_v9 = vadd.f32 %v17013_v60, %v14287_v16 }
 0x411   : > { %17010 = vst [vmem:[#allocation68_spill] sm:$0xff] %v14626_v2  ;;  %v14634_v26 = vpop.f32.mrb[175].mxu1  ;;  %v14636_v24 = vpop.f32.mrb[191].mxu0  ;;  %v6023_v11 = vrot.slane %v6022_v17, 4  ;;  %v6059_v25 = vadd.f32 %v6058_v43, %v5761_v23  ;;  %10194 = vpow2.f32 %v14519_v53  ;;  %v17014_v53 = vld [vmem:[#allocation15_spill] sm:$0xff] }
 0x412   : > { %17011 = vst [vmem:[#allocation12_spill] sm:$0xff] %v14634_v26  ;;  %17012 = vst [vmem:[#allocation69_spill] sm:$0xff] %v14636_v24  ;;  %v14638_v32 = vpop.eup %10174  ;;  %v5950_v49 = vadd.f32 %v5949_v38, %v5948_v48  ;;  %v5986_v12 = vrot.slane %v5985_v14, 4  ;;  %10196 = vpow2.f32 %v14526_v40  ;;  %v14649_v26 = vmul.f32 -1.442695, %v14611_v63 }
 0x413   : > { %v14645_v30 = vpop.eup %10176  ;;  %v6024_v2 = vadd.f32 %v6023_v11, %v6022_v17  ;;  %v6060_v45 = vrot.slane %v6059_v25, 4  ;;  %10198 = vpow2.f32 %v14544_v22  ;;  %v14654_v43 = vadd.f32 %v17014_v53, %v14349_v1  ;;  %v14658_v17 = vpop.f32.mrb[176].mxu1 }
 0x414   : > { %v10179_v24 = vpop.eup %10178  ;;  %v5951_v60 = vrot.slane %v5950_v49, 2  ;;  %v5987_v41 = vadd.f32 %v5986_v12, %v5985_v14  ;;  %10200 = vpow2.f32 %v14547_v31  ;;  %17015 = vst [vmem:[#allocation70_spill] sm:$0xff] %v14658_v17  ;;  %v14660_v11 = vpop.f32.mrb[192].mxu0 }
 0x415   : > { %v10181_v23 = vpop.eup %10180  ;;  %v3998_v61 = vadd.f32 1.0, %v10179_v24  ;;  %v6025_v40 = vrot.slane %v6024_v2, 2  ;;  %v6061_v38 = vadd.f32 %v6060_v45, %v6059_v25  ;;  %10202 = vpow2.f32 %v14550_v62  ;;  %17016 = vst [vmem:[#allocation71_spill] sm:$0xff] %v14660_v11  ;;  %v14662_v47 = vpop.f32.mrb[177].mxu1 }
 0x416   : > { %v10183_v48 = vpop.eup %10182  ;;  %v4000_v58 = vadd.f32 1.0, %v10181_v23  ;;  %v5952_v52 = vadd.f32 %v5951_v60, %v5950_v49  ;;  %v5988_v53 = vrot.slane %v5987_v41, 2  ;;  %17017 = vst [vmem:[#allocation15_spill] sm:$0xff] %v14662_v47 }
 0x417   : > { %v10185_v22 = vpop.eup %10184  ;;  %10204 = vrcp.f32 %v3998_v61  ;;  %v3999_v63 = vadd.f32 1.0, %v10183_v48  ;;  %v6026_v24 = vadd.f32 %v6025_v40, %v6024_v2  ;;  %v6062_v31 = vrot.slane %v6061_v38, 2 }
 0x418   : > { %v10187_v14 = vpop.eup %10186  ;;  %10206 = vrcp.f32 %v4000_v58  ;;  %v4001_v12 = vadd.f32 1.0, %v10185_v22  ;;  %v5953_v25 = vrot.slane %v5952_v52, 1  ;;  %v5989_v23 = vadd.f32 %v5988_v53, %v5987_v41  ;;  %v17018_v41 = vld [vmem:[#allocation72_spill] sm:$0xff] }
 0x419   : > { %v10189_v45 = vpop.eup %10188  ;;  %10208 = vrcp.f32 %v3999_v63  ;;  %v4012_v62 = vadd.f32 1.0, %v10187_v14  ;;  %v6027_v33 = vrot.slane %v6026_v24, 1  ;;  %v6063_v11 = vadd.f32 %v6062_v31, %v6061_v38 }
 0x41a   : > { %v10191_v17 = vpop.eup %10190  ;;  %10210 = vrcp.f32 %v4001_v12  ;;  %v4014_v49 = vadd.f32 1.0, %v10189_v45  ;;  %v5954_v61 = vadd.f32 %v5953_v25, %v5952_v52  ;;  %v5990_v48 = vrot.slane %v5989_v23, 1  ;;  %v17019_v25 = vld [vmem:[#allocation73_spill] sm:$0xff] }
 0x41b   : > { %v10193_v60 = vpop.eup %10192  ;;  %10212 = vrcp.f32 %v4012_v62  ;;  %v4013_v47 = vadd.f32 1.0, %v10191_v17  ;;  %v6028_v2 = vadd.f32 %v6027_v33, %v6026_v24  ;;  %v6064_v40 = vrot.slane %v6063_v11, 1 }
 0x41c   : > { %v10195_v35 = vpop.eup %10194  ;;  %10214 = vrcp.f32 %v4014_v49  ;;  %v4015_v58 = vadd.f32 1.0, %v10193_v60  ;;  %v5991_v8 = vadd.f32 %v5990_v48, %v5989_v23  ;;  %v14666_v53 = vadd.f32 %v17018_v41, %v14291_v46  ;;  %v14682_v60 = vpop.f32.mrb[193].mxu0 }
 0x41d   : > { %v10197_v22 = vpop.eup %10196  ;;  %10216 = vrcp.f32 %v4013_v47  ;;  %v4026_v63 = vadd.f32 1.0, %v10195_v35  ;;  %v6065_v14 = vadd.f32 %v6064_v40, %v6063_v11  ;;  %v14669_v31 = vmul.f32 -1.442695, %v14643_v9 }
 0x41e   : > { %v10199_v38 = vpop.eup %10198  ;;  %10218 = vrcp.f32 %v4015_v58  ;;  %v4028_v52 = vadd.f32 1.0, %v10197_v22  ;;  %v6304_v33 = vcombine.low %v5954_v61, %v5991_v8  ;;  %v14672_v12 = vmul.f32 -1.442695, %v14654_v43 }
 0x41f   : > { %v10201_v17 = vpop.eup %10200  ;;  %10220 = vrcp.f32 %v4026_v63  ;;  %v4027_v24 = vadd.f32 1.0, %v10199_v38  ;;  %v6305_v35 = vcombine.low %v6028_v2, %v6065_v14  ;;  %v14676_v23 = vadd.f32 %v17019_v25, %v14277_v51  ;;  %v14693_v38 = vpop.f32.mrb[178].mxu1 }
 0x420   : > { %v10203_v47 = vpop.eup %10202  ;;  %10222 = vrcp.f32 %v4028_v52  ;;  %v4029_v45 = vadd.f32 1.0, %v10201_v17  ;;  %v6326_v62 = vrot.slane %v6304_v33, %v16957_v20  ;;  %v14680_v8 = vmul.f32 -1.442695, %v14666_v53  ;;  %v14695_v14 = vpop.f32.mrb[194].mxu0 }
 0x421   : > { %v10205_v11 = vpop.eup %10204  ;;  %10224 = vrcp.f32 %v4027_v24  ;;  %v4040_v49 = vadd.f32 1.0, %v10203_v47  ;;  %v6333_v48 = vrot.slane %v6305_v35, %v16957_v20  ;;  %v5328_v2 = vmul.f32 %v14617_v54, %v14329_v0 }
 0x422   : > { %v10207_v61 = vpop.eup %10206  ;;  %v5342_v40 = vmul.f32 %v10205_v11, %v14396_v4  ;;  %10226 = vrcp.f32 %v4029_v45  ;;  %v5330_v22 = vmul.f32 %v14628_v39, %v14334_v13  ;;  %v5329_v63 = vmul.f32 %v14638_v32, %v14384_v55  ;;  %v14705_v32 = vpop.f32.mrb[195].mxu0  ;;  %v17021_v45 = vld [vmem:[#allocation6_spill] sm:$0xff] }
 0x423   : > { %v10209_v58 = vpop.eup %10208  ;;  %v5344_v41 = vmul.f32 %v10207_v61, %v14408_v19  ;;  %10228 = vrcp.f32 %v4040_v49  ;;  %v6335_v17 = vcombine.low %v6326_v62, %v6333_v48  ;;  %v5331_v13 = vmul.f32 %v14645_v30, %v14374_v21  ;;  %v14703_v19 = vpop.f32.mrb[179].mxu1 }
 0x424   : > { %v10211_v52 = vpop.eup %10210  ;;  %v6066_v0 = vadd.f32 %v5342_v40, %v5328_v2  ;;  %v5343_v4 = vmul.f32 %v10209_v58, %v14442_v28  ;;  %10230 = vpow2.f32 %v14558_v7 }
 0x425   : > { %v10213_v54 = vpop.eup %10212  ;;  %v6140_v39 = vadd.f32 %v5344_v41, %v5330_v22  ;;  %v5345_v55 = vmul.f32 %v10211_v52, %v14454_v36  ;;  %10232 = vpow2.f32 %v14566_v6  ;;  %v6349_v24 = vrot.slane %v6335_v17, %v16957_v20  ;;  %v17020_v36 = vld [vmem:[#allocation29_spill] sm:$0xff]  ;;  %v17058_v20 = vld [vmem:[#allocation64_spill] sm:$0xff] }
 0x426   : > { %v10215_v33 = vpop.eup %10214  ;;  %v6103_v47 = vadd.f32 %v5343_v4, %v5329_v63  ;;  %v5356_v28 = vmul.f32 %v10213_v54, %v14464_v10  ;;  %10234 = vpow2.f32 %v14569_v59  ;;  %v14714_v6 = vadd.f32 %v17020_v36, %v14287_v16 }
 0x427   : > { %v10217_v7 = vpop.eup %10216  ;;  %v6177_v35 = vadd.f32 %v5345_v55, %v5331_v13  ;;  %v5358_v21 = vmul.f32 %v10215_v33, %v14474_v3  ;;  %10236 = vpow2.f32 %v14582_v42  ;;  %v6350_v25 = vcombine.low %v17021_v45, %v6349_v24  ;;  %v17028_v33 = vld [vmem:[#allocation17_spill] sm:$0xff] }
 0x428   : > { %v10219_v30 = vpop.eup %10218  ;;  %v6067_v11 = vadd.f32 %v6066_v0, %v5356_v28  ;;  %v5357_v62 = vmul.f32 %v10217_v7, %v14478_v50  ;;  %10238 = vpow2.f32 %v14601_v57  ;;  %v8088_v3 = vmul.f32 -1.442695, %v14676_v23  ;;  %v17022_v57 = vld [vmem:[#allocation30_spill] sm:$0xff] }
 0x429   : > { %v10221_v10 = vpop.eup %10220  ;;  %v6141_v59 = vadd.f32 %v6140_v39, %v5358_v21  ;;  %v5359_v49 = vmul.f32 %v10219_v30, %v14482_v29  ;;  %10240 = vpow2.f32 %v14622_v37  ;;  %v14728_v58 = vadd.f32 %v17022_v57, %v14349_v1  ;;  %v14730_v29 = vpop.f32.mrb[180].mxu1  ;;  %6395 = vst [vmem:[#allocation2] sm:$0xff] %v6350_v25  ;;  %v17024_v0 = vld [vmem:[#allocation38_spill] sm:$0xff]  ;;  %v17027_v39 = vld [vmem:[#allocation11_spill] sm:$0xff] }
 0x42a   : > { %v10223_v42 = vpop.eup %10222  ;;  %v6104_v61 = vadd.f32 %v6103_v47, %v5357_v62  ;;  %v5370_v48 = vmul.f32 %v10221_v10, %v14495_v44  ;;  %10242 = vpow2.f32 %v14632_v56  ;;  %v14732_v37 = vpop.f32.mrb[196].mxu0  ;;  %v8090_v56 = vmul.f32 -1.442695, %v14714_v6 }
 0x42b   : > { %v10225_v2 = vpop.eup %10224  ;;  %v6178_v40 = vadd.f32 %v6177_v35, %v5359_v49  ;;  %v5372_v50 = vmul.f32 %v10223_v42, %v14502_v34  ;;  %10244 = vpow2.f32 %v14649_v26  ;;  %v14737_v34 = vpop.f32.mrb[181].mxu1  ;;  %v14747_v4 = vadd.f32 %v17024_v0, %v14291_v46  ;;  %v17031_v35 = vld [vmem:[#allocation39_spill] sm:$0xff] }
 0x42c   : > { %v10227_v22 = vpop.eup %10226  ;;  %v6068_v63 = vadd.f32 %v6067_v11, %v5370_v48  ;;  %v5371_v44 = vmul.f32 %v10225_v2, %v14512_v18  ;;  %10246 = vpow2.f32 %v14669_v31  ;;  %v14739_v26 = vpop.f32.mrb[197].mxu0  ;;  %v14769_v21 = vadd.f32 %v17031_v35, %v14287_v16 }
 0x42d   : > { %17023 = vst [vmem:[#allocation72_spill] sm:$0xff] %v14739_v26  ;;  %v10229_v41 = vpop.eup %10228  ;;  %v14741_v52 = vadd.f32 %v6141_v59, %v5372_v50  ;;  %v5373_v17 = vmul.f32 %v10227_v22, %v14516_v27  ;;  %10248 = vpow2.f32 %v14672_v12  ;;  %v14749_v18 = vpop.f32.mrb[182].mxu1  ;;  %v14759_v27 = vadd.f32 %v17028_v33, %v14277_v51  ;;  %v17032_v50 = vld [vmem:[#allocation40_spill] sm:$0xff] }
 0x42e   : > { %17025 = vst [vmem:[#allocation73_spill] sm:$0xff] %v14749_v18  ;;  %v14751_v31 = vpop.f32.mrb[198].mxu0  ;;  %v10231_v54 = vpop.eup %10230  ;;  %v14753_v13 = vadd.f32 %v6104_v61, %v5371_v44  ;;  %v5384_v55 = vmul.f32 %v10229_v41, %v17027_v39  ;;  %10250 = vpow2.f32 %v14680_v8  ;;  %v14774_v10 = vmul.f32 -1.442695, %v14728_v58 }
 0x42f   : > { %17026 = vst [vmem:[#allocation29_spill] sm:$0xff] %v14751_v31  ;;  %v14761_v12 = vpop.f32.mrb[183].mxu1  ;;  %v14763_v24 = vpop.f32.mrb[199].mxu0  ;;  %v14765_v28 = vadd.f32 %v6178_v40, %v5373_v17  ;;  %v4042_v7 = vadd.f32 1.0, %v10231_v54  ;;  %10252 = vpow2.f32 %v8088_v3  ;;  %v14777_v59 = vmul.f32 -1.442695, %v14747_v4 }
 0x430   : > { %17029 = vst [vmem:[#allocation6_spill] sm:$0xff] %v14761_v12  ;;  %17030 = vst [vmem:[#allocation30_spill] sm:$0xff] %v14763_v24  ;;  %v10233_v47 = vpop.eup %10232  ;;  %v14771_v30 = vadd.f32 %v6068_v63, %v5384_v55  ;;  %10254 = vpow2.f32 %v8090_v56  ;;  %v14780_v42 = vmul.f32 -1.442695, %v14759_v27  ;;  %v14783_v61 = vmul.f32 -1.442695, %v14769_v21 }
 0x431   : > { %v10235_v36 = vpop.eup %10234  ;;  %v4041_v8 = vadd.f32 1.0, %v10233_v47  ;;  %10256 = vrcp.f32 %v4042_v7  ;;  %v6404_v48 = vld [vmem:[#allocation2] sm:$0xff]  ;;  %v14787_v57 = vadd.f32 %v17032_v50, %v14349_v1  ;;  %v17033_v56 = vld [vmem:[#allocation41_spill] sm:$0xff]  ;;  %v17034_v17 = vld [vmem:[#allocation42_spill] sm:$0xff] }
 0x432   : > { %v10237_v45 = vpop.eup %10236  ;;  %v4043_v25 = vadd.f32 1.0, %v10235_v36  ;;  %v14789_v22 = vmul.f32 0.00390625, %v6404_v48  ;;  %v14793_v41 = vadd.f32 %v17033_v56, %v14291_v46  ;;  %v14797_v0 = vadd.f32 %v17034_v17, %v14277_v51  ;;  %v17035_v55 = vld [vmem:[#allocation25_spill] sm:$0xff]  ;;  %v17036_v47 = vld [vmem:[#allocation22_spill] sm:$0xff] }
 0x433   : > { %v10239_v11 = vpop.eup %10238  ;;  %10258 = vrcp.f32 %v4041_v8  ;;  %v4054_v62 = vadd.f32 1.0, %v10237_v45  ;;  %v17037_v7 = vsub.s32 7, %v17036_v47  ;;  %v17038_v45 = vld [vmem:[#allocation23_spill] sm:$0xff]  ;;  %v8932_v17 = vld [vmem:[%s16440_s5 + $0xc8] sm:$0xff]  }
 0x434   : > { %v10241_v49 = vpop.eup %10240  ;;  %10260 = vrcp.f32 %v4043_v25  ;;  %v4056_v3 = vadd.f32 1.0, %v10239_v11  ;;  %v6417_v33 = vrot.slane %v14789_v22, %v17035_v55  ;;  %v6413_v25 = vrot.slane %v14789_v22, %v17038_v45  ;;  %v17078_v31 = vld [vmem:[#allocation49_spill] sm:$0xff] }
 0x435   : > { %v10243_v2 = vpop.eup %10242  ;;  %10262 = vrcp.f32 %v4054_v62  ;;  %v4055_v40 = vadd.f32 1.0, %v10241_v49  ;;  %v6441_v35 = vrot.slane %v14789_v22, %v17037_v7  ;;  %v17039_v11 = vsub.s32 6, %v17036_v47  ;;  %v17041_v7 = vld [vmem:[#allocation26_spill] sm:$0xff] }
 0x436   : > { %v10245_v63 = vpop.eup %10244  ;;  %10264 = vrcp.f32 %v4056_v3  ;;  %v4057_v44 = vadd.f32 1.0, %v10243_v2  ;;  %v6481_v48 = vpack.c.bf16 %v6417_v33, %v6417_v33  ;;  %v15004_v18 = vadd.f32 %v17078_v31, %v14277_v51  ;;  %v8947_v31 = vld [vmem:[%s16440_s5 + $0x100] sm:$0xff]  }
 0x437   : > { %v10247_v54 = vpop.eup %10246  ;;  %10266 = vrcp.f32 %v4055_v40  ;;  %v4068_v39 = vadd.f32 1.0, %v10245_v63  ;;  %v6437_v62 = vrot.slane %v14789_v22, %v17039_v11  ;;  %v6487_v2 = vpack.c.bf16 %v6441_v35, %v6441_v35  ;;  %v8931_v40 = vld [vmem:[%s16440_s5 + $0x80] sm:$0xff]  }
 0x438   : > { %v10249_v36 = vpop.eup %10248  ;;  %10268 = vrcp.f32 %v4057_v44  ;;  %v4070_v8 = vadd.f32 1.0, %v10247_v54  ;;  %v6480_v44 = vpack.c.bf16 %v6413_v25, %v6413_v25  ;;  %7423 = vmatprep.mubr.bf16.mxu0 %v6481_v48  ;;  %v6425_v35 = vrot.slane %v14789_v22, %v17041_v7  ;;  %v17042_v11 = vld [vmem:[#allocation16_spill] sm:$0xff] }
 0x439   : > { %v10251_v49 = vpop.eup %10250  ;;  %10270 = vrcp.f32 %v4068_v39  ;;  %v4069_v3 = vadd.f32 1.0, %v10249_v36  ;;  %v6486_v56 = vpack.c.bf16 %v6437_v62, %v6437_v62  ;;  %v17040_v39 = vld [vmem:[#allocation75_spill] sm:$0xff]  ;;  %7543 = vmatprep.mubr.bf16.mxu1 %v6487_v2  ;;  %v8103_v25 = vmul.f32 -1.442695, %v14787_v57 }
 0x43a   : > { %v10253_v50 = vpop.eup %10252  ;;  %10272 = vrcp.f32 %v4070_v8  ;;  %v4071_v63 = vadd.f32 1.0, %v10251_v49  ;;  %v14817_v33 = vadd.f32 %v17040_v39, %v14287_v16  ;;  %v14824_v62 = vadd.f32 %v17042_v11, %v14349_v1  ;;  %7424 = vmatmul.mubr.bf16.vlgmr.msra.gmra.mrb[216].mxu0 %v6480_v44  ;;  %v17043_v44 = vld [vmem:[#allocation19_spill] sm:$0xff] }
 0x43b   : > { %v10255_v54 = vpop.eup %10254  ;;  %10274 = vrcp.f32 %v4069_v3  ;;  %v4082_v47 = vadd.f32 1.0, %v10253_v50  ;;  %7544 = vmatmul.mubr.bf16.vlgmr.msra.gmra.mrb[8].mxu1 %v6486_v56  ;;  %v8105_v48 = vmul.f32 -1.442695, %v14793_v41  ;;  %8587 = vmatpush3.bf16.msra.mxu0 %v8931_v40  ;;  %v6483_v2 = vpack.c.bf16 %v6425_v35, %v6425_v35  ;;  %v8933_v50 = vld [vmem:[%s16440_s5 + $0x88] sm:$0xff]   ;;  %v17044_v35 = vld [vmem:[#allocation34_spill] sm:$0xff] }
 0x43c   : > { %v10257_v36 = vpop.eup %10256  ;;  %10276 = vrcp.f32 %v4071_v63  ;;  %v4084_v8 = vadd.f32 1.0, %v10255_v54  ;;  %v8116_v39 = vmul.f32 -1.442695, %v14797_v0  ;;  %v14835_v56 = vadd.f32 %v17043_v44, %v14291_v46  ;;  %8588 = vmatprep.subr.bf16.mxu0 %v8932_v17 }
 0x43d   : > { %v10259_v49 = vpop.eup %10258  ;;  %v5386_v3 = vmul.f32 %v10257_v36, %v14530_v15  ;;  %10278 = vrcp.f32 %v4082_v47  ;;  %v8934_v15 = vld [vmem:[%s16440_s5 + $0xd0] sm:$0xff]   ;;  %7463 = vmatprep.mubr.bf16.mxu0 %v6483_v2  ;;  %v8117_v17 = vmul.f32 -1.442695, %v14824_v62  ;;  %v14858_v2 = vpop.f32.mrb[184].mxu1 }
 0x43e   : > { %v10261_v63 = vpop.eup %10260  ;;  %v5385_v54 = vmul.f32 %v10259_v49, %v14534_v5  ;;  %10280 = vrcp.f32 %v4084_v8  ;;  %v8118_v5 = vmul.f32 -1.442695, %v14817_v33  ;;  %v17045_v49 = vld [vmem:[#allocation35_spill] sm:$0xff]  ;;  %17048 = vst [vmem:[#allocation38_spill] sm:$0xff] %v14858_v2 }
 0x43f   : > { %v10263_v40 = vpop.eup %10262  ;;  %v6143_v47 = vadd.f32 %v14741_v52, %v5386_v3  ;;  %v5387_v36 = vmul.f32 %v10261_v63, %v17044_v35  ;;  %10282 = vpow2.f32 %v14774_v10  ;;  %v17046_v52 = vld [vmem:[#allocation60_spill] sm:$0xff]  ;;  %v17047_v10 = vld [vmem:[#allocation18_spill] sm:$0xff]  ;;  %8589 = vmatpush3.bf16.msra.mxu0 %v8933_v50  ;;  %v8936_v50 = vld [vmem:[%s16440_s5 + $0xd8] sm:$0xff]  }
 0x440   : > { %v10265_v8 = vpop.eup %10264  ;;  %v6106_v11 = vadd.f32 %v14753_v13, %v5385_v54  ;;  %v5398_v44 = vmul.f32 %v10263_v40, %v17045_v49  ;;  %10284 = vpow2.f32 %v14777_v59  ;;  %v14853_v63 = vadd.f32 %v17047_v10, %v14277_v51  ;;  %v8935_v13 = vld [vmem:[%s16440_s5 + $0x90] sm:$0xff]   ;;  %v14860_v59 = vpop.f32.mrb[200].mxu0  ;;  %8590 = vmatprep.subr.bf16.mxu0 %v8934_v15 }
 0x441   : > { %v10267_v45 = vpop.eup %10266  ;;  %v6180_v7 = vadd.f32 %v14765_v28, %v5387_v36  ;;  %v5400_v3 = vmul.f32 %v10265_v8, %v17046_v52  ;;  %10286 = vpow2.f32 %v14780_v42  ;;  %17049 = vst [vmem:[#allocation11_spill] sm:$0xff] %v14860_v59  ;;  %v17050_v40 = vld [vmem:[#allocation10_spill] sm:$0xff]  ;;  %v17051_v42 = vld [vmem:[#allocation21_spill] sm:$0xff]  ;;  %v14872_v8 = vpop.f32.mrb[185].mxu1 }
 0x442   : > { %v10269_v54 = vpop.eup %10268  ;;  %v6070_v28 = vadd.f32 %v14771_v30, %v5398_v44  ;;  %v5399_v35 = vmul.f32 %v10267_v45, %v17050_v40  ;;  %10288 = vpow2.f32 %v14783_v61  ;;  %v14867_v36 = vadd.f32 %v17051_v42, %v14287_v16  ;;  %17052 = vst [vmem:[#allocation17_spill] sm:$0xff] %v14872_v8  ;;  %v14874_v49 = vpop.f32.mrb[201].mxu0  ;;  %v17054_v30 = vld [vmem:[#allocation36_spill] sm:$0xff]  ;;  %v17055_v61 = vld [vmem:[#allocation43_spill] sm:$0xff] }
 0x443   : > { %17053 = vst [vmem:[#allocation39_spill] sm:$0xff] %v14874_v49  ;;  %v10271_v52 = vpop.eup %10270  ;;  %v6144_v10 = vadd.f32 %v6143_v47, %v5400_v3  ;;  %v5401_v44 = vmul.f32 %v10269_v54, %v17054_v30  ;;  %10290 = vpow2.f32 %v8103_v25  ;;  %v14879_v45 = vadd.f32 %v17055_v61, %v14349_v1  ;;  %v14881_v40 = vpop.f32.mrb[186].mxu1  ;;  %8591 = vmatpush3.bf16.msra.mxu0 %v8935_v13 }
 0x444   : > { %17056 = vst [vmem:[#allocation40_spill] sm:$0xff] %v14881_v40  ;;  %v14883_v15 = vpop.f32.mrb[202].mxu0  ;;  %v10273_v42 = vpop.eup %10272  ;;  %v6107_v55 = vadd.f32 %v6106_v11, %v5399_v35  ;;  %v5412_v59 = vmul.f32 %v10271_v52, %v17058_v20  ;;  %10292 = vpow2.f32 %v8105_v48  ;;  %v8119_v49 = vmul.f32 -1.442695, %v14835_v56  ;;  %v8937_v11 = vld [vmem:[%s16440_s5 + $0x98] sm:$0xff]   ;;  %8592 = vmatprep.subr.bf16.mxu0 %v8936_v50 }
 0x445   : > { %17057 = vst [vmem:[#allocation41_spill] sm:$0xff] %v14883_v15  ;;  %v14887_v8 = vpop.f32.mrb[187].mxu1  ;;  %v14889_v47 = vpop.f32.mrb[203].mxu0  ;;  %v6181_v3 = vadd.f32 %v6180_v7, %v5401_v44  ;;  %v5414_v54 = vmul.f32 %v10273_v42, %v14643_v9  ;;  %10294 = vpow2.f32 %v8116_v39  ;;  %v8130_v30 = vmul.f32 -1.442695, %v14853_v63  ;;  %v8938_v9 = vld [vmem:[%s16440_s5 + $0xe0] sm:$0xff]  }
 0x446   : > { %17059 = vst [vmem:[#allocation42_spill] sm:$0xff] %v14887_v8  ;;  %17060 = vst [vmem:[#allocation22_spill] sm:$0xff] %v14889_v47  ;;  %v10275_v25 = vpop.eup %10274  ;;  %v6071_v48 = vadd.f32 %v6070_v28, %v5412_v59  ;;  %10296 = vpow2.f32 %v8118_v5  ;;  %v8132_v52 = vmul.f32 -1.442695, %v14867_v36  ;;  %v8131_v44 = vmul.f32 -1.442695, %v14879_v45 }
 0x447   : > { %v10277_v20 = vpop.eup %10276  ;;  %v5413_v35 = vmul.f32 %v10275_v25, %v14654_v43  ;;  %v6145_v39 = vadd.f32 %v6144_v10, %v5414_v54  ;;  %10298 = vpow2.f32 %v8117_v17  ;;  %8593 = vmatpush3.bf16.msra.mxu0 %v8937_v11  ;;  %v14912_v17 = vpop.f32.mrb[188].mxu1 }
 0x448   : > { %v10279_v7 = vpop.eup %10278  ;;  %v5415_v13 = vmul.f32 %v10277_v20, %v14666_v53  ;;  %10300 = vpow2.f32 %v8119_v49  ;;  %v8939_v53 = vld [vmem:[%s16440_s5 + $0xa0] sm:$0xff]   ;;  %17061 = vst [vmem:[#allocation75_spill] sm:$0xff] %v14912_v17  ;;  %v14914_v50 = vpop.f32.mrb[204].mxu0  ;;  %8594 = vmatprep.subr.bf16.mxu0 %v8938_v9 }
 0x449   : > { %v10281_v61 = vpop.eup %10280  ;;  %v14903_v42 = vadd.f32 %v6107_v55, %v5413_v35  ;;  %v5426_v43 = vmul.f32 %v10279_v7, %v14676_v23  ;;  %10302 = vpow2.f32 %v8130_v30  ;;  %17062 = vst [vmem:[#allocation16_spill] sm:$0xff] %v14914_v50  ;;  %v14921_v49 = vpop.f32.mrb[189].mxu1  ;;  %v17066_v35 = vld [vmem:[#allocation44_spill] sm:$0xff] }
 0x44a   : > { %v10283_v5 = vpop.eup %10282  ;;  %v14906_v59 = vadd.f32 %v6181_v3, %v5415_v13  ;;  %v5428_v28 = vmul.f32 %v10281_v61, %v14714_v6  ;;  %10304 = vpow2.f32 %v8132_v52  ;;  %v8940_v6 = vld [vmem:[%s16440_s5 + $0xe8] sm:$0xff]   ;;  %17063 = vst [vmem:[#allocation19_spill] sm:$0xff] %v14921_v49  ;;  %v14923_v25 = vpop.f32.mrb[205].mxu0  ;;  %v14931_v52 = vadd.f32 %v17066_v35, %v14291_v46  ;;  %v17073_v49 = vld [vmem:[#allocation28_spill] sm:$0xff] }
 0x44b   : > { %v10285_v55 = vpop.eup %10284  ;;  %v14916_v10 = vadd.f32 %v6071_v48, %v5426_v43  ;;  %v4083_v23 = vadd.f32 1.0, %v10283_v5  ;;  %17064 = vst [vmem:[#allocation34_spill] sm:$0xff] %v14923_v25  ;;  %10306 = vpow2.f32 %v8131_v44  ;;  %v14927_v11 = vpop.f32.mrb[190].mxu1  ;;  %8595 = vmatpush3.bf16.msra.mxu0 %v8939_v53  ;;  %v17067_v61 = vld [vmem:[#allocation45_spill] sm:$0xff]  ;;  %v8942_v5 = vld [vmem:[%s16440_s5 + $0xf0] sm:$0xff]  }
 0x44c   : > { %v10287_v3 = vpop.eup %10286  ;;  %v14925_v54 = vadd.f32 %v6145_v39, %v5428_v28  ;;  %v4085_v30 = vadd.f32 1.0, %v10285_v55  ;;  %17065 = vst [vmem:[#allocation35_spill] sm:$0xff] %v14927_v11  ;;  %v8941_v39 = vld [vmem:[%s16440_s5 + $0xa8] sm:$0xff]   ;;  %v14938_v43 = vadd.f32 %v17067_v61, %v14277_v51  ;;  %8596 = vmatprep.subr.bf16.mxu0 %v8940_v6  ;;  %v17068_v53 = vld [vmem:[#allocation46_spill] sm:$0xff]  ;;  %v17070_v61 = vld [vmem:[#allocation47_spill] sm:$0xff] }
 0x44d   : > { %v10289_v20 = vpop.eup %10288  ;;  %10308 = vrcp.f32 %v4083_v23  ;;  %v4096_v48 = vadd.f32 1.0, %v10287_v3  ;;  %v14945_v23 = vadd.f32 %v17068_v53, %v14287_v16 }
 0x44e   : > { %v10291_v9 = vpop.eup %10290  ;;  %10310 = vrcp.f32 %v4085_v30  ;;  %v4098_v7 = vadd.f32 1.0, %v10289_v20  ;;  %v8133_v20 = vmul.f32 -1.442695, %v14931_v52  ;;  %v8144_v11 = vmul.f32 -1.442695, %v14938_v43 }
 0x44f   : > { %v10293_v13 = vpop.eup %10292  ;;  %10312 = vrcp.f32 %v4096_v48  ;;  %v4097_v44 = vadd.f32 1.0, %v10291_v9  ;;  %v17069_v48 = vld [vmem:[#allocation20_spill] sm:$0xff]  ;;  %8597 = vmatpush3.bf16.msra.mxu0 %v8941_v39  ;;  %v8146_v25 = vmul.f32 -1.442695, %v14945_v23 }
 0x450   : > { %v10295_v28 = vpop.eup %10294  ;;  %10314 = vrcp.f32 %v4098_v7  ;;  %v4099_v55 = vadd.f32 1.0, %v10293_v13  ;;  %v14950_v35 = vadd.f32 %v17069_v48, %v14349_v1  ;;  %v14954_v7 = vadd.f32 %v17070_v61, %v14291_v46  ;;  %v17071_v13 = vld [vmem:[#allocation14_spill] sm:$0xff]  ;;  %8598 = vmatprep.subr.bf16.mxu0 %v8942_v5  ;;  %v8944_v61 = vld [vmem:[%s16440_s5 + $0xf8] sm:$0xff]   ;;  %v17074_v5 = vld [vmem:[#allocation48_spill] sm:$0xff] }
 0x451   : > { %v10297_v3 = vpop.eup %10296  ;;  %10316 = vrcp.f32 %v4097_v44  ;;  %v4110_v30 = vadd.f32 1.0, %v10295_v28  ;;  %v14958_v53 = vadd.f32 %v17071_v13, %v14277_v51  ;;  %v8943_v44 = vld [vmem:[%s16440_s5 + $0xb0] sm:$0xff]   ;;  %v14979_v17 = vadd.f32 %v17074_v5, %v14291_v46  ;;  %v17075_v5 = vld [vmem:[#allocation24_spill] sm:$0xff] }
 0x452   : > { %v10299_v6 = vpop.eup %10298  ;;  %10318 = vrcp.f32 %v4099_v55  ;;  %v4112_v9 = vadd.f32 1.0, %v10297_v3  ;;  %v17072_v55 = vld [vmem:[#allocation27_spill] sm:$0xff]  ;;  %v6421_v40 = vrot.slane %v14789_v22, %v17075_v5 }
 0x453   : > { %v10301_v28 = vpop.eup %10300  ;;  %10320 = vrcp.f32 %v4110_v30  ;;  %v4111_v48 = vadd.f32 1.0, %v10299_v6  ;;  %v14966_v3 = vadd.f32 %v17072_v55, %v14287_v16  ;;  %v14974_v30 = vadd.f32 %v17073_v49, %v14349_v1  ;;  %8599 = vmatpush3.bf16.msra.mxu0 %v8943_v44  ;;  %v8945_v49 = vld [vmem:[%s16440_s5 + $0xb8] sm:$0xff]  }
 0x454   : > { %v10303_v13 = vpop.eup %10302  ;;  %10322 = vrcp.f32 %v4112_v9  ;;  %v4113_v39 = vadd.f32 1.0, %v10301_v28  ;;  %v8145_v55 = vmul.f32 -1.442695, %v14950_v35  ;;  %v8147_v9 = vmul.f32 -1.442695, %v14954_v7  ;;  %8600 = vmatprep.subr.bf16.mxu0 %v8944_v61 }
 0x455   : > { %v10305_v6 = vpop.eup %10304  ;;  %10324 = vrcp.f32 %v4111_v48  ;;  %v4124_v50 = vadd.f32 1.0, %v10303_v13  ;;  %v8158_v28 = vmul.f32 -1.442695, %v14958_v53  ;;  %v8160_v15 = vmul.f32 -1.442695, %v14966_v3 }
 0x456   : > { %v10307_v47 = vpop.eup %10306  ;;  %10326 = vrcp.f32 %v4113_v39  ;;  %v4126_v8 = vadd.f32 1.0, %v10305_v6  ;;  %v8946_v39 = vld [vmem:[%s16440_s5 + $0x140] sm:$0xff]   ;;  %v14992_v6 = vpop.f32.mrb[206].mxu0  ;;  %v8159_v24 = vmul.f32 -1.442695, %v14974_v30  ;;  %v6482_v26 = vpack.c.bf16 %v6421_v40, %v6421_v40 }
 0x457   : > { %v10309_v48 = vpop.eup %10308  ;;  %10328 = vrcp.f32 %v4124_v50  ;;  %v4125_v13 = vadd.f32 1.0, %v10307_v47  ;;  %17076 = vst [vmem:[#allocation60_spill] sm:$0xff] %v14992_v6  ;;  %v17077_v50 = vld [vmem:[#allocation62_spill] sm:$0xff]  ;;  %v15000_v5 = vmul.f32 -1.442695, %v14979_v17  ;;  %v15006_v6 = vpop.f32.mrb[191].mxu1  ;;  %8601 = vmatpush3.bf16.msra.mxu0 %v8945_v49 }
 0x458   : > { %v10311_v44 = vpop.eup %10310  ;;  %v5427_v2 = vmul.f32 %v10309_v48, %v14728_v58  ;;  %10330 = vrcp.f32 %v4126_v8  ;;  %v6433_v47 = vrot.slane %v14789_v22, %v17077_v50  ;;  %17079 = vst [vmem:[#allocation18_spill] sm:$0xff] %v15006_v6  ;;  %v15008_v58 = vpop.f32.mrb[207].mxu0  ;;  %8608 = vmatprep.subr.bf16.mxu0 %v8946_v39 }
 0x459   : > { %v10313_v12 = vpop.eup %10312  ;;  %v5429_v61 = vmul.f32 %v10311_v44, %v14747_v4  ;;  %10332 = vrcp.f32 %v4125_v13  ;;  %17080 = vst [vmem:[#allocation10_spill] sm:$0xff] %v15008_v58  ;;  %v17081_v4 = vld [vmem:[#allocation50_spill] sm:$0xff] }
 0x45a   : > { %v10315_v8 = vpop.eup %10314  ;;  %v6109_v48 = vadd.f32 %v14903_v42, %v5427_v2  ;;  %v5440_v50 = vmul.f32 %v10313_v12, %v14759_v27  ;;  %10334 = vpow2.f32 %v8133_v20  ;;  %v15014_v13 = vadd.f32 %v17081_v4, %v14287_v16  ;;  %v8948_v27 = vld [vmem:[%s16440_s5 + $0x148] sm:$0xff]   ;;  %7464 = vmatmul.mubr.bf16.vlgmr.msra.gmra.mrb[220].mxu0 %v6482_v26 }
 0x45b   : > { %v10317_v44 = vpop.eup %10316  ;;  %v6183_v6 = vadd.f32 %v14906_v59, %v5429_v61  ;;  %v5442_v58 = vmul.f32 %v10315_v8, %v14769_v21  ;;  %10336 = vpow2.f32 %v8144_v11  ;;  %v6485_v20 = vpack.c.bf16 %v6433_v47, %v6433_v47  ;;  %v17082_v21 = vld [vmem:[#allocation7_spill] sm:$0xff]  ;;  %8609 = vmatpush3.bf16.msra.mxu0 %v8947_v31 }
 0x45c   : > { %v10319_v12 = vpop.eup %10318  ;;  %v6073_v2 = vadd.f32 %v14916_v10, %v5440_v50  ;;  %v5441_v42 = vmul.f32 %v10317_v44, %v14787_v57  ;;  %10338 = vpow2.f32 %v8146_v25  ;;  %v15030_v40 = vadd.f32 %v17082_v21, %v14349_v1  ;;  %v17083_v57 = vld [vmem:[#allocation51_spill] sm:$0xff]  ;;  %8610 = vmatprep.subr.bf16.mxu0 %v8948_v27  ;;  %v15047_v50 = vpop.f32.mrb[208].mxu0 }
 0x45d   : > { %v10321_v49 = vpop.eup %10320  ;;  %v6147_v4 = vadd.f32 %v14925_v54, %v5442_v58  ;;  %v5443_v59 = vmul.f32 %v10319_v12, %v14793_v41  ;;  %10340 = vpow2.f32 %v8145_v55  ;;  %v15035_v10 = vadd.f32 %v17083_v57, %v14291_v46  ;;  %7503 = vmatprep.mubr.bf16.mxu0 %v6485_v20  ;;  %v8949_v41 = vld [vmem:[%s16440_s5 + $0x108] sm:$0xff]  }
 0x45e   : > { %v10323_v11 = vpop.eup %10322  ;;  %v6110_v39 = vadd.f32 %v6109_v48, %v5441_v42  ;;  %v5454_v61 = vmul.f32 %v10321_v49, %v14797_v0  ;;  %10342 = vpow2.f32 %v8147_v9  ;;  %v8172_v26 = vmul.f32 -1.442695, %v15004_v18  ;;  %v8950_v0 = vld [vmem:[%s16440_s5 + $0x150] sm:$0xff]   ;;  %v15045_v9 = vpop.f32.mrb[192].mxu1 }
 0x45f   : > { %v10325_v25 = vpop.eup %10324  ;;  %v6184_v54 = vadd.f32 %v6183_v6, %v5443_v59  ;;  %v5456_v55 = vmul.f32 %v10323_v11, %v14817_v33  ;;  %10344 = vpow2.f32 %v8158_v28  ;;  %v8174_v6 = vmul.f32 -1.442695, %v15014_v13  ;;  %v15051_v33 = vpop.f32.mrb[193].mxu1  ;;  %8611 = vmatpush3.bf16.msra.mxu0 %v8949_v41 }
 0x460   : > { %v10327_v47 = vpop.eup %10326  ;;  %v6074_v58 = vadd.f32 %v6073_v2, %v5454_v61  ;;  %v5455_v8 = vmul.f32 %v10325_v25, %v14824_v62  ;;  %10346 = vpow2.f32 %v8160_v15  ;;  %17084 = vst [vmem:[#allocation21_spill] sm:$0xff] %v15051_v33  ;;  %v15053_v28 = vpop.f32.mrb[209].mxu0  ;;  %v8173_v27 = vmul.f32 -1.442695, %v15030_v40  ;;  %8612 = vmatprep.subr.bf16.mxu0 %v8950_v0 }
 0x461   : > { %17085 = vst [vmem:[#allocation36_spill] sm:$0xff] %v15053_v28  ;;  %v10329_v48 = vpop.eup %10328  ;;  %v6148_v31 = vadd.f32 %v6147_v4, %v5456_v55  ;;  %v5457_v44 = vmul.f32 %v10327_v47, %v14835_v56  ;;  %10348 = vpow2.f32 %v8159_v24  ;;  %v15057_v12 = vpop.f32.mrb[194].mxu1  ;;  %v8175_v20 = vmul.f32 -1.442695, %v15035_v10  ;;  %v8951_v56 = vld [vmem:[%s16440_s5 + $0x110] sm:$0xff]   ;;  %v8953_v55 = vld [vmem:[%s16440_s5 + $0x118] sm:$0xff]  }
 0x462   : > { %17086 = vst [vmem:[#allocation43_spill] sm:$0xff] %v15057_v12  ;;  %v15059_v42 = vpop.f32.mrb[210].mxu0  ;;  %v10331_v2 = vpop.eup %10330  ;;  %v6111_v62 = vadd.f32 %v6110_v39, %v5455_v8  ;;  %v5468_v15 = vmul.f32 %v10329_v48, %v14853_v63  ;;  %10350 = vpow2.f32 %v15000_v5  ;;  %v8952_v63 = vld [vmem:[%s16440_s5 + $0x158] sm:$0xff]  }
 0x463   : > { %17087 = vst [vmem:[#allocation64_spill] sm:$0xff] %v15059_v42  ;;  %v15067_v24 = vpop.f32.mrb[195].mxu1  ;;  %v15069_v49 = vpop.f32.mrb[211].mxu0  ;;  %v15071_v59 = vadd.f32 %v6184_v54, %v5457_v44  ;;  %v5470_v21 = vmul.f32 %v10331_v2, %v14867_v36  ;;  %10352 = vpow2.f32 %v8172_v26  ;;  %8613 = vmatpush3.bf16.msra.mxu0 %v8951_v56  ;;  %v17092_v44 = vld [vmem:[#allocation52_spill] sm:$0xff] }
 0x464   : > { %17088 = vst [vmem:[#allocation44_spill] sm:$0xff] %v15067_v24  ;;  %17089 = vst [vmem:[#allocation45_spill] sm:$0xff] %v15069_v49  ;;  %v10333_v4 = vpop.eup %10332  ;;  %v15077_v11 = vadd.f32 %v6074_v58, %v5468_v15  ;;  %10354 = vpow2.f32 %v8174_v6  ;;  %8614 = vmatprep.subr.bf16.mxu0 %v8952_v63  ;;  %v15090_v47 = vpop.f32.mrb[196].mxu1  ;;  %v17093_v15 = vld [vmem:[#allocation53_spill] sm:$0xff]  ;;  %v8955_v56 = vld [vmem:[%s16440_s5 + $0x120] sm:$0xff]  }
 0x465   : > { %v10335_v5 = vpop.eup %10334  ;;  %v5469_v39 = vmul.f32 %v10333_v4, %v14879_v45  ;;  %v15080_v57 = vadd.f32 %v6148_v31, %v5470_v21  ;;  %10356 = vpow2.f32 %v8173_v27  ;;  %v8954_v45 = vld [vmem:[%s16440_s5 + $0x160] sm:$0xff]   ;;  %17090 = vst [vmem:[#allocation46_spill] sm:$0xff] %v15090_v47  ;;  %v15092_v58 = vpop.f32.mrb[212].mxu0  ;;  %v15096_v27 = vadd.f32 %v17092_v44, %v14277_v51  ;;  %v17094_v63 = vld [vmem:[#allocation54_spill] sm:$0xff] }
 0x466   : > { %v10337_v61 = vpop.eup %10336  ;;  %v4127_v41 = vadd.f32 1.0, %v10335_v5  ;;  %10358 = vpow2.f32 %v8175_v20  ;;  %17091 = vst [vmem:[#allocation20_spill] sm:$0xff] %v15092_v58  ;;  %v15100_v20 = vadd.f32 %v17093_v15, %v14287_v16  ;;  %v15107_v5 = vadd.f32 %v17094_v63, %v14349_v1  ;;  %v15151_v24 = vpop.f32.mrb[197].mxu1 }
 0x467   : > { %v10339_v25 = vpop.eup %10338  ;;  %v15082_v54 = vadd.f32 %v6111_v62, %v5469_v39  ;;  %v4138_v36 = vadd.f32 1.0, %v10337_v61  ;;  %8615 = vmatpush3.bf16.msra.mxu0 %v8953_v55  ;;  %v8956_v39 = vld [vmem:[%s16440_s5 + $0x168] sm:$0xff]   ;;  %v17096_v55 = vld [vmem:[#allocation31_spill] sm:$0xff]  ;;  %17102 = vst [vmem:[#allocation47_spill] sm:$0xff] %v15151_v24 }
 0x468   : > { %v10341_v26 = vpop.eup %10340  ;;  %10360 = vrcp.f32 %v4127_v41  ;;  %v4140_v0 = vadd.f32 1.0, %v10339_v25  ;;  %8616 = vmatprep.subr.bf16.mxu0 %v8954_v45  ;;  %v17095_v25 = vld [vmem:[#allocation55_spill] sm:$0xff]  ;;  %v8186_v45 = vmul.f32 -1.442695, %v15096_v27 }
 0x469   : > { %v10343_v8 = vpop.eup %10342  ;;  %10362 = vrcp.f32 %v4138_v36  ;;  %v4139_v6 = vadd.f32 1.0, %v10341_v26  ;;  %v15114_v36 = vadd.f32 %v17095_v25, %v14291_v46  ;;  %v15118_v26 = vadd.f32 %v17096_v55, %v14277_v51  ;;  %v17099_v25 = vld [vmem:[#allocation57_spill] sm:$0xff] }
 0x46a   : > { %v10345_v48 = vpop.eup %10344  ;;  %10364 = vrcp.f32 %v4140_v0  ;;  %v4141_v31 = vadd.f32 1.0, %v10343_v8 }
 0x46b   : > { %v10347_v2 = vpop.eup %10346  ;;  %10366 = vrcp.f32 %v4139_v6  ;;  %v4152_v62 = vadd.f32 1.0, %v10345_v48  ;;  %v17097_v6 = vld [vmem:[#allocation56_spill] sm:$0xff]  ;;  %8617 = vmatpush3.bf16.msra.mxu0 %v8955_v56  ;;  %v8200_v56 = vmul.f32 -1.442695, %v15118_v26 }
 0x46c   : > { %v10349_v4 = vpop.eup %10348  ;;  %10368 = vrcp.f32 %v4141_v31  ;;  %v4154_v21 = vadd.f32 1.0, %v10347_v2  ;;  %v15123_v48 = vadd.f32 %v17097_v6, %v14287_v16  ;;  %v8188_v2 = vmul.f32 -1.442695, %v15100_v20  ;;  %8618 = vmatprep.subr.bf16.mxu0 %v8956_v39 }
 0x46d   : > { %v10351_v61 = vpop.eup %10350  ;;  %10370 = vrcp.f32 %v4152_v62  ;;  %v4153_v41 = vadd.f32 1.0, %v10349_v4  ;;  %v17098_v62 = vld [vmem:[#allocation9_spill] sm:$0xff]  ;;  %v8189_v6 = vmul.f32 -1.442695, %v15114_v36 }
 0x46e   : > { %v10353_v0 = vpop.eup %10352  ;;  %10372 = vrcp.f32 %v4154_v21  ;;  %v4155_v8 = vadd.f32 1.0, %v10351_v61  ;;  %v15128_v15 = vadd.f32 %v17098_v62, %v14349_v1  ;;  %v8957_v4 = vld [vmem:[%s16440_s5 + $0x128] sm:$0xff]   ;;  %v8187_v61 = vmul.f32 -1.442695, %v15107_v5 }
 0x46f   : > { %v10355_v31 = vpop.eup %10354  ;;  %10374 = vrcp.f32 %v4153_v41  ;;  %v4166_v44 = vadd.f32 1.0, %v10353_v0  ;;  %v15136_v41 = vadd.f32 %v17099_v25, %v14291_v46  ;;  %8619 = vmatpush3.bf16.msra.mxu0 %v8957_v4 }
 0x470   : > { %v10357_v21 = vpop.eup %10356  ;;  %10376 = vrcp.f32 %v4155_v8  ;;  %v4168_v63 = vadd.f32 1.0, %v10355_v31  ;;  %v8202_v8 = vmul.f32 -1.442695, %v15123_v48  ;;  %v17100_v31 = vld [vmem:[#allocation58_spill] sm:$0xff]  ;;  %v8201_v39 = vmul.f32 -1.442695, %v15128_v15 }
 0x471   : > { %v10359_v55 = vpop.eup %10358  ;;  %10378 = vrcp.f32 %v4166_v44  ;;  %v4167_v0 = vadd.f32 1.0, %v10357_v21  ;;  %v15143_v47 = vadd.f32 %v17100_v31, %v14277_v51  ;;  %v17101_v44 = vld [vmem:[#allocation8_spill] sm:$0xff]  ;;  %v8203_v31 = vmul.f32 -1.442695, %v15136_v41 }
 0x472   : > { %v10361_v62 = vpop.eup %10360  ;;  %10380 = vrcp.f32 %v4168_v63  ;;  %v4169_v58 = vadd.f32 1.0, %v10359_v55  ;;  %v15149_v21 = vadd.f32 %v17101_v44, %v14287_v16  ;;  %v15153_v63 = vpop.f32.mrb[213].mxu0 }
 0x473   : > { %v10363_v49 = vpop.eup %10362  ;;  %v5471_v25 = vmul.f32 %v10361_v62, %v14931_v52  ;;  %10382 = vrcp.f32 %v4167_v0  ;;  %17103 = vst [vmem:[#allocation14_spill] sm:$0xff] %v15153_v63  ;;  %v17104_v52 = vld [vmem:[#allocation76_spill] sm:$0xff]  ;;  %v8958_v62 = vld [vmem:[%s16440_s5 + $0x170] sm:$0xff]   ;;  %v17105_v63 = vld [vmem:[#allocation77_spill] sm:$0xff]  ;;  %v8214_v33 = vmul.f32 -1.442695, %v15143_v47 }
 0x474   : > { %v10365_v55 = vpop.eup %10364  ;;  %v5482_v42 = vmul.f32 %v10363_v49, %v14938_v43  ;;  %10384 = vrcp.f32 %v4169_v58  ;;  %v15159_v0 = vadd.f32 %v17104_v52, %v14349_v1  ;;  %v15168_v43 = vadd.f32 %v17105_v63, %v14291_v46  ;;  %v15170_v49 = vpop.f32.mrb[198].mxu1  ;;  %8620 = vmatprep.subr.bf16.mxu0 %v8958_v62  ;;  %v17107_v62 = vld [vmem:[#allocation32_spill] sm:$0xff] }
 0x475   : > { %v10367_v44 = vpop.eup %10366  ;;  %v6186_v4 = vadd.f32 %v15071_v59, %v5471_v25  ;;  %v5484_v24 = vmul.f32 %v10365_v55, %v14945_v23  ;;  %10386 = vpow2.f32 %v8186_v45  ;;  %v15172_v58 = vpop.f32.mrb[214].mxu0  ;;  %v8959_v23 = vld [vmem:[%s16440_s5 + $0x130] sm:$0xff]   ;;  %v8216_v63 = vmul.f32 -1.442695, %v15149_v21 }
 0x476   : > { %v10369_v52 = vpop.eup %10368  ;;  %v6076_v12 = vadd.f32 %v15077_v11, %v5482_v42  ;;  %v5483_v28 = vmul.f32 %v10367_v44, %v14950_v35  ;;  %10388 = vpow2.f32 %v8188_v2  ;;  %v15183_v55 = vpop.f32.mrb[199].mxu1  ;;  %v15191_v44 = vadd.f32 %v17107_v62, %v14277_v51  ;;  %8621 = vmatpush3.bf16.msra.mxu0 %v8959_v23 }
 0x477   : > { %v10371_v59 = vpop.eup %10370  ;;  %v6150_v45 = vadd.f32 %v15080_v57, %v5484_v24  ;;  %v5485_v25 = vmul.f32 %v10369_v52, %v14954_v7  ;;  %10390 = vpow2.f32 %v8187_v61  ;;  %v15185_v42 = vpop.f32.mrb[215].mxu0  ;;  %v8960_v61 = vld [vmem:[%s16440_s5 + $0x178] sm:$0xff]   ;;  %v17108_v52 = vld [vmem:[#allocation13_spill] sm:$0xff] }
 0x478   : > { %17106 = vst [vmem:[#allocation27_spill] sm:$0xff] %v15185_v42  ;;  %v10373_v35 = vpop.eup %10372  ;;  %v6113_v11 = vadd.f32 %v15082_v54, %v5483_v28  ;;  %v5496_v2 = vmul.f32 %v10371_v59, %v14958_v53  ;;  %10392 = vpow2.f32 %v8189_v6  ;;  %v6429_v28 = vrot.slane %v14789_v22, %v17108_v52  ;;  %8622 = vmatprep.subr.bf16.mxu0 %v8960_v61 }
 0x479   : > { %v10375_v24 = vpop.eup %10374  ;;  %v6187_v7 = vadd.f32 %v6186_v4, %v5485_v25  ;;  %v5498_v57 = vmul.f32 %v10373_v35, %v14966_v3  ;;  %10394 = vpow2.f32 %v8200_v56  ;;  %v8215_v59 = vmul.f32 -1.442695, %v15159_v0  ;;  %v8961_v4 = vld [vmem:[%s16440_s5 + $0x138] sm:$0xff]  }
 0x47a   : > { %v10377_v54 = vpop.eup %10376  ;;  %v6077_v53 = vadd.f32 %v6076_v12, %v5496_v2  ;;  %v5497_v6 = vmul.f32 %v10375_v24, %v14974_v30  ;;  %10396 = vpow2.f32 %v8202_v8  ;;  %v8217_v25 = vmul.f32 -1.442695, %v15168_v43  ;;  %8623 = vmatpush3.bf16.msra.mxu0 %v8961_v4 }
 0x47b   : > { %v10379_v3 = vpop.eup %10378  ;;  %v6151_v56 = vadd.f32 %v6150_v45, %v5498_v57  ;;  %v5499_v23 = vmul.f32 %v10377_v54, %v14979_v17  ;;  %10398 = vpow2.f32 %v8201_v39  ;;  %v8228_v30 = vmul.f32 -1.442695, %v15191_v44  ;;  %v15209_v45 = vpop.f32.mrb[200].mxu1 }
 0x47c   : > { %v10381_v22 = vpop.eup %10380  ;;  %v6114_v35 = vadd.f32 %v6113_v11, %v5497_v6  ;;  %v5510_v12 = vmul.f32 %v10379_v3, %v15004_v18  ;;  %10400 = vpow2.f32 %v8203_v31  ;;  %17109 = vst [vmem:[#allocation28_spill] sm:$0xff] %v15209_v45  ;;  %v6484_v17 = vpack.c.bf16 %v6429_v28, %v6429_v28  ;;  %v15214_v11 = vpop.f32.mrb[201].mxu1  ;;  %v17113_v3 = vld [vmem:[#allocation33_spill] sm:$0xff] }
 0x47d   : > { %v10383_v8 = vpop.eup %10382  ;;  %v6188_v2 = vadd.f32 %v6187_v7, %v5499_v23  ;;  %v5512_v62 = vmul.f32 %v10381_v22, %v15014_v13  ;;  %10402 = vpow2.f32 %v8214_v33  ;;  %17110 = vst [vmem:[#allocation48_spill] sm:$0xff] %v15214_v11  ;;  %v15219_v7 = vpop.f32.mrb[202].mxu1 }
 0x47e   : > { %v10385_v39 = vpop.eup %10384  ;;  %v15211_v24 = vadd.f32 %v6077_v53, %v5510_v12  ;;  %v5511_v57 = vmul.f32 %v10383_v8, %v15030_v40  ;;  %10404 = vpow2.f32 %v8216_v63  ;;  %17111 = vst [vmem:[#allocation49_spill] sm:$0xff] %v15219_v7  ;;  %7504 = vmatmul.mubr.bf16.vlgmr.msra.gmra.mrb[224].mxu0 %v6484_v17  ;;  %v15223_v54 = vpop.f32.mrb[203].mxu1 }
 0x47f   : > { %v10387_v18 = vpop.eup %10386  ;;  %v15216_v31 = vadd.f32 %v6151_v56, %v5512_v62  ;;  %v5513_v61 = vmul.f32 %v10385_v39, %v15035_v10  ;;  %10406 = vpow2.f32 %v8215_v59  ;;  %17112 = vst [vmem:[#allocation50_spill] sm:$0xff] %v15223_v54  ;;  %v15229_v56 = vadd.f32 %v17113_v3, %v14287_v16  ;;  %v15231_v12 = vpop.f32.mrb[204].mxu1  ;;  %v17120_v3 = vld [vmem:[#allocation63_spill] sm:$0xff] }
 0x480   : > { %v10389_v13 = vpop.eup %10388  ;;  %v15221_v33 = vadd.f32 %v6114_v35, %v5511_v57  ;;  %v4180_v28 = vadd.f32 1.0, %v10387_v18  ;;  %10408 = vpow2.f32 %v8217_v25  ;;  %17114 = vst [vmem:[#allocation7_spill] sm:$0xff] %v15231_v12  ;;  %v17116_v57 = vld [vmem:[#allocation59_spill] sm:$0xff] }
 0x481   : > { %v10391_v40 = vpop.eup %10390  ;;  %v15225_v63 = vadd.f32 %v6188_v2, %v5513_v61  ;;  %v4182_v53 = vadd.f32 1.0, %v10389_v13  ;;  %10410 = vpow2.f32 %v8228_v30  ;;  %v15233_v2 = vpop.f32.mrb[205].mxu1  ;;  %v8230_v39 = vmul.f32 -1.442695, %v15229_v56 }
 0x482   : > { %v10393_v6 = vpop.eup %10392  ;;  %10412 = vrcp.f32 %v4180_v28  ;;  %v4181_v4 = vadd.f32 1.0, %v10391_v40  ;;  %17115 = vst [vmem:[#allocation51_spill] sm:$0xff] %v15233_v2  ;;  %v15238_v18 = vadd.f32 %v17116_v57, %v14349_v1  ;;  %v15240_v61 = vpop.f32.mrb[206].mxu1  ;;  %v17118_v40 = vld [vmem:[#allocation61_spill] sm:$0xff]  ;;  %v17123_v57 = vld [vmem:[#allocation67_spill] sm:$0xff] }
 0x483   : > { %v10395_v10 = vpop.eup %10394  ;;  %10414 = vrcp.f32 %v4182_v53  ;;  %v4183_v59 = vadd.f32 1.0, %v10393_v6  ;;  %17117 = vst [vmem:[#allocation52_spill] sm:$0xff] %v15240_v61  ;;  %v15244_v53 = vadd.f32 %v17118_v40, %v14291_v46  ;;  %v17119_v6 = vld [vmem:[#allocation37_spill] sm:$0xff]  ;;  %v15264_v40 = vadd.f32 %v17123_v57, %v14277_v51  ;;  %v15276_v12 = vpop.f32.mrb[207].mxu1 }
 0x484   : > { %v10397_v23 = vpop.eup %10396  ;;  %10416 = vrcp.f32 %v4181_v4  ;;  %v4194_v25 = vadd.f32 1.0, %v10395_v10  ;;  %v15248_v4 = vadd.f32 %v17119_v6, %v14277_v51  ;;  %v8229_v6 = vmul.f32 -1.442695, %v15238_v18  ;;  %17125 = vst [vmem:[#allocation53_spill] sm:$0xff] %v15276_v12 }
 0x485   : > { %v10399_v22 = vpop.eup %10398  ;;  %10418 = vrcp.f32 %v4183_v59  ;;  %v4196_v35 = vadd.f32 1.0, %v10397_v23  ;;  %v15252_v23 = vadd.f32 %v17120_v3, %v14287_v16  ;;  %v17124_v3 = vld [vmem:[#allocation68_spill] sm:$0xff] }
 0x486   : > { %v10401_v8 = vpop.eup %10400  ;;  %10420 = vrcp.f32 %v4194_v25  ;;  %v4195_v30 = vadd.f32 1.0, %v10399_v22  ;;  %v17121_v25 = vld [vmem:[#allocation65_spill] sm:$0xff] }
 0x487   : > { %v10403_v62 = vpop.eup %10402  ;;  %10422 = vrcp.f32 %v4196_v35  ;;  %v4197_v17 = vadd.f32 1.0, %v10401_v8  ;;  %v15256_v22 = vadd.f32 %v17121_v25, %v14349_v1  ;;  %v15269_v25 = vadd.f32 %v17124_v3, %v14287_v16 }
 0x488   : > { %v10405_v13 = vpop.eup %10404  ;;  %10424 = vrcp.f32 %v4195_v30  ;;  %v4208_v28 = vadd.f32 1.0, %v10403_v62  ;;  %v17122_v30 = vld [vmem:[#allocation66_spill] sm:$0xff] }
 0x489   : > { %v10407_v10 = vpop.eup %10406  ;;  %10426 = vrcp.f32 %v4197_v17  ;;  %v4210_v59 = vadd.f32 1.0, %v10405_v13  ;;  %v15260_v62 = vadd.f32 %v17122_v30, %v14291_v46  ;;  %v8242_v30 = vmul.f32 -1.442695, %v15248_v4 }
 0x48a   : > { %v10409_v35 = vpop.eup %10408  ;;  %10428 = vrcp.f32 %v4208_v28  ;;  %v4209_v8 = vadd.f32 1.0, %v10407_v10  ;;  %v8231_v10 = vmul.f32 -1.442695, %v15244_v53 }
 0x48b   : > { %v10411_v17 = vpop.eup %10410  ;;  %10430 = vrcp.f32 %v4210_v59  ;;  %v4211_v13 = vadd.f32 1.0, %v10409_v35  ;;  %v8244_v59 = vmul.f32 -1.442695, %v15252_v23  ;;  %v8243_v35 = vmul.f32 -1.442695, %v15256_v22 }
 0x48c   : > { %v10413_v61 = vpop.eup %10412  ;;  %10432 = vrcp.f32 %v4209_v8  ;;  %v4222_v28 = vadd.f32 1.0, %v10411_v17  ;;  %v8245_v8 = vmul.f32 -1.442695, %v15260_v62  ;;  %v8256_v17 = vmul.f32 -1.442695, %v15264_v40 }
 0x48d   : > { %v10415_v2 = vpop.eup %10414  ;;  %v5524_v57 = vmul.f32 %v10413_v61, %v15096_v27  ;;  %10434 = vrcp.f32 %v4211_v13  ;;  %v8258_v61 = vmul.f32 -1.442695, %v15269_v25 }
 0x48e   : > { %v10417_v54 = vpop.eup %10416  ;;  %v5526_v3 = vmul.f32 %v10415_v2, %v15100_v20  ;;  %10436 = vrcp.f32 %v4222_v28  ;;  %v17126_v20 = vld [vmem:[#allocation12_spill] sm:$0xff] }
 0x48f   : > { %v10419_v7 = vpop.eup %10418  ;;  %v6079_v11 = vadd.f32 %v15211_v24, %v5524_v57  ;;  %v5525_v27 = vmul.f32 %v10417_v54, %v15107_v5  ;;  %10438 = vpow2.f32 %v8230_v39  ;;  %v15288_v2 = vadd.f32 %v17126_v20, %v14349_v1  ;;  %v17127_v5 = vld [vmem:[#allocation69_spill] sm:$0xff]  ;;  %v15302_v57 = vpop.f32.mrb[208].mxu1 }
 0x490   : > { %v10421_v13 = vpop.eup %10420  ;;  %v6153_v45 = vadd.f32 %v15216_v31, %v5526_v3  ;;  %v5527_v12 = vmul.f32 %v10419_v7, %v15114_v36  ;;  %10440 = vpow2.f32 %v8229_v6  ;;  %v15294_v54 = vadd.f32 %v17127_v5, %v14291_v46  ;;  %v17128_v7 = vld [vmem:[#allocation70_spill] sm:$0xff] }
 0x491   : > { %v10423_v28 = vpop.eup %10422  ;;  %v6116_v42 = vadd.f32 %v15221_v33, %v5525_v27  ;;  %v5538_v24 = vmul.f32 %v10421_v13, %v15118_v26  ;;  %10442 = vpow2.f32 %v8231_v10  ;;  %v15300_v6 = vadd.f32 %v17128_v7, %v14277_v51  ;;  %v17129_v10 = vld [vmem:[#allocation71_spill] sm:$0xff]  ;;  %v15309_v13 = vpop.f32.mrb[209].mxu1 }
 0x492   : > { %v10425_v39 = vpop.eup %10424  ;;  %v6190_v31 = vadd.f32 %v15225_v63, %v5527_v12  ;;  %v5540_v36 = vmul.f32 %v10423_v28, %v15123_v48  ;;  %10444 = vpow2.f32 %v8242_v30  ;;  %v15307_v27 = vadd.f32 %v17129_v10, %v14287_v16  ;;  %v15313_v20 = vpop.f32.mrb[210].mxu1 }
 0x493   : > { %v10427_v33 = vpop.eup %10426  ;;  %v6080_v3 = vadd.f32 %v6079_v11, %v5538_v24  ;;  %v5539_v26 = vmul.f32 %v10425_v39, %v15128_v15  ;;  %10446 = vpow2.f32 %v8244_v59  ;;  %v8257_v30 = vmul.f32 -1.442695, %v15288_v2  ;;  %v15317_v24 = vpop.f32.mrb[211].mxu1 }
 0x494   : > { %v10429_v63 = vpop.eup %10428  ;;  %v6154_v48 = vadd.f32 %v6153_v45, %v5540_v36  ;;  %v5541_v12 = vmul.f32 %v10427_v33, %v15136_v41  ;;  %10448 = vpow2.f32 %v8243_v35  ;;  %v8259_v59 = vmul.f32 -1.442695, %v15294_v54 }
 0x495   : > { %v10431_v28 = vpop.eup %10430  ;;  %v6117_v11 = vadd.f32 %v6116_v42, %v5539_v26  ;;  %v5552_v15 = vmul.f32 %v10429_v63, %v15143_v47  ;;  %10450 = vpow2.f32 %v8245_v8  ;;  %v8270_v41 = vmul.f32 -1.442695, %v15300_v6 }
 0x496   : > { %v10433_v5 = vpop.eup %10432  ;;  %v6191_v39 = vadd.f32 %v6190_v31, %v5541_v12  ;;  %v5554_v45 = vmul.f32 %v10431_v28, %v15149_v21  ;;  %10452 = vpow2.f32 %v8256_v17  ;;  %v8272_v42 = vmul.f32 -1.442695, %v15307_v27 }
 0x497   : > { %v10435_v35 = vpop.eup %10434  ;;  %v6081_v36 = vadd.f32 %v6080_v3, %v5552_v15  ;;  %v5553_v7 = vmul.f32 %v10433_v5, %v15159_v0  ;;  %10454 = vpow2.f32 %v8258_v61  ;;  %v15331_v0 = vpop.f32.mrb[212].mxu1 }
 0x498   : > { %v10437_v47 = vpop.eup %10436  ;;  %v15323_v8 = vadd.f32 %v6154_v48, %v5554_v45  ;;  %v5555_v33 = vmul.f32 %v10435_v35, %v15168_v43  ;;  %10456 = vpow2.f32 %v8257_v30  ;;  %v15335_v43 = vpop.f32.mrb[213].mxu1 }
 0x499   : > { %v10439_v26 = vpop.eup %10438  ;;  %v15326_v31 = vadd.f32 %v6117_v11, %v5553_v7  ;;  %v5566_v21 = vmul.f32 %v10437_v47, %v15191_v44  ;;  %10458 = vpow2.f32 %v8259_v59  ;;  %v15337_v28 = vpop.f32.mrb[214].mxu1 }
 0x49a   : > { %v10441_v17 = vpop.eup %10440  ;;  %v15329_v10 = vadd.f32 %v6191_v39, %v5555_v33  ;;  %v4224_v3 = vadd.f32 1.0, %v10439_v26  ;;  %10460 = vpow2.f32 %v8270_v41  ;;  %v15339_v15 = vpop.f32.mrb[215].mxu1  ;;  %v17130_v39 = vld [vmem:[#allocation15_spill] sm:$0xff]  ;;  %v15347_v33 = vadd.f32 %v14682_v60, %v14291_v46 }
 0x49b   : > { %v10443_v61 = vpop.eup %10442  ;;  %v15333_v63 = vadd.f32 %v6081_v36, %v5566_v21  ;;  %v4223_v48 = vadd.f32 1.0, %v10441_v17  ;;  %10462 = vpow2.f32 %v8272_v42  ;;  %v15343_v45 = vadd.f32 %v17130_v39, %v14349_v1 }
 0x49c   : > { %v10445_v12 = vpop.eup %10444  ;;  %10464 = vrcp.f32 %v4224_v3  ;;  %v4225_v30 = vadd.f32 1.0, %v10443_v61  ;;  %v15351_v26 = vadd.f32 %v14693_v38, %v14277_v51  ;;  %v15356_v61 = vadd.f32 %v14695_v14, %v14287_v16 }
 0x49d   : > { %v10447_v44 = vpop.eup %10446  ;;  %10466 = vrcp.f32 %v4223_v48  ;;  %v4236_v11 = vadd.f32 1.0, %v10445_v12  ;;  %v8271_v3 = vmul.f32 -1.442695, %v15343_v45  ;;  %v15360_v60 = vadd.f32 %v14703_v19, %v14349_v1 }
 0x49e   : > { %v10449_v59 = vpop.eup %10448  ;;  %10468 = vrcp.f32 %v4225_v30  ;;  %v4238_v5 = vadd.f32 1.0, %v10447_v44  ;;  %v15364_v38 = vadd.f32 %v14705_v32, %v14291_v46  ;;  %v15372_v14 = vadd.f32 %v14732_v37, %v14287_v16 }
 0x49f   : > { %v10451_v41 = vpop.eup %10450  ;;  %10470 = vrcp.f32 %v4236_v11  ;;  %v4237_v35 = vadd.f32 1.0, %v10449_v59  ;;  %v15368_v11 = vadd.f32 %v14730_v29, %v14277_v51  ;;  %v8273_v19 = vmul.f32 -1.442695, %v15347_v33 }
 0x4a0   : > { %v10453_v36 = vpop.eup %10452  ;;  %10472 = vrcp.f32 %v4238_v5  ;;  %v4239_v7 = vadd.f32 1.0, %v10451_v41  ;;  %v8284_v39 = vmul.f32 -1.442695, %v15351_v26  ;;  %v15379_v29 = vadd.f32 %v14737_v34, %v14349_v1 }
 0x4a1   : > { %v10455_v42 = vpop.eup %10454  ;;  %10474 = vrcp.f32 %v4237_v35  ;;  %v4250_v47 = vadd.f32 1.0, %v10453_v36  ;;  %v8286_v35 = vmul.f32 -1.442695, %v15356_v61 }
 0x4a2   : > { %v10457_v21 = vpop.eup %10456  ;;  %10476 = vrcp.f32 %v4239_v7  ;;  %v4252_v17 = vadd.f32 1.0, %v10455_v42  ;;  %v8285_v7 = vmul.f32 -1.442695, %v15360_v60  ;;  %v8287_v42 = vmul.f32 -1.442695, %v15364_v38 }
 0x4a3   : > { %v10459_v48 = vpop.eup %10458  ;;  %10478 = vrcp.f32 %v4250_v47  ;;  %v4251_v12 = vadd.f32 1.0, %v10457_v21  ;;  %v15384_v47 = vpop.f32.mrb[216].mxu1 }
 0x4a4   : > { %v10461_v30 = vpop.eup %10460  ;;  %10480 = vrcp.f32 %v4252_v17  ;;  %v4253_v44 = vadd.f32 1.0, %v10459_v48  ;;  %17131 = vst [vmem:[#allocation54_spill] sm:$0xff] %v15384_v47  ;;  %v8298_v48 = vmul.f32 -1.442695, %v15368_v11  ;;  %v15389_v34 = vpop.f32.mrb[217].mxu1 }
 0x4a5   : > { %v10463_v59 = vpop.eup %10462  ;;  %10482 = vrcp.f32 %v4251_v12  ;;  %v4264_v5 = vadd.f32 1.0, %v10461_v30  ;;  %v8300_v12 = vmul.f32 -1.442695, %v15372_v14  ;;  %17132 = vst [vmem:[#allocation55_spill] sm:$0xff] %v15389_v34  ;;  %v8299_v34 = vmul.f32 -1.442695, %v15379_v29 }
 0x4a6   : > { %v10465_v32 = vpop.eup %10464  ;;  %10484 = vrcp.f32 %v4253_v44  ;;  %v4266_v41 = vadd.f32 1.0, %v10463_v59  ;;  %v17133_v59 = vld [vmem:[#allocation72_spill] sm:$0xff] }
 0x4a7   : > { %v10467_v36 = vpop.eup %10466  ;;  %v5568_v37 = vmul.f32 %v10465_v32, %v15229_v56  ;;  %10486 = vrcp.f32 %v4264_v5  ;;  %v15395_v5 = vadd.f32 %v17133_v59, %v14291_v46  ;;  %v15397_v32 = vpop.f32.mrb[218].mxu1 }
 0x4a8   : > { %v10469_v21 = vpop.eup %10468  ;;  %v5567_v17 = vmul.f32 %v10467_v36, %v15238_v18  ;;  %10488 = vrcp.f32 %v4266_v41  ;;  %17134 = vst [vmem:[#allocation31_spill] sm:$0xff] %v15397_v32  ;;  %v15402_v47 = vpop.f32.mrb[219].mxu1 }
 0x4a9   : > { %v10471_v30 = vpop.eup %10470  ;;  %v6156_v56 = vadd.f32 %v15323_v8, %v5568_v37  ;;  %v5569_v44 = vmul.f32 %v10469_v21, %v15244_v53  ;;  %10490 = vpow2.f32 %v8271_v3  ;;  %17135 = vst [vmem:[#allocation56_spill] sm:$0xff] %v15402_v47  ;;  %v17136_v37 = vld [vmem:[#allocation73_spill] sm:$0xff] }
 0x4aa   : > { %v10473_v18 = vpop.eup %10472  ;;  %v6119_v41 = vadd.f32 %v15326_v31, %v5567_v17  ;;  %v5580_v36 = vmul.f32 %v10471_v30, %v15248_v4  ;;  %10492 = vpow2.f32 %v8273_v19  ;;  %v15408_v21 = vadd.f32 %v17136_v37, %v14277_v51  ;;  %v17137_v19 = vld [vmem:[#allocation29_spill] sm:$0xff] }
 0x4ab   : > { %v10475_v8 = vpop.eup %10474  ;;  %v6193_v53 = vadd.f32 %v15329_v10, %v5569_v44  ;;  %v5582_v3 = vmul.f32 %v10473_v18, %v15252_v23  ;;  %10494 = vpow2.f32 %v8284_v39  ;;  %v15414_v17 = vadd.f32 %v17137_v19, %v14287_v16  ;;  %v17138_v23 = vld [vmem:[#allocation6_spill] sm:$0xff] }
 0x4ac   : > { %v10477_v59 = vpop.eup %10476  ;;  %v6083_v31 = vadd.f32 %v15333_v63, %v5580_v36  ;;  %v5581_v4 = vmul.f32 %v10475_v8, %v15256_v22  ;;  %10496 = vpow2.f32 %v8286_v35  ;;  %v15419_v39 = vadd.f32 %v17138_v23, %v14349_v1 }
 0x4ad   : > { %v10479_v30 = vpop.eup %10478  ;;  %v6157_v47 = vadd.f32 %v6156_v56, %v5582_v3  ;;  %v5583_v10 = vmul.f32 %v10477_v59, %v15260_v62  ;;  %10498 = vpow2.f32 %v8285_v7  ;;  %v8301_v22 = vmul.f32 -1.442695, %v15395_v5  ;;  %v15425_v62 = vpop.f32.mrb[220].mxu1 }
 0x4ae   : > { %v10481_v44 = vpop.eup %10480  ;;  %v6120_v18 = vadd.f32 %v6119_v41, %v5581_v4  ;;  %v5594_v63 = vmul.f32 %v10479_v30, %v15264_v40  ;;  %10500 = vpow2.f32 %v8287_v42  ;;  %v8312_v56 = vmul.f32 -1.442695, %v15408_v21  ;;  %17139 = vst [vmem:[#allocation9_spill] sm:$0xff] %v15425_v62  ;;  %v15429_v40 = vpop.f32.mrb[221].mxu1 }
 0x4af   : > { %v10483_v35 = vpop.eup %10482  ;;  %v6194_v36 = vadd.f32 %v6193_v53, %v5583_v10  ;;  %v5596_v8 = vmul.f32 %v10481_v44, %v15269_v25  ;;  %10502 = vpow2.f32 %v8298_v48  ;;  %v8314_v41 = vmul.f32 -1.442695, %v15414_v17  ;;  %17140 = vst [vmem:[#allocation57_spill] sm:$0xff] %v15429_v40  ;;  %v15433_v48 = vpop.f32.mrb[222].mxu1 }
 0x4b0   : > { %v10485_v7 = vpop.eup %10484  ;;  %v6084_v3 = vadd.f32 %v6083_v31, %v5594_v63  ;;  %v5595_v37 = vmul.f32 %v10483_v35, %v15288_v2  ;;  %10504 = vpow2.f32 %v8300_v12  ;;  %v8313_v25 = vmul.f32 -1.442695, %v15419_v39  ;;  %17141 = vst [vmem:[#allocation58_spill] sm:$0xff] %v15433_v48  ;;  %v15438_v2 = vpop.f32.mrb[223].mxu1 }
 0x4b1   : > { %v10487_v42 = vpop.eup %10486  ;;  %v6158_v59 = vadd.f32 %v6157_v47, %v5596_v8  ;;  %v5597_v53 = vmul.f32 %v10485_v7, %v15294_v54  ;;  %10506 = vpow2.f32 %v8299_v34  ;;  %17142 = vst [vmem:[#allocation8_spill] sm:$0xff] %v15438_v2 }
 0x4b2   : > { %v10489_v4 = vpop.eup %10488  ;;  %v15435_v19 = vadd.f32 %v6120_v18, %v5595_v37  ;;  %v5608_v31 = vmul.f32 %v10487_v42, %v15300_v6  ;;  %10508 = vpow2.f32 %v8301_v22 }
 0x4b3   : > { %v10491_v12 = vpop.eup %10490  ;;  %v15440_v30 = vadd.f32 %v6194_v36, %v5597_v53  ;;  %v5610_v47 = vmul.f32 %v10489_v4, %v15307_v27  ;;  %10510 = vpow2.f32 %v8312_v56  ;;  %v15447_v36 = vpop.f32.mrb[224].mxu1  ;;  %v17144_v56 = vld [vmem:[#allocation30_spill] sm:$0xff] }
 0x4b4   : > { %v10493_v54 = vpop.eup %10492  ;;  %v15443_v34 = vadd.f32 %v6084_v3, %v5608_v31  ;;  %v4265_v10 = vadd.f32 1.0, %v10491_v12  ;;  %10512 = vpow2.f32 %v8314_v41  ;;  %17143 = vst [vmem:[#allocation76_spill] sm:$0xff] %v15447_v36  ;;  %v15451_v7 = vadd.f32 %v17144_v56, %v14291_v46  ;;  %v15453_v3 = vpop.f32.mrb[225].mxu1  ;;  %v17148_v12 = vld [vmem:[#allocation38_spill] sm:$0xff] }
 0x4b5   : > { %v10495_v23 = vpop.eup %10494  ;;  %v15445_v44 = vadd.f32 %v6158_v59, %v5610_v47  ;;  %v4267_v18 = vadd.f32 1.0, %v10493_v54  ;;  %10514 = vpow2.f32 %v8313_v25  ;;  %17145 = vst [vmem:[#allocation77_spill] sm:$0xff] %v15453_v3  ;;  %v15455_v42 = vpop.f32.mrb[226].mxu1  ;;  %v15461_v47 = vadd.f32 %v17148_v12, %v14277_v51  ;;  %v17149_v54 = vld [vmem:[#allocation11_spill] sm:$0xff] }
 0x4b6   : > { %v10497_v6 = vpop.eup %10496  ;;  %10516 = vrcp.f32 %v4265_v10  ;;  %v4278_v63 = vadd.f32 1.0, %v10495_v23  ;;  %17146 = vst [vmem:[#allocation32_spill] sm:$0xff] %v15455_v42  ;;  %v15457_v25 = vpop.f32.mrb[227].mxu1  ;;  %v15465_v10 = vadd.f32 %v17149_v54, %v14287_v16  ;;  %v17154_v54 = vld [vmem:[#allocation42_spill] sm:$0xff] }
 0x4b7   : > { %v10499_v22 = vpop.eup %10498  ;;  %10518 = vrcp.f32 %v4267_v18  ;;  %v4280_v35 = vadd.f32 1.0, %v10497_v6  ;;  %17147 = vst [vmem:[#allocation33_spill] sm:$0xff] %v15457_v25  ;;  %v8315_v6 = vmul.f32 -1.442695, %v15451_v7 }
 0x4b8   : > { %v10501_v27 = vpop.eup %10500  ;;  %10520 = vrcp.f32 %v4278_v63  ;;  %v4279_v8 = vadd.f32 1.0, %v10499_v22  ;;  %v17150_v63 = vld [vmem:[#allocation17_spill] sm:$0xff]  ;;  %v8328_v25 = vmul.f32 -1.442695, %v15465_v10 }
 0x4b9   : > { %v10503_v37 = vpop.eup %10502  ;;  %10522 = vrcp.f32 %v4280_v35  ;;  %v4281_v41 = vadd.f32 1.0, %v10501_v27  ;;  %v15470_v22 = vadd.f32 %v17150_v63, %v14349_v1  ;;  %v15486_v63 = vadd.f32 %v17154_v54, %v14349_v1 }
 0x4ba   : > { %v10505_v59 = vpop.eup %10504  ;;  %10524 = vrcp.f32 %v4279_v8  ;;  %v4292_v53 = vadd.f32 1.0, %v10503_v37  ;;  %v17151_v8 = vld [vmem:[#allocation39_spill] sm:$0xff]  ;;  %v17152_v37 = vld [vmem:[#allocation40_spill] sm:$0xff] }
 0x4bb   : > { %v10507_v4 = vpop.eup %10506  ;;  %10526 = vrcp.f32 %v4281_v41  ;;  %v4294_v31 = vadd.f32 1.0, %v10505_v59  ;;  %v15474_v56 = vadd.f32 %v17151_v8, %v14291_v46  ;;  %v15478_v41 = vadd.f32 %v17152_v37, %v14277_v51  ;;  %v15490_v37 = vpop.f32.mrb[228].mxu1 }
 0x4bc   : > { %v10509_v23 = vpop.eup %10508  ;;  %10528 = vrcp.f32 %v4292_v53  ;;  %v4293_v18 = vadd.f32 1.0, %v10507_v4  ;;  %v17153_v4 = vld [vmem:[#allocation41_spill] sm:$0xff]  ;;  %v8326_v8 = vmul.f32 -1.442695, %v15461_v47  ;;  %17155 = vst [vmem:[#allocation59_spill] sm:$0xff] %v15490_v37  ;;  %v15497_v54 = vpop.f32.mrb[229].mxu1 }
 0x4bd   : > { %v10511_v35 = vpop.eup %10510  ;;  %10530 = vrcp.f32 %v4294_v31  ;;  %v4295_v27 = vadd.f32 1.0, %v10509_v23  ;;  %v15482_v12 = vadd.f32 %v17153_v4, %v14287_v16  ;;  %v17156_v4 = vld [vmem:[#allocation22_spill] sm:$0xff]  ;;  %17157 = vst [vmem:[#allocation61_spill] sm:$0xff] %v15497_v54  ;;  %v8340_v2 = vmul.f32 -1.442695, %v15478_v41  ;;  %v15502_v37 = vpop.f32.mrb[230].mxu1 }
 0x4be   : > { %v10513_v59 = vpop.eup %10512  ;;  %10532 = vrcp.f32 %v4293_v18  ;;  %v4306_v53 = vadd.f32 1.0, %v10511_v35  ;;  %v8327_v35 = vmul.f32 -1.442695, %v15470_v22  ;;  %v15495_v3 = vadd.f32 %v17156_v4, %v14291_v46  ;;  %17158 = vst [vmem:[#allocation37_spill] sm:$0xff] %v15502_v37  ;;  %v15507_v40 = vpop.f32.mrb[231].mxu1 }
 0x4bf   : > { %v10515_v31 = vpop.eup %10514  ;;  %10534 = vrcp.f32 %v4295_v27  ;;  %v4308_v23 = vadd.f32 1.0, %v10513_v59  ;;  %v8329_v59 = vmul.f32 -1.442695, %v15474_v56  ;;  %v8342_v48 = vmul.f32 -1.442695, %v15482_v12  ;;  %17159 = vst [vmem:[#allocation63_spill] sm:$0xff] %v15507_v40 }
 0x4c0   : > { %v10517_v42 = vpop.eup %10516  ;;  %10536 = vrcp.f32 %v4306_v53  ;;  %v4307_v18 = vadd.f32 1.0, %v10515_v31  ;;  %v8341_v4 = vmul.f32 -1.442695, %v15486_v63 }
 0x4c1   : > { %v10519_v36 = vpop.eup %10518  ;;  %v5609_v27 = vmul.f32 %v10517_v42, %v15343_v45  ;;  %10538 = vrcp.f32 %v4308_v23  ;;  %v17160_v23 = vld [vmem:[#allocation75_spill] sm:$0xff] }
 0x4c2   : > { %v10521_v53 = vpop.eup %10520  ;;  %v5611_v31 = vmul.f32 %v10519_v36, %v15347_v33  ;;  %10540 = vrcp.f32 %v4307_v18  ;;  %v15513_v62 = vadd.f32 %v17160_v23, %v14277_v51  ;;  %v8343_v18 = vmul.f32 -1.442695, %v15495_v3 }
 0x4c3   : > { %v10523_v54 = vpop.eup %10522  ;;  %v6122_v45 = vadd.f32 %v15435_v19, %v5609_v27  ;;  %v5622_v42 = vmul.f32 %v10521_v53, %v15351_v26  ;;  %10542 = vpow2.f32 %v8315_v6  ;;  %v17161_v26 = vld [vmem:[#allocation16_spill] sm:$0xff] }
 0x4c4   : > { %v10525_v37 = vpop.eup %10524  ;;  %v6196_v33 = vadd.f32 %v15440_v30, %v5611_v31  ;;  %v5624_v36 = vmul.f32 %v10523_v54, %v15356_v61  ;;  %10544 = vpow2.f32 %v8326_v8  ;;  %v15522_v6 = vadd.f32 %v17161_v26, %v14287_v16  ;;  %v17162_v61 = vld [vmem:[#allocation19_spill] sm:$0xff] }
 0x4c5   : > { %v10527_v32 = vpop.eup %10526  ;;  %v6086_v40 = vadd.f32 %v15443_v34, %v5622_v42  ;;  %v5623_v19 = vmul.f32 %v10525_v37, %v15360_v60  ;;  %10546 = vpow2.f32 %v8328_v25  ;;  %v15528_v8 = vadd.f32 %v17162_v61, %v14349_v1  ;;  %v17163_v60 = vld [vmem:[#allocation34_spill] sm:$0xff]  ;;  %v15535_v37 = vpop.f32.mrb[232].mxu1 }
 0x4c6   : > { %v10529_v27 = vpop.eup %10528  ;;  %v6160_v53 = vadd.f32 %v15445_v44, %v5624_v36  ;;  %v5625_v30 = vmul.f32 %v10527_v32, %v15364_v38  ;;  %10548 = vpow2.f32 %v8327_v35  ;;  %v15533_v25 = vadd.f32 %v17163_v60, %v14291_v46  ;;  %v15539_v35 = vpop.f32.mrb[233].mxu1 }
 0x4c7   : > { %v10531_v54 = vpop.eup %10530  ;;  %v6123_v31 = vadd.f32 %v6122_v45, %v5623_v19  ;;  %v5636_v34 = vmul.f32 %v10529_v27, %v15368_v11  ;;  %10550 = vpow2.f32 %v8329_v59  ;;  %v8354_v32 = vmul.f32 -1.442695, %v15513_v62  ;;  %v15543_v36 = vpop.f32.mrb[234].mxu1 }
 0x4c8   : > { %v10533_v42 = vpop.eup %10532  ;;  %v6197_v44 = vadd.f32 %v6196_v33, %v5625_v30  ;;  %v5638_v38 = vmul.f32 %v10531_v54, %v15372_v14  ;;  %10552 = vpow2.f32 %v8340_v2  ;;  %v8356_v59 = vmul.f32 -1.442695, %v15522_v6  ;;  %17164 = vst [vmem:[#allocation65_spill] sm:$0xff] %v15543_v36  ;;  %v15547_v2 = vpop.f32.mrb[235].mxu1 }
 0x4c9   : > { %v10535_v23 = vpop.eup %10534  ;;  %v6087_v45 = vadd.f32 %v6086_v40, %v5636_v34  ;;  %v5637_v11 = vmul.f32 %v10533_v42, %v15379_v29  ;;  %10554 = vpow2.f32 %v8342_v48  ;;  %v8355_v14 = vmul.f32 -1.442695, %v15528_v8  ;;  %17165 = vst [vmem:[#allocation66_spill] sm:$0xff] %v15547_v2 }
 0x4ca   : > { %v10537_v19 = vpop.eup %10536  ;;  %v6161_v26 = vadd.f32 %v6160_v53, %v5638_v38  ;;  %v5639_v33 = vmul.f32 %v10535_v23, %v15395_v5  ;;  %10556 = vpow2.f32 %v8341_v4  ;;  %v8357_v29 = vmul.f32 -1.442695, %v15533_v25 }
 0x4cb   : > { %v10539_v27 = vpop.eup %10538  ;;  %v6124_v30 = vadd.f32 %v6123_v31, %v5637_v11  ;;  %v5650_v40 = vmul.f32 %v10537_v19, %v15408_v21  ;;  %10558 = vpow2.f32 %v8343_v18  ;;  %v17169_v19 = vld [vmem:[#allocation35_spill] sm:$0xff] }
 0x4cc   : > { %v10541_v48 = vpop.eup %10540  ;;  %v15551_v61 = vadd.f32 %v6197_v44, %v5639_v33  ;;  %v5652_v54 = vmul.f32 %v10539_v27, %v15414_v17  ;;  %10560 = vpow2.f32 %v8354_v32  ;;  %v15561_v44 = vpop.f32.mrb[236].mxu1 }
 0x4cd   : > { %v10543_v53 = vpop.eup %10542  ;;  %v15554_v5 = vadd.f32 %v6087_v45, %v5650_v40  ;;  %v5651_v4 = vmul.f32 %v10541_v48, %v15419_v39  ;;  %10562 = vpow2.f32 %v8356_v59  ;;  %17166 = vst [vmem:[#allocation67_spill] sm:$0xff] %v15561_v44  ;;  %v15563_v32 = vpop.f32.mrb[237].mxu1 }
 0x4ce   : > { %v10545_v34 = vpop.eup %10544  ;;  %v15557_v60 = vadd.f32 %v6161_v26, %v5652_v54  ;;  %v4309_v31 = vadd.f32 1.0, %v10543_v53  ;;  %10564 = vpow2.f32 %v8355_v14  ;;  %17167 = vst [vmem:[#allocation68_spill] sm:$0xff] %v15563_v32  ;;  %v15565_v45 = vpop.f32.mrb[238].mxu1  ;;  %v15569_v26 = vadd.f32 %v17169_v19, %v14277_v51  ;;  %v17171_v54 = vld [vmem:[#allocation60_spill] sm:$0xff] }
 0x4cf   : > { %v10547_v21 = vpop.eup %10546  ;;  %v15559_v18 = vadd.f32 %v6124_v30, %v5651_v4  ;;  %v4320_v42 = vadd.f32 1.0, %v10545_v34  ;;  %10566 = vpow2.f32 %v8357_v29  ;;  %17168 = vst [vmem:[#allocation12_spill] sm:$0xff] %v15565_v45  ;;  %v15571_v33 = vpop.f32.mrb[239].mxu1  ;;  %v15575_v53 = vadd.f32 %v17171_v54, %v14287_v16  ;;  %v17172_v4 = vld [vmem:[#allocation18_spill] sm:$0xff] }
 0x4d0   : > { %v10549_v17 = vpop.eup %10548  ;;  %10568 = vrcp.f32 %v4309_v31  ;;  %v4322_v38 = vadd.f32 1.0, %v10547_v21  ;;  %17170 = vst [vmem:[#allocation69_spill] sm:$0xff] %v15571_v33  ;;  %v15579_v34 = vadd.f32 %v17172_v4, %v14349_v1  ;;  %v15594_v19 = vpop.f32.mrb[240].mxu1 }
 0x4d1   : > { %v10551_v23 = vpop.eup %10550  ;;  %10570 = vrcp.f32 %v4320_v42  ;;  %v4321_v39 = vadd.f32 1.0, %v10549_v17  ;;  %v8368_v42 = vmul.f32 -1.442695, %v15569_v26  ;;  %v17173_v17 = vld [vmem:[#allocation10_spill] sm:$0xff]  ;;  %17174 = vst [vmem:[#allocation70_spill] sm:$0xff] %v15594_v19  ;;  %v15604_v54 = vpop.f32.mrb[241].mxu1 }
 0x4d2   : > { %v10553_v11 = vpop.eup %10552  ;;  %10572 = vrcp.f32 %v4322_v38  ;;  %v4323_v59 = vadd.f32 1.0, %v10551_v23  ;;  %v15584_v38 = vadd.f32 %v17173_v17, %v14291_v46  ;;  %17177 = vst [vmem:[#allocation71_spill] sm:$0xff] %v15604_v54  ;;  %v15608_v17 = vpop.f32.mrb[242].mxu1  ;;  %v17179_v19 = vld [vmem:[#allocation43_spill] sm:$0xff] }
 0x4d3   : > { %v10555_v14 = vpop.eup %10554  ;;  %10574 = vrcp.f32 %v4321_v39  ;;  %v4334_v27 = vadd.f32 1.0, %v10553_v11  ;;  %v15588_v11 = vadd.f32 %v15045_v9, %v14277_v51  ;;  %17178 = vst [vmem:[#allocation15_spill] sm:$0xff] %v15608_v17  ;;  %v15615_v33 = vpop.f32.mrb[243].mxu1 }
 0x4d4   : > { %v10557_v30 = vpop.eup %10556  ;;  %10576 = vrcp.f32 %v4323_v59  ;;  %v4336_v40 = vadd.f32 1.0, %v10555_v14  ;;  %v15592_v59 = vadd.f32 %v15047_v50, %v14287_v16  ;;  %v8370_v50 = vmul.f32 -1.442695, %v15575_v53  ;;  %17180 = vst [vmem:[#allocation72_spill] sm:$0xff] %v15615_v33 }
 0x4d5   : > { %v10559_v29 = vpop.eup %10558  ;;  %10578 = vrcp.f32 %v4334_v27  ;;  %v4335_v48 = vadd.f32 1.0, %v10557_v30  ;;  %v17175_v30 = vld [vmem:[#allocation21_spill] sm:$0xff] }
 0x4d6   : > { %v10561_v31 = vpop.eup %10560  ;;  %10580 = vrcp.f32 %v4336_v40  ;;  %v4337_v21 = vadd.f32 1.0, %v10559_v29  ;;  %v15598_v40 = vadd.f32 %v17175_v30, %v14349_v1  ;;  %v17176_v29 = vld [vmem:[#allocation36_spill] sm:$0xff]  ;;  %v8371_v30 = vmul.f32 -1.442695, %v15584_v38 }
 0x4d7   : > { %v10563_v23 = vpop.eup %10562  ;;  %10582 = vrcp.f32 %v4335_v48  ;;  %v4348_v39 = vadd.f32 1.0, %v10561_v31  ;;  %v15602_v48 = vadd.f32 %v17176_v29, %v14291_v46  ;;  %v8369_v31 = vmul.f32 -1.442695, %v15579_v34 }
 0x4d8   : > { %v10565_v14 = vpop.eup %10564  ;;  %10584 = vrcp.f32 %v4337_v21  ;;  %v4350_v27 = vadd.f32 1.0, %v10563_v23  ;;  %v15613_v29 = vadd.f32 %v17179_v19, %v14277_v51  ;;  %v8384_v45 = vmul.f32 -1.442695, %v15592_v59 }
 0x4d9   : > { %v10567_v9 = vpop.eup %10566  ;;  %10586 = vrcp.f32 %v4348_v39  ;;  %v4349_v4 = vadd.f32 1.0, %v10565_v14  ;;  %v8382_v14 = vmul.f32 -1.442695, %v15588_v11  ;;  %v8385_v32 = vmul.f32 -1.442695, %v15602_v48 }
 0x4da   : > { %v10569_v21 = vpop.eup %10568  ;;  %10588 = vrcp.f32 %v4350_v27  ;;  %v4351_v23 = vadd.f32 1.0, %v10567_v9  ;;  %v8383_v9 = vmul.f32 -1.442695, %v15598_v40 }
 0x4db   : > { %v10571_v54 = vpop.eup %10570  ;;  %v5653_v39 = vmul.f32 %v10569_v21, %v15451_v7  ;;  %10590 = vrcp.f32 %v4349_v4  ;;  %v17181_v7 = vld [vmem:[#allocation64_spill] sm:$0xff] }
 0x4dc   : > { %v10573_v17 = vpop.eup %10572  ;;  %v5664_v27 = vmul.f32 %v10571_v54, %v15461_v47  ;;  %10592 = vrcp.f32 %v4351_v23  ;;  %v15627_v4 = vadd.f32 %v17181_v7, %v14287_v16  ;;  %v8396_v54 = vmul.f32 -1.442695, %v15613_v29 }
 0x4dd   : > { %v10575_v19 = vpop.eup %10574  ;;  %v6199_v44 = vadd.f32 %v15551_v61, %v5653_v39  ;;  %v5666_v33 = vmul.f32 %v10573_v17, %v15465_v10  ;;  %10594 = vpow2.f32 %v8368_v42  ;;  %v17182_v10 = vld [vmem:[#allocation44_spill] sm:$0xff]  ;;  %v15638_v17 = vpop.f32.mrb[244].mxu1 }
 0x4de   : > { %v10577_v21 = vpop.eup %10576  ;;  %v6089_v2 = vadd.f32 %v15554_v5, %v5664_v27  ;;  %v5665_v47 = vmul.f32 %v10575_v19, %v15470_v22  ;;  %10596 = vpow2.f32 %v8370_v50  ;;  %v15636_v42 = vadd.f32 %v17182_v10, %v14349_v1  ;;  %v17183_v50 = vld [vmem:[#allocation45_spill] sm:$0xff]  ;;  %v17184_v19 = vld [vmem:[#allocation46_spill] sm:$0xff] }
 0x4df   : > { %v10579_v23 = vpop.eup %10578  ;;  %v6163_v36 = vadd.f32 %v15557_v60, %v5666_v33  ;;  %v5667_v61 = vmul.f32 %v10577_v21, %v15474_v56  ;;  %10598 = vpow2.f32 %v8369_v31  ;;  %v15644_v27 = vadd.f32 %v17183_v50, %v14291_v46  ;;  %v15646_v60 = vpop.f32.mrb[245].mxu1 }
 0x4e0   : > { %v10581_v39 = vpop.eup %10580  ;;  %v6126_v5 = vadd.f32 %v15559_v18, %v5665_v47  ;;  %v5678_v22 = vmul.f32 %v10579_v23, %v15478_v41  ;;  %10600 = vpow2.f32 %v8371_v30  ;;  %v15651_v7 = vadd.f32 %v17184_v19, %v14277_v51  ;;  %v15653_v21 = vpop.f32.mrb[246].mxu1 }
 0x4e1   : > { %v10583_v56 = vpop.eup %10582  ;;  %v6200_v33 = vadd.f32 %v6199_v44, %v5667_v61  ;;  %v5680_v31 = vmul.f32 %v10581_v39, %v15482_v12  ;;  %10602 = vpow2.f32 %v8382_v14  ;;  %v8398_v47 = vmul.f32 -1.442695, %v15627_v4  ;;  %v15657_v23 = vpop.f32.mrb[247].mxu1 }
 0x4e2   : > { %v10585_v18 = vpop.eup %10584  ;;  %v6090_v41 = vadd.f32 %v6089_v2, %v5678_v22  ;;  %v5679_v30 = vmul.f32 %v10583_v56, %v15486_v63  ;;  %10604 = vpow2.f32 %v8384_v45  ;;  %v8397_v14 = vmul.f32 -1.442695, %v15636_v42 }
 0x4e3   : > { %v10587_v10 = vpop.eup %10586  ;;  %v6164_v44 = vadd.f32 %v6163_v36, %v5680_v31  ;;  %v5681_v12 = vmul.f32 %v10585_v18, %v15495_v3  ;;  %10606 = vpow2.f32 %v8383_v9  ;;  %v8399_v2 = vmul.f32 -1.442695, %v15644_v27 }
 0x4e4   : > { %v10589_v61 = vpop.eup %10588  ;;  %v6127_v39 = vadd.f32 %v6126_v5, %v5679_v30  ;;  %v5692_v50 = vmul.f32 %v10587_v10, %v15513_v62  ;;  %10608 = vpow2.f32 %v8385_v32  ;;  %v8410_v56 = vmul.f32 -1.442695, %v15651_v7  ;;  %v15671_v32 = vpop.f32.mrb[248].mxu1 }
 0x4e5   : > { %v10591_v63 = vpop.eup %10590  ;;  %v6201_v45 = vadd.f32 %v6200_v33, %v5681_v12  ;;  %v5694_v22 = vmul.f32 %v10589_v61, %v15522_v6  ;;  %10610 = vpow2.f32 %v8396_v54  ;;  %v15675_v54 = vpop.f32.mrb[249].mxu1 }
 0x4e6   : > { %v10593_v36 = vpop.eup %10592  ;;  %v15665_v31 = vadd.f32 %v6090_v41, %v5692_v50  ;;  %v5693_v3 = vmul.f32 %v10591_v63, %v15528_v8  ;;  %10612 = vpow2.f32 %v8398_v47  ;;  %v15679_v30 = vpop.f32.mrb[250].mxu1 }
 0x4e7   : > { %v10595_v9 = vpop.eup %10594  ;;  %v15668_v5 = vadd.f32 %v6164_v44, %v5694_v22  ;;  %v5695_v62 = vmul.f32 %v10593_v36, %v15533_v25  ;;  %10614 = vpow2.f32 %v8397_v14  ;;  %17185 = vst [vmem:[#allocation73_spill] sm:$0xff] %v15679_v30  ;;  %v15681_v10 = vpop.f32.mrb[251].mxu1  ;;  %v10931_v22 = vld [vmem:[%s16439_s4 + $0x8] sm:$0x3f]  ;;  %v17188_v36 = vld [vmem:[#allocation62_spill] sm:$0xff] }
 0x4e8   : > { %v10597_v33 = vpop.eup %10596  ;;  %v15673_v19 = vadd.f32 %v6127_v39, %v5693_v3  ;;  %v4362_v6 = vadd.f32 1.0, %v10595_v9  ;;  %10616 = vpow2.f32 %v8399_v2  ;;  %17186 = vst [vmem:[#allocation29_spill] sm:$0xff] %v15681_v10  ;;  %v17187_v39 = vld [vmem:[#allocation20_spill] sm:$0xff]  ;;  %v15694_v3 = vrot.slane %v10931_v22, %v17188_v36 }
 0x4e9   : > { %v10599_v18 = vpop.eup %10598  ;;  %v15677_v41 = vadd.f32 %v6201_v45, %v5695_v62  ;;  %v4364_v8 = vadd.f32 1.0, %v10597_v33  ;;  %10618 = vpow2.f32 %v8410_v56  ;;  %v15685_v50 = vadd.f32 %v17187_v39, %v14287_v16 }
 0x4ea   : > { %v10601_v47 = vpop.eup %10600  ;;  %10620 = vrcp.f32 %v4362_v6  ;;  %v4363_v25 = vadd.f32 1.0, %v10599_v18  ;;  %v15691_v56 = vrot.slane %v10931_v22, %v17108_v52  ;;  %v17189_v6 = vld [vmem:[#allocation47_spill] sm:$0xff]  ;;  %v15719_v22 = vadd.f32 %v15183_v55, %v14349_v1 }
 0x4eb   : > { %v10603_v44 = vpop.eup %10602  ;;  %10622 = vrcp.f32 %v4364_v8  ;;  %v4365_v12 = vadd.f32 1.0, %v10601_v47  ;;  %v15698_v18 = vadd.f32 %v17189_v6, %v14349_v1  ;;  %v17190_v8 = vld [vmem:[#allocation14_spill] sm:$0xff] }
 0x4ec   : > { %v10605_v14 = vpop.eup %10604  ;;  %10624 = vrcp.f32 %v4363_v25  ;;  %v4376_v61 = vadd.f32 1.0, %v10603_v44  ;;  %v15702_v47 = vadd.f32 %v17190_v8, %v14291_v46  ;;  %v15704_v25 = vpop.f32.mrb[252].mxu1 }
 0x4ed   : > { %v10607_v2 = vpop.eup %10606  ;;  %10626 = vrcp.f32 %v4365_v12  ;;  %v4378_v63 = vadd.f32 1.0, %v10605_v14  ;;  %17191 = vst [vmem:[#allocation6_spill] sm:$0xff] %v15704_v25  ;;  %v8412_v14 = vmul.f32 -1.442695, %v15685_v50  ;;  %v15711_v39 = vpop.f32.mrb[253].mxu1 }
 0x4ee   : > { %v10609_v45 = vpop.eup %10608  ;;  %10628 = vrcp.f32 %v4376_v61  ;;  %v4377_v9 = vadd.f32 1.0, %v10607_v2  ;;  %v15709_v61 = vadd.f32 %v15170_v49, %v14277_v51  ;;  %17192 = vst [vmem:[#allocation30_spill] sm:$0xff] %v15711_v39  ;;  %v17194_v51 = vld [vmem:[#allocation27_spill] sm:$0xff]  ;;  %v8411_v1 = vmul.f32 -1.442695, %v15698_v18 }
 0x4ef   : > { %v10611_v62 = vpop.eup %10610  ;;  %10630 = vrcp.f32 %v4378_v63  ;;  %v4379_v33 = vadd.f32 1.0, %v10609_v45  ;;  %v15715_v45 = vadd.f32 %v15172_v58, %v14287_v16  ;;  %v15725_v49 = vadd.f32 %v17194_v51, %v14291_v46  ;;  %v17197_v46 = vld [vmem:[#allocation48_spill] sm:$0xff] }
 0x4f0   : > { %v10613_v44 = vpop.eup %10612  ;;  %10632 = vrcp.f32 %v4377_v9  ;;  %v4390_v12 = vadd.f32 1.0, %v10611_v62  ;;  %v15721_v9 = vpop.f32.mrb[254].mxu1  ;;  %v8413_v55 = vmul.f32 -1.442695, %v15702_v47  ;;  %v15738_v51 = vadd.f32 %v17197_v46, %v15694_v3 }
 0x4f1   : > { %v10615_v2 = vpop.eup %10614  ;;  %10634 = vrcp.f32 %v4379_v33  ;;  %v4392_v63 = vadd.f32 1.0, %v10613_v44  ;;  %17193 = vst [vmem:[#allocation38_spill] sm:$0xff] %v15721_v9  ;;  %v17195_v33 = vld [vmem:[#allocation28_spill] sm:$0xff]  ;;  %v15731_v44 = vpop.f32.mrb[255].mxu1 }
 0x4f2   : > { %v10617_v62 = vpop.eup %10616  ;;  %10636 = vrcp.f32 %v4390_v12  ;;  %v4391_v6 = vadd.f32 1.0, %v10615_v2  ;;  %v15729_v8 = vadd.f32 %v17195_v33, %v15691_v56  ;;  %17196 = vst [vmem:[#allocation11_spill] sm:$0xff] %v15731_v44  ;;  %v8424_v2 = vmul.f32 -1.442695, %v15709_v61 }
 0x4f3   : > { %v10619_v16 = vpop.eup %10618  ;;  %10638 = vrcp.f32 %v4392_v63  ;;  %v4393_v58 = vadd.f32 1.0, %v10617_v62  ;;  %v8426_v63 = vmul.f32 -1.442695, %v15715_v45  ;;  %v8425_v62 = vmul.f32 -1.442695, %v15719_v22 }
 0x4f4   : > { %v10621_v52 = vpop.eup %10620  ;;  %10640 = vrcp.f32 %v4391_v6  ;;  %v4404_v12 = vadd.f32 1.0, %v10619_v16  ;;  %v8427_v6 = vmul.f32 -1.442695, %v15725_v49  ;;  %v7994_v16 = vmul.f32 -1.442695, %v15729_v8 }
 0x4f5   : > { %v10623_v33 = vpop.eup %10622  ;;  %v5706_v36 = vmul.f32 %v10621_v52, %v15569_v26  ;;  %10642 = vrcp.f32 %v4393_v58  ;;  %v17198_v52 = vld [vmem:[#allocation49_spill] sm:$0xff]  ;;  %v15752_v58 = vpop.f32.mrb[0].mxu1 }
 0x4f6   : > { %v10625_v44 = vpop.eup %10624  ;;  %v5708_v9 = vmul.f32 %v10623_v33, %v15575_v53  ;;  %10644 = vrcp.f32 %v4404_v12  ;;  %v15750_v26 = vadd.f32 %v17198_v52, %v15691_v56  ;;  %v7995_v33 = vmul.f32 -1.442695, %v15738_v51  ;;  %v15757_v30 = vpop.f32.mrb[1].mxu1 }
 0x4f7   : > { %v10627_v39 = vpop.eup %10626  ;;  %v6092_v46 = vadd.f32 %v15665_v31, %v5706_v36  ;;  %v5707_v25 = vmul.f32 %v10625_v44, %v15579_v34  ;;  %10646 = vpow2.f32 %v8412_v14  ;;  %v17199_v14 = vld [vmem:[#allocation50_spill] sm:$0xff]  ;;  %v15765_v52 = vpop.f32.mrb[2].mxu1 }
 0x4f8   : > { %v10629_v10 = vpop.eup %10628  ;;  %v6166_v53 = vadd.f32 %v15668_v5, %v5708_v9  ;;  %v5709_v12 = vmul.f32 %v10627_v39, %v15584_v38  ;;  %10648 = vpow2.f32 %v8411_v1  ;;  %v15763_v44 = vadd.f32 %v17199_v14, %v15694_v3  ;;  %17200 = vst [vmem:[#allocation17_spill] sm:$0xff] %v15765_v52  ;;  %v17201_v9 = vld [vmem:[#allocation7_spill] sm:$0xff] }
 0x4f9   : > { %v10631_v31 = vpop.eup %10630  ;;  %v6129_v34 = vadd.f32 %v15673_v19, %v5707_v25  ;;  %v5720_v36 = vmul.f32 %v10629_v10, %v15588_v11  ;;  %10650 = vpow2.f32 %v8413_v55  ;;  %v15771_v1 = vadd.f32 %v17201_v9, %v15691_v56  ;;  %v15773_v19 = vpop.f32.mrb[3].mxu1  ;;  %v17202_v55 = vld [vmem:[#allocation51_spill] sm:$0xff] }
 0x4fa   : > { %v10633_v5 = vpop.eup %10632  ;;  %v6203_v38 = vadd.f32 %v15677_v41, %v5709_v12  ;;  %v5722_v39 = vmul.f32 %v10631_v31, %v15592_v59  ;;  %10652 = vpow2.f32 %v8424_v2  ;;  %v15778_v14 = vadd.f32 %v17202_v55, %v15694_v3 }
 0x4fb   : > { %v10635_v11 = vpop.eup %10634  ;;  %v6093_v10 = vadd.f32 %v6092_v46, %v5720_v36  ;;  %v5721_v25 = vmul.f32 %v10633_v5, %v15598_v40  ;;  %10654 = vpow2.f32 %v8426_v63  ;;  %v8008_v2 = vmul.f32 -1.442695, %v15750_v26 }
 0x4fc   : > { %v10637_v52 = vpop.eup %10636  ;;  %v6167_v41 = vadd.f32 %v6166_v53, %v5722_v39  ;;  %v5723_v59 = vmul.f32 %v10635_v11, %v15602_v48  ;;  %10656 = vpow2.f32 %v8425_v62  ;;  %v8009_v46 = vmul.f32 -1.442695, %v15763_v44 }
 0x4fd   : > { %v10639_v12 = vpop.eup %10638  ;;  %v6130_v31 = vadd.f32 %v6129_v34, %v5721_v25  ;;  %v5734_v9 = vmul.f32 %v10637_v52, %v15613_v29  ;;  %10658 = vpow2.f32 %v8427_v6  ;;  %v8022_v5 = vmul.f32 -1.442695, %v15771_v1  ;;  %v15788_v34 = vpop.f32.mrb[4].mxu1 }
 0x4fe   : > { %v10641_v40 = vpop.eup %10640  ;;  %v6204_v63 = vadd.f32 %v6203_v38, %v5723_v59  ;;  %v5736_v36 = vmul.f32 %v10639_v12, %v15627_v4  ;;  %10660 = vpow2.f32 %v7994_v16  ;;  %v8023_v62 = vmul.f32 -1.442695, %v15778_v14  ;;  %17203 = vst [vmem:[#allocation39_spill] sm:$0xff] %v15788_v34  ;;  %v15793_v38 = vpop.f32.mrb[5].mxu1 }
 0x4ff   : > { %v10643_v53 = vpop.eup %10642  ;;  %v6094_v39 = vadd.f32 %v6093_v10, %v5734_v9  ;;  %v5735_v48 = vmul.f32 %v10641_v40, %v15636_v42  ;;  %10662 = vpow2.f32 %v7995_v33  ;;  %17204 = vst [vmem:[#allocation40_spill] sm:$0xff] %v15793_v38  ;;  %v15798_v42 = vpop.f32.mrb[6].mxu1  ;;  %v17208_v9 = vld [vmem:[#allocation53_spill] sm:$0xff] }
 0x500   : > { %v10645_v29 = vpop.eup %10644  ;;  %v15790_v6 = vadd.f32 %v6167_v41, %v5736_v36  ;;  %v5737_v52 = vmul.f32 %v10643_v53, %v15644_v27  ;;  %10664 = vpow2.f32 %v8008_v2  ;;  %17205 = vst [vmem:[#allocation41_spill] sm:$0xff] %v15798_v42  ;;  %v15802_v55 = vpop.f32.mrb[7].mxu1  ;;  %v17207_v2 = vld [vmem:[#allocation52_spill] sm:$0xff]  ;;  %v15816_v36 = vadd.f32 %v15302_v57, %v15691_v56 }
 0x501   : > { %v10647_v4 = vpop.eup %10646  ;;  %v15795_v16 = vadd.f32 %v6130_v31, %v5735_v48  ;;  %v5748_v11 = vmul.f32 %v10645_v29, %v15651_v7  ;;  %10666 = vpow2.f32 %v8009_v46  ;;  %17206 = vst [vmem:[#allocation42_spill] sm:$0xff] %v15802_v55  ;;  %v15808_v12 = vadd.f32 %v17207_v2, %v15691_v56 }
 0x502   : > { %v10649_v33 = vpop.eup %10648  ;;  %v15800_v10 = vadd.f32 %v6204_v63, %v5737_v52  ;;  %v4406_v25 = vadd.f32 1.0, %v10647_v4  ;;  %10668 = vpow2.f32 %v8022_v5  ;;  %v15812_v46 = vadd.f32 %v17208_v9, %v15694_v3 }
 0x503   : > { %v10651_v41 = vpop.eup %10650  ;;  %v15804_v27 = vadd.f32 %v6094_v39, %v5748_v11  ;;  %v4405_v59 = vadd.f32 1.0, %v10649_v33  ;;  %10670 = vpow2.f32 %v8023_v62  ;;  %v8036_v62 = vmul.f32 -1.442695, %v15808_v12 }
 0x504   : > { %v10653_v7 = vpop.eup %10652  ;;  %10672 = vrcp.f32 %v4406_v25  ;;  %v4407_v31 = vadd.f32 1.0, %v10651_v41  ;;  %v8037_v4 = vmul.f32 -1.442695, %v15812_v46  ;;  %v15822_v11 = vadd.f32 %v15309_v13, %v15694_v3 }
 0x505   : > { %v10655_v40 = vpop.eup %10654  ;;  %10674 = vrcp.f32 %v4405_v59  ;;  %v4418_v63 = vadd.f32 1.0, %v10653_v7  ;;  %v8050_v25 = vmul.f32 -1.442695, %v15816_v36  ;;  %v15827_v41 = vadd.f32 %v15313_v20, %v15691_v56 }
 0x506   : > { %v10657_v5 = vpop.eup %10656  ;;  %10676 = vrcp.f32 %v4407_v31  ;;  %v4420_v53 = vadd.f32 1.0, %v10655_v40  ;;  %v15831_v7 = vadd.f32 %v15317_v24, %v15694_v3  ;;  %v15835_v13 = vadd.f32 %v15331_v0, %v15691_v56 }
 0x507   : > { %v10659_v39 = vpop.eup %10658  ;;  %10678 = vrcp.f32 %v4418_v63  ;;  %v4419_v48 = vadd.f32 1.0, %v10657_v5  ;;  %v15839_v40 = vadd.f32 %v15335_v43, %v15694_v3  ;;  %v15843_v20 = vadd.f32 %v15337_v28, %v15691_v56  ;;  %v17209_v43 = vld [vmem:[#allocation54_spill] sm:$0xff] }
 0x508   : > { %v10661_v29 = vpop.eup %10660  ;;  %10680 = vrcp.f32 %v4420_v53  ;;  %v4421_v52 = vadd.f32 1.0, %v10659_v39  ;;  %v8051_v24 = vmul.f32 -1.442695, %v15822_v11  ;;  %v15848_v0 = vadd.f32 %v15339_v15, %v15694_v3 }
 0x509   : > { %v10663_v33 = vpop.eup %10662  ;;  %10682 = vrcp.f32 %v4419_v48  ;;  %v3988_v57 = vadd.f32 1.0, %v10661_v29  ;;  %v8064_v48 = vmul.f32 -1.442695, %v15827_v41  ;;  %v15853_v29 = vadd.f32 %v17209_v43, %v15691_v56 }
 0x50a   : > { %v10665_v59 = vpop.eup %10664  ;;  %10684 = vrcp.f32 %v4421_v52  ;;  %v3989_v2 = vadd.f32 1.0, %v10663_v33  ;;  %v8065_v33 = vmul.f32 -1.442695, %v15831_v7  ;;  %v15862_v43 = vmul.f32 -1.442695, %v15848_v0 }
 0x50b   : > { %v10667_v31 = vpop.eup %10666  ;;  %10686 = vrcp.f32 %v3988_v57  ;;  %v4002_v9 = vadd.f32 1.0, %v10665_v59  ;;  %v8078_v57 = vmul.f32 -1.442695, %v15835_v13 }
 0x50c   : > { %v10669_v63 = vpop.eup %10668  ;;  %10688 = vrcp.f32 %v3989_v2  ;;  %v4003_v5 = vadd.f32 1.0, %v10667_v31  ;;  %v8079_v2 = vmul.f32 -1.442695, %v15839_v40  ;;  %v8092_v31 = vmul.f32 -1.442695, %v15843_v20 }
 0x50d   : > { %v10671_v53 = vpop.eup %10670  ;;  %10690 = vrcp.f32 %v4002_v9  ;;  %v4016_v39 = vadd.f32 1.0, %v10669_v63 }
 0x50e   : > { %v10673_v28 = vpop.eup %10672  ;;  %10692 = vrcp.f32 %v4003_v5  ;;  %v4017_v52 = vadd.f32 1.0, %v10671_v53  ;;  %v17210_v5 = vld [vmem:[#allocation55_spill] sm:$0xff] }
 0x50f   : > { %v10675_v59 = vpop.eup %10674  ;;  %v5750_v15 = vmul.f32 %v10673_v28, %v15685_v50  ;;  %10694 = vrcp.f32 %v4016_v39  ;;  %v15866_v53 = vadd.f32 %v17210_v5, %v15694_v3  ;;  %v15871_v39 = vmul.f32 -1.442695, %v15853_v29 }
 0x510   : > { %v10677_v9 = vpop.eup %10676  ;;  %v5749_v63 = vmul.f32 %v10675_v59, %v15698_v18  ;;  %10696 = vrcp.f32 %v4017_v52  ;;  %v17211_v59 = vld [vmem:[#allocation31_spill] sm:$0xff] }
 0x511   : > { %v10679_v55 = vpop.eup %10678  ;;  %v6169_v42 = vadd.f32 %v15790_v6, %v5750_v15  ;;  %v5751_v50 = vmul.f32 %v10677_v9, %v15702_v47  ;;  %10698 = vpow2.f32 %v8036_v62  ;;  %v15877_v38 = vadd.f32 %v17211_v59, %v15691_v56  ;;  %v17212_v47 = vld [vmem:[#allocation56_spill] sm:$0xff] }
 0x512   : > { %v10681_v28 = vpop.eup %10680  ;;  %v6132_v18 = vadd.f32 %v15795_v16, %v5749_v63  ;;  %v5762_v52 = vmul.f32 %v10679_v55, %v15709_v61  ;;  %10700 = vpow2.f32 %v8037_v4  ;;  %v15883_v62 = vadd.f32 %v17212_v47, %v15694_v3  ;;  %v17213_v55 = vld [vmem:[#allocation9_spill] sm:$0xff] }
 0x513   : > { %v10683_v5 = vpop.eup %10682  ;;  %v6206_v34 = vadd.f32 %v15800_v10, %v5751_v50  ;;  %v5764_v6 = vmul.f32 %v10681_v28, %v15715_v45  ;;  %10702 = vpow2.f32 %v8050_v25  ;;  %v15889_v4 = vadd.f32 %v17213_v55, %v15691_v56  ;;  %v17214_v45 = vld [vmem:[#allocation57_spill] sm:$0xff] }
 0x514   : > { %v10685_v15 = vpop.eup %10684  ;;  %v6096_v16 = vadd.f32 %v15804_v27, %v5762_v52  ;;  %v5763_v61 = vmul.f32 %v10683_v5, %v15719_v22  ;;  %10704 = vpow2.f32 %v8051_v24  ;;  %v15894_v25 = vadd.f32 %v17214_v45, %v15694_v3 }
 0x515   : > { %v10687_v9 = vpop.eup %10686  ;;  %v6170_v63 = vadd.f32 %v6169_v42, %v5764_v6  ;;  %v5765_v10 = vmul.f32 %v10685_v15, %v15725_v49  ;;  %10706 = vpow2.f32 %v8064_v48 }
 0x516   : > { %v10689_v50 = vpop.eup %10688  ;;  %v6097_v28 = vrot.slane %v6096_v16, 4  ;;  %v6133_v59 = vadd.f32 %v6132_v18, %v5763_v61  ;;  %v5332_v27 = vmul.f32 %v10687_v9, %v15729_v8  ;;  %10708 = vpow2.f32 %v8065_v33 }
 0x517   : > { %v10691_v22 = vpop.eup %10690  ;;  %v6171_v24 = vrot.slane %v6170_v63, 4  ;;  %v6207_v52 = vadd.f32 %v6206_v34, %v5765_v10  ;;  %v5333_v5 = vmul.f32 %v10689_v50, %v15738_v51  ;;  %10710 = vpow2.f32 %v8078_v57 }
 0x518   : > { %v10693_v42 = vpop.eup %10692  ;;  %v6098_v6 = vadd.f32 %v6097_v28, %v6096_v16  ;;  %v6134_v49 = vrot.slane %v6133_v59, 4  ;;  %v5346_v48 = vmul.f32 %v10691_v22, %v15750_v26  ;;  %10712 = vpow2.f32 %v8079_v2 }
 0x519   : > { %v10695_v47 = vpop.eup %10694  ;;  %v6172_v15 = vadd.f32 %v6171_v24, %v6170_v63  ;;  %v6208_v55 = vrot.slane %v6207_v52, 4  ;;  %v5347_v18 = vmul.f32 %v10693_v42, %v15763_v44  ;;  %10714 = vpow2.f32 %v8092_v31 }
 0x51a   : > { %v10697_v8 = vpop.eup %10696  ;;  %v6099_v33 = vrot.slane %v6098_v6, 2  ;;  %v6135_v61 = vadd.f32 %v6134_v49, %v6133_v59  ;;  %v6214_v9 = vadd.f32 %v5346_v48, %v5332_v27  ;;  %v5360_v34 = vmul.f32 %v10695_v47, %v15771_v1  ;;  %v8580_v27 = vpop.f32.mrb[216].mxu0 }
 0x51b   : > { %v10699_v51 = vpop.eup %10698  ;;  %v6173_v57 = vrot.slane %v6172_v15, 2  ;;  %v6209_v10 = vadd.f32 %v6208_v55, %v6207_v52  ;;  %v6251_v16 = vadd.f32 %v5347_v18, %v5333_v5  ;;  %v5361_v45 = vmul.f32 %v10697_v8, %v15778_v14  ;;  %v8646_v1 = vpop.f32.mrb[8].mxu1 }
 0x51c   : > { %v10701_v26 = vpop.eup %10700  ;;  %v6100_v2 = vadd.f32 %v6099_v33, %v6098_v6  ;;  %v6136_v50 = vrot.slane %v6135_v61, 2  ;;  %v15902_v63 = vadd.f32 %v6214_v9, %v5360_v34  ;;  %v4030_v28 = vadd.f32 1.0, %v10699_v51  ;;  %v8581_v14 = vpop.f32.mrb[217].mxu0 }
 0x51d   : > { %v10703_v44 = vpop.eup %10702  ;;  %v6174_v31 = vadd.f32 %v6173_v57, %v6172_v15  ;;  %v6210_v22 = vrot.slane %v6209_v10, 2  ;;  %v15904_v24 = vadd.f32 %v6251_v16, %v5361_v45  ;;  %v4031_v59 = vadd.f32 1.0, %v10701_v26  ;;  %v8647_v48 = vpop.f32.mrb[9].mxu1 }
 0x51e   : > { %v10705_v42 = vpop.eup %10704  ;;  %v6101_v49 = vrot.slane %v6100_v2, 1  ;;  %v6137_v52 = vadd.f32 %v6136_v50, %v6135_v61  ;;  %10716 = vrcp.f32 %v4030_v28  ;;  %v4044_v5 = vadd.f32 1.0, %v10703_v44  ;;  %v8583_v8 = vpop.f32.mrb[218].mxu0 }
 0x51f   : > { %v10707_v6 = vpop.eup %10706  ;;  %v6175_v47 = vrot.slane %v6174_v31, 1  ;;  %v6211_v55 = vadd.f32 %v6210_v22, %v6209_v10  ;;  %10718 = vrcp.f32 %v4031_v59  ;;  %v4045_v18 = vadd.f32 1.0, %v10705_v42  ;;  %v8649_v15 = vpop.f32.mrb[10].mxu1  ;;  %v8962_v8 = vld [vmem:[%s16440_s5 + $0x240] sm:$0xff]  }
 0x520   : > { %v10709_v33 = vpop.eup %10708  ;;  %v6102_v9 = vadd.f32 %v6101_v49, %v6100_v2  ;;  %v6138_v34 = vrot.slane %v6137_v52, 1  ;;  %10720 = vrcp.f32 %v4044_v5  ;;  %v4058_v51 = vadd.f32 1.0, %v10707_v6  ;;  %v8584_v57 = vpop.f32.mrb[219].mxu0  ;;  %v17220_v15 = vld [vmem:[#allocation74_spill] sm:$0xff]  ;;  %8652 = vmatprep.subr.bf16.mxu0 %v8962_v8 }
 0x521   : > { %v8650_v16 = vpop.f32.mrb[11].mxu1  ;;  %v10711_v45 = vpop.eup %10710  ;;  %v6176_v61 = vadd.f32 %v6175_v47, %v6174_v31  ;;  %v6212_v26 = vrot.slane %v6211_v55, 1  ;;  %10722 = vrcp.f32 %v4045_v18  ;;  %v4059_v50 = vadd.f32 1.0, %v10709_v33  ;;  %v17219_v47 = vld [vmem:[#allocation58_spill] sm:$0xff]  ;;  %v8963_v57 = vld [vmem:[%s16440_s5 + $0x200] sm:$0xff]  }
 0x522   : > { %v10713_v28 = vpop.eup %10712  ;;  %v6139_v44 = vadd.f32 %v6138_v34, %v6137_v52  ;;  %10724 = vrcp.f32 %v4058_v51  ;;  %v4072_v10 = vadd.f32 1.0, %v10711_v45  ;;  %v15906_v22 = vadd.f32 %v8581_v14, %v8580_v27  ;;  %v17221_v34 = vld [vmem:[#allocation8_spill] sm:$0xff]  ;;  %8653 = vmatpush3.bf16.msra.mxu0 %v8963_v57 }
 0x523   : > { %v10715_v59 = vpop.eup %10714  ;;  %v6213_v42 = vadd.f32 %v6212_v26, %v6211_v55  ;;  %10726 = vrcp.f32 %v4059_v50  ;;  %v4073_v2 = vadd.f32 1.0, %v10713_v28  ;;  %v17215_v49 = vlaneseq }
 0x524   : > { %v17216_v5 = vmov 0  ;;  %v6351_v6 = vcombine.low %v6102_v9, %v6139_v44  ;;  %10728 = vrcp.f32 %v4072_v10  ;;  %v4086_v31 = vadd.f32 1.0, %v10715_v59  ;;  %v17222_v44 = vld [vmem:[#allocation76_spill] sm:$0xff] }
 0x525   : > { %vm15909_vm4 = vcmp.lt.s32.totalorder %v17215_v49, 768  ;;  %v15915_v18 = vadd.f32 %v17219_v47, %v15691_v56  ;;  %v11015_v52 = vmov 0.0   ;;  %v6352_v27 = vcombine.low %v6176_v61, %v6213_v42  ;;  %v8965_v61 = vld [vmem:[%s16440_s5 + $0x280] sm:$0xff]   ;;  %v8966_v49 = vld [vmem:[%s16440_s5 + $0x248] sm:$0xff]  }
 0x526   : > { %v17217_v5 = vsel %vm15909_vm4, 4294967295, %v17216_v5  ;;  %314 = vst.msk [vmem:[#allocation2 + $0x8] sm:$0x3f] %vm15909_vm4, %v11015_v52  ;;  %10730 = vrcp.f32 %v4073_v2  ;;  %v8107_v14 = vmul.f32 -1.442695, %v15866_v53  ;;  %v15920_v55 = vadd.f32 %v8647_v48, %v8646_v1  ;;  %v8964_v1 = vld [vmem:[%s16440_s5 + $0x2c0] sm:$0xff]   ;;  %8654 = vmatprep.subr.bf16.mxu0 %v8966_v49 }
 0x527   : > { %17218 = vst [vmem:[#allocation22_spill] sm:$0xff] %v17217_v5  ;;  %v15926_v33 = vrot.slane %v6351_v6, %v17220_v15  ;;  %10732 = vrcp.f32 %v4086_v31  ;;  %v8120_v9 = vmul.f32 -1.442695, %v15877_v38  ;;  %v15931_v51 = vadd.f32 %v17221_v34, %v15694_v3  ;;  %8674 = vmatprep.subr.bf16.mxu1 %v8964_v1  ;;  %v17223_v2 = vld [vmem:[#allocation77_spill] sm:$0xff]  ;;  %v17224_v52 = vld [vmem:[#allocation32_spill] sm:$0xff] }
 0x528   : > { %v15940_v48 = vrot.slane %v6352_v27, %v17220_v15  ;;  %10734 = vpow2.f32 %v15862_v43  ;;  %v8121_v16 = vmul.f32 -1.442695, %v15883_v62  ;;  %v8134_v45 = vmul.f32 -1.442695, %v15889_v4  ;;  %v10717_v26 = vpop.eup %10716  ;;  %8675 = vmatpush3.bf16.msra.mxu1 %v8965_v61  ;;  %v8969_v1 = vld [vmem:[%s16440_s5 + $0x288] sm:$0xff]  }
 0x529   : > { %10736 = vpow2.f32 %v15871_v39  ;;  %v8135_v50 = vmul.f32 -1.442695, %v15894_v25  ;;  %v8148_v28 = vmul.f32 -1.442695, %v15915_v18  ;;  %v15953_v10 = vadd.f32 %v17222_v44, %v15691_v56  ;;  %v10719_v43 = vpop.eup %10718 }
 0x52a   : > { %v5374_v42 = vmul.f32 %v10717_v26, %v15808_v12  ;;  %10738 = vpow2.f32 %v8107_v14  ;;  %v15960_v39 = vadd.f32 %v17223_v2, %v15694_v3  ;;  %v10721_v6 = vpop.eup %10720  ;;  %v5375_v31 = vmul.f32 %v10719_v43, %v15812_v46  ;;  %v8967_v12 = vld [vmem:[%s16440_s5 + $0x208] sm:$0xff]   ;;  %v8970_v2 = vld [vmem:[%s16440_s5 + $0x250] sm:$0xff]  }
 0x52b   : > { %10740 = vpow2.f32 %v8120_v9  ;;  %v8149_v47 = vmul.f32 -1.442695, %v15931_v51  ;;  %v15969_v27 = vadd.f32 %v17224_v52, %v15691_v56  ;;  %v8968_v14 = vld [vmem:[%s16440_s5 + $0x2c8] sm:$0xff]   ;;  %v10723_v8 = vpop.eup %10722  ;;  %v5388_v46 = vmul.f32 %v10721_v6, %v15816_v36  ;;  %8655 = vmatpush3.bf16.msra.mxu0 %v8967_v12  ;;  %v8971_v6 = vld [vmem:[%s16440_s5 + $0x210] sm:$0xff]  }
 0x52c   : > { %v6216_v34 = vadd.f32 %v15902_v63, %v5374_v42  ;;  %10742 = vpow2.f32 %v8121_v16  ;;  %v17225_v9 = vld [vmem:[#allocation33_spill] sm:$0xff]  ;;  %v10725_v61 = vpop.eup %10724  ;;  %v6253_v26 = vadd.f32 %v15904_v24, %v5375_v31  ;;  %v5389_v44 = vmul.f32 %v10723_v8, %v15822_v11  ;;  %8676 = vmatprep.subr.bf16.mxu1 %v8968_v14  ;;  %8656 = vmatprep.subr.bf16.mxu0 %v8970_v2 }
 0x52d   : > { %v15981_v57 = vadd.f32 %v17225_v9, %v15694_v3  ;;  %10744 = vpow2.f32 %v8134_v45  ;;  %v8162_v63 = vmul.f32 -1.442695, %v15953_v10  ;;  %v10727_v36 = vpop.eup %10726  ;;  %v5402_v43 = vmul.f32 %v10725_v61, %v15827_v41  ;;  %8677 = vmatpush3.bf16.msra.mxu1 %v8969_v1  ;;  %v8972_v41 = vld [vmem:[%s16440_s5 + $0x2d0] sm:$0xff]  }
 0x52e   : > { %v6217_v16 = vadd.f32 %v6216_v34, %v5388_v46  ;;  %10746 = vpow2.f32 %v8135_v50  ;;  %v8163_v42 = vmul.f32 -1.442695, %v15960_v39  ;;  %v10729_v24 = vpop.eup %10728  ;;  %v6254_v49 = vadd.f32 %v6253_v26, %v5389_v44  ;;  %8678 = vmatprep.subr.bf16.mxu1 %v8972_v41  ;;  %v8976_v46 = vld [vmem:[%s16440_s5 + $0x2d8] sm:$0xff]   ;;  %v8978_v26 = vld [vmem:[%s16440_s5 + $0x260] sm:$0xff]   ;;  %v8602_v44 = vpop.f32.mrb[220].mxu0 }
 0x52f   : > { %v5403_v11 = vmul.f32 %v10727_v36, %v15831_v7  ;;  %10748 = vpow2.f32 %v8148_v28  ;;  %v8176_v45 = vmul.f32 -1.442695, %v15969_v27  ;;  %v5416_v52 = vmul.f32 %v10729_v24, %v15835_v13  ;;  %v6718_v7 = vld [vmem:[%s16441_s6] sm:$0x1]  ;;  %v8973_v28 = vld [vmem:[%s16440_s5 + $0x290] sm:$0xff]   ;;  %8657 = vmatpush3.bf16.msra.mxu0 %v8971_v6  ;;  %v8974_v13 = vld [vmem:[%s16440_s5 + $0x258] sm:$0xff]  }
 0x530   : > { %v10731_v50 = vpop.eup %10730  ;;  %v6218_v31 = vadd.f32 %v6217_v16, %v5402_v43  ;;  %10750 = vpow2.f32 %v8149_v47  ;;  %v8177_v12 = vmul.f32 -1.442695, %v15981_v57  ;;  %v8975_v47 = vld [vmem:[%s16440_s5 + $0x218] sm:$0xff]   ;;  %v7426_v43 = vadd.f32 %v15906_v22, %v6718_v7  ;;  %8658 = vmatprep.subr.bf16.mxu0 %v8974_v13  ;;  %v8979_v22 = vld [vmem:[%s16440_s5 + $0x220] sm:$0xff]  }
 0x531   : > { %v10733_v14 = vpop.eup %10732  ;;  %v6255_v8 = vadd.f32 %v6254_v49, %v5403_v11  ;;  %v5417_v34 = vmul.f32 %v10731_v50, %v15839_v40  ;;  %10752 = vpow2.f32 %v8162_v63  ;;  %8679 = vmatpush3.bf16.msra.mxu1 %v8973_v28  ;;  %v8977_v40 = vld [vmem:[%s16440_s5 + $0x298] sm:$0xff]  }
 0x532   : > { %v10735_v9 = vpop.eup %10734  ;;  %v6219_v1 = vadd.f32 %v6218_v31, %v5416_v52  ;;  %v5430_v61 = vmul.f32 %v10733_v14, %v15843_v20  ;;  %10754 = vpow2.f32 %v8163_v42  ;;  %8680 = vmatprep.subr.bf16.mxu1 %v8976_v46  ;;  %v8980_v20 = vld [vmem:[%s16440_s5 + $0x2e0] sm:$0xff]   ;;  %v8603_v42 = vpop.f32.mrb[221].mxu0  ;;  %v17226_v7 = vld [vmem:[#allocation59_spill] sm:$0xff]  ;;  %v8982_v14 = vld [vmem:[%s16440_s5 + $0x268] sm:$0xff]  }
 0x533   : > { %v10737_v63 = vpop.eup %10736  ;;  %v16027_v36 = vadd.f32 %v6255_v8, %v5417_v34  ;;  %v4087_v16 = vadd.f32 1.0, %v10735_v9  ;;  %10756 = vpow2.f32 %v8176_v45  ;;  %v8604_v11 = vadd.f32 %v8603_v42, %v8602_v44  ;;  %v8605_v6 = vpop.f32.mrb[222].mxu0  ;;  %8659 = vmatpush3.bf16.msra.mxu0 %v8975_v47  ;;  %v17227_v47 = vld [vmem:[#allocation61_spill] sm:$0xff] }
 0x534   : > { %v10739_v2 = vpop.eup %10738  ;;  %v16033_v24 = vadd.f32 %v6219_v1, %v5430_v61  ;;  %v4100_v49 = vadd.f32 1.0, %v10737_v63  ;;  %10758 = vpow2.f32 %v8177_v12  ;;  %v8606_v45 = vpop.f32.mrb[223].mxu0  ;;  %v16040_v28 = vadd.f32 %v17226_v7, %v15691_v56  ;;  %8660 = vmatprep.subr.bf16.mxu0 %v8978_v26  ;;  %v8981_v12 = vld [vmem:[%s16440_s5 + $0x2a0] sm:$0xff]   ;;  %v8984_v9 = vld [vmem:[%s16440_s5 + $0x2e8] sm:$0xff]  }
 0x535   : > { %v10741_v41 = vpop.eup %10740  ;;  %10760 = vrcp.f32 %v4087_v16  ;;  %v4101_v50 = vadd.f32 1.0, %v10739_v2  ;;  %8681 = vmatpush3.bf16.msra.mxu1 %v8977_v40  ;;  %v16048_v8 = vadd.f32 %v8604_v11, %v7426_v43  ;;  %v16052_v46 = vadd.f32 %v17227_v47, %v15694_v3  ;;  %v8983_v44 = vld [vmem:[%s16440_s5 + $0x228] sm:$0xff]   ;;  %v8988_v45 = vld [vmem:[%s16440_s5 + $0x2f0] sm:$0xff]  }
 0x536   : > { %v10743_v31 = vpop.eup %10742  ;;  %10762 = vrcp.f32 %v4100_v49  ;;  %v4114_v52 = vadd.f32 1.0, %v10741_v41  ;;  %8682 = vmatprep.subr.bf16.mxu1 %v8980_v20  ;;  %v8190_v43 = vmul.f32 -1.442695, %v16040_v28  ;;  %v17228_v20 = vld [vmem:[#allocation37_spill] sm:$0xff]  ;;  %v8986_v49 = vld [vmem:[%s16440_s5 + $0x270] sm:$0xff]   ;;  %v16081_v7 = vadd.f32 %v15535_v37, %v15691_v56 }
 0x537   : > { %v10745_v34 = vpop.eup %10744  ;;  %10764 = vrcp.f32 %v4101_v50  ;;  %v4115_v13 = vadd.f32 1.0, %v10743_v31  ;;  %8661 = vmatpush3.bf16.msra.mxu0 %v8979_v22  ;;  %v16063_v42 = vadd.f32 %v17228_v20, %v15691_v56  ;;  %v8985_v2 = vld [vmem:[%s16440_s5 + $0x2a8] sm:$0xff]   ;;  %v8191_v41 = vmul.f32 -1.442695, %v16052_v46  ;;  %v17229_v50 = vld [vmem:[#allocation63_spill] sm:$0xff]  ;;  %v8987_v37 = vld [vmem:[%s16440_s5 + $0x230] sm:$0xff]  }
 0x538   : > { %v10747_v1 = vpop.eup %10746  ;;  %10766 = vrcp.f32 %v4114_v52  ;;  %v4128_v61 = vadd.f32 1.0, %v10745_v34  ;;  %8662 = vmatprep.subr.bf16.mxu0 %v8982_v14  ;;  %v16074_v22 = vadd.f32 %v17229_v50, %v15694_v3 }
 0x539   : > { %v10749_v40 = vpop.eup %10748  ;;  %10768 = vrcp.f32 %v4115_v13  ;;  %v4129_v26 = vadd.f32 1.0, %v10747_v1  ;;  %8683 = vmatpush3.bf16.msra.mxu1 %v8981_v12  ;;  %v16085_v12 = vadd.f32 %v15539_v35, %v15694_v3  ;;  %v17230_v13 = vld [vmem:[#allocation65_spill] sm:$0xff] }
 0x53a   : > { %v10751_v63 = vpop.eup %10750  ;;  %10770 = vrcp.f32 %v4128_v61  ;;  %v4142_v16 = vadd.f32 1.0, %v10749_v40  ;;  %8684 = vmatprep.subr.bf16.mxu1 %v8984_v9  ;;  %v16089_v47 = vadd.f32 %v17230_v13, %v15691_v56  ;;  %v17231_v9 = vld [vmem:[#allocation66_spill] sm:$0xff]  ;;  %v8204_v40 = vmul.f32 -1.442695, %v16063_v42 }
 0x53b   : > { %v10753_v11 = vpop.eup %10752  ;;  %10772 = vrcp.f32 %v4129_v26  ;;  %v4143_v6 = vadd.f32 1.0, %v10751_v63  ;;  %v16093_v1 = vadd.f32 %v17231_v9, %v15694_v3  ;;  %8663 = vmatpush3.bf16.msra.mxu0 %v8983_v44  ;;  %v8989_v26 = vld [vmem:[%s16440_s5 + $0x2b0] sm:$0xff]   ;;  %v8990_v63 = vld [vmem:[%s16440_s5 + $0x278] sm:$0xff]   ;;  %v8205_v20 = vmul.f32 -1.442695, %v16074_v22 }
 0x53c   : > { %v10755_v31 = vpop.eup %10754  ;;  %10774 = vrcp.f32 %v4142_v16  ;;  %v4156_v52 = vadd.f32 1.0, %v10753_v11  ;;  %8664 = vmatprep.subr.bf16.mxu0 %v8986_v49  ;;  %v17232_v11 = vld [vmem:[#allocation67_spill] sm:$0xff]  ;;  %v8232_v13 = vmul.f32 -1.442695, %v16089_v47 }
 0x53d   : > { %v10757_v14 = vpop.eup %10756  ;;  %10776 = vrcp.f32 %v4143_v6  ;;  %v4157_v34 = vadd.f32 1.0, %v10755_v31  ;;  %8685 = vmatpush3.bf16.msra.mxu1 %v8985_v2  ;;  %v16108_v6 = vadd.f32 %v17232_v11, %v15691_v56  ;;  %v8992_v2 = vld [vmem:[%s16440_s5 + $0x2f8] sm:$0xff]   ;;  %v8218_v31 = vmul.f32 -1.442695, %v16081_v7 }
 0x53e   : > { %v10759_v61 = vpop.eup %10758  ;;  %10778 = vrcp.f32 %v4156_v52  ;;  %v4170_v35 = vadd.f32 1.0, %v10757_v14  ;;  %8686 = vmatprep.subr.bf16.mxu1 %v8988_v45  ;;  %v8219_v52 = vmul.f32 -1.442695, %v16085_v12  ;;  %v8233_v45 = vmul.f32 -1.442695, %v16093_v1  ;;  %v8991_v9 = vld [vmem:[%s16440_s5 + $0x238] sm:$0xff]  }
 0x53f   : > { %v10761_v44 = vpop.eup %10760  ;;  %10780 = vrcp.f32 %v4157_v34  ;;  %v4171_v16 = vadd.f32 1.0, %v10759_v61  ;;  %8665 = vmatpush3.bf16.msra.mxu0 %v8987_v37  ;;  %v8994_v37 = vld [vmem:[%s16440_s5 + $0x340] sm:$0xff]  }
 0x540   : > { %v10763_v49 = vpop.eup %10762  ;;  %v5431_v50 = vmul.f32 %v10761_v44, %v15848_v0  ;;  %10782 = vrcp.f32 %v4170_v35  ;;  %v17233_v44 = vld [vmem:[#allocation68_spill] sm:$0xff]  ;;  %8666 = vmatprep.subr.bf16.mxu0 %v8990_v63 }
 0x541   : > { %v10765_v14 = vpop.eup %10764  ;;  %v5444_v34 = vmul.f32 %v10763_v49, %v15853_v29  ;;  %10784 = vrcp.f32 %v4171_v16  ;;  %v16126_v11 = vadd.f32 %v17233_v44, %v15694_v3  ;;  %8687 = vmatpush3.bf16.msra.mxu1 %v8989_v26  ;;  %v8993_v29 = vld [vmem:[%s16440_s5 + $0x2b8] sm:$0xff]  }
 0x542   : > { %v10767_v61 = vpop.eup %10766  ;;  %v6257_v0 = vadd.f32 %v16027_v36, %v5431_v50  ;;  %v5445_v35 = vmul.f32 %v10765_v14, %v15866_v53  ;;  %10786 = vpow2.f32 %v8190_v43  ;;  %v8246_v43 = vmul.f32 -1.442695, %v16108_v6  ;;  %8688 = vmatprep.subr.bf16.mxu1 %v8992_v2  ;;  %v17234_v50 = vld [vmem:[#allocation12_spill] sm:$0xff] }
 0x543   : > { %v10769_v16 = vpop.eup %10768  ;;  %v6221_v36 = vadd.f32 %v16033_v24, %v5444_v34  ;;  %v5458_v53 = vmul.f32 %v10767_v61, %v15877_v38  ;;  %10788 = vpow2.f32 %v8191_v41  ;;  %v16140_v14 = vadd.f32 %v17234_v50, %v15691_v56  ;;  %v17235_v38 = vld [vmem:[#allocation69_spill] sm:$0xff]  ;;  %8667 = vmatpush3.bf16.msra.mxu0 %v8991_v9 }
 0x544   : > { %v10771_v49 = vpop.eup %10770  ;;  %v6258_v26 = vadd.f32 %v6257_v0, %v5445_v35  ;;  %v5459_v63 = vmul.f32 %v10769_v16, %v15883_v62  ;;  %10790 = vpow2.f32 %v8204_v40  ;;  %v16145_v24 = vadd.f32 %v17235_v38, %v15694_v3  ;;  %v17236_v62 = vld [vmem:[#allocation70_spill] sm:$0xff]  ;;  %8696 = vmatprep.subr.bf16.mxu0 %v8994_v37 }
 0x545   : > { %v10773_v44 = vpop.eup %10772  ;;  %v6222_v59 = vadd.f32 %v6221_v36, %v5458_v53  ;;  %v5472_v5 = vmul.f32 %v10771_v49, %v15889_v4  ;;  %10792 = vpow2.f32 %v8205_v20  ;;  %v16150_v40 = vadd.f32 %v17236_v62, %v15691_v56  ;;  %8689 = vmatpush3.bf16.msra.mxu1 %v8993_v29  ;;  %v17238_v62 = vld [vmem:[#allocation15_spill] sm:$0xff] }
 0x546   : > { %v10775_v41 = vpop.eup %10774  ;;  %v6259_v2 = vadd.f32 %v6258_v26, %v5459_v63  ;;  %v5473_v34 = vmul.f32 %v10773_v44, %v15894_v25  ;;  %10794 = vpow2.f32 %v8218_v31  ;;  %v8247_v20 = vmul.f32 -1.442695, %v16126_v11 }
 0x547   : > { %v10777_v61 = vpop.eup %10776  ;;  %v6223_v0 = vadd.f32 %v6222_v59, %v5472_v5  ;;  %v5486_v4 = vmul.f32 %v10775_v41, %v15915_v18  ;;  %10796 = vpow2.f32 %v8219_v52  ;;  %v8260_v25 = vmul.f32 -1.442695, %v16140_v14 }
 0x548   : > { %v10779_v35 = vpop.eup %10778  ;;  %v6260_v9 = vadd.f32 %v6259_v2, %v5473_v34  ;;  %v5487_v16 = vmul.f32 %v10777_v61, %v15931_v51  ;;  %10798 = vpow2.f32 %v8232_v13  ;;  %v8261_v29 = vmul.f32 -1.442695, %v16145_v24 }
 0x549   : > { %v10781_v31 = vpop.eup %10780  ;;  %v6224_v36 = vadd.f32 %v6223_v0, %v5486_v4  ;;  %v5500_v53 = vmul.f32 %v10779_v35, %v15953_v10  ;;  %10800 = vpow2.f32 %v8233_v45  ;;  %v8274_v52 = vmul.f32 -1.442695, %v16150_v40 }
 0x54a   : > { %v10783_v5 = vpop.eup %10782  ;;  %v6261_v59 = vadd.f32 %v6260_v9, %v5487_v16  ;;  %v5501_v18 = vmul.f32 %v10781_v31, %v15960_v39  ;;  %10802 = vpow2.f32 %v8246_v43  ;;  %v16172_v61 = vadd.f32 %v17238_v62, %v15691_v56  ;;  %v17239_v31 = vld [vmem:[#allocation72_spill] sm:$0xff] }
 0x54b   : > { %v10785_v37 = vpop.eup %10784  ;;  %v6225_v49 = vadd.f32 %v6224_v36, %v5500_v53  ;;  %v5514_v51 = vmul.f32 %v10783_v5, %v15969_v27  ;;  %10804 = vpow2.f32 %v8247_v20  ;;  %v17237_v27 = vld [vmem:[#allocation71_spill] sm:$0xff]  ;;  %v16177_v36 = vadd.f32 %v17239_v31, %v15694_v3  ;;  %v17240_v31 = vld [vmem:[#allocation73_spill] sm:$0xff] }
 0x54c   : > { %v10787_v13 = vpop.eup %10786  ;;  %v6262_v26 = vadd.f32 %v6261_v59, %v5501_v18  ;;  %v5515_v63 = vmul.f32 %v10785_v37, %v15981_v57  ;;  %10806 = vpow2.f32 %v8260_v25  ;;  %v16168_v2 = vadd.f32 %v17237_v27, %v15694_v3 }
 0x54d   : > { %v10789_v10 = vpop.eup %10788  ;;  %v16162_v45 = vadd.f32 %v6225_v49, %v5514_v51  ;;  %v4184_v50 = vadd.f32 1.0, %v10787_v13  ;;  %10808 = vpow2.f32 %v8261_v29  ;;  %v8288_v59 = vmul.f32 -1.442695, %v16172_v61 }
 0x54e   : > { %v10791_v44 = vpop.eup %10790  ;;  %v16164_v39 = vadd.f32 %v6262_v26, %v5515_v63  ;;  %v4185_v43 = vadd.f32 1.0, %v10789_v10  ;;  %10810 = vpow2.f32 %v8274_v52  ;;  %v8275_v25 = vmul.f32 -1.442695, %v16168_v2 }
 0x54f   : > { %v10793_v38 = vpop.eup %10792  ;;  %10812 = vrcp.f32 %v4184_v50  ;;  %v4198_v41 = vadd.f32 1.0, %v10791_v44  ;;  %v16182_v18 = vadd.f32 %v15638_v17, %v15691_v56  ;;  %v16186_v49 = vadd.f32 %v15646_v60, %v15694_v3 }
 0x550   : > { %v10795_v34 = vpop.eup %10794  ;;  %10814 = vrcp.f32 %v4185_v43  ;;  %v4199_v57 = vadd.f32 1.0, %v10793_v38  ;;  %v16190_v51 = vadd.f32 %v15653_v21, %v15691_v56  ;;  %v16194_v10 = vadd.f32 %v15657_v23, %v15694_v3 }
 0x551   : > { %v10797_v0 = vpop.eup %10796  ;;  %10816 = vrcp.f32 %v4198_v41  ;;  %v4212_v4 = vadd.f32 1.0, %v10795_v34  ;;  %v8624_v53 = vpop.f32.mrb[224].mxu0  ;;  %v8289_v60 = vmul.f32 -1.442695, %v16177_v36  ;;  %v16199_v38 = vadd.f32 %v15671_v32, %v15691_v56 }
 0x552   : > { %v10799_v20 = vpop.eup %10798  ;;  %10818 = vrcp.f32 %v4199_v57  ;;  %v4213_v35 = vadd.f32 1.0, %v10797_v0  ;;  %v8625_v13 = vpop.f32.mrb[225].mxu0  ;;  %v16203_v34 = vadd.f32 %v15675_v54, %v15694_v3  ;;  %v8302_v0 = vmul.f32 -1.442695, %v16182_v18 }
 0x553   : > { %v10801_v9 = vpop.eup %10800  ;;  %10820 = vrcp.f32 %v4212_v4  ;;  %v4226_v16 = vadd.f32 1.0, %v10799_v20  ;;  %v8626_v17 = vadd.f32 %v8625_v13, %v8624_v53  ;;  %v8627_v50 = vpop.f32.mrb[226].mxu0  ;;  %v8303_v4 = vmul.f32 -1.442695, %v16186_v49 }
 0x554   : > { %v10803_v29 = vpop.eup %10802  ;;  %10822 = vrcp.f32 %v4213_v35  ;;  %v4227_v5 = vadd.f32 1.0, %v10801_v9  ;;  %v8628_v21 = vpop.f32.mrb[227].mxu0  ;;  %v8316_v35 = vmul.f32 -1.442695, %v16190_v51  ;;  %v8317_v9 = vmul.f32 -1.442695, %v16194_v10 }
 0x555   : > { %v10805_v52 = vpop.eup %10804  ;;  %10824 = vrcp.f32 %v4226_v16  ;;  %v4240_v37 = vadd.f32 1.0, %v10803_v29  ;;  %v7506_v23 = vadd.f32 %v8626_v17, %v16048_v8  ;;  %v8330_v8 = vmul.f32 -1.442695, %v16199_v38 }
 0x556   : > { %v10807_v26 = vpop.eup %10806  ;;  %10826 = vrcp.f32 %v4227_v5  ;;  %v4241_v63 = vadd.f32 1.0, %v10805_v52  ;;  %v16215_v53 = vadd.f32 %v17240_v31, %v15691_v56  ;;  %v8331_v52 = vmul.f32 -1.442695, %v16203_v34 }
 0x557   : > { %v10809_v44 = vpop.eup %10808  ;;  %10828 = vrcp.f32 %v4240_v37  ;;  %v4254_v43 = vadd.f32 1.0, %v10807_v26  ;;  %v17241_v26 = vld [vmem:[#allocation29_spill] sm:$0xff]  ;;  %v16244_v31 = vadd.f32 %v15920_v55, %v7506_v23 }
 0x558   : > { %v10811_v41 = vpop.eup %10810  ;;  %10830 = vrcp.f32 %v4241_v63  ;;  %v4255_v27 = vadd.f32 1.0, %v10809_v44  ;;  %v16224_v63 = vadd.f32 %v17241_v26, %v15694_v3 }
 0x559   : > { %v10813_v57 = vpop.eup %10812  ;;  %10832 = vrcp.f32 %v4254_v43  ;;  %v4268_v62 = vadd.f32 1.0, %v10811_v41 }
 0x55a   : > { %v10815_v20 = vpop.eup %10814  ;;  %v5528_v32 = vmul.f32 %v10813_v57, %v16040_v28  ;;  %10834 = vrcp.f32 %v4255_v27  ;;  %v17243_v27 = vld [vmem:[#allocation30_spill] sm:$0xff] }
 0x55b   : > { %v10817_v16 = vpop.eup %10816  ;;  %v5529_v54 = vmul.f32 %v10815_v20, %v16052_v46  ;;  %10836 = vrcp.f32 %v4268_v62  ;;  %v8345_v20 = vmul.f32 -1.442695, %v16224_v63 }
 0x55c   : > { %v10819_v29 = vpop.eup %10818  ;;  %v6227_v5 = vadd.f32 %v16162_v45, %v5528_v32  ;;  %v5542_v28 = vmul.f32 %v10817_v16, %v16063_v42  ;;  %10838 = vpow2.f32 %v8275_v25  ;;  %v17242_v42 = vld [vmem:[#allocation6_spill] sm:$0xff] }
 0x55d   : > { %v10821_v37 = vpop.eup %10820  ;;  %v6264_v13 = vadd.f32 %v16164_v39, %v5529_v54  ;;  %v5543_v46 = vmul.f32 %v10819_v29, %v16074_v22  ;;  %10840 = vpow2.f32 %v8288_v59  ;;  %v16229_v45 = vadd.f32 %v17242_v42, %v15691_v56 }
 0x55e   : > { %v10823_v17 = vpop.eup %10822  ;;  %v6228_v50 = vadd.f32 %v6227_v5, %v5542_v28  ;;  %v5556_v44 = vmul.f32 %v10821_v37, %v16081_v7  ;;  %10842 = vpow2.f32 %v8289_v60  ;;  %v8344_v22 = vmul.f32 -1.442695, %v16215_v53 }
 0x55f   : > { %v10825_v25 = vpop.eup %10824  ;;  %v6265_v43 = vadd.f32 %v6264_v13, %v5543_v46  ;;  %v5557_v39 = vmul.f32 %v10823_v17, %v16085_v12  ;;  %10844 = vpow2.f32 %v8302_v0  ;;  %v16236_v7 = vadd.f32 %v17243_v27, %v15694_v3  ;;  %v17245_v27 = vld [vmem:[#allocation11_spill] sm:$0xff] }
 0x560   : > { %v10827_v59 = vpop.eup %10826  ;;  %v6229_v21 = vadd.f32 %v6228_v50, %v5556_v44  ;;  %v5570_v41 = vmul.f32 %v10825_v25, %v16089_v47  ;;  %10846 = vpow2.f32 %v8303_v4  ;;  %v8358_v16 = vmul.f32 -1.442695, %v16229_v45 }
 0x561   : > { %v10829_v60 = vpop.eup %10828  ;;  %v6266_v57 = vadd.f32 %v6265_v43, %v5557_v39  ;;  %v5571_v62 = vmul.f32 %v10827_v59, %v16093_v1  ;;  %10848 = vpow2.f32 %v8316_v35  ;;  %v8359_v5 = vmul.f32 -1.442695, %v16236_v7 }
 0x562   : > { %v10831_v12 = vpop.eup %10830  ;;  %v6230_v0 = vadd.f32 %v6229_v21, %v5570_v41  ;;  %v5584_v32 = vmul.f32 %v10829_v60, %v16108_v6  ;;  %10850 = vpow2.f32 %v8317_v9  ;;  %v17244_v21 = vld [vmem:[#allocation38_spill] sm:$0xff]  ;;  %v16256_v60 = vadd.f32 %v17245_v27, %v15694_v3 }
 0x563   : > { %v10833_v47 = vpop.eup %10832  ;;  %v6267_v4 = vadd.f32 %v6266_v57, %v5571_v62  ;;  %v5585_v54 = vmul.f32 %v10831_v12, %v16126_v11  ;;  %10852 = vpow2.f32 %v8330_v8  ;;  %v16252_v41 = vadd.f32 %v17244_v21, %v15691_v56 }
 0x564   : > { %v10835_v29 = vpop.eup %10834  ;;  %v6231_v1 = vadd.f32 %v6230_v0, %v5584_v32  ;;  %v5598_v35 = vmul.f32 %v10833_v47, %v16140_v14  ;;  %10854 = vpow2.f32 %v8331_v52  ;;  %v16264_v12 = vadd.f32 %v15757_v30, %v15694_v3 }
 0x565   : > { %v10837_v28 = vpop.eup %10836  ;;  %v6268_v6 = vadd.f32 %v6267_v4, %v5585_v54  ;;  %v5599_v9 = vmul.f32 %v10835_v29, %v16145_v24  ;;  %10856 = vpow2.f32 %v8344_v22  ;;  %v16272_v29 = vadd.f32 %v15773_v19, %v15694_v3 }
 0x566   : > { %v10839_v37 = vpop.eup %10838  ;;  %v6232_v13 = vadd.f32 %v6231_v1, %v5598_v35  ;;  %v5612_v11 = vmul.f32 %v10837_v28, %v16150_v40  ;;  %10858 = vpow2.f32 %v8345_v20  ;;  %v16260_v20 = vadd.f32 %v15752_v58, %v15691_v56 }
 0x567   : > { %v10841_v8 = vpop.eup %10840  ;;  %v6269_v55 = vadd.f32 %v6268_v6, %v5599_v9  ;;  %v4269_v23 = vadd.f32 1.0, %v10839_v37  ;;  %10860 = vpow2.f32 %v8358_v16  ;;  %v17246_v16 = vld [vmem:[#allocation17_spill] sm:$0xff]  ;;  %v8372_v30 = vmul.f32 -1.442695, %v16252_v41 }
 0x568   : > { %v10843_v46 = vpop.eup %10842  ;;  %v6233_v26 = vadd.f32 %v6232_v13, %v5612_v11  ;;  %v4282_v14 = vadd.f32 1.0, %v10841_v8  ;;  %10862 = vpow2.f32 %v8359_v5  ;;  %v16268_v47 = vadd.f32 %v17246_v16, %v15691_v56  ;;  %v17247_v11 = vld [vmem:[#allocation39_spill] sm:$0xff] }
 0x569   : > { %v10845_v52 = vpop.eup %10844  ;;  %10864 = vrcp.f32 %v4269_v23  ;;  %v4283_v17 = vadd.f32 1.0, %v10843_v46  ;;  %v8373_v35 = vmul.f32 -1.442695, %v16256_v60  ;;  %v8386_v6 = vmul.f32 -1.442695, %v16260_v20 }
 0x56a   : > { %v10847_v50 = vpop.eup %10846  ;;  %10866 = vrcp.f32 %v4282_v14  ;;  %v4296_v24 = vadd.f32 1.0, %v10845_v52  ;;  %v8387_v9 = vmul.f32 -1.442695, %v16264_v12  ;;  %v8400_v19 = vmul.f32 -1.442695, %v16268_v47  ;;  %v17248_v52 = vld [vmem:[#allocation40_spill] sm:$0xff] }
 0x56b   : > { %v10849_v44 = vpop.eup %10848  ;;  %10868 = vrcp.f32 %v4283_v17  ;;  %v4297_v42 = vadd.f32 1.0, %v10847_v50  ;;  %v16282_v8 = vadd.f32 %v17247_v11, %v15691_v56  ;;  %v8401_v14 = vmul.f32 -1.442695, %v16272_v29 }
 0x56c   : > { %v10851_v25 = vpop.eup %10850  ;;  %10870 = vrcp.f32 %v4296_v24  ;;  %v4310_v40 = vadd.f32 1.0, %v10849_v44  ;;  %v16288_v17 = vadd.f32 %v17248_v52, %v15694_v3  ;;  %v17249_v44 = vld [vmem:[#allocation41_spill] sm:$0xff] }
 0x56d   : > { %v10853_v43 = vpop.eup %10852  ;;  %10872 = vrcp.f32 %v4297_v42  ;;  %v4311_v39 = vadd.f32 1.0, %v10851_v25  ;;  %v16293_v42 = vadd.f32 %v17249_v44, %v15691_v56 }
 0x56e   : > { %v10855_v22 = vpop.eup %10854  ;;  %10874 = vrcp.f32 %v4310_v40  ;;  %v4324_v59 = vadd.f32 1.0, %v10853_v43  ;;  %v17250_v43 = vld [vmem:[#allocation42_spill] sm:$0xff] }
 0x56f   : > { %v10857_v57 = vpop.eup %10856  ;;  %10876 = vrcp.f32 %v4311_v39  ;;  %v4325_v62 = vadd.f32 1.0, %v10855_v22  ;;  %v16298_v39 = vadd.f32 %v17250_v43, %v15694_v3  ;;  %v8428_v3 = vmul.f32 -1.442695, %v16293_v42 }
 0x570   : > { %v10859_v0 = vpop.eup %10858  ;;  %10878 = vrcp.f32 %v4324_v59  ;;  %v4338_v32 = vadd.f32 1.0, %v10857_v57 }
 0x571   : > { %v10861_v4 = vpop.eup %10860  ;;  %10880 = vrcp.f32 %v4325_v62  ;;  %v4339_v54 = vadd.f32 1.0, %v10859_v0  ;;  %v8429_v16 = vmul.f32 -1.442695, %v16298_v39 }
 0x572   : > { %v10863_v58 = vpop.eup %10862  ;;  %10882 = vrcp.f32 %v4338_v32  ;;  %v4352_v1 = vadd.f32 1.0, %v10861_v4 }
 0x573   : > { %v10865_v5 = vpop.eup %10864  ;;  %10884 = vrcp.f32 %v4339_v54  ;;  %v4353_v28 = vadd.f32 1.0, %v10863_v58 }
 0x574   : > { %v10867_v37 = vpop.eup %10866  ;;  %v5613_v13 = vmul.f32 %v10865_v5, %v16168_v2  ;;  %10886 = vrcp.f32 %v4352_v1 }
 0x575   : > { %v10869_v23 = vpop.eup %10868  ;;  %v5626_v46 = vmul.f32 %v10867_v37, %v16172_v61  ;;  %10888 = vrcp.f32 %v4353_v28 }
 0x576   : > { %v10871_v50 = vpop.eup %10870  ;;  %v6270_v24 = vadd.f32 %v6269_v55, %v5613_v13  ;;  %v5627_v2 = vmul.f32 %v10869_v23, %v16177_v36  ;;  %10890 = vpow2.f32 %v8372_v30  ;;  %v8414_v36 = vmul.f32 -1.442695, %v16282_v8 }
 0x577   : > { %v10873_v25 = vpop.eup %10872  ;;  %v6234_v40 = vadd.f32 %v6233_v26, %v5626_v46  ;;  %v5640_v61 = vmul.f32 %v10871_v50, %v16182_v18  ;;  %10892 = vpow2.f32 %v8373_v35  ;;  %v8415_v26 = vmul.f32 -1.442695, %v16288_v17 }
 0x578   : > { %v10875_v22 = vpop.eup %10874  ;;  %v6271_v59 = vadd.f32 %v6270_v24, %v5627_v2  ;;  %v5641_v55 = vmul.f32 %v10873_v25, %v16186_v49  ;;  %10894 = vpow2.f32 %v8386_v6 }
 0x579   : > { %v10877_v21 = vpop.eup %10876  ;;  %v6235_v27 = vadd.f32 %v6234_v40, %v5640_v61  ;;  %v5654_v56 = vmul.f32 %v10875_v22, %v16190_v51  ;;  %10896 = vpow2.f32 %v8387_v9 }
 0x57a   : > { %v10879_v18 = vpop.eup %10878  ;;  %v6272_v57 = vadd.f32 %v6271_v59, %v5641_v55  ;;  %v5655_v62 = vmul.f32 %v10877_v21, %v16194_v10  ;;  %10898 = vpow2.f32 %v8400_v19 }
 0x57b   : > { %v10881_v0 = vpop.eup %10880  ;;  %v6236_v32 = vadd.f32 %v6235_v27, %v5654_v56  ;;  %v5668_v49 = vmul.f32 %v10879_v18, %v16199_v38  ;;  %10900 = vpow2.f32 %v8401_v14 }
 0x57c   : > { %v10883_v4 = vpop.eup %10882  ;;  %v6273_v54 = vadd.f32 %v6272_v57, %v5655_v62  ;;  %v5669_v51 = vmul.f32 %v10881_v0, %v16203_v34  ;;  %10902 = vpow2.f32 %v8414_v36 }
 0x57d   : > { %v10885_v58 = vpop.eup %10884  ;;  %v6237_v1 = vadd.f32 %v6236_v32, %v5668_v49  ;;  %v5682_v30 = vmul.f32 %v10883_v4, %v16215_v53  ;;  %10904 = vpow2.f32 %v8415_v26 }
 0x57e   : > { %v10887_v10 = vpop.eup %10886  ;;  %v6274_v35 = vadd.f32 %v6273_v54, %v5669_v51  ;;  %v5683_v5 = vmul.f32 %v10885_v58, %v16224_v63  ;;  %10906 = vpow2.f32 %v8428_v3 }
 0x57f   : > { %v10889_v28 = vpop.eup %10888  ;;  %v6238_v38 = vadd.f32 %v6237_v1, %v5682_v30  ;;  %v5696_v6 = vmul.f32 %v10887_v10, %v16229_v45  ;;  %10908 = vpow2.f32 %v8429_v16 }
 0x580   : > { %v10891_v9 = vpop.eup %10890  ;;  %v6275_v37 = vadd.f32 %v6274_v35, %v5683_v5  ;;  %v5697_v34 = vmul.f32 %v10889_v28, %v16236_v7 }
 0x581   : > { %v10893_v13 = vpop.eup %10892  ;;  %v6239_v19 = vadd.f32 %v6238_v38, %v5696_v6  ;;  %v4366_v11 = vadd.f32 1.0, %v10891_v9 }
 0x582   : > { %v10895_v23 = vpop.eup %10894  ;;  %v6276_v53 = vadd.f32 %v6275_v37, %v5697_v34  ;;  %v4367_v46 = vadd.f32 1.0, %v10893_v13 }
 0x583   : > { %v10897_v14 = vpop.eup %10896  ;;  %10910 = vrcp.f32 %v4366_v11  ;;  %v4380_v52 = vadd.f32 1.0, %v10895_v23 }
 0x584   : > { %v10899_v63 = vpop.eup %10898  ;;  %10912 = vrcp.f32 %v4367_v46  ;;  %v4381_v50 = vadd.f32 1.0, %v10897_v14 }
 0x585   : > { %v10901_v24 = vpop.eup %10900  ;;  %10914 = vrcp.f32 %v4380_v52  ;;  %v4394_v45 = vadd.f32 1.0, %v10899_v63  ;;  %v5769_v63 = vld [vmem:[#allocation2 + $0x8] sm:$0x3f] }
 0x586   : > { %v10903_v2 = vpop.eup %10902  ;;  %10916 = vrcp.f32 %v4381_v50  ;;  %v4395_v44 = vadd.f32 1.0, %v10901_v24 }
 0x587   : > { %v10905_v25 = vpop.eup %10904  ;;  %10918 = vrcp.f32 %v4394_v45  ;;  %v4408_v7 = vadd.f32 1.0, %v10903_v2 }
 0x588   : > { %v10907_v40 = vpop.eup %10906  ;;  %10920 = vrcp.f32 %v4395_v44  ;;  %v4409_v61 = vadd.f32 1.0, %v10905_v25  ;;  %v17253_v25 = vld [vmem:[#allocation25_spill] sm:$0xff] }
 0x589   : > { %v10909_v43 = vpop.eup %10908  ;;  %10922 = vrcp.f32 %v4408_v7  ;;  %v4422_v22 = vadd.f32 1.0, %v10907_v40  ;;  %v17254_v40 = vld [vmem:[#allocation26_spill] sm:$0xff] }
 0x58a   : > { %10924 = vrcp.f32 %v4409_v61  ;;  %v4423_v59 = vadd.f32 1.0, %v10909_v43  ;;  %v17255_v43 = vld [vmem:[#allocation23_spill] sm:$0xff] }
 0x58b   : > { %10926 = vrcp.f32 %v4422_v22 }
 0x58c   : > { %10928 = vrcp.f32 %v4423_v59  ;;  %v17256_v59 = vld [vmem:[#allocation24_spill] sm:$0xff] }
 0x58d   : > { %v10911_v55 = vpop.eup %10910 }
 0x58e   : > { %v10913_v36 = vpop.eup %10912  ;;  %v5710_v21 = vmul.f32 %v10911_v55, %v16252_v41 }
 0x58f   : > { %v10915_v27 = vpop.eup %10914  ;;  %v5711_v56 = vmul.f32 %v10913_v36, %v16256_v60 }
 0x590   : > { %v10917_v26 = vpop.eup %10916  ;;  %v6240_v18 = vadd.f32 %v6239_v19, %v5710_v21  ;;  %v5724_v57 = vmul.f32 %v10915_v27, %v16260_v20 }
 0x591   : > { %v10919_v62 = vpop.eup %10918  ;;  %v6277_v3 = vadd.f32 %v6276_v53, %v5711_v56  ;;  %v5725_v0 = vmul.f32 %v10917_v26, %v16264_v12  ;;  %v8995_v56 = vld [vmem:[%s16440_s5 + $0x300] sm:$0xff]   ;;  %v8996_v26 = vld [vmem:[%s16440_s5 + $0x348] sm:$0xff]  }
 0x592   : > { %v10921_v32 = vpop.eup %10920  ;;  %v6241_v49 = vadd.f32 %v6240_v18, %v5724_v57  ;;  %v5738_v16 = vmul.f32 %v10919_v62, %v16268_v47  ;;  %v8997_v57 = vld [vmem:[%s16440_s5 + $0x308] sm:$0xff]   ;;  %v8998_v62 = vld [vmem:[%s16440_s5 + $0x350] sm:$0xff]  }
 0x593   : > { %v10923_v4 = vpop.eup %10922  ;;  %v6278_v54 = vadd.f32 %v6277_v3, %v5725_v0  ;;  %v5739_v51 = vmul.f32 %v10921_v32, %v16272_v29  ;;  %v8999_v3 = vld [vmem:[%s16440_s5 + $0x310] sm:$0xff]   ;;  %v9000_v0 = vld [vmem:[%s16440_s5 + $0x358] sm:$0xff]  }
 0x594   : > { %v10925_v41 = vpop.eup %10924  ;;  %v6242_v58 = vadd.f32 %v6241_v49, %v5738_v16  ;;  %v5752_v60 = vmul.f32 %v10923_v4, %v16282_v8  ;;  %v9001_v32 = vld [vmem:[%s16440_s5 + $0x318] sm:$0xff]   ;;  %v9002_v49 = vld [vmem:[%s16440_s5 + $0x360] sm:$0xff]   ;;  %v9004_v4 = vld [vmem:[%s16440_s5 + $0x368] sm:$0xff]  }
 0x595   : > { %v10927_v1 = vpop.eup %10926  ;;  %v6279_v30 = vadd.f32 %v6278_v54, %v5739_v51  ;;  %v5753_v20 = vmul.f32 %v10925_v41, %v16288_v17  ;;  %v9003_v16 = vld [vmem:[%s16440_s5 + $0x320] sm:$0xff]   ;;  %v9005_v54 = vld [vmem:[%s16440_s5 + $0x328] sm:$0xff]   ;;  %v9006_v51 = vld [vmem:[%s16440_s5 + $0x370] sm:$0xff]  }
 0x596   : > { %v10929_v10 = vpop.eup %10928  ;;  %v6243_v35 = vadd.f32 %v6242_v58, %v5752_v60  ;;  %v5766_v12 = vmul.f32 %v10927_v1, %v16293_v42  ;;  %v9007_v41 = vld [vmem:[%s16440_s5 + $0x330] sm:$0xff]   ;;  %v9008_v58 = vld [vmem:[%s16440_s5 + $0x378] sm:$0xff]   ;;  %v17258_v1 = vld [vmem:[#allocation13_spill] sm:$0xff] }
 0x597   : > { %v6280_v5 = vadd.f32 %v6279_v30, %v5753_v20  ;;  %v5767_v28 = vmul.f32 %v10929_v10, %v16298_v39  ;;  %v17251_v39 = vcombine.low %v15926_v33, %v15940_v48  ;;  %v17257_v33 = vld [vmem:[#allocation62_spill] sm:$0xff]  ;;  %v9009_v60 = vld [vmem:[%s16440_s5 + $0x338] sm:$0xff]  }
 0x598   : > { %v6244_v47 = vadd.f32 %v6243_v35, %v5766_v12 }
 0x599   : > { %v6281_v38 = vadd.f32 %v6280_v5, %v5767_v28  ;;  %v6382_v14 = vrot.slane %v17251_v39, %v17220_v15 }
 0x59a   : > { %v6245_v6 = vrot.slane %v6244_v47, 4 }
 0x59b   : > { %v6282_v9 = vrot.slane %v6281_v38, 4 }
 0x59c   : > { %v6246_v29 = vadd.f32 %v6245_v6, %v6244_v47 }
 0x59d   : > { %v6283_v37 = vadd.f32 %v6282_v9, %v6281_v38 }
 0x59e   : > { %v6247_v34 = vrot.slane %v6246_v29, 2 }
 0x59f   : > { %v6284_v13 = vrot.slane %v6283_v37, 2 }
 0x5a0   : > { %v6248_v8 = vadd.f32 %v6247_v34, %v6246_v29 }
 0x5a1   : > { %v6285_v19 = vadd.f32 %v6284_v13, %v6283_v37 }
 0x5a2   : > { %v6249_v11 = vrot.slane %v6248_v8, 1 }
 0x5a3   : > { %v6286_v23 = vrot.slane %v6285_v19, 1 }
 0x5a4   : > { %v6250_v17 = vadd.f32 %v6249_v11, %v6248_v8 }
 0x5a5   : > { %v6287_v53 = vadd.f32 %v6286_v23, %v6285_v19 }
 0x5a7   : > { %v6353_v46 = vcombine.low %v6250_v17, %v6287_v53 }
 0x5a9   : > { %v6374_v42 = vrot.slane %v6353_v46, %v17220_v15 }
 0x5ab   : > { %v6389_v52 = vrot.slane %v6374_v42, %v17220_v15 }
 0x5ad   : > { %v6390_v50 = vcombine.low %v6382_v14, %v6389_v52 }
 0x5af   : > { %v6394_v24 = vadd.f32 %v6390_v50, %v5769_v63 }
 0x5b1   : > { %6400 = vst.msk [vmem:[#allocation2 + $0x8] sm:$0x3f] %vm15909_vm4, %v6394_v24 }
 0x5b8   : > { %v6405_v2 = vld [vmem:[#allocation2 + $0x8] sm:$0x3f] }
 0x5b9   : > { %v6407_v44 = vmul.f32 0.00390625, %v6405_v2 }
 0x5bb   : > { %v6449_v7 = vrot.slane %v6407_v44, %v17253_v25  ;;  %v6457_v61 = vrot.slane %v6407_v44, %v17254_v40  ;;  %v6445_v22 = vrot.slane %v6407_v44, %v17255_v43  ;;  %v6453_v55 = vrot.slane %v6407_v44, %v17256_v59 }
 0x5bc   : > { %v6465_v48 = vrot.slane %v6407_v44, %v17257_v33  ;;  %v6461_v30 = vrot.slane %v6407_v44, %v17258_v1 }
 0x5bd   : > { %v6489_v36 = vpack.c.bf16 %v6449_v7, %v6449_v7  ;;  %v6491_v15 = vpack.c.bf16 %v6457_v61, %v6457_v61  ;;  %v6488_v21 = vpack.c.bf16 %v6445_v22, %v6445_v22  ;;  %v6490_v27 = vpack.c.bf16 %v6453_v55, %v6453_v55 }
 0x5be   : > { %v6493_v18 = vpack.c.bf16 %v6465_v48, %v6465_v48  ;;  %v6492_v20 = vpack.c.bf16 %v6461_v30, %v6461_v30 }
 0x5bf   : > { %7583 = vmatprep.mubr.bf16.mxu0 %v6489_v36  ;;  %7623 = vmatprep.mubr.bf16.mxu1 %v6491_v15 }
 0x5c0   : > { %7584 = vmatmul.mubr.bf16.vlgmr.msra.gmra.mrb[228].mxu0 %v6488_v21  ;;  %7624 = vmatmul.mubr.bf16.vlgmr.msra.gmra.mrb[12].mxu1 %v6490_v27 }
 0x5c1   : > { %8697 = vmatpush3.bf16.msra.mxu0 %v8995_v56  ;;  %7663 = vmatprep.mubr.bf16.mxu0 %v6493_v18 }
 0x5c2   : > { %8698 = vmatprep.subr.bf16.mxu0 %v8996_v26 }
 0x5c5   : > { %8699 = vmatpush3.bf16.msra.mxu0 %v8997_v57 }
 0x5c6   : > { %8700 = vmatprep.subr.bf16.mxu0 %v8998_v62 }
 0x5c9   : > { %8701 = vmatpush3.bf16.msra.mxu0 %v8999_v3 }
 0x5ca   : > { %8702 = vmatprep.subr.bf16.mxu0 %v9000_v0 }
 0x5cd   : > { %8703 = vmatpush3.bf16.msra.mxu0 %v9001_v32 }
 0x5ce   : > { %8704 = vmatprep.subr.bf16.mxu0 %v9002_v49 }
 0x5d1   : > { %8705 = vmatpush3.bf16.msra.mxu0 %v9003_v16 }
 0x5d2   : > { %8706 = vmatprep.subr.bf16.mxu0 %v9004_v4 }
 0x5d5   : > { %8707 = vmatpush3.bf16.msra.mxu0 %v9005_v54 }
 0x5d6   : > { %8708 = vmatprep.subr.bf16.mxu0 %v9006_v51 }
 0x5d9   : > { %8709 = vmatpush3.bf16.msra.mxu0 %v9007_v41 }
 0x5da   : > { %8710 = vmatprep.subr.bf16.mxu0 %v9008_v58 }
 0x5dd   : > { %8711 = vmatpush3.bf16.msra.mxu0 %v9009_v60 }
 0x5e0   : > { %7664 = vmatmul.mubr.bf16.vlgmr.msra.gmra.mrb[232].mxu0 %v6492_v20 }
 0x693   : > { %v8668_v10 = vpop.f32.mrb[228].mxu0  ;;  %v8690_v35 = vpop.f32.mrb[12].mxu1 }
 0x694   : > { %v8669_v12 = vpop.f32.mrb[229].mxu0  ;;  %v8691_v5 = vpop.f32.mrb[13].mxu1 }
 0x695   : > { %v8670_v28 = vadd.f32 %v8669_v12, %v8668_v10  ;;  %v8692_v47 = vadd.f32 %v8691_v5, %v8690_v35  ;;  %v8671_v38 = vpop.f32.mrb[230].mxu0  ;;  %v8693_v6 = vpop.f32.mrb[14].mxu1 }
 0x696   : > { %v8672_v9 = vpop.f32.mrb[231].mxu0  ;;  %v8694_v29 = vpop.f32.mrb[15].mxu1 }
 0x697   : > { %v7586_v37 = vadd.f32 %v8670_v28, %v16244_v31 }
 0x699   : > { %v7626_v34 = vadd.f32 %v8692_v47, %v7586_v37 }
 0x6b3   : > { %v8712_v13 = vpop.f32.mrb[232].mxu0 }
 0x6b4   : > { %v8713_v8 = vpop.f32.mrb[233].mxu0 }
 0x6b5   : > { %v8714_v19 = vadd.f32 %v8713_v8, %v8712_v13  ;;  %v8715_v11 = vpop.f32.mrb[234].mxu0 }
 0x6b6   : > { %v8716_v23 = vpop.f32.mrb[235].mxu0 }
 0x6b7   : > { %v7666_v17 = vadd.f32 %v8714_v19, %v7626_v34 }
 0x6b9   : > { %7671 = vst [vmem:[%s293_s21] sm:$0x1] %v7666_v17 }
 0x6ba   : > { %10945 = shalt.err (!%p10942_p5)
}
 0x6bb   : > { %s10946_s17 = scalar_lea.hbm %s16388_s8, 16  ;;  %s10950_s20 = scalar_lea.hbm %s16442_s7, 32 }
 0x6bc   : > { %p10947_p6 = scmp.ne.s32.totalorder %s16388_s8, %s10946_s17  ;;  %p10951_p10 = scmp.lt.u32.totalorder %s16388_s8, %s16442_s7 }
 0x6bd   : > { %p10952_p11 = scmp.lt.u32.totalorder %s10950_s20, %s10946_s17  ;;  %p10954_p13 = scmp.lt.u32.totalorder %s10946_s17, %s16388_s8 }
 0x6be   : > { %p10948_p7 = pnand %p10947_p6, %p11097_p4 }
 0x6bf   : > { %p10953_p12 = por %p10952_p11, %p10951_p10 }
 0x6c0   : > { %p10949_p9 = pneg %p10948_p7 }
 0x6c1   : > { %p10955_p0 = por %p10954_p13, %p10953_p12 }
 0x6c3   : > { %p10956_p1 = pnand %p10955_p0, %p10949_p9 }
 0x6c5   : > { %10959 = shalt.err (!%p10956_p1)
}
 0x6c6   : > { %8758 = dma.vmem_to_hbm [thread:$0]  (%p11097_p4), %s16390_s22, 16, %s16388_s8, %s7673_s10  }
 0x6c7 PF: > { %p8764_p2 = scmp.ge.s32.totalorder %s11010_s29, 2  ;;  %s7697_s30 = sand.u32 1, %s10990_s24  }
 0x6c8   : > { %s7698_s12 = scalar_lea.sflag [#allocation4], %s7697_s30 }
 0x6c9   : > { %p8761_p3 = pnand %p8764_p2, %p11104_p8 }
 0x6cb   : > { %10985 = dma.done.wait (!%p8761_p3), %s7698_s12, 16  }
 0x6cc   : > { %10987 = vsyncadd (!%p8761_p3), %s7698_s12, 4294967280  ;;  %s20_s29 = sadd.s32 1, %s11010_s29   ;;  %s17259_s24 = smov %s10994_s25 }
 0x6cd   : > { %p17_p5 = scmp.ge.s32.totalorder %s20_s29, 4   ;;  %s17260_s25 = smov %s10998_s26 }
 0x6ce   : > { %s17261_s26 = smov %s11110_s14  ;;  %s17262_s27 = smov %s11006_s28 }
 0x6cf   : > { %s17263_s28 = smov %s17265_s9  ;;  %19 = sbr.rel (!%p17_p5) target bundleno = 4 (0x4), region = 91 }
 0x6d6   :  { %7702 = vsyncpa [#allocation4], 1 }
 0x6d7   :  { %7704 = vsyncpa [#allocation4 + $0x1], 1 }

</bundles_post_ra>
